<compile_context>
chip_gen: v7x
topology: tpu7x:2x2x1
jax: 0.10.0
libtpu: 0.0.40
codegen_flags: <defaults>
</compile_context>

<pallas_src>
import functools
import math

import jax
import jax.numpy as jnp
from jax.experimental import pallas as pl
from jax.experimental.pallas import tpu as pltpu

# ---- module hyper-parameters (scaled-down "SMALL" version of the original
#      1024*block -> 4096 -> 1024 -> block**2 stack; structure is identical) ----
SEGMENT = 2
BLOCK = SEGMENT ** 2            # 4
T = 8                           # number of timesteps (step_mode='m')
SCALE = 8
D_IN = (1024 * BLOCK) // SCALE  # 512   (original: 4096)
H1 = 4096 // SCALE              # 512   (original: 4096)
H2 = 1024 // SCALE              # 128   (original: 1024)
OUT = BLOCK ** 2                # 16
B = 256                         # total batch processed by one pallas_call
BM = 128                        # batch tile (multiple of 16 for bf16 tiling;
                                # 128 already fills the v5e MXU)

# spikingjelly LIFNode defaults
TAU = 2.0
V_TH = 1.0
V_RESET = 0.0
BN_EPS = 1e-5


def _round_up(n, m):
    return ((n + m - 1) // m) * m


# --------------------------------------------------------------------------
# Pallas kernel: full forward pass for one batch tile.
# --------------------------------------------------------------------------
def fcn_kernel(x_ref, w1_ref, sh1_ref, w2_ref, sh2_ref, w3_ref, b3_ref,
               o_ref, s1_buf, *, n_steps):
    bm = x_ref.shape[0]
    inv_tau = jnp.float32(1.0 / TAU)

    # ---- Layer 1 (time-invariant preactivation): bf16 x bf16 -> f32 on MXU.
    # BN scale is pre-folded into the w1 columns; only the shift remains.
    a1 = jnp.dot(x_ref[...], w1_ref[...], preferred_element_type=jnp.float32)
    a1 = a1 + sh1_ref[...]                                   # [bm, H1] f32

    # ---- LIF #1 recurrence (pure VPU): T tile-aligned bf16 spike stores. ----
    v1 = jnp.zeros_like(a1)
    for t in range(n_steps):                                 # static unroll
        v1 = v1 + (a1 - v1) * inv_tau
        spk = v1 >= V_TH
        s1_buf[pl.ds(t * bm, bm), :] = spk.astype(jnp.bfloat16)
        v1 = jnp.where(spk, V_RESET, v1)

    # ---- Layer 2: ONE fat [T*bm, H1] @ [H1, H2] matmul (bf16 operands). ----
    a2_all = jnp.dot(s1_buf[...], w2_ref[...],
                     preferred_element_type=jnp.float32)     # [T*bm, H2] f32
    a2_all = a2_all + sh2_ref[...]

    # ---- LIF #2 recurrence; accumulate the spike count (1/T folded in w3). ----
    v2 = jnp.zeros((bm, a2_all.shape[1]), jnp.float32)
    s2_sum = jnp.zeros_like(v2)
    for t in range(n_steps):
        a2 = a2_all[t * bm:(t + 1) * bm, :]                  # static slice
        v2 = v2 + (a2 - v2) * inv_tau
        spk = v2 >= V_TH
        s2_sum = s2_sum + spk.astype(jnp.float32)
        v2 = jnp.where(spk, V_RESET, v2)

    # ---- Layer 3: spike counts @ (w3 / T) + b3. ----
    out = jnp.dot(s2_sum, w3_ref[...], preferred_element_type=jnp.float32)
    o_ref[...] = out + b3_ref[...]                           # [bm, OUT]


# --------------------------------------------------------------------------
# One-time parameter preprocessing (hoisted out of the per-call path).
# --------------------------------------------------------------------------
def prepare_params(params):
    (w1, b1, g1, be1, m1, var1,
     w2, b2, g2, be2, m2, var2,
     w3, b3) = params

    # Eval-mode BN folded into weight columns + a per-channel shift:
    #   BN(x@w + b) = x@(w*sc) + (be + (b - m)*sc)
    sc1 = g1 * jax.lax.rsqrt(var1 + BN_EPS)
    sh1 = be1 + (b1 - m1) * sc1
    sc2 = g2 * jax.lax.rsqrt(var2 + BN_EPS)
    sh2 = be2 + (b2 - m2) * sc2

    row = lambda a: a.reshape(1, -1).astype(jnp.float32)
    return dict(
        w1=(w1 * sc1[None, :]).astype(jnp.bfloat16),     # [D_IN, H1] bf16
        sh1=row(sh1),                                    # [1, H1]    f32
        w2=(w2 * sc2[None, :]).astype(jnp.bfloat16),     # [H1, H2]   bf16
        sh2=row(sh2),                                    # [1, H2]    f32
        w3=(w3 * (1.0 / T)).astype(jnp.float32),         # [H2, OUT]  f32 (1/T folded)
        b3=row(b3),                                      # [1, OUT]   f32
    )


def fcn_forward(x, folded, *, block_batch=BM):
    """x: [B, BLOCK, 16, 8] (NCHW-style); returns [B, OUT] float32."""
    bsz = x.shape[0]
    xf = x.reshape(bsz, -1).astype(jnp.bfloat16)          # x.view(B, -1), bf16

    bm = min(block_batch, _round_up(bsz, 16))              # keep bf16 tile alignment
    padded = _round_up(bsz, bm)
    if padded != bsz:
        xf = jnp.pad(xf, ((0, padded - bsz), (0, 0)))
    n_tiles = padded // bm

    w1, sh1, w2, sh2, w3, b3 = (folded["w1"], folded["sh1"], folded["w2"],
                                folded["sh2"], folded["w3"], folded["b3"])
    d_in, h1 = w1.shape
    h2, n_out = w3.shape

    out = pl.pallas_call(
        functools.partial(fcn_kernel, n_steps=T),
        out_shape=jax.ShapeDtypeStruct((padded, n_out), jnp.float32),
        grid=(n_tiles,),
        in_specs=[
            pl.BlockSpec((bm, d_in),   lambda i: (i, 0)),   # x tile (pipelined)
            pl.BlockSpec((d_in, h1),   lambda i: (0, 0)),   # w1 (VMEM-resident)
            pl.BlockSpec((1, h1),      lambda i: (0, 0)),   # sh1
            pl.BlockSpec((h1, h2),     lambda i: (0, 0)),   # w2
            pl.BlockSpec((1, h2),      lambda i: (0, 0)),   # sh2
            pl.BlockSpec((h2, n_out),  lambda i: (0, 0)),   # w3 (1/T folded)
            pl.BlockSpec((1, n_out),   lambda i: (0, 0)),   # b3
        ],
        out_specs=pl.BlockSpec((bm, n_out), lambda i: (i, 0)),
        scratch_shapes=[pltpu.VMEM((T * bm, h1), jnp.bfloat16)],
        compiler_params=pltpu.CompilerParams(
            dimension_semantics=("parallel",)),             # v7x: 2 TCs
    )(xf, w1, sh1, w2, sh2, w3, b3)
    return out[:bsz]


# --------------------------------------------------------------------------
# Pure-JAX reference using the SAME folded/bf16 parameters, so the comparison
# isolates Pallas-kernel correctness (grid, scratch, LIF loops, matmuls) from
# the intended bf16 quantization of the weights/activations.
# --------------------------------------------------------------------------
def fcn_reference(x, folded, *, n_steps=T):
    xf = x.reshape(x.shape[0], -1).astype(jnp.bfloat16)

    def lif(seq):                                           # seq: [T, B, C] f32
        def step(v, a):
            v = v + (a - v) * (1.0 / TAU)
            spk = v >= V_TH
            v = jnp.where(spk, V_RESET, v)
            return v, spk.astype(jnp.float32)
        _, spikes = jax.lax.scan(step, jnp.zeros_like(seq[0]), seq)
        return spikes

    a1 = (jnp.dot(xf, folded["w1"], preferred_element_type=jnp.float32)
          + folded["sh1"])
    a1_seq = jnp.broadcast_to(a1, (n_steps,) + a1.shape)    # input repeated T times
    s1 = lif(a1_seq)
    a2 = (jnp.dot(s1.astype(jnp.bfloat16), folded["w2"],
                  preferred_element_type=jnp.float32) + folded["sh2"])
    s2 = lif(a2)
    out = (jnp.dot(s2.sum(axis=0), folded["w3"],
                   preferred_element_type=jnp.float32) + folded["b3"])
    return out


# --------------------------------------------------------------------------
# Deterministic parameter init (PyTorch-style uniform for Linear, synthetic BN).
# --------------------------------------------------------------------------
def init_params(key):
    ks = jax.random.split(key, 8)

    def linear(kw, kb, fan_in, fan_out):
        bound = 1.0 / math.sqrt(fan_in)
        w = jax.random.uniform(kw, (fan_in, fan_out), jnp.float32, -bound, bound)
        b = jax.random.uniform(kb, (fan_out,), jnp.float32, -bound, bound)
        return w, b

    def bn(k, c):
        k1, k2, k3, k4 = jax.random.split(k, 4)
        gamma = jax.random.uniform(k1, (c,), jnp.float32, 0.5, 1.5)
        beta = 0.1 * jax.random.normal(k2, (c,), jnp.float32)
        mean = 0.1 * jax.random.normal(k3, (c,), jnp.float32)
        var = jax.random.uniform(k4, (c,), jnp.float32, 0.5, 1.5)
        return gamma, beta, mean, var

    w1, b1 = linear(ks[0], ks[1], D_IN, H1)
    g1, be1, m1, var1 = bn(ks[2], H1)
    w2, b2 = linear(ks[3], ks[4], H1, H2)
    g2, be2, m2, var2 = bn(ks[5], H2)
    w3, b3 = linear(ks[6], ks[7], H2, OUT)
    return (w1, b1, g1, be1, m1, var1,
            w2, b2, g2, be2, m2, var2,
            w3, b3)


if __name__ == "__main__":
    key = jax.random.PRNGKey(0)
    k_param, k_x = jax.random.split(key)
    params = init_params(k_param)
    folded = prepare_params(params)        # one-time weight preprocessing

    # NCHW-style input; 4 * 16 * 8 = 512 = D_IN features after flattening.
    x = jax.random.normal(k_x, (B, BLOCK, 16, 8), jnp.float32)

    fwd = jax.jit(fcn_forward)
    out = jax.block_until_ready(fwd(x, folded))
    ref = jax.block_until_ready(jax.jit(fcn_reference)(x, folded))

    assert out.shape == (B, OUT) and out.dtype == jnp.float32
    assert bool(jnp.all(jnp.isfinite(out)))
    # Loose tolerance: tiny matmul accumulation-order differences near the spike
    # threshold can flip individual spikes, perturbing outputs by ~1e-2 each.
    max_diff = float(jnp.max(jnp.abs(out - ref)))
    assert max_diff < 0.25, f"kernel/reference mismatch: {max_diff}"

    print("KERNEL_OK")
</pallas_src>

<mosaic_0001>
module attributes {stable_mosaic.version = 11 : i64} {
  func.func @fcn_kernel(%arg0: i32, %arg1: memref<128x512xbf16, #tpu.memory_space<vmem>>, %arg2: memref<512x512xbf16, #tpu.memory_space<vmem>>, %arg3: memref<1x512xf32, #tpu.memory_space<vmem>>, %arg4: memref<512x128xbf16, #tpu.memory_space<vmem>>, %arg5: memref<1x128xf32, #tpu.memory_space<vmem>>, %arg6: memref<128x16xf32, #tpu.memory_space<vmem>>, %arg7: memref<1x16xf32, #tpu.memory_space<vmem>>, %arg8: memref<128x16xf32, #tpu.memory_space<vmem>>, %arg9: memref<1024x512xbf16, #tpu.memory_space<vmem>>) attributes {dimension_semantics = [#tpu.dimension_semantics<parallel>], iteration_bounds = array<i64: 2>, scalar_prefetch = 0 : i64, scratch_operands = 1 : i64, tpu.core_type = #tpu.core_type<tc>, window_params = [{transform_indices = @transform_0, window_bounds = array<i64: 128, 512>}, {pipeline_mode = #tpu.pipeline_mode<synchronous>, transform_indices = @transform_1, window_bounds = array<i64: 512, 512>}, {pipeline_mode = #tpu.pipeline_mode<synchronous>, transform_indices = @transform_2, window_bounds = array<i64: 1, 512>}, {pipeline_mode = #tpu.pipeline_mode<synchronous>, transform_indices = @transform_3, window_bounds = array<i64: 512, 128>}, {pipeline_mode = #tpu.pipeline_mode<synchronous>, transform_indices = @transform_4, window_bounds = array<i64: 1, 128>}, {pipeline_mode = #tpu.pipeline_mode<synchronous>, transform_indices = @transform_5, window_bounds = array<i64: 128, 16>}, {pipeline_mode = #tpu.pipeline_mode<synchronous>, transform_indices = @transform_6, window_bounds = array<i64: 1, 16>}, {transform_indices = @transform_7, window_bounds = array<i64: 128, 16>}]} {
    %c0 = arith.constant 0 : index
    %c0_0 = arith.constant 0 : index
    %0 = vector.load %arg1[%c0, %c0_0] : memref<128x512xbf16, #tpu.memory_space<vmem>>, vector<128x512xbf16>
    %c0_1 = arith.constant 0 : index
    %c0_2 = arith.constant 0 : index
    %1 = vector.load %arg2[%c0_1, %c0_2] : memref<512x512xbf16, #tpu.memory_space<vmem>>, vector<512x512xbf16>
    %cst = arith.constant dense<0.000000e+00> : vector<128x512xf32>
    %2 = tpu.matmul %0, %1, %cst {dimension_numbers = #tpu.dot_dimension_numbers<[1], [0], [0], [1], [0, 0, 1, 1], [], []>} : vector<128x512xbf16>, vector<512x512xbf16>, vector<128x512xf32> -> vector<128x512xf32>
    %c0_3 = arith.constant 0 : index
    %c0_4 = arith.constant 0 : index
    %3 = vector.load %arg3[%c0_3, %c0_4] : memref<1x512xf32, #tpu.memory_space<vmem>>, vector<1x512xf32>
    %4 = vector.broadcast %3 : vector<1x512xf32> to vector<128x512xf32>
    %5 = arith.addf %2, %4 : vector<128x512xf32>
    %cst_5 = arith.constant 0.000000e+00 : f32
    %6 = vector.broadcast %cst_5 : f32 to vector<128x512xf32>
    %7 = arith.subf %5, %6 : vector<128x512xf32>
    %cst_6 = arith.constant 5.000000e-01 : f32
    %8 = vector.broadcast %cst_6 : f32 to vector<128x512xf32>
    %9 = arith.mulf %7, %8 : vector<128x512xf32>
    %10 = arith.addf %6, %9 : vector<128x512xf32>
    %cst_7 = arith.constant 1.000000e+00 : f32
    %11 = vector.broadcast %cst_7 : f32 to vector<128x512xf32>
    %12 = arith.cmpf oge, %10, %11 : vector<128x512xf32>
    %13 = arith.extui %12 : vector<128x512xi1> to vector<128x512xi32>
    %14 = arith.sitofp %13 : vector<128x512xi32> to vector<128x512xf32>
    %15 = arith.truncf %14 : vector<128x512xf32> to vector<128x512xbf16>
    %c0_8 = arith.constant 0 : index
    %c0_9 = arith.constant 0 : index
    %16 = vector.load %arg9[%c0_8, %c0_9] : memref<1024x512xbf16, #tpu.memory_space<vmem>>, vector<128x512xbf16>
    tpu.vector_store %arg9[%c0_8, %c0_9], %15 {strides = array<i32>} : memref<1024x512xbf16, #tpu.memory_space<vmem>>, vector<128x512xbf16>,
    %cst_10 = arith.constant 0.000000e+00 : f32
    %17 = vector.broadcast %cst_10 : f32 to vector<128x512xf32>
    %18 = arith.select %12, %17, %10 : vector<128x512xi1>, vector<128x512xf32>
    %19 = arith.subf %5, %18 : vector<128x512xf32>
    %cst_11 = arith.constant 5.000000e-01 : f32
    %20 = vector.broadcast %cst_11 : f32 to vector<128x512xf32>
    %21 = arith.mulf %19, %20 : vector<128x512xf32>
    %22 = arith.addf %18, %21 : vector<128x512xf32>
    %cst_12 = arith.constant 1.000000e+00 : f32
    %23 = vector.broadcast %cst_12 : f32 to vector<128x512xf32>
    %24 = arith.cmpf oge, %22, %23 : vector<128x512xf32>
    %25 = arith.extui %24 : vector<128x512xi1> to vector<128x512xi32>
    %26 = arith.sitofp %25 : vector<128x512xi32> to vector<128x512xf32>
    %27 = arith.truncf %26 : vector<128x512xf32> to vector<128x512xbf16>
    %c128 = arith.constant 128 : index
    %c0_13 = arith.constant 0 : index
    %28 = vector.load %arg9[%c128, %c0_13] : memref<1024x512xbf16, #tpu.memory_space<vmem>>, vector<128x512xbf16>
    tpu.vector_store %arg9[%c128, %c0_13], %27 {strides = array<i32>} : memref<1024x512xbf16, #tpu.memory_space<vmem>>, vector<128x512xbf16>,
    %cst_14 = arith.constant 0.000000e+00 : f32
    %29 = vector.broadcast %cst_14 : f32 to vector<128x512xf32>
    %30 = arith.select %24, %29, %22 : vector<128x512xi1>, vector<128x512xf32>
    %31 = arith.subf %5, %30 : vector<128x512xf32>
    %cst_15 = arith.constant 5.000000e-01 : f32
    %32 = vector.broadcast %cst_15 : f32 to vector<128x512xf32>
    %33 = arith.mulf %31, %32 : vector<128x512xf32>
    %34 = arith.addf %30, %33 : vector<128x512xf32>
    %cst_16 = arith.constant 1.000000e+00 : f32
    %35 = vector.broadcast %cst_16 : f32 to vector<128x512xf32>
    %36 = arith.cmpf oge, %34, %35 : vector<128x512xf32>
    %37 = arith.extui %36 : vector<128x512xi1> to vector<128x512xi32>
    %38 = arith.sitofp %37 : vector<128x512xi32> to vector<128x512xf32>
    %39 = arith.truncf %38 : vector<128x512xf32> to vector<128x512xbf16>
    %c256 = arith.constant 256 : index
    %c0_17 = arith.constant 0 : index
    %40 = vector.load %arg9[%c256, %c0_17] : memref<1024x512xbf16, #tpu.memory_space<vmem>>, vector<128x512xbf16>
    tpu.vector_store %arg9[%c256, %c0_17], %39 {strides = array<i32>} : memref<1024x512xbf16, #tpu.memory_space<vmem>>, vector<128x512xbf16>,
    %cst_18 = arith.constant 0.000000e+00 : f32
    %41 = vector.broadcast %cst_18 : f32 to vector<128x512xf32>
    %42 = arith.select %36, %41, %34 : vector<128x512xi1>, vector<128x512xf32>
    %43 = arith.subf %5, %42 : vector<128x512xf32>
    %cst_19 = arith.constant 5.000000e-01 : f32
    %44 = vector.broadcast %cst_19 : f32 to vector<128x512xf32>
    %45 = arith.mulf %43, %44 : vector<128x512xf32>
    %46 = arith.addf %42, %45 : vector<128x512xf32>
    %cst_20 = arith.constant 1.000000e+00 : f32
    %47 = vector.broadcast %cst_20 : f32 to vector<128x512xf32>
    %48 = arith.cmpf oge, %46, %47 : vector<128x512xf32>
    %49 = arith.extui %48 : vector<128x512xi1> to vector<128x512xi32>
    %50 = arith.sitofp %49 : vector<128x512xi32> to vector<128x512xf32>
    %51 = arith.truncf %50 : vector<128x512xf32> to vector<128x512xbf16>
    %c384 = arith.constant 384 : index
    %c0_21 = arith.constant 0 : index
    %52 = vector.load %arg9[%c384, %c0_21] : memref<1024x512xbf16, #tpu.memory_space<vmem>>, vector<128x512xbf16>
    tpu.vector_store %arg9[%c384, %c0_21], %51 {strides = array<i32>} : memref<1024x512xbf16, #tpu.memory_space<vmem>>, vector<128x512xbf16>,
    %cst_22 = arith.constant 0.000000e+00 : f32
    %53 = vector.broadcast %cst_22 : f32 to vector<128x512xf32>
    %54 = arith.select %48, %53, %46 : vector<128x512xi1>, vector<128x512xf32>
    %55 = arith.subf %5, %54 : vector<128x512xf32>
    %cst_23 = arith.constant 5.000000e-01 : f32
    %56 = vector.broadcast %cst_23 : f32 to vector<128x512xf32>
    %57 = arith.mulf %55, %56 : vector<128x512xf32>
    %58 = arith.addf %54, %57 : vector<128x512xf32>
    %cst_24 = arith.constant 1.000000e+00 : f32
    %59 = vector.broadcast %cst_24 : f32 to vector<128x512xf32>
    %60 = arith.cmpf oge, %58, %59 : vector<128x512xf32>
    %61 = arith.extui %60 : vector<128x512xi1> to vector<128x512xi32>
    %62 = arith.sitofp %61 : vector<128x512xi32> to vector<128x512xf32>
    %63 = arith.truncf %62 : vector<128x512xf32> to vector<128x512xbf16>
    %c512 = arith.constant 512 : index
    %c0_25 = arith.constant 0 : index
    %64 = vector.load %arg9[%c512, %c0_25] : memref<1024x512xbf16, #tpu.memory_space<vmem>>, vector<128x512xbf16>
    tpu.vector_store %arg9[%c512, %c0_25], %63 {strides = array<i32>} : memref<1024x512xbf16, #tpu.memory_space<vmem>>, vector<128x512xbf16>,
    %cst_26 = arith.constant 0.000000e+00 : f32
    %65 = vector.broadcast %cst_26 : f32 to vector<128x512xf32>
    %66 = arith.select %60, %65, %58 : vector<128x512xi1>, vector<128x512xf32>
    %67 = arith.subf %5, %66 : vector<128x512xf32>
    %cst_27 = arith.constant 5.000000e-01 : f32
    %68 = vector.broadcast %cst_27 : f32 to vector<128x512xf32>
    %69 = arith.mulf %67, %68 : vector<128x512xf32>
    %70 = arith.addf %66, %69 : vector<128x512xf32>
    %cst_28 = arith.constant 1.000000e+00 : f32
    %71 = vector.broadcast %cst_28 : f32 to vector<128x512xf32>
    %72 = arith.cmpf oge, %70, %71 : vector<128x512xf32>
    %73 = arith.extui %72 : vector<128x512xi1> to vector<128x512xi32>
    %74 = arith.sitofp %73 : vector<128x512xi32> to vector<128x512xf32>
    %75 = arith.truncf %74 : vector<128x512xf32> to vector<128x512xbf16>
    %c640 = arith.constant 640 : index
    %c0_29 = arith.constant 0 : index
    %76 = vector.load %arg9[%c640, %c0_29] : memref<1024x512xbf16, #tpu.memory_space<vmem>>, vector<128x512xbf16>
    tpu.vector_store %arg9[%c640, %c0_29], %75 {strides = array<i32>} : memref<1024x512xbf16, #tpu.memory_space<vmem>>, vector<128x512xbf16>,
    %cst_30 = arith.constant 0.000000e+00 : f32
    %77 = vector.broadcast %cst_30 : f32 to vector<128x512xf32>
    %78 = arith.select %72, %77, %70 : vector<128x512xi1>, vector<128x512xf32>
    %79 = arith.subf %5, %78 : vector<128x512xf32>
    %cst_31 = arith.constant 5.000000e-01 : f32
    %80 = vector.broadcast %cst_31 : f32 to vector<128x512xf32>
    %81 = arith.mulf %79, %80 : vector<128x512xf32>
    %82 = arith.addf %78, %81 : vector<128x512xf32>
    %cst_32 = arith.constant 1.000000e+00 : f32
    %83 = vector.broadcast %cst_32 : f32 to vector<128x512xf32>
    %84 = arith.cmpf oge, %82, %83 : vector<128x512xf32>
    %85 = arith.extui %84 : vector<128x512xi1> to vector<128x512xi32>
    %86 = arith.sitofp %85 : vector<128x512xi32> to vector<128x512xf32>
    %87 = arith.truncf %86 : vector<128x512xf32> to vector<128x512xbf16>
    %c768 = arith.constant 768 : index
    %c0_33 = arith.constant 0 : index
    %88 = vector.load %arg9[%c768, %c0_33] : memref<1024x512xbf16, #tpu.memory_space<vmem>>, vector<128x512xbf16>
    tpu.vector_store %arg9[%c768, %c0_33], %87 {strides = array<i32>} : memref<1024x512xbf16, #tpu.memory_space<vmem>>, vector<128x512xbf16>,
    %cst_34 = arith.constant 0.000000e+00 : f32
    %89 = vector.broadcast %cst_34 : f32 to vector<128x512xf32>
    %90 = arith.select %84, %89, %82 : vector<128x512xi1>, vector<128x512xf32>
    %91 = arith.subf %5, %90 : vector<128x512xf32>
    %cst_35 = arith.constant 5.000000e-01 : f32
    %92 = vector.broadcast %cst_35 : f32 to vector<128x512xf32>
    %93 = arith.mulf %91, %92 : vector<128x512xf32>
    %94 = arith.addf %90, %93 : vector<128x512xf32>
    %cst_36 = arith.constant 1.000000e+00 : f32
    %95 = vector.broadcast %cst_36 : f32 to vector<128x512xf32>
    %96 = arith.cmpf oge, %94, %95 : vector<128x512xf32>
    %97 = arith.extui %96 : vector<128x512xi1> to vector<128x512xi32>
    %98 = arith.sitofp %97 : vector<128x512xi32> to vector<128x512xf32>
    %99 = arith.truncf %98 : vector<128x512xf32> to vector<128x512xbf16>
    %c896 = arith.constant 896 : index
    %c0_37 = arith.constant 0 : index
    %100 = vector.load %arg9[%c896, %c0_37] : memref<1024x512xbf16, #tpu.memory_space<vmem>>, vector<128x512xbf16>
    tpu.vector_store %arg9[%c896, %c0_37], %99 {strides = array<i32>} : memref<1024x512xbf16, #tpu.memory_space<vmem>>, vector<128x512xbf16>,
    %c0_38 = arith.constant 0 : index
    %c0_39 = arith.constant 0 : index
    %101 = vector.load %arg9[%c0_38, %c0_39] : memref<1024x512xbf16, #tpu.memory_space<vmem>>, vector<1024x512xbf16>
    %c0_40 = arith.constant 0 : index
    %c0_41 = arith.constant 0 : index
    %102 = vector.load %arg4[%c0_40, %c0_41] : memref<512x128xbf16, #tpu.memory_space<vmem>>, vector<512x128xbf16>
    %cst_42 = arith.constant dense<0.000000e+00> : vector<1024x128xf32>
    %103 = tpu.matmul %101, %102, %cst_42 {dimension_numbers = #tpu.dot_dimension_numbers<[1], [0], [0], [1], [0, 0, 1, 1], [], []>} : vector<1024x512xbf16>, vector<512x128xbf16>, vector<1024x128xf32> -> vector<1024x128xf32>
    %c0_43 = arith.constant 0 : index
    %c0_44 = arith.constant 0 : index
    %104 = vector.load %arg5[%c0_43, %c0_44] : memref<1x128xf32, #tpu.memory_space<vmem>>, vector<1x128xf32>
    %105 = vector.broadcast %104 : vector<1x128xf32> to vector<1024x128xf32>
    %106 = arith.addf %103, %105 : vector<1024x128xf32>
    %cst_45 = arith.constant 0.000000e+00 : f32
    %107 = vector.broadcast %cst_45 : f32 to vector<128x128xf32>
    %cst_46 = arith.constant 0.000000e+00 : f32
    %108 = vector.broadcast %cst_46 : f32 to vector<128x128xf32>
    %109 = vector.extract_strided_slice %106 {offsets = [0, 0], sizes = [128, 128], strides = [1, 1]} : vector<1024x128xf32> to vector<128x128xf32>
    %110 = arith.subf %109, %107 : vector<128x128xf32>
    %cst_47 = arith.constant 5.000000e-01 : f32
    %111 = vector.broadcast %cst_47 : f32 to vector<128x128xf32>
    %112 = arith.mulf %110, %111 : vector<128x128xf32>
    %113 = arith.addf %107, %112 : vector<128x128xf32>
    %cst_48 = arith.constant 1.000000e+00 : f32
    %114 = vector.broadcast %cst_48 : f32 to vector<128x128xf32>
    %115 = arith.cmpf oge, %113, %114 : vector<128x128xf32>
    %116 = arith.extui %115 : vector<128x128xi1> to vector<128x128xi32>
    %117 = arith.sitofp %116 : vector<128x128xi32> to vector<128x128xf32>
    %118 = arith.addf %108, %117 : vector<128x128xf32>
    %cst_49 = arith.constant 0.000000e+00 : f32
    %119 = vector.broadcast %cst_49 : f32 to vector<128x128xf32>
    %120 = arith.select %115, %119, %113 : vector<128x128xi1>, vector<128x128xf32>
    %121 = vector.extract_strided_slice %106 {offsets = [128, 0], sizes = [128, 128], strides = [1, 1]} : vector<1024x128xf32> to vector<128x128xf32>
    %122 = arith.subf %121, %120 : vector<128x128xf32>
    %cst_50 = arith.constant 5.000000e-01 : f32
    %123 = vector.broadcast %cst_50 : f32 to vector<128x128xf32>
    %124 = arith.mulf %122, %123 : vector<128x128xf32>
    %125 = arith.addf %120, %124 : vector<128x128xf32>
    %cst_51 = arith.constant 1.000000e+00 : f32
    %126 = vector.broadcast %cst_51 : f32 to vector<128x128xf32>
    %127 = arith.cmpf oge, %125, %126 : vector<128x128xf32>
    %128 = arith.extui %127 : vector<128x128xi1> to vector<128x128xi32>
    %129 = arith.sitofp %128 : vector<128x128xi32> to vector<128x128xf32>
    %130 = arith.addf %118, %129 : vector<128x128xf32>
    %cst_52 = arith.constant 0.000000e+00 : f32
    %131 = vector.broadcast %cst_52 : f32 to vector<128x128xf32>
    %132 = arith.select %127, %131, %125 : vector<128x128xi1>, vector<128x128xf32>
    %133 = vector.extract_strided_slice %106 {offsets = [256, 0], sizes = [128, 128], strides = [1, 1]} : vector<1024x128xf32> to vector<128x128xf32>
    %134 = arith.subf %133, %132 : vector<128x128xf32>
    %cst_53 = arith.constant 5.000000e-01 : f32
    %135 = vector.broadcast %cst_53 : f32 to vector<128x128xf32>
    %136 = arith.mulf %134, %135 : vector<128x128xf32>
    %137 = arith.addf %132, %136 : vector<128x128xf32>
    %cst_54 = arith.constant 1.000000e+00 : f32
    %138 = vector.broadcast %cst_54 : f32 to vector<128x128xf32>
    %139 = arith.cmpf oge, %137, %138 : vector<128x128xf32>
    %140 = arith.extui %139 : vector<128x128xi1> to vector<128x128xi32>
    %141 = arith.sitofp %140 : vector<128x128xi32> to vector<128x128xf32>
    %142 = arith.addf %130, %141 : vector<128x128xf32>
    %cst_55 = arith.constant 0.000000e+00 : f32
    %143 = vector.broadcast %cst_55 : f32 to vector<128x128xf32>
    %144 = arith.select %139, %143, %137 : vector<128x128xi1>, vector<128x128xf32>
    %145 = vector.extract_strided_slice %106 {offsets = [384, 0], sizes = [128, 128], strides = [1, 1]} : vector<1024x128xf32> to vector<128x128xf32>
    %146 = arith.subf %145, %144 : vector<128x128xf32>
    %cst_56 = arith.constant 5.000000e-01 : f32
    %147 = vector.broadcast %cst_56 : f32 to vector<128x128xf32>
    %148 = arith.mulf %146, %147 : vector<128x128xf32>
    %149 = arith.addf %144, %148 : vector<128x128xf32>
    %cst_57 = arith.constant 1.000000e+00 : f32
    %150 = vector.broadcast %cst_57 : f32 to vector<128x128xf32>
    %151 = arith.cmpf oge, %149, %150 : vector<128x128xf32>
    %152 = arith.extui %151 : vector<128x128xi1> to vector<128x128xi32>
    %153 = arith.sitofp %152 : vector<128x128xi32> to vector<128x128xf32>
    %154 = arith.addf %142, %153 : vector<128x128xf32>
    %cst_58 = arith.constant 0.000000e+00 : f32
    %155 = vector.broadcast %cst_58 : f32 to vector<128x128xf32>
    %156 = arith.select %151, %155, %149 : vector<128x128xi1>, vector<128x128xf32>
    %157 = vector.extract_strided_slice %106 {offsets = [512, 0], sizes = [128, 128], strides = [1, 1]} : vector<1024x128xf32> to vector<128x128xf32>
    %158 = arith.subf %157, %156 : vector<128x128xf32>
    %cst_59 = arith.constant 5.000000e-01 : f32
    %159 = vector.broadcast %cst_59 : f32 to vector<128x128xf32>
    %160 = arith.mulf %158, %159 : vector<128x128xf32>
    %161 = arith.addf %156, %160 : vector<128x128xf32>
    %cst_60 = arith.constant 1.000000e+00 : f32
    %162 = vector.broadcast %cst_60 : f32 to vector<128x128xf32>
    %163 = arith.cmpf oge, %161, %162 : vector<128x128xf32>
    %164 = arith.extui %163 : vector<128x128xi1> to vector<128x128xi32>
    %165 = arith.sitofp %164 : vector<128x128xi32> to vector<128x128xf32>
    %166 = arith.addf %154, %165 : vector<128x128xf32>
    %cst_61 = arith.constant 0.000000e+00 : f32
    %167 = vector.broadcast %cst_61 : f32 to vector<128x128xf32>
    %168 = arith.select %163, %167, %161 : vector<128x128xi1>, vector<128x128xf32>
    %169 = vector.extract_strided_slice %106 {offsets = [640, 0], sizes = [128, 128], strides = [1, 1]} : vector<1024x128xf32> to vector<128x128xf32>
    %170 = arith.subf %169, %168 : vector<128x128xf32>
    %cst_62 = arith.constant 5.000000e-01 : f32
    %171 = vector.broadcast %cst_62 : f32 to vector<128x128xf32>
    %172 = arith.mulf %170, %171 : vector<128x128xf32>
    %173 = arith.addf %168, %172 : vector<128x128xf32>
    %cst_63 = arith.constant 1.000000e+00 : f32
    %174 = vector.broadcast %cst_63 : f32 to vector<128x128xf32>
    %175 = arith.cmpf oge, %173, %174 : vector<128x128xf32>
    %176 = arith.extui %175 : vector<128x128xi1> to vector<128x128xi32>
    %177 = arith.sitofp %176 : vector<128x128xi32> to vector<128x128xf32>
    %178 = arith.addf %166, %177 : vector<128x128xf32>
    %cst_64 = arith.constant 0.000000e+00 : f32
    %179 = vector.broadcast %cst_64 : f32 to vector<128x128xf32>
    %180 = arith.select %175, %179, %173 : vector<128x128xi1>, vector<128x128xf32>
    %181 = vector.extract_strided_slice %106 {offsets = [768, 0], sizes = [128, 128], strides = [1, 1]} : vector<1024x128xf32> to vector<128x128xf32>
    %182 = arith.subf %181, %180 : vector<128x128xf32>
    %cst_65 = arith.constant 5.000000e-01 : f32
    %183 = vector.broadcast %cst_65 : f32 to vector<128x128xf32>
    %184 = arith.mulf %182, %183 : vector<128x128xf32>
    %185 = arith.addf %180, %184 : vector<128x128xf32>
    %cst_66 = arith.constant 1.000000e+00 : f32
    %186 = vector.broadcast %cst_66 : f32 to vector<128x128xf32>
    %187 = arith.cmpf oge, %185, %186 : vector<128x128xf32>
    %188 = arith.extui %187 : vector<128x128xi1> to vector<128x128xi32>
    %189 = arith.sitofp %188 : vector<128x128xi32> to vector<128x128xf32>
    %190 = arith.addf %178, %189 : vector<128x128xf32>
    %cst_67 = arith.constant 0.000000e+00 : f32
    %191 = vector.broadcast %cst_67 : f32 to vector<128x128xf32>
    %192 = arith.select %187, %191, %185 : vector<128x128xi1>, vector<128x128xf32>
    %193 = vector.extract_strided_slice %106 {offsets = [896, 0], sizes = [128, 128], strides = [1, 1]} : vector<1024x128xf32> to vector<128x128xf32>
    %194 = arith.subf %193, %192 : vector<128x128xf32>
    %cst_68 = arith.constant 5.000000e-01 : f32
    %195 = vector.broadcast %cst_68 : f32 to vector<128x128xf32>
    %196 = arith.mulf %194, %195 : vector<128x128xf32>
    %197 = arith.addf %192, %196 : vector<128x128xf32>
    %cst_69 = arith.constant 1.000000e+00 : f32
    %198 = vector.broadcast %cst_69 : f32 to vector<128x128xf32>
    %199 = arith.cmpf oge, %197, %198 : vector<128x128xf32>
    %200 = arith.extui %199 : vector<128x128xi1> to vector<128x128xi32>
    %201 = arith.sitofp %200 : vector<128x128xi32> to vector<128x128xf32>
    %202 = arith.addf %190, %201 : vector<128x128xf32>
    %c0_70 = arith.constant 0 : index
    %c0_71 = arith.constant 0 : index
    %203 = vector.load %arg6[%c0_70, %c0_71] : memref<128x16xf32, #tpu.memory_space<vmem>>, vector<128x16xf32>
    %cst_72 = arith.constant dense<0.000000e+00> : vector<128x16xf32>
    %204 = tpu.matmul %202, %203, %cst_72 {dimension_numbers = #tpu.dot_dimension_numbers<[1], [0], [0], [1], [0, 0, 1, 1], [], []>} : vector<128x128xf32>, vector<128x16xf32>, vector<128x16xf32> -> vector<128x16xf32>
    %c0_73 = arith.constant 0 : index
    %c0_74 = arith.constant 0 : index
    %205 = vector.load %arg7[%c0_73, %c0_74] : memref<1x16xf32, #tpu.memory_space<vmem>>, vector<1x16xf32>
    %206 = vector.broadcast %205 : vector<1x16xf32> to vector<128x16xf32>
    %207 = arith.addf %204, %206 : vector<128x16xf32>
    %c0_75 = arith.constant 0 : index
    %c0_76 = arith.constant 0 : index
    %208 = vector.load %arg8[%c0_75, %c0_76] : memref<128x16xf32, #tpu.memory_space<vmem>>, vector<128x16xf32>
    tpu.vector_store %arg8[%c0_75, %c0_76], %207 {strides = array<i32>} : memref<128x16xf32, #tpu.memory_space<vmem>>, vector<128x16xf32>,
    return
  }
  func.func @transform_0(%arg0: i32) -> (i32, i32) {
    %c0_i32 = arith.constant 0 : i32
    %c0_i32_0 = arith.constant 0 : i32
    return %arg0, %c0_i32 : i32, i32
  }
  func.func @transform_1(%arg0: i32) -> (i32, i32) {
    %c0_i32 = arith.constant 0 : i32
    %c0_i32_0 = arith.constant 0 : i32
    %c0_i32_1 = arith.constant 0 : i32
    return %c0_i32, %c0_i32_0 : i32, i32
  }
  func.func @transform_2(%arg0: i32) -> (i32, i32) {
    %c0_i32 = arith.constant 0 : i32
    %c0_i32_0 = arith.constant 0 : i32
    %c0_i32_1 = arith.constant 0 : i32
    return %c0_i32, %c0_i32_0 : i32, i32
  }
  func.func @transform_3(%arg0: i32) -> (i32, i32) {
    %c0_i32 = arith.constant 0 : i32
    %c0_i32_0 = arith.constant 0 : i32
    %c0_i32_1 = arith.constant 0 : i32
    return %c0_i32, %c0_i32_0 : i32, i32
  }
  func.func @transform_4(%arg0: i32) -> (i32, i32) {
    %c0_i32 = arith.constant 0 : i32
    %c0_i32_0 = arith.constant 0 : i32
    %c0_i32_1 = arith.constant 0 : i32
    return %c0_i32, %c0_i32_0 : i32, i32
  }
  func.func @transform_5(%arg0: i32) -> (i32, i32) {
    %c0_i32 = arith.constant 0 : i32
    %c0_i32_0 = arith.constant 0 : i32
    %c0_i32_1 = arith.constant 0 : i32
    return %c0_i32, %c0_i32_0 : i32, i32
  }
  func.func @transform_6(%arg0: i32) -> (i32, i32) {
    %c0_i32 = arith.constant 0 : i32
    %c0_i32_0 = arith.constant 0 : i32
    %c0_i32_1 = arith.constant 0 : i32
    return %c0_i32, %c0_i32_0 : i32, i32
  }
  func.func @transform_7(%arg0: i32) -> (i32, i32) {
    %c0_i32 = arith.constant 0 : i32
    %c0_i32_0 = arith.constant 0 : i32
    return %arg0, %c0_i32 : i32, i32
  }
}

</mosaic_0001>

<bundles_post_ra>
// kernel: fcn_forward.1
= control target key start
LH: loop header
LB: loop body
LE: loop exit
PB: predicated region body
PF: predicated region fallthrough
CT: control target
= control target key end

     0   :  { %s10768_s24 = smov 0   ;;  %s17265_s0 = inlined_call_operand.vmem [shape: bf16[256,512], index: 0, kind: input, shape index: {}]   ;;  %s17266_s1 = inlined_call_operand.vmem [shape: bf16[512,512], index: 1, kind: input, shape index: {}]   ;;  %s17267_s2 = inlined_call_operand.vmem [shape: f32[1,512], index: 2, kind: input, shape index: {}]   ;;  %s17268_s3 = inlined_call_operand.vmem [shape: bf16[512,128], index: 3, kind: input, shape index: {}]   ;;  %s17269_s4 = inlined_call_operand.vmem [shape: f32[1,128], index: 4, kind: input, shape index: {}]   ;;  %s17270_s5 = inlined_call_operand.vmem [shape: f32[128,16], index: 5, kind: input, shape index: {}]   ;;  %s17271_s6 = inlined_call_operand.vmem [shape: f32[1,16], index: 6, kind: input, shape index: {}]   ;;  %s17272_s7 = inlined_call_operand.vmem [shape: f32[256,16], index: 7, kind: output, shape index: {}]  }
   0x1 LB: > { %s8530_s25 = sadd.s32 4294967295, %s10723_s24   ;;  %p8534_p0 = scmp.ge.s32.totalorder %s10723_s24, 1  ;;  %s10723_s24 = sphi %s10768_s24, %s17_s24  }
   0x2   : > { %p239_p1 = scmp.lt.s32.totalorder %s10723_s24, 3 }
   0x4   : > { %p240_p2 = pnand %p8534_p0, %p239_p1 }
   0x6   : > { %243 = sbr.rel (%p240_p2) target bundleno = 1693 (0x69d), region = 48 }
   0xd   : > { %v10440_v0 = vld [vmem:[%s17266_s1 + $0x4] ss:$16 sps:$4 sm:$0xff]   ;;  %v10442_v1 = vld [vmem:[%s17266_s1 + $0xc] ss:$16 sps:$4 sm:$0xff]   ;;  %v10444_v2 = vld [vmem:[%s17266_s1] ss:$16 sps:$4 sm:$0xff]  }
   0xe   : > { %1268 = vmatprep.subr.bf16.mxu0 %v10440_v0  ;;  %v10445_v3 = vld [vmem:[%s17266_s1 + $0x8] ss:$16 sps:$4 sm:$0xff]   ;;  %1494 = vmatprep.subr.bf16.mxu1 %v10442_v1  ;;  %v10446_v4 = vld [vmem:[%s17266_s1 + $0x24] ss:$16 sps:$4 sm:$0xff]   ;;  %v10448_v5 = vld [vmem:[%s17266_s1 + $0x2c] ss:$16 sps:$4 sm:$0xff]  }
   0xf   : > { %1269 = vmatpush1.bf16.msra.mxu0 %v10444_v2  ;;  %1495 = vmatpush1.bf16.msra.mxu1 %v10445_v3  ;;  %v10450_v6 = vld [vmem:[%s17266_s1 + $0x20] ss:$16 sps:$4 sm:$0xff]   ;;  %v10451_v7 = vld [vmem:[%s17266_s1 + $0x28] ss:$16 sps:$4 sm:$0xff]   ;;  %v10452_v8 = vld [vmem:[%s17266_s1 + $0x44] ss:$16 sps:$4 sm:$0xff]  }
  0x10   : > { %1270 = vmatprep.subr.bf16.mxu0 %v10446_v4  ;;  %1496 = vmatprep.subr.bf16.mxu1 %v10448_v5  ;;  %v10454_v9 = vld [vmem:[%s17266_s1 + $0x4c] ss:$16 sps:$4 sm:$0xff]   ;;  %v10456_v10 = vld [vmem:[%s17266_s1 + $0x40] ss:$16 sps:$4 sm:$0xff]   ;;  %v10457_v11 = vld [vmem:[%s17266_s1 + $0x48] ss:$16 sps:$4 sm:$0xff]  }
  0x11   : > { %v10458_v12 = vld [vmem:[%s17266_s1 + $0x64] ss:$16 sps:$4 sm:$0xff]   ;;  %v10460_v13 = vld [vmem:[%s17266_s1 + $0x6c] ss:$16 sps:$4 sm:$0xff]   ;;  %v10462_v14 = vld [vmem:[%s17266_s1 + $0x60] ss:$16 sps:$4 sm:$0xff]  }
  0x12   : > { %v10463_v15 = vld [vmem:[%s17266_s1 + $0x68] ss:$16 sps:$4 sm:$0xff]   ;;  %v10464_v16 = vld [vmem:[%s17266_s1 + $0x84] ss:$16 sps:$4 sm:$0xff]   ;;  %v10466_v17 = vld [vmem:[%s17266_s1 + $0x8c] ss:$16 sps:$4 sm:$0xff]  }
  0x13   : > { %1271 = vmatpush1.bf16.msra.mxu0 %v10450_v6  ;;  %1497 = vmatpush1.bf16.msra.mxu1 %v10451_v7  ;;  %v10468_v18 = vld [vmem:[%s17266_s1 + $0x80] ss:$16 sps:$4 sm:$0xff]   ;;  %v10469_v19 = vld [vmem:[%s17266_s1 + $0x88] ss:$16 sps:$4 sm:$0xff]   ;;  %v10470_v20 = vld [vmem:[%s17266_s1 + $0xa4] ss:$16 sps:$4 sm:$0xff]  }
  0x14   : > { %1272 = vmatprep.subr.bf16.mxu0 %v10452_v8  ;;  %1498 = vmatprep.subr.bf16.mxu1 %v10454_v9  ;;  %v10472_v21 = vld [vmem:[%s17266_s1 + $0xac] ss:$16 sps:$4 sm:$0xff]   ;;  %v10474_v22 = vld [vmem:[%s17266_s1 + $0xa0] ss:$16 sps:$4 sm:$0xff]   ;;  %v10475_v23 = vld [vmem:[%s17266_s1 + $0xa8] ss:$16 sps:$4 sm:$0xff]  }
  0x15   : > { %v10476_v24 = vld [vmem:[%s17266_s1 + $0xc4] ss:$16 sps:$4 sm:$0xff]   ;;  %v10478_v25 = vld [vmem:[%s17266_s1 + $0xcc] ss:$16 sps:$4 sm:$0xff]   ;;  %v10480_v26 = vld [vmem:[%s17266_s1 + $0xc0] ss:$16 sps:$4 sm:$0xff]  }
  0x16   : > { %v10481_v27 = vld [vmem:[%s17266_s1 + $0xc8] ss:$16 sps:$4 sm:$0xff]   ;;  %v10482_v28 = vld [vmem:[%s17266_s1 + $0xe4] ss:$16 sps:$4 sm:$0xff]   ;;  %v10484_v29 = vld [vmem:[%s17266_s1 + $0xec] ss:$16 sps:$4 sm:$0xff]  }
  0x17   : > { %1273 = vmatpush1.bf16.msra.mxu0 %v10456_v10  ;;  %1499 = vmatpush1.bf16.msra.mxu1 %v10457_v11  ;;  %s8535_s21 = sshll.u32 %s8530_s25, 4  ;;  %v10486_v30 = vld [vmem:[%s17266_s1 + $0xe0] ss:$16 sps:$4 sm:$0xff]   ;;  %v10487_v31 = vld [vmem:[%s17266_s1 + $0xe8] ss:$16 sps:$4 sm:$0xff]  }
  0x18   : > { %1274 = vmatprep.subr.bf16.mxu0 %v10458_v12  ;;  %1500 = vmatprep.subr.bf16.mxu1 %v10460_v13  ;;  %v10488_v32 = vld [vmem:[%s17266_s1 + $0x104] ss:$16 sps:$4 sm:$0xff]   ;;  %v10490_v33 = vld [vmem:[%s17266_s1 + $0x10c] ss:$16 sps:$4 sm:$0xff]   ;;  %p273_p3 = scmp.lt.s32.totalorder %s8535_s21, 31 }
  0x19   : > { %v10492_v34 = vld [vmem:[%s17266_s1 + $0x100] ss:$16 sps:$4 sm:$0xff]   ;;  %v10493_v35 = vld [vmem:[%s17266_s1 + $0x108] ss:$16 sps:$4 sm:$0xff]   ;;  %v10494_v36 = vld [vmem:[%s17266_s1 + $0x124] ss:$16 sps:$4 sm:$0xff]  }
  0x1a   : > { %v10496_v37 = vld [vmem:[%s17266_s1 + $0x12c] ss:$16 sps:$4 sm:$0xff]   ;;  %s19912_s21 = smov (!%p273_p3, %s8535_s21), 31  ;;  %v10498_v38 = vld [vmem:[%s17266_s1 + $0x120] ss:$16 sps:$4 sm:$0xff]  }
  0x1b   : > { %1275 = vmatpush1.bf16.msra.mxu0 %v10462_v14  ;;  %1501 = vmatpush1.bf16.msra.mxu1 %v10463_v15  ;;  %v10499_v39 = vld [vmem:[%s17266_s1 + $0x128] ss:$16 sps:$4 sm:$0xff]   ;;  %v10500_v40 = vld [vmem:[%s17266_s1 + $0x144] ss:$16 sps:$4 sm:$0xff]   ;;  %v10502_v41 = vld [vmem:[%s17266_s1 + $0x14c] ss:$16 sps:$4 sm:$0xff]  }
  0x1c   : > { %1276 = vmatprep.subr.bf16.mxu0 %v10464_v16  ;;  %1502 = vmatprep.subr.bf16.mxu1 %v10466_v17  ;;  %s9376_s27 = sshll.u32 %s19912_s21, 4  ;;  %v10504_v42 = vld [vmem:[%s17266_s1 + $0x140] ss:$16 sps:$4 sm:$0xff]   ;;  %v10505_v43 = vld [vmem:[%s17266_s1 + $0x148] ss:$16 sps:$4 sm:$0xff]   ;;  %s8539_s29 = sshll.u32 %s19912_s21, 3 }
  0x1d   : > { %v10506_v44 = vld [vmem:[%s17266_s1 + $0x164] ss:$16 sps:$4 sm:$0xff]   ;;  %s10919_s12 = scalar_lea.vmem %s17265_s0, %s9376_s27  ;;  %v10508_v45 = vld [vmem:[%s17266_s1 + $0x16c] ss:$16 sps:$4 sm:$0xff]   ;;  %v10510_v46 = vld [vmem:[%s17266_s1 + $0x160] ss:$16 sps:$4 sm:$0xff]   ;;  %s17228_s9 = scalar_lea.vmem %s17272_s7, %s8539_s29 }
  0x1e   : > { %v10511_v47 = vld [vmem:[%s17266_s1 + $0x168] ss:$16 sps:$4 sm:$0xff]   ;;  %v10538_v48 = vld [vmem:[%s10919_s12 + $0x4] ss:$16 sps:$4 sm:$0xff]   ;;  %v10514_v50 = vld [vmem:[%s17266_s1 + $0x18c] ss:$16 sps:$4 sm:$0xff]  }
  0x1f   : > { %1277 = vmatpush1.bf16.msra.mxu0 %v10468_v18  ;;  %1503 = vmatpush1.bf16.msra.mxu1 %v10469_v19  ;;  %v10512_v49 = vld [vmem:[%s17266_s1 + $0x184] ss:$16 sps:$4 sm:$0xff]   ;;  %v10516_v51 = vld [vmem:[%s17266_s1 + $0x180] ss:$16 sps:$4 sm:$0xff]   ;;  %v10517_v52 = vld [vmem:[%s17266_s1 + $0x188] ss:$16 sps:$4 sm:$0xff]  }
  0x20   : > { %1278 = vmatprep.subr.bf16.mxu0 %v10470_v20  ;;  %1504 = vmatprep.subr.bf16.mxu1 %v10472_v21  ;;  %v10518_v53 = vld [vmem:[%s17266_s1 + $0x1a4] ss:$16 sps:$4 sm:$0xff]   ;;  %v10520_v54 = vld [vmem:[%s17266_s1 + $0x1ac] ss:$16 sps:$4 sm:$0xff]   ;;  %v10522_v55 = vld [vmem:[%s17266_s1 + $0x1a0] ss:$16 sps:$4 sm:$0xff]  }
  0x21   : > { %1300 = vmatprep.mubr.bf16.mxu0 %v10538_v48  ;;  %1526 = vmatprep.mubr.bf16.mxu1 %v10538_v48  ;;  %v10523_v56 = vld [vmem:[%s17266_s1 + $0x1a8] ss:$16 sps:$4 sm:$0xff]   ;;  %v10524_v57 = vld [vmem:[%s17266_s1 + $0x1c4] ss:$16 sps:$4 sm:$0xff]   ;;  %v10526_v58 = vld [vmem:[%s17266_s1 + $0x1cc] ss:$16 sps:$4 sm:$0xff]  }
  0x22   : > { %v10528_v59 = vld [vmem:[%s17266_s1 + $0x1c0] ss:$16 sps:$4 sm:$0xff]   ;;  %v10529_v60 = vld [vmem:[%s17266_s1 + $0x1c8] ss:$16 sps:$4 sm:$0xff]   ;;  %v10530_v61 = vld [vmem:[%s17266_s1 + $0x1e4] ss:$16 sps:$4 sm:$0xff]  }
  0x23   : > { %1279 = vmatpush1.bf16.msra.mxu0 %v10474_v22  ;;  %1505 = vmatpush1.bf16.msra.mxu1 %v10475_v23  ;;  %v10532_v62 = vld [vmem:[%s17266_s1 + $0x1ec] ss:$16 sps:$4 sm:$0xff]   ;;  %v10534_v63 = vld [vmem:[%s17266_s1 + $0x1e0] ss:$16 sps:$4 sm:$0xff]   ;;  %v10535_v0 = vld [vmem:[%s17266_s1 + $0x1e8] ss:$16 sps:$4 sm:$0xff]  }
  0x24   : > { %1280 = vmatprep.subr.bf16.mxu0 %v10476_v24  ;;  %1506 = vmatprep.subr.bf16.mxu1 %v10478_v25  ;;  %v10541_v1 = vld [vmem:[%s17266_s1 + $0x204] ss:$16 sps:$4 sm:$0xff]   ;;  %v10544_v2 = vld [vmem:[%s17266_s1 + $0x20c] ss:$16 sps:$4 sm:$0xff]   ;;  %v10536_v3 = vld [vmem:[%s10919_s12] ss:$16 sps:$4 sm:$0xff]  }
  0x25   : > { %v10539_v4 = vld [vmem:[%s17266_s1 + $0x200] ss:$16 sps:$4 sm:$0xff]   ;;  %v10542_v5 = vld [vmem:[%s17266_s1 + $0x208] ss:$16 sps:$4 sm:$0xff]   ;;  %v10547_v6 = vld [vmem:[%s17266_s1 + $0x224] ss:$16 sps:$4 sm:$0xff]  }
  0x26   : > { %v10550_v7 = vld [vmem:[%s17266_s1 + $0x22c] ss:$16 sps:$4 sm:$0xff]   ;;  %v10551_v8 = vld [vmem:[%s10919_s12 + $0x24] ss:$16 sps:$4 sm:$0xff]   ;;  %v10545_v9 = vld [vmem:[%s17266_s1 + $0x220] ss:$16 sps:$4 sm:$0xff]  }
  0x27   : > { %1281 = vmatpush1.bf16.msra.mxu0 %v10480_v26  ;;  %1507 = vmatpush1.bf16.msra.mxu1 %v10481_v27  ;;  %v10548_v10 = vld [vmem:[%s17266_s1 + $0x228] ss:$16 sps:$4 sm:$0xff]   ;;  %v10556_v11 = vld [vmem:[%s17266_s1 + $0x244] ss:$16 sps:$4 sm:$0xff]   ;;  %v10559_v12 = vld [vmem:[%s17266_s1 + $0x24c] ss:$16 sps:$4 sm:$0xff]  }
  0x28   : > { %1282 = vmatprep.subr.bf16.mxu0 %v10482_v28  ;;  %1508 = vmatprep.subr.bf16.mxu1 %v10484_v29  ;;  %v10553_v13 = vld [vmem:[%s10919_s12 + $0x20] ss:$16 sps:$4 sm:$0xff]   ;;  %v10557_v15 = vld [vmem:[%s17266_s1 + $0x248] ss:$16 sps:$4 sm:$0xff]   ;;  %v10562_v16 = vld [vmem:[%s17266_s1 + $0x264] ss:$16 sps:$4 sm:$0xff]  }
  0x29   : > { %v10554_v14 = vld [vmem:[%s17266_s1 + $0x240] ss:$16 sps:$4 sm:$0xff]   ;;  %v10565_v17 = vld [vmem:[%s17266_s1 + $0x26c] ss:$16 sps:$4 sm:$0xff]   ;;  %v10566_v18 = vld [vmem:[%s10919_s12 + $0x44] ss:$16 sps:$4 sm:$0xff]  }
  0x2a   : > { %v10560_v19 = vld [vmem:[%s17266_s1 + $0x260] ss:$16 sps:$4 sm:$0xff]   ;;  %v10563_v20 = vld [vmem:[%s17266_s1 + $0x268] ss:$16 sps:$4 sm:$0xff]   ;;  %v10571_v21 = vld [vmem:[%s17266_s1 + $0x284] ss:$16 sps:$4 sm:$0xff]  }
  0x2b   : > { %1283 = vmatpush1.bf16.msra.mxu0 %v10486_v30  ;;  %1509 = vmatpush1.bf16.msra.mxu1 %v10487_v31  ;;  %v10574_v22 = vld [vmem:[%s17266_s1 + $0x28c] ss:$16 sps:$4 sm:$0xff]   ;;  %v10568_v23 = vld [vmem:[%s10919_s12 + $0x40] ss:$16 sps:$4 sm:$0xff]   ;;  %v10572_v25 = vld [vmem:[%s17266_s1 + $0x288] ss:$16 sps:$4 sm:$0xff]  }
  0x2c   : > { %1284 = vmatprep.subr.bf16.mxu0 %v10488_v32  ;;  %1510 = vmatprep.subr.bf16.mxu1 %v10490_v33  ;;  %v10569_v24 = vld [vmem:[%s17266_s1 + $0x280] ss:$16 sps:$4 sm:$0xff]   ;;  %v10577_v26 = vld [vmem:[%s17266_s1 + $0x2a4] ss:$16 sps:$4 sm:$0xff]   ;;  %v10580_v27 = vld [vmem:[%s17266_s1 + $0x2ac] ss:$16 sps:$4 sm:$0xff]  }
  0x2d   : > { %v10581_v28 = vld [vmem:[%s10919_s12 + $0x64] ss:$16 sps:$4 sm:$0xff]   ;;  %v10575_v29 = vld [vmem:[%s17266_s1 + $0x2a0] ss:$16 sps:$4 sm:$0xff]   ;;  %v10578_v30 = vld [vmem:[%s17266_s1 + $0x2a8] ss:$16 sps:$4 sm:$0xff]  }
  0x2e   : > { %v10586_v31 = vld [vmem:[%s17266_s1 + $0x2c4] ss:$16 sps:$4 sm:$0xff]   ;;  %v10589_v32 = vld [vmem:[%s17266_s1 + $0x2cc] ss:$16 sps:$4 sm:$0xff]   ;;  %v10583_v33 = vld [vmem:[%s10919_s12 + $0x60] ss:$16 sps:$4 sm:$0xff]  }
  0x2f   : > { %1285 = vmatpush1.bf16.msra.mxu0 %v10492_v34  ;;  %1511 = vmatpush1.bf16.msra.mxu1 %v10493_v35  ;;  %v10584_v34 = vld [vmem:[%s17266_s1 + $0x2c0] ss:$16 sps:$4 sm:$0xff]   ;;  %v10587_v35 = vld [vmem:[%s17266_s1 + $0x2c8] ss:$16 sps:$4 sm:$0xff]   ;;  %v10611_v48 = vld [vmem:[%s10919_s12 + $0xa4] ss:$16 sps:$4 sm:$0xff]  }
  0x30   : > { %1286 = vmatprep.subr.bf16.mxu0 %v10494_v36  ;;  %1512 = vmatprep.subr.bf16.mxu1 %v10496_v37  ;;  %v10592_v36 = vld [vmem:[%s17266_s1 + $0x2e4] ss:$16 sps:$4 sm:$0xff]   ;;  %v10595_v37 = vld [vmem:[%s17266_s1 + $0x2ec] ss:$16 sps:$4 sm:$0xff]  }
  0x33   : > { %1287 = vmatpush1.bf16.msra.mxu0 %v10498_v38  ;;  %1513 = vmatpush1.bf16.msra.mxu1 %v10499_v39  ;;  %v10596_v38 = vld [vmem:[%s10919_s12 + $0x84] ss:$16 sps:$4 sm:$0xff]   ;;  %v10590_v39 = vld [vmem:[%s17266_s1 + $0x2e0] ss:$16 sps:$4 sm:$0xff]  }
  0x34   : > { %1288 = vmatprep.subr.bf16.mxu0 %v10500_v40  ;;  %1514 = vmatprep.subr.bf16.mxu1 %v10502_v41  ;;  %v10593_v40 = vld [vmem:[%s17266_s1 + $0x2e8] ss:$16 sps:$4 sm:$0xff]   ;;  %v10601_v41 = vld [vmem:[%s17266_s1 + $0x304] ss:$16 sps:$4 sm:$0xff]  }
  0x37   : > { %1289 = vmatpush1.bf16.msra.mxu0 %v10504_v42  ;;  %1515 = vmatpush1.bf16.msra.mxu1 %v10505_v43  ;;  %v10604_v42 = vld [vmem:[%s17266_s1 + $0x30c] ss:$16 sps:$4 sm:$0xff]   ;;  %v10598_v43 = vld [vmem:[%s10919_s12 + $0x80] ss:$16 sps:$4 sm:$0xff]  }
  0x38   : > { %1290 = vmatprep.subr.bf16.mxu0 %v10506_v44  ;;  %1516 = vmatprep.subr.bf16.mxu1 %v10508_v45  ;;  %v10599_v44 = vld [vmem:[%s17266_s1 + $0x300] ss:$16 sps:$4 sm:$0xff]   ;;  %v10602_v45 = vld [vmem:[%s17266_s1 + $0x308] ss:$16 sps:$4 sm:$0xff]  }
  0x3b   : > { %1291 = vmatpush1.bf16.msra.mxu0 %v10510_v46  ;;  %1517 = vmatpush1.bf16.msra.mxu1 %v10511_v47  ;;  %v10607_v46 = vld [vmem:[%s17266_s1 + $0x324] ss:$16 sps:$4 sm:$0xff]   ;;  %v10610_v47 = vld [vmem:[%s17266_s1 + $0x32c] ss:$16 sps:$4 sm:$0xff]  }
  0x3c   : > { %1292 = vmatprep.subr.bf16.mxu0 %v10512_v49  ;;  %1518 = vmatprep.subr.bf16.mxu1 %v10514_v50  ;;  %v10605_v49 = vld [vmem:[%s17266_s1 + $0x320] ss:$16 sps:$4 sm:$0xff]   ;;  %v10608_v50 = vld [vmem:[%s17266_s1 + $0x328] ss:$16 sps:$4 sm:$0xff]  }
  0x3f   : > { %1293 = vmatpush1.bf16.msra.mxu0 %v10516_v51  ;;  %1519 = vmatpush1.bf16.msra.mxu1 %v10517_v52  ;;  %v10616_v51 = vld [vmem:[%s17266_s1 + $0x344] ss:$16 sps:$4 sm:$0xff]   ;;  %v10619_v52 = vld [vmem:[%s17266_s1 + $0x34c] ss:$16 sps:$4 sm:$0xff]  }
  0x40   : > { %1294 = vmatprep.subr.bf16.mxu0 %v10518_v53  ;;  %1520 = vmatprep.subr.bf16.mxu1 %v10520_v54  ;;  %v10613_v53 = vld [vmem:[%s10919_s12 + $0xa0] ss:$16 sps:$4 sm:$0xff]  }
  0x41   : > { %v10614_v54 = vld [vmem:[%s17266_s1 + $0x340] ss:$16 sps:$4 sm:$0xff]  }
  0x43   : > { %1295 = vmatpush1.bf16.msra.mxu0 %v10522_v55  ;;  %1521 = vmatpush1.bf16.msra.mxu1 %v10523_v56  ;;  %v10617_v55 = vld [vmem:[%s17266_s1 + $0x348] ss:$16 sps:$4 sm:$0xff]   ;;  %v10622_v56 = vld [vmem:[%s17266_s1 + $0x364] ss:$16 sps:$4 sm:$0xff]  }
  0x44   : > { %1296 = vmatprep.subr.bf16.mxu0 %v10524_v57  ;;  %1522 = vmatprep.subr.bf16.mxu1 %v10526_v58  ;;  %v10625_v57 = vld [vmem:[%s17266_s1 + $0x36c] ss:$16 sps:$4 sm:$0xff]   ;;  %v10620_v58 = vld [vmem:[%s17266_s1 + $0x360] ss:$16 sps:$4 sm:$0xff]  }
  0x47   : > { %1297 = vmatpush1.bf16.msra.mxu0 %v10528_v59  ;;  %1523 = vmatpush1.bf16.msra.mxu1 %v10529_v60  ;;  %v10626_v59 = vld [vmem:[%s10919_s12 + $0xc4] ss:$16 sps:$4 sm:$0xff]   ;;  %v10623_v60 = vld [vmem:[%s17266_s1 + $0x368] ss:$16 sps:$4 sm:$0xff]  }
  0x48   : > { %1298 = vmatprep.subr.bf16.mxu0 %v10530_v61  ;;  %1524 = vmatprep.subr.bf16.mxu1 %v10532_v62  ;;  %v10631_v61 = vld [vmem:[%s17266_s1 + $0x384] ss:$16 sps:$4 sm:$0xff]   ;;  %v10628_v62 = vld [vmem:[%s10919_s12 + $0xc0] ss:$16 sps:$4 sm:$0xff]  }
  0x4b   : > { %1299 = vmatpush1.bf16.msra.mxu0 %v10534_v63  ;;  %1525 = vmatpush1.bf16.msra.mxu1 %v10535_v0  ;;  %v10634_v63 = vld [vmem:[%s17266_s1 + $0x38c] ss:$16 sps:$4 sm:$0xff]   ;;  %v10629_v0 = vld [vmem:[%s17266_s1 + $0x380] ss:$16 sps:$4 sm:$0xff]  }
  0x4c   : > { %1381 = vmatprep.subr.bf16.mxu0 %v10541_v1  ;;  %1607 = vmatprep.subr.bf16.mxu1 %v10544_v2  ;;  %v10632_v1 = vld [vmem:[%s17266_s1 + $0x388] ss:$16 sps:$4 sm:$0xff]   ;;  %v10637_v2 = vld [vmem:[%s17266_s1 + $0x3a4] ss:$16 sps:$4 sm:$0xff]  }
  0x4e   : > { %1301 = vmatmul.mubr.bf16.vlgmr.msra.gmra.mrb[0].mxu0 %v10536_v3  ;;  %1527 = vmatmul.mubr.bf16.vlgmr.msra.gmra.mrb[0].mxu1 %v10536_v3  ;;  %v10640_v3 = vld [vmem:[%s17266_s1 + $0x3ac] ss:$16 sps:$4 sm:$0xff]  }
  0x4f   : > { %1382 = vmatpush1.bf16.msra.mxu0 %v10539_v4  ;;  %1608 = vmatpush1.bf16.msra.mxu1 %v10542_v5  ;;  %v10635_v4 = vld [vmem:[%s17266_s1 + $0x3a0] ss:$16 sps:$4 sm:$0xff]   ;;  %v10641_v5 = vld [vmem:[%s10919_s12 + $0xe4] ss:$16 sps:$4 sm:$0xff]  }
  0x50   : > { %1383 = vmatprep.subr.bf16.mxu0 %v10547_v6  ;;  %1609 = vmatprep.subr.bf16.mxu1 %v10550_v7  ;;  %v10638_v6 = vld [vmem:[%s17266_s1 + $0x3a8] ss:$16 sps:$4 sm:$0xff]   ;;  %v10646_v7 = vld [vmem:[%s17266_s1 + $0x3c4] ss:$16 sps:$4 sm:$0xff]  }
  0x51   : > { %1310 = vmatprep.mubr.bf16.mxu0 %v10551_v8  ;;  %1536 = vmatprep.mubr.bf16.mxu1 %v10551_v8  ;;  %v10643_v8 = vld [vmem:[%s10919_s12 + $0xe0] ss:$16 sps:$4 sm:$0xff]  }
  0x53   : > { %1384 = vmatpush1.bf16.msra.mxu0 %v10545_v9  ;;  %1610 = vmatpush1.bf16.msra.mxu1 %v10548_v10  ;;  %v10649_v9 = vld [vmem:[%s17266_s1 + $0x3cc] ss:$16 sps:$4 sm:$0xff]   ;;  %v10644_v10 = vld [vmem:[%s17266_s1 + $0x3c0] ss:$16 sps:$4 sm:$0xff]  }
  0x54   : > { %1385 = vmatprep.subr.bf16.mxu0 %v10556_v11  ;;  %1611 = vmatprep.subr.bf16.mxu1 %v10559_v12  ;;  %v10647_v11 = vld [vmem:[%s17266_s1 + $0x3c8] ss:$16 sps:$4 sm:$0xff]   ;;  %v10652_v12 = vld [vmem:[%s17266_s1 + $0x3e4] ss:$16 sps:$4 sm:$0xff]  }
  0x56   : > { %1311 = vmatmul.mubr.bf16.gmra.mrb[4].mxu0 %v10553_v13  ;;  %1537 = vmatmul.mubr.bf16.gmra.mrb[4].mxu1 %v10553_v13  ;;  %v10655_v13 = vld [vmem:[%s17266_s1 + $0x3ec] ss:$16 sps:$4 sm:$0xff]  }
  0x57   : > { %1386 = vmatpush1.bf16.msra.mxu0 %v10554_v14  ;;  %1612 = vmatpush1.bf16.msra.mxu1 %v10557_v15  ;;  %v10658_v14 = vld [vmem:[%s10919_s12 + $0xc] ss:$16 sps:$4 sm:$0xff]   ;;  %v10650_v15 = vld [vmem:[%s17266_s1 + $0x3e0] ss:$16 sps:$4 sm:$0xff]  }
  0x58   : > { %1387 = vmatprep.subr.bf16.mxu0 %v10562_v16  ;;  %1613 = vmatprep.subr.bf16.mxu1 %v10565_v17  ;;  %v10653_v16 = vld [vmem:[%s17266_s1 + $0x3e8] ss:$16 sps:$4 sm:$0xff]  }
  0x59   : > { %1320 = vmatprep.mubr.bf16.mxu0 %v10566_v18  ;;  %1546 = vmatprep.mubr.bf16.mxu1 %v10566_v18  ;;  %v10656_v17 = vld [vmem:[%s10919_s12 + $0x8] ss:$16 sps:$4 sm:$0xff]   ;;  %v10659_v18 = vld [vmem:[%s10919_s12 + $0x2c] ss:$16 sps:$4 sm:$0xff]  }
  0x5b   : > { %1388 = vmatpush1.bf16.msra.mxu0 %v10560_v19  ;;  %1614 = vmatpush1.bf16.msra.mxu1 %v10563_v20  ;;  %v10680_v19 = vld [vmem:[%s17268_s3] sm:$0xff]  }
  0x5c   : > { %1389 = vmatprep.subr.bf16.mxu0 %v10571_v21  ;;  %1615 = vmatprep.subr.bf16.mxu1 %v10574_v22  ;;  %v11195_v20 = vld [vmem:[%s17268_s3 + $0x80] sm:$0xff]   ;;  %v17275_v21 = vmov 0   ;;  %v10681_v22 = vld [vmem:[%s17268_s3 + $0x8] sm:$0xff]  }
  0x5e   : > { %1321 = vmatmul.mubr.bf16.gmra.mrb[8].mxu0 %v10568_v23  ;;  %1547 = vmatmul.mubr.bf16.gmra.mrb[8].mxu1 %v10568_v23  ;;  %v11205_v23 = vld [vmem:[%s17268_s3 + $0x88] sm:$0xff]  }
  0x5f   : > { %1390 = vmatpush1.bf16.msra.mxu0 %v10569_v24  ;;  %1616 = vmatpush1.bf16.msra.mxu1 %v10572_v25  ;;  %v10661_v24 = vld [vmem:[%s10919_s12 + $0x28] ss:$16 sps:$4 sm:$0xff]   ;;  %v10662_v25 = vld [vmem:[%s10919_s12 + $0x4c] ss:$16 sps:$4 sm:$0xff]  }
  0x60   : > { %1391 = vmatprep.subr.bf16.mxu0 %v10577_v26  ;;  %1617 = vmatprep.subr.bf16.mxu1 %v10580_v27  ;;  %v10682_v26 = vld [vmem:[%s17268_s3 + $0x10] sm:$0xff]  }
  0x61   : > { %1330 = vmatprep.mubr.bf16.mxu0 %v10581_v28  ;;  %1556 = vmatprep.mubr.bf16.mxu1 %v10581_v28  ;;  %v11219_v27 = vld [vmem:[%s17268_s3 + $0x90] sm:$0xff]   ;;  %v10683_v28 = vld [vmem:[%s17268_s3 + $0x18] sm:$0xff]  }
  0x63   : > { %1392 = vmatpush1.bf16.msra.mxu0 %v10575_v29  ;;  %1618 = vmatpush1.bf16.msra.mxu1 %v10578_v30  ;;  %v11230_v29 = vld [vmem:[%s17268_s3 + $0x98] sm:$0xff]  }
  0x64   : > { %1393 = vmatprep.subr.bf16.mxu0 %v10586_v31  ;;  %1619 = vmatprep.subr.bf16.mxu1 %v10589_v32  ;;  %v10664_v30 = vld [vmem:[%s10919_s12 + $0x48] ss:$16 sps:$4 sm:$0xff]   ;;  %v10665_v31 = vld [vmem:[%s10919_s12 + $0x6c] ss:$16 sps:$4 sm:$0xff]   ;;  %v10684_v32 = vld [vmem:[%s17268_s3 + $0x20] sm:$0xff]  }
  0x66   : > { %1331 = vmatmul.mubr.bf16.gmra.mrb[12].mxu0 %v10583_v33  ;;  %1557 = vmatmul.mubr.bf16.gmra.mrb[12].mxu1 %v10583_v33  ;;  %v11243_v33 = vld [vmem:[%s17268_s3 + $0xa0] sm:$0xff]  }
  0x67   : > { %1394 = vmatpush1.bf16.msra.mxu0 %v10584_v34  ;;  %1620 = vmatpush1.bf16.msra.mxu1 %v10587_v35  ;;  %v10686_v34 = vld [vmem:[%s17268_s3 + $0x28] sm:$0xff]  }
  0x68   : > { %1395 = vmatprep.subr.bf16.mxu0 %v10592_v36  ;;  %1621 = vmatprep.subr.bf16.mxu1 %v10595_v37  ;;  %v11254_v35 = vld [vmem:[%s17268_s3 + $0xa8] sm:$0xff]  }
  0x69   : > { %1340 = vmatprep.mubr.bf16.mxu0 %v10596_v38  ;;  %1566 = vmatprep.mubr.bf16.mxu1 %v10596_v38  ;;  %v10667_v36 = vld [vmem:[%s10919_s12 + $0x68] ss:$16 sps:$4 sm:$0xff]   ;;  %v10668_v37 = vld [vmem:[%s10919_s12 + $0x8c] ss:$16 sps:$4 sm:$0xff]   ;;  %v10688_v38 = vld [vmem:[%s17268_s3 + $0x30] sm:$0xff]  }
  0x6b   : > { %1396 = vmatpush1.bf16.msra.mxu0 %v10590_v39  ;;  %1622 = vmatpush1.bf16.msra.mxu1 %v10593_v40  ;;  %v11267_v39 = vld [vmem:[%s17268_s3 + $0xb0] sm:$0xff]   ;;  %v10690_v40 = vld [vmem:[%s17268_s3 + $0x38] sm:$0xff]  }
  0x6c   : > { %1397 = vmatprep.subr.bf16.mxu0 %v10601_v41  ;;  %1623 = vmatprep.subr.bf16.mxu1 %v10604_v42  ;;  %v11278_v41 = vld [vmem:[%s17268_s3 + $0xb8] sm:$0xff]  }
  0x6d   : > { %v10670_v42 = vld [vmem:[%s10919_s12 + $0x88] ss:$16 sps:$4 sm:$0xff]  }
  0x6e   : > { %1341 = vmatmul.mubr.bf16.gmra.mrb[16].mxu0 %v10598_v43  ;;  %1567 = vmatmul.mubr.bf16.gmra.mrb[16].mxu1 %v10598_v43  ;;  %v10671_v43 = vld [vmem:[%s10919_s12 + $0xac] ss:$16 sps:$4 sm:$0xff]  }
  0x6f   : > { %1398 = vmatpush1.bf16.msra.mxu0 %v10599_v44  ;;  %1624 = vmatpush1.bf16.msra.mxu1 %v10602_v45  ;;  %v10692_v44 = vld [vmem:[%s17268_s3 + $0x40] sm:$0xff]  }
  0x70   : > { %1399 = vmatprep.subr.bf16.mxu0 %v10607_v46  ;;  %1625 = vmatprep.subr.bf16.mxu1 %v10610_v47  ;;  %v11291_v45 = vld [vmem:[%s17268_s3 + $0xc0] sm:$0xff]   ;;  %v10694_v46 = vld [vmem:[%s17268_s3 + $0x48] sm:$0xff]  }
  0x71   : > { %1350 = vmatprep.mubr.bf16.mxu0 %v10611_v48  ;;  %1576 = vmatprep.mubr.bf16.mxu1 %v10611_v48  ;;  %v10673_v47 = vld [vmem:[%s10919_s12 + $0xa8] ss:$16 sps:$4 sm:$0xff]   ;;  %v10674_v48 = vld [vmem:[%s10919_s12 + $0xcc] ss:$16 sps:$4 sm:$0xff]  }
  0x73   : > { %1400 = vmatpush1.bf16.msra.mxu0 %v10605_v49  ;;  %1626 = vmatpush1.bf16.msra.mxu1 %v10608_v50  ;;  %v10696_v49 = vld [vmem:[%s17268_s3 + $0x50] sm:$0xff]   ;;  %v10698_v50 = vld [vmem:[%s17268_s3 + $0x58] sm:$0xff]  }
  0x74   : > { %1401 = vmatprep.subr.bf16.mxu0 %v10616_v51  ;;  %1627 = vmatprep.subr.bf16.mxu1 %v10619_v52  ;;  %v10676_v51 = vld [vmem:[%s10919_s12 + $0xc8] ss:$16 sps:$4 sm:$0xff]   ;;  %v10677_v52 = vld [vmem:[%s10919_s12 + $0xec] ss:$16 sps:$4 sm:$0xff]  }
  0x76   : > { %1351 = vmatmul.mubr.bf16.gmra.mrb[20].mxu0 %v10613_v53  ;;  %1577 = vmatmul.mubr.bf16.gmra.mrb[20].mxu1 %v10613_v53  ;;  %v10700_v53 = vld [vmem:[%s17268_s3 + $0x60] sm:$0xff]  }
  0x77   : > { %1402 = vmatpush1.bf16.msra.mxu0 %v10614_v54  ;;  %1628 = vmatpush1.bf16.msra.mxu1 %v10617_v55  ;;  %v10679_v54 = vld [vmem:[%s10919_s12 + $0xe8] ss:$16 sps:$4 sm:$0xff]  }
  0x78   : > { %1403 = vmatprep.subr.bf16.mxu0 %v10622_v56  ;;  %1629 = vmatprep.subr.bf16.mxu1 %v10625_v57  ;;  %v10702_v55 = vld [vmem:[%s17268_s3 + $0x68] sm:$0xff]   ;;  %v10704_v57 = vld [vmem:[%s17268_s3 + $0x70] sm:$0xff]  }
  0x79   : > { %1360 = vmatprep.mubr.bf16.mxu0 %v10626_v59  ;;  %1586 = vmatprep.mubr.bf16.mxu1 %v10626_v59  ;;  %v11325_v56 = vld [vmem:[%s17268_s3 + $0xc8] sm:$0xff]   ;;  %v10706_v59 = vld [vmem:[%s17268_s3 + $0x78] sm:$0xff]  }
  0x7b   : > { %1404 = vmatpush1.bf16.msra.mxu0 %v10620_v58  ;;  %1630 = vmatpush1.bf16.msra.mxu1 %v10623_v60  ;;  %v11336_v58 = vld [vmem:[%s17268_s3 + $0xd0] sm:$0xff]   ;;  %v11347_v60 = vld [vmem:[%s17268_s3 + $0xd8] sm:$0xff]  }
  0x7c   : > { %1405 = vmatprep.subr.bf16.mxu0 %v10631_v61  ;;  %1631 = vmatprep.subr.bf16.mxu1 %v10634_v63  ;;  %v11355_v61 = vld [vmem:[%s17268_s3 + $0xe0] sm:$0xff]   ;;  %v11369_v63 = vld [vmem:[%s17268_s3 + $0xf0] sm:$0xff]  }
  0x7e   : > { %1361 = vmatmul.mubr.bf16.gmra.mrb[24].mxu0 %v10628_v62  ;;  %1587 = vmatmul.mubr.bf16.gmra.mrb[24].mxu1 %v10628_v62  ;;  %v11362_v62 = vld [vmem:[%s17268_s3 + $0xe8] sm:$0xff]  }
  0x7f   : > { %1406 = vmatpush1.bf16.msra.mxu0 %v10629_v0  ;;  %1632 = vmatpush1.bf16.msra.mxu1 %v10632_v1  ;;  %v11376_v0 = vld [vmem:[%s17268_s3 + $0xf8] sm:$0xff]   ;;  %v448_v1 = vlaneseq }
  0x80   : > { %1407 = vmatprep.subr.bf16.mxu0 %v10637_v2  ;;  %1633 = vmatprep.subr.bf16.mxu1 %v10640_v3 }
  0x81   : > { %1370 = vmatprep.mubr.bf16.mxu0 %v10641_v5  ;;  %1596 = vmatprep.mubr.bf16.mxu1 %v10641_v5  ;;  %v449_v2 = vshrl.u32 %v448_v1, 7 }
  0x83   : > { %1408 = vmatpush1.bf16.msra.mxu0 %v10635_v4  ;;  %1634 = vmatpush1.bf16.msra.mxu1 %v10638_v6  ;;  %v450_v3 = vsub.s32 0, %v449_v2  ;;  %v446_v4 = vld [vmem:[%s17267_s2] sm:$0xf]  ;;  %v454_v5 = vsub.s32 1, %v449_v2  ;;  %v462_v6 = vsub.s32 3, %v449_v2 }
  0x84   : > { %1409 = vmatprep.subr.bf16.mxu0 %v10646_v7  ;;  %1635 = vmatprep.subr.bf16.mxu1 %v10649_v9  ;;  %v458_v7 = vsub.s32 2, %v449_v2 }
  0x85   : > { %v11384_v9 = vrot.slane %v446_v4, %v454_v5  ;;  %v17273_v5 = vmov 1.0|1.0  }
  0x86   : > { %1371 = vmatmul.mubr.bf16.gmra.mrb[28].mxu0 %v10643_v8  ;;  %1597 = vmatmul.mubr.bf16.gmra.mrb[28].mxu1 %v10643_v8  ;;  %v11382_v8 = vrot.slane %v446_v4, %v450_v3 }
  0x87   : > { %1410 = vmatpush1.bf16.msra.mxu0 %v10644_v10  ;;  %1636 = vmatpush1.bf16.msra.mxu1 %v10647_v11  ;;  %v11386_v10 = vrot.slane %v446_v4, %v462_v6  ;;  %v11388_v11 = vrot.slane %v446_v4, %v458_v7 }
  0x88   : > { %1411 = vmatprep.subr.bf16.mxu0 %v10652_v12  ;;  %1637 = vmatprep.subr.bf16.mxu1 %v10655_v13 }
  0x89   : > { %1413 = vmatprep.mubr.bf16.mxu0 %v10658_v14  ;;  %1639 = vmatprep.mubr.bf16.mxu1 %v10658_v14 }
  0x8b   : > { %1412 = vmatpush1.bf16.msra.mxu0 %v10650_v15  ;;  %1638 = vmatpush1.bf16.msra.mxu1 %v10653_v16 }
  0x8c   : > { %6207 = vmatprep.subr.bf16.mxu0 %v17275_v21  ;;  %10009 = vmatprep.subr.bf16.mxu1 %v17275_v21 }
  0x8e   : > { %1414 = vmatmul.mubr.bf16.vlgmr.msra.gmra.mrb[0].mxu0 %v10656_v17  ;;  %1640 = vmatmul.mubr.bf16.vlgmr.msra.gmra.mrb[0].mxu1 %v10656_v17 }
  0x8f   : > { %1423 = vmatprep.mubr.bf16.mxu0 %v10659_v18  ;;  %1649 = vmatprep.mubr.bf16.mxu1 %v10659_v18 }
  0x90   : > { %6208 = vmatpush1.bf16.msra.mxu0 %v10680_v19  ;;  %10025 = vmatpush1.bf16.msra.mxu1 %v11195_v20 }
  0x91   : > { %6209 = vmatprep.subr.bf16.mxu0 %v17275_v21  ;;  %10010 = vmatprep.subr.bf16.mxu1 %v17275_v21 }
  0x94   : > { %6210 = vmatpush1.bf16.msra.mxu0 %v10681_v22  ;;  %10026 = vmatpush1.bf16.msra.mxu1 %v11205_v23 }
  0x95   : > { %6211 = vmatprep.subr.bf16.mxu0 %v17275_v21  ;;  %10011 = vmatprep.subr.bf16.mxu1 %v17275_v21 }
  0x96   : > { %1424 = vmatmul.mubr.bf16.gmra.mrb[4].mxu0 %v10661_v24  ;;  %1650 = vmatmul.mubr.bf16.gmra.mrb[4].mxu1 %v10661_v24 }
  0x97   : > { %1433 = vmatprep.mubr.bf16.mxu0 %v10662_v25  ;;  %1659 = vmatprep.mubr.bf16.mxu1 %v10662_v25 }
  0x98   : > { %6212 = vmatpush1.bf16.msra.mxu0 %v10682_v26  ;;  %10027 = vmatpush1.bf16.msra.mxu1 %v11219_v27 }
  0x99   : > { %6213 = vmatprep.subr.bf16.mxu0 %v17275_v21  ;;  %10012 = vmatprep.subr.bf16.mxu1 %v17275_v21 }
  0x9c   : > { %6214 = vmatpush1.bf16.msra.mxu0 %v10683_v28  ;;  %10028 = vmatpush1.bf16.msra.mxu1 %v11230_v29 }
  0x9d   : > { %6215 = vmatprep.subr.bf16.mxu0 %v17275_v21  ;;  %10013 = vmatprep.subr.bf16.mxu1 %v17275_v21 }
  0x9e   : > { %1434 = vmatmul.mubr.bf16.gmra.mrb[8].mxu0 %v10664_v30  ;;  %1660 = vmatmul.mubr.bf16.gmra.mrb[8].mxu1 %v10664_v30 }
  0x9f   : > { %1443 = vmatprep.mubr.bf16.mxu0 %v10665_v31  ;;  %1669 = vmatprep.mubr.bf16.mxu1 %v10665_v31 }
  0xa0   : > { %6216 = vmatpush1.bf16.msra.mxu0 %v10684_v32  ;;  %10029 = vmatpush1.bf16.msra.mxu1 %v11243_v33 }
  0xa1   : > { %6217 = vmatprep.subr.bf16.mxu0 %v17275_v21  ;;  %10014 = vmatprep.subr.bf16.mxu1 %v17275_v21 }
  0xa4   : > { %6218 = vmatpush1.bf16.msra.mxu0 %v10686_v34  ;;  %10030 = vmatpush1.bf16.msra.mxu1 %v11254_v35 }
  0xa5   : > { %6219 = vmatprep.subr.bf16.mxu0 %v17275_v21  ;;  %10015 = vmatprep.subr.bf16.mxu1 %v17275_v21 }
  0xa6   : > { %1444 = vmatmul.mubr.bf16.gmra.mrb[12].mxu0 %v10667_v36  ;;  %1670 = vmatmul.mubr.bf16.gmra.mrb[12].mxu1 %v10667_v36 }
  0xa7   : > { %1453 = vmatprep.mubr.bf16.mxu0 %v10668_v37  ;;  %1679 = vmatprep.mubr.bf16.mxu1 %v10668_v37 }
  0xa8   : > { %6220 = vmatpush1.bf16.msra.mxu0 %v10688_v38  ;;  %10031 = vmatpush1.bf16.msra.mxu1 %v11267_v39 }
  0xa9   : > { %6221 = vmatprep.subr.bf16.mxu0 %v17275_v21  ;;  %10016 = vmatprep.subr.bf16.mxu1 %v17275_v21 }
  0xac   : > { %6222 = vmatpush1.bf16.msra.mxu0 %v10690_v40  ;;  %10032 = vmatpush1.bf16.msra.mxu1 %v11278_v41 }
  0xad   : > { %6223 = vmatprep.subr.bf16.mxu0 %v17275_v21  ;;  %10017 = vmatprep.subr.bf16.mxu1 %v17275_v21 }
  0xae   : > { %1454 = vmatmul.mubr.bf16.gmra.mrb[16].mxu0 %v10670_v42  ;;  %1680 = vmatmul.mubr.bf16.gmra.mrb[16].mxu1 %v10670_v42 }
  0xaf   : > { %1463 = vmatprep.mubr.bf16.mxu0 %v10671_v43  ;;  %1689 = vmatprep.mubr.bf16.mxu1 %v10671_v43 }
  0xb0   : > { %6224 = vmatpush1.bf16.msra.mxu0 %v10692_v44  ;;  %10033 = vmatpush1.bf16.msra.mxu1 %v11291_v45 }
  0xb1   : > { %6225 = vmatprep.subr.bf16.mxu0 %v17275_v21  ;;  %10018 = vmatprep.subr.bf16.mxu1 %v17275_v21 }
  0xb4   : > { %6226 = vmatpush1.bf16.msra.mxu0 %v10694_v46  ;;  %10034 = vmatpush1.bf16.msra.mxu1 %v11325_v56 }
  0xb5   : > { %6227 = vmatprep.subr.bf16.mxu0 %v17275_v21  ;;  %10019 = vmatprep.subr.bf16.mxu1 %v17275_v21 }
  0xb6   : > { %1464 = vmatmul.mubr.bf16.gmra.mrb[20].mxu0 %v10673_v47  ;;  %1690 = vmatmul.mubr.bf16.gmra.mrb[20].mxu1 %v10673_v47 }
  0xb7   : > { %1473 = vmatprep.mubr.bf16.mxu0 %v10674_v48  ;;  %1699 = vmatprep.mubr.bf16.mxu1 %v10674_v48 }
  0xb8   : > { %6228 = vmatpush1.bf16.msra.mxu0 %v10696_v49  ;;  %10035 = vmatpush1.bf16.msra.mxu1 %v11336_v58 }
  0xb9   : > { %6229 = vmatprep.subr.bf16.mxu0 %v17275_v21  ;;  %10020 = vmatprep.subr.bf16.mxu1 %v17275_v21 }
  0xbc   : > { %6230 = vmatpush1.bf16.msra.mxu0 %v10698_v50  ;;  %10036 = vmatpush1.bf16.msra.mxu1 %v11347_v60 }
  0xbd   : > { %6231 = vmatprep.subr.bf16.mxu0 %v17275_v21  ;;  %10021 = vmatprep.subr.bf16.mxu1 %v17275_v21 }
  0xbe   : > { %1474 = vmatmul.mubr.bf16.gmra.mrb[24].mxu0 %v10676_v51  ;;  %1700 = vmatmul.mubr.bf16.gmra.mrb[24].mxu1 %v10676_v51 }
  0xbf   : > { %1483 = vmatprep.mubr.bf16.mxu0 %v10677_v52  ;;  %1709 = vmatprep.mubr.bf16.mxu1 %v10677_v52 }
  0xc0   : > { %6232 = vmatpush1.bf16.msra.mxu0 %v10700_v53  ;;  %10037 = vmatpush1.bf16.msra.mxu1 %v11355_v61 }
  0xc1   : > { %6233 = vmatprep.subr.bf16.mxu0 %v17275_v21  ;;  %10022 = vmatprep.subr.bf16.mxu1 %v17275_v21 }
  0xc4   : > { %6234 = vmatpush1.bf16.msra.mxu0 %v10702_v55  ;;  %10038 = vmatpush1.bf16.msra.mxu1 %v11362_v62 }
  0xc5   : > { %6235 = vmatprep.subr.bf16.mxu0 %v17275_v21  ;;  %10023 = vmatprep.subr.bf16.mxu1 %v17275_v21 }
  0xc6   : > { %1484 = vmatmul.mubr.bf16.gmra.mrb[28].mxu0 %v10679_v54  ;;  %1710 = vmatmul.mubr.bf16.gmra.mrb[28].mxu1 %v10679_v54 }
  0xc8   : > { %6236 = vmatpush1.bf16.msra.mxu0 %v10704_v57  ;;  %10039 = vmatpush1.bf16.msra.mxu1 %v11369_v63 }
  0xc9   : > { %6237 = vmatprep.subr.bf16.mxu0 %v17275_v21  ;;  %10024 = vmatprep.subr.bf16.mxu1 %v17275_v21 }
  0xcc   : > { %6238 = vmatpush1.bf16.msra.mxu0 %v10706_v59  ;;  %10040 = vmatpush1.bf16.msra.mxu1 %v11376_v0 }
  0xcd   : > { %6752 = vmatprep.subr.bf16.mxu0 %v17275_v21 }
 0x161   : > { %v1415_v12 = vpop.f32.mrb[0].mxu0  ;;  %v1641_v13 = vpop.f32.mrb[0].mxu1 }
 0x162   : > { %v11391_v14 = vadd.f32 %v1415_v12, %v11382_v8  ;;  %v1417_v15 = vpop.f32.mrb[1].mxu0  ;;  %v1643_v16 = vpop.f32.mrb[1].mxu1  ;;  %v11400_v24 = vadd.f32 %v1641_v13, %v11388_v11 }
 0x163   : > { %v11394_v17 = vadd.f32 %v1417_v15, %v11384_v9  ;;  %v11397_v18 = vadd.f32 %v1643_v16, %v11386_v10  ;;  %v1419_v19 = vpop.f32.mrb[2].mxu0  ;;  %v1645_v22 = vpop.f32.mrb[2].mxu1 }
 0x164   : > { %17827 = vst [vmem:[#allocation3_spill] sm:$0xff] %v11391_v14  ;;  %17830 = vst [vmem:[#allocation6_spill] sm:$0xff] %v11400_v24  ;;  %v11403_v25 = vadd.f32 %v1419_v19, %v11382_v8  ;;  %v1421_v26 = vpop.f32.mrb[3].mxu0  ;;  %v1647_v28 = vpop.f32.mrb[3].mxu1  ;;  %v1720_v30 = vmul.f32 0.5, %v11391_v14  ;;  %v11417_v37 = vadd.f32 %v1645_v22, %v11388_v11  ;;  %v11440_v50 = vmul.f32 0.5, %v11400_v24 }
 0x165   : > { %17828 = vst [vmem:[#allocation4_spill] sm:$0xff] %v11394_v17  ;;  %17829 = vst [vmem:[#allocation5_spill] sm:$0xff] %v11397_v18  ;;  %v11407_v31 = vadd.f32 %v1421_v26, %v11384_v9  ;;  %v11410_v32 = vadd.f32 %v1647_v28, %v11386_v10  ;;  %v1721_v34 = vmul.f32 0.5, %v11394_v17  ;;  %v11414_v36 = vmul.f32 0.5, %v11397_v18 }
 0x166   : > { %17831 = vst [vmem:[#allocation7_spill] sm:$0xff] %v11403_v25  ;;  %17835 = vst [vmem:[#allocation11_spill] sm:$0xff] %v11417_v37  ;;  %v11420_v38 = vmul.f32 0.5, %v11403_v25  ;;  %vm1848_vm0 = vcmp.ge.f32.partialorder %v1720_v30, 1.0  ;;  %v11449_v57 = vmul.f32 0.5, %v11417_v37 }
 0x167   : > { %17832 = vst [vmem:[#allocation8_spill] sm:$0xff] %v11407_v31  ;;  %17833 = vst [vmem:[#allocation9_spill] sm:$0xff] %v11410_v32  ;;  %v1725_v40 = vmul.f32 0.5, %v11407_v31  ;;  %vm1849_vm1 = vcmp.ge.f32.partialorder %v1721_v34, 1.0  ;;  %v11424_v42 = vmul.f32 0.5, %v11410_v32  ;;  %vm17805_vm2 = vcmp.ge.f32.partialorder %v11414_v36, 1.0 }
 0x168   : > { %17834 = vst [vmem:[#allocation10_spill] sm:$0xff] %v11414_v36  ;;  %v2105_v43 = vsel %vm1849_vm1, 0.0, %v1721_v34  ;;  %vm1852_vm3 = vcmp.ge.f32.partialorder %v11420_v38, 1.0  ;;  %v11432_v44 = vsel %vm17805_vm2, 0.0, %v11414_v36  ;;  %v11435_v46 = vsel %vm1848_vm0, 0.0, %v1720_v30  ;;  %17837 = vst [vmem:[#allocation13_spill] sm:$0xff] %v11440_v50 }
 0x169   : > { %17836 = vst [vmem:[#allocation12_spill] sm:$0xff] %v11424_v42  ;;  %v1425_v47 = vpop.f32.mrb[4].mxu0  ;;  %v1651_v48 = vpop.f32.mrb[4].mxu1  ;;  %vm1853_vm4 = vcmp.ge.f32.partialorder %v1725_v40, 1.0  ;;  %v2169_v49 = vsub.f32 %v11394_v17, %v2105_v43  ;;  %vm17797_vm5 = vcmp.ge.f32.partialorder %v11424_v42, 1.0  ;;  %v2171_v55 = vsub.f32 %v11397_v18, %v11432_v44  ;;  %17839 = vst [vmem:[#allocation15_spill] sm:$0xff] %v11449_v57 }
 0x16a   : > { %v11443_v51 = vadd.f32 %v1425_v47, %v11382_v8  ;;  %v1427_v52 = vpop.f32.mrb[5].mxu0  ;;  %v1653_v53 = vpop.f32.mrb[5].mxu1  ;;  %v2109_v54 = vsel %vm1853_vm4, 0.0, %v1725_v40  ;;  %vm9377_vm6 = vmpackc.low %vm1853_vm4, %vm1849_vm1  ;;  %v11462_v6 = vsel %vm17797_vm5, 0.0, %v11424_v42  ;;  %v11465_v7 = vadd.f32 %v1651_v48, %v11388_v11 }
 0x16b   : > { %v11452_v59 = vadd.f32 %v1427_v52, %v11384_v9  ;;  %v1429_v1 = vpop.f32.mrb[6].mxu0  ;;  %v1655_v2 = vpop.f32.mrb[6].mxu1  ;;  %v2173_v3 = vsub.f32 %v11407_v31, %v2109_v54  ;;  %v2233_v4 = vmul.f32 0.5, %v2169_v49  ;;  %9378 = vmatprep.mubr.msk.bf16.mxu0 %vm9377_vm6, %v17273_v5  ;;  %vm9379_vm7 = vmpackc.low %vm1852_vm3, %vm1848_vm0  ;;  %v11468_v12 = vadd.f32 %v1653_v53, %v11386_v10 }
 0x16c   : > { %17838 = vst [vmem:[#allocation14_spill] sm:$0xff] %v11443_v51  ;;  %17841 = vst [vmem:[#allocation17_spill] sm:$0xff] %v11465_v7  ;;  %v11471_v13 = vadd.f32 %v1429_v1, %v11382_v8  ;;  %v1431_v15 = vpop.f32.mrb[7].mxu0  ;;  %v1657_v16 = vpop.f32.mrb[7].mxu1  ;;  %9380 = vmatmul.mubr.msk.bf16.vlgmr.msra.gmra.mrb[32].mxu0 %vm9379_vm7, %v17273_v5  ;;  %v1728_v19 = vmul.f32 0.5, %v11443_v51  ;;  %v11476_v22 = vadd.f32 %v1655_v2, %v11388_v11  ;;  %v11501_v1 = vmul.f32 0.5, %v2171_v55 }
 0x16d   : > { %17840 = vst [vmem:[#allocation16_spill] sm:$0xff] %v11452_v59  ;;  %17842 = vst [vmem:[#allocation18_spill] sm:$0xff] %v11468_v12  ;;  %v2237_v26 = vmul.f32 0.5, %v2173_v3  ;;  %v11479_v28 = vadd.f32 %v1431_v15, %v11384_v9  ;;  %6753 = vmatpush1.bf16.msra.mxu0 %v11195_v20  ;;  %v1729_v30 = vmul.f32 0.5, %v11452_v59  ;;  %v11484_v34 = vadd.f32 %v1657_v16, %v11386_v10 }
 0x16e   : > { %17843 = vst [vmem:[#allocation19_spill] sm:$0xff] %v11471_v13  ;;  %17844 = vst [vmem:[#allocation20_spill] sm:$0xff] %v11476_v22  ;;  %v1732_v40 = vmul.f32 0.5, %v11471_v13  ;;  %vm1856_vm8 = vcmp.ge.f32.partialorder %v1728_v19, 1.0  ;;  %6754 = vmatprep.subr.bf16.mxu0 %v17275_v21  ;;  %v11494_v20 = vadd.f32 %v2233_v4, %v2105_v43  ;;  %v17852_v36 = vmov 0  }
 0x16f   : > { %17845 = vst [vmem:[#allocation21_spill] sm:$0xff] %v11479_v28  ;;  %17846 = vst [vmem:[#allocation22_spill] sm:$0xff] %v11484_v34  ;;  %v1733_v48 = vmul.f32 0.5, %v11479_v28  ;;  %vm1857_vm9 = vcmp.ge.f32.partialorder %v1729_v30, 1.0  ;;  %v11492_v49 = vsel %vm1856_vm8, 0.0, %v1728_v19  ;;  %v11509_v43 = vadd.f32 %v2237_v26, %v2109_v54 }
 0x170   : > { %17847 = vst [vmem:[#allocation23_spill] sm:$0xff] %v11492_v49  ;;  %v11497_v52 = vsel %vm1857_vm9, 0.0, %v1729_v30  ;;  %vm1860_vm10 = vcmp.ge.f32.partialorder %v1732_v40, 1.0  ;;  %v2176_v53 = vsub.f32 %v11443_v51, %v11492_v49  ;;  %v17855_v30 = vmov 1.0|1.0  }
 0x171   : > { %v1435_v2 = vpop.f32.mrb[8].mxu0  ;;  %v1661_v3 = vpop.f32.mrb[8].mxu1  ;;  %vm1861_vm11 = vcmp.ge.f32.partialorder %v1733_v48, 1.0  ;;  %v2177_v15 = vsub.f32 %v11452_v59, %v11497_v52  ;;  %v11506_v16 = vsel %vm1860_vm10, 0.0, %v1732_v40  ;;  %6755 = vmatpush1.bf16.msra.mxu0 %v11205_v23  ;;  %vm9383_vm13 = vmpackc.low %vm1860_vm10, %vm1856_vm8 }
 0x172   : > { %17848 = vst [vmem:[#allocation24_spill] sm:$0xff] %v11506_v16  ;;  %v11512_v4 = vadd.f32 %v1435_v2, %v11382_v8  ;;  %v11515_v47 = vadd.f32 %v1661_v3, %v11388_v11  ;;  %v1437_v55 = vpop.f32.mrb[9].mxu0  ;;  %v1663_v5 = vpop.f32.mrb[9].mxu1  ;;  %v11517_v21 = vsel %vm1861_vm11, 0.0, %v1733_v48  ;;  %vm9381_vm12 = vmpackc.low %vm1861_vm11, %vm1857_vm9  ;;  %v2180_v42 = vsub.f32 %v11471_v13, %v11506_v16  ;;  %6756 = vmatprep.subr.bf16.mxu0 %v17852_v36 }
 0x173   : > { %17851 = vst [vmem:[#allocation27_spill] sm:$0xff] %v11517_v21  ;;  %v11524_v23 = vadd.f32 %v1437_v55, %v11384_v9  ;;  %v11527_v54 = vadd.f32 %v1663_v5, %v11386_v10  ;;  %v1439_v26 = vpop.f32.mrb[10].mxu0  ;;  %v1665_v2 = vpop.f32.mrb[10].mxu1  ;;  %v2181_v3 = vsub.f32 %v11479_v28, %v11517_v21  ;;  %v11531_v48 = vmul.f32 0.5, %v2177_v15  ;;  %9382 = vmatprep.mubr.msk.bf16.mxu0 %vm9381_vm12, %v17855_v30 }
 0x174   : > { %17849 = vst [vmem:[#allocation25_spill] sm:$0xff] %v11512_v4  ;;  %17850 = vst [vmem:[#allocation26_spill] sm:$0xff] %v11515_v47  ;;  %v11537_v13 = vadd.f32 %v1439_v26, %v11382_v8  ;;  %v11540_v55 = vadd.f32 %v1665_v2, %v11388_v11  ;;  %v1441_v5 = vpop.f32.mrb[11].mxu0  ;;  %v1667_v51 = vpop.f32.mrb[11].mxu1  ;;  %v11542_v22 = vmul.f32 0.5, %v2176_v53  ;;  %v11544_v7 = vmul.f32 0.5, %v2180_v42  ;;  %9384 = vmatmul.mubr.msk.bf16.gmra.mrb[36].mxu0 %vm9383_vm13, %v17855_v30 }
 0x175   : > { %17853 = vst [vmem:[#allocation28_spill] sm:$0xff] %v11524_v23  ;;  %17854 = vst [vmem:[#allocation29_spill] sm:$0xff] %v11527_v54  ;;  %v11547_v15 = vmul.f32 0.5, %v2181_v3  ;;  %v11550_v19 = vadd.f32 %v1441_v5, %v11384_v9  ;;  %v11553_v40 = vadd.f32 %v1667_v51, %v11386_v10  ;;  %v1737_v26 = vmul.f32 0.5, %v11524_v23  ;;  %6757 = vmatpush1.bf16.msra.mxu0 %v11219_v27 }
 0x176   : > { %17856 = vst [vmem:[#allocation30_spill] sm:$0xff] %v11537_v13  ;;  %17857 = vst [vmem:[#allocation31_spill] sm:$0xff] %v11540_v55  ;;  %v1739_v2 = vmul.f32 0.5, %v11527_v54  ;;  %v1736_v53 = vmul.f32 0.5, %v11512_v4  ;;  %v1740_v42 = vmul.f32 0.5, %v11537_v13  ;;  %6758 = vmatprep.subr.bf16.mxu0 %v17852_v36  ;;  %v11567_v5 = vmul.f32 0.5, %v11540_v55 }
 0x177   : > { %17858 = vst [vmem:[#allocation32_spill] sm:$0xff] %v11542_v22  ;;  %17859 = vst [vmem:[#allocation33_spill] sm:$0xff] %v11544_v7  ;;  %v11561_v7 = vmul.f32 0.5, %v11515_v47  ;;  %v1741_v3 = vmul.f32 0.5, %v11550_v19  ;;  %vm1865_vm14 = vcmp.ge.f32.partialorder %v1737_v26, 1.0  ;;  %v1743_v51 = vmul.f32 0.5, %v11553_v40 }
 0x178   : > { %17860 = vst [vmem:[#allocation34_spill] sm:$0xff] %v11547_v15  ;;  %17861 = vst [vmem:[#allocation35_spill] sm:$0xff] %v11550_v19  ;;  %v11570_v27 = vsel %vm1865_vm14, 0.0, %v1737_v26  ;;  %vm1867_vm15 = vcmp.ge.f32.partialorder %v1739_v2, 1.0  ;;  %vm1864_vm0 = vcmp.ge.f32.partialorder %v1736_v53, 1.0  ;;  %vm1868_vm1 = vcmp.ge.f32.partialorder %v1740_v42, 1.0 }
 0x179   : > { %17862 = vst [vmem:[#allocation36_spill] sm:$0xff] %v11553_v40  ;;  %17863 = vst [vmem:[#allocation37_spill] sm:$0xff] %v11561_v7  ;;  %v1445_v16 = vpop.f32.mrb[12].mxu0  ;;  %v1671_v22 = vpop.f32.mrb[12].mxu1  ;;  %vm1869_vm4 = vcmp.ge.f32.partialorder %v1741_v3, 1.0  ;;  %v2185_v47 = vsub.f32 %v11524_v23, %v11570_v27  ;;  %vm1871_vm6 = vcmp.ge.f32.partialorder %v1743_v51, 1.0  ;;  %6759 = vmatpush1.bf16.msra.mxu0 %v11230_v29 }
 0x17a   : > { %17864 = vst [vmem:[#allocation38_spill] sm:$0xff] %v11567_v5  ;;  %17865 = vst [vmem:[#allocation39_spill] sm:$0xff] %v11570_v27  ;;  %v11575_v49 = vsel %vm1867_vm15, 0.0, %v1739_v2  ;;  %v11579_v55 = vadd.f32 %v1445_v16, %v11382_v8  ;;  %v11582_v34 = vadd.f32 %v1671_v22, %v11388_v11  ;;  %v1447_v28 = vpop.f32.mrb[13].mxu0  ;;  %v1673_v59 = vpop.f32.mrb[13].mxu1  ;;  %v11584_v12 = vsel %vm1869_vm4, 0.0, %v1741_v3  ;;  %6760 = vmatprep.subr.bf16.mxu0 %v17852_v36 }
 0x17b   : > { %17866 = vst [vmem:[#allocation40_spill] sm:$0xff] %v11575_v49  ;;  %17869 = vst [vmem:[#allocation43_spill] sm:$0xff] %v11584_v12  ;;  %v11588_v23 = vsel %vm1871_vm6, 0.0, %v1743_v51  ;;  %v11592_v27 = vadd.f32 %v1447_v28, %v11384_v9  ;;  %v11595_v29 = vadd.f32 %v1673_v59, %v11386_v10  ;;  %v1449_v16 = vpop.f32.mrb[14].mxu0  ;;  %v1675_v22 = vpop.f32.mrb[14].mxu1  ;;  %v2189_v15 = vsub.f32 %v11550_v19, %v11584_v12 }
 0x17c   : > { %17867 = vst [vmem:[#allocation41_spill] sm:$0xff] %v11579_v55  ;;  %17868 = vst [vmem:[#allocation42_spill] sm:$0xff] %v11582_v34  ;;  %v11599_v3 = vmul.f32 0.5, %v2185_v47  ;;  %v11605_v26 = vadd.f32 %v1449_v16, %v11382_v8  ;;  %v11608_v28 = vadd.f32 %v1675_v22, %v11388_v11  ;;  %v2187_v59 = vsub.f32 %v11527_v54, %v11575_v49  ;;  %v1451_v47 = vpop.f32.mrb[15].mxu0  ;;  %v1677_v19 = vpop.f32.mrb[15].mxu1 }
 0x17d   : > { %vm9385_vm7 = vmpackc.low %vm1869_vm4, %vm1865_vm14  ;;  %17870 = vst [vmem:[#allocation44_spill] sm:$0xff] %v11588_v23  ;;  %v2191_v21 = vsub.f32 %v11553_v40, %v11588_v23  ;;  %v11617_v2 = vmul.f32 0.5, %v2189_v15  ;;  %v11620_v51 = vadd.f32 %v1451_v47, %v11384_v9  ;;  %v11623_v16 = vadd.f32 %v1677_v19, %v11386_v10  ;;  %6761 = vmatpush1.bf16.msra.mxu0 %v11243_v33 }
 0x17e   : > { %17871 = vst [vmem:[#allocation45_spill] sm:$0xff] %v11592_v27  ;;  %17872 = vst [vmem:[#allocation46_spill] sm:$0xff] %v11595_v29  ;;  %9386 = vmatprep.mubr.msk.bf16.mxu0 %vm9385_vm7, %v17855_v30  ;;  %v11626_v22 = vsel %vm1864_vm0, 0.0, %v1736_v53  ;;  %v11629_v40 = vmul.f32 0.5, %v2187_v59  ;;  %v11634_v23 = vsel %vm1868_vm1, 0.0, %v1740_v42  ;;  %vm1866_vm10 = vcmp.ge.f32.partialorder %v11561_v7, 1.0  ;;  %6762 = vmatprep.subr.bf16.mxu0 %v17852_v36 }
 0x17f   : > { %17873 = vst [vmem:[#allocation47_spill] sm:$0xff] %v11599_v3  ;;  %vm9641_vm8 = vmpackc.low %vm1871_vm6, %vm1867_vm15  ;;  %v11631_v54 = vmul.f32 0.5, %v2191_v21  ;;  %v2184_v15 = vsub.f32 %v11512_v4, %v11626_v22  ;;  %v2188_v19 = vsub.f32 %v11537_v13, %v11634_v23  ;;  %vm1870_vm11 = vcmp.ge.f32.partialorder %v11567_v5, 1.0 }
 0x180   : > { %17874 = vst [vmem:[#allocation48_spill] sm:$0xff] %v11605_v26  ;;  %17875 = vst [vmem:[#allocation49_spill] sm:$0xff] %v11608_v28  ;;  %9642 = vmatprep.mubr.msk.bf16.mxu1 %vm9641_vm8, %v17855_v30  ;;  %v1745_v53 = vmul.f32 0.5, %v11592_v27  ;;  %v1749_v33 = vmul.f32 0.5, %v11620_v51  ;;  %v1747_v42 = vmul.f32 0.5, %v11595_v29  ;;  %v1751_v59 = vmul.f32 0.5, %v11623_v16 }
 0x181   : > { %vm9387_vm9 = vmpackc.low %vm1868_vm1, %vm1864_vm0  ;;  %17876 = vst [vmem:[#allocation50_spill] sm:$0xff] %v11617_v2  ;;  %v11645_v21 = vmul.f32 0.5, %v2184_v15  ;;  %v11654_v47 = vmul.f32 0.5, %v2188_v19  ;;  %v1455_v13 = vpop.f32.mrb[16].mxu0  ;;  %v1681_v4 = vpop.f32.mrb[16].mxu1  ;;  %v1744_v15 = vmul.f32 0.5, %v11579_v55  ;;  %6763 = vmatpush1.bf16.msra.mxu0 %v11254_v35 }
 0x182   : > { %17877 = vst [vmem:[#allocation51_spill] sm:$0xff] %v11620_v51  ;;  %17878 = vst [vmem:[#allocation52_spill] sm:$0xff] %v11623_v16  ;;  %9388 = vmatmul.mubr.msk.bf16.gmra.mrb[40].mxu0 %vm9387_vm9, %v17855_v30  ;;  %vm1873_vm13 = vcmp.ge.f32.partialorder %v1745_v53, 1.0  ;;  %v1748_v7 = vmul.f32 0.5, %v11605_v26  ;;  %v11660_v5 = vadd.f32 %v1455_v13, %v11382_v8  ;;  %vm1877_vm14 = vcmp.ge.f32.partialorder %v1749_v33, 1.0  ;;  %6764 = vmatprep.subr.bf16.mxu0 %v17852_v36 }
 0x183   : > { %17879 = vst [vmem:[#allocation53_spill] sm:$0xff] %v11626_v22  ;;  %17880 = vst [vmem:[#allocation54_spill] sm:$0xff] %v11629_v40  ;;  %v1683_v22 = vpop.f32.mrb[17].mxu1  ;;  %v11666_v19 = vsel %vm1873_vm13, 0.0, %v1745_v53  ;;  %v11675_v49 = vsel %vm1877_vm14, 0.0, %v1749_v33  ;;  %vm1875_vm0 = vcmp.ge.f32.partialorder %v1747_v42, 1.0 }
 0x184   : > { %17881 = vst [vmem:[#allocation55_spill] sm:$0xff] %v11631_v54  ;;  %17882 = vst [vmem:[#allocation56_spill] sm:$0xff] %v11634_v23  ;;  %v11663_v23 = vadd.f32 %v1681_v4, %v11388_v11  ;;  %v11673_v54 = vadd.f32 %v1683_v22, %v11386_v10  ;;  %v1685_v13 = vpop.f32.mrb[18].mxu1  ;;  %v2193_v4 = vsub.f32 %v11592_v27, %v11666_v19  ;;  %vm1879_vm1 = vcmp.ge.f32.partialorder %v1751_v59, 1.0 }
 0x185   : > { %17883 = vst [vmem:[#allocation57_spill] sm:$0xff] %v11645_v21  ;;  %vm9643_vm12 = vmpackc.low %vm1870_vm11, %vm1866_vm10  ;;  %v1457_v21 = vpop.f32.mrb[17].mxu0  ;;  %v11685_v35 = vadd.f32 %v1685_v13, %v11388_v11  ;;  %v2197_v22 = vsub.f32 %v11620_v51, %v11675_v49  ;;  %v1687_v33 = vpop.f32.mrb[19].mxu1  ;;  %v11692_v53 = vsel %vm1875_vm0, 0.0, %v1747_v42  ;;  %v11699_v13 = vsel %vm1879_vm1, 0.0, %v1751_v59  ;;  %6765 = vmatpush1.bf16.msra.mxu0 %v11267_v39 }
 0x186   : > { %17884 = vst [vmem:[#allocation58_spill] sm:$0xff] %v11654_v47  ;;  %9644 = vmatmul.mubr.msk.bf16.vlgmr.msra.gmra.mrb[32].mxu1 %vm9643_vm12, %v17855_v30  ;;  %17885 = vst [vmem:[#allocation59_spill] sm:$0xff] %v11660_v5  ;;  %v11670_v47 = vadd.f32 %v1457_v21, %v11384_v9  ;;  %v1459_v40 = vpop.f32.mrb[18].mxu0  ;;  %v11690_v12 = vmul.f32 0.5, %v2193_v4  ;;  %v2195_v51 = vsub.f32 %v11595_v29, %v11692_v53  ;;  %vm1872_vm6 = vcmp.ge.f32.partialorder %v1744_v15, 1.0 }
 0x187   : > { %17886 = vst [vmem:[#allocation60_spill] sm:$0xff] %v11663_v23  ;;  %17887 = vst [vmem:[#allocation61_spill] sm:$0xff] %v11666_v19  ;;  %v11682_v2 = vadd.f32 %v1459_v40, %v11382_v8  ;;  %v1461_v21 = vpop.f32.mrb[19].mxu0  ;;  %v11697_v40 = vmul.f32 0.5, %v2197_v22  ;;  %v2199_v42 = vsub.f32 %v11623_v16, %v11699_v13  ;;  %vm1876_vm7 = vcmp.ge.f32.partialorder %v1748_v7, 1.0  ;;  %6766 = vmatprep.subr.bf16.mxu0 %v17852_v36 }
 0x188   : > { %17888 = vst [vmem:[#allocation62_spill] sm:$0xff] %v11670_v47  ;;  %17889 = vst [vmem:[#allocation63_spill] sm:$0xff] %v11673_v54  ;;  %v11695_v27 = vadd.f32 %v1461_v21, %v11384_v9  ;;  %v1746_v4 = vmul.f32 0.5, %v11582_v34  ;;  %v11712_v59 = vmul.f32 0.5, %v2195_v51  ;;  %v11714_v22 = vsel %vm1872_vm6, 0.0, %v1744_v15 }
 0x189   : > { %17890 = vst [vmem:[#allocation64_spill] sm:$0xff] %v11675_v49  ;;  %vm9389_vm15 = vmpackc.low %vm1877_vm14, %vm1873_vm13  ;;  %v11704_v49 = vadd.f32 %v1687_v33, %v11386_v10  ;;  %v11716_v21 = vsel %vm1876_vm7, 0.0, %v1748_v7  ;;  %v1750_v39 = vmul.f32 0.5, %v11608_v28  ;;  %v11719_v33 = vmul.f32 0.5, %v2199_v42  ;;  %v1465_v51 = vpop.f32.mrb[20].mxu0  ;;  %6767 = vmatpush1.bf16.msra.mxu0 %v11278_v41 }
 0x18a   : > { %17891 = vst [vmem:[#allocation65_spill] sm:$0xff] %v11682_v2  ;;  %17892 = vst [vmem:[#allocation66_spill] sm:$0xff] %v11685_v35  ;;  %9390 = vmatprep.mubr.msk.bf16.mxu0 %vm9389_vm15, %v17855_v30  ;;  %v2192_v16 = vsub.f32 %v11579_v55, %v11714_v22  ;;  %v2196_v29 = vsub.f32 %v11605_v26, %v11716_v21  ;;  %vm1874_vm9 = vcmp.ge.f32.partialorder %v1746_v4, 1.0  ;;  %6768 = vmatprep.subr.bf16.mxu0 %v17852_v36 }
 0x18b   : > { %17893 = vst [vmem:[#allocation67_spill] sm:$0xff] %v11690_v12  ;;  %17894 = vst [vmem:[#allocation68_spill] sm:$0xff] %v11692_v53  ;;  %vm1878_vm12 = vcmp.ge.f32.partialorder %v1750_v39, 1.0  ;;  %v11726_v15 = vsel %vm1874_vm9, 0.0, %v1746_v4  ;;  %v11729_v7 = vadd.f32 %v1465_v51, %v11382_v8 }
 0x18c   : > { %17895 = vst [vmem:[#allocation69_spill] sm:$0xff] %v11695_v27  ;;  %17896 = vst [vmem:[#allocation70_spill] sm:$0xff] %v11697_v40  ;;  %v11735_v55 = vmul.f32 0.5, %v2192_v16  ;;  %v11737_v26 = vmul.f32 0.5, %v2196_v29  ;;  %v2194_v4 = vsub.f32 %v11582_v34, %v11726_v15 }
 0x18d   : > { %17897 = vst [vmem:[#allocation71_spill] sm:$0xff] %v11699_v13  ;;  %vm9645_vm4 = vmpackc.low %vm1879_vm1, %vm1875_vm0  ;;  %v1691_v13 = vpop.f32.mrb[20].mxu1  ;;  %6769 = vmatpush1.bf16.msra.mxu0 %v11291_v45 }
 0x18e   : > { %17898 = vst [vmem:[#allocation72_spill] sm:$0xff] %v11704_v49  ;;  %9646 = vmatprep.mubr.msk.bf16.mxu1 %vm9645_vm4, %v17855_v30  ;;  %17899 = vst [vmem:[#allocation73_spill] sm:$0xff] %v11712_v59  ;;  %v11732_v42 = vadd.f32 %v1691_v13, %v11388_v11  ;;  %v1693_v59 = vpop.f32.mrb[21].mxu1  ;;  %6770 = vmatprep.subr.bf16.mxu0 %v17852_v36 }
 0x18f   : > { %17900 = vst [vmem:[#allocation74_spill] sm:$0xff] %v11714_v22  ;;  %17901 = vst [vmem:[#allocation75_spill] sm:$0xff] %v11716_v21  ;;  %v11739_v21 = vsel %vm1878_vm12, 0.0, %v1750_v39  ;;  %v1695_v51 = vpop.f32.mrb[22].mxu1  ;;  %v11751_v29 = vadd.f32 %v1693_v59, %v11386_v10  ;;  %v1759_v59 = vmul.f32 0.5, %v11704_v49 }
 0x190   : > { %vm9391_vm8 = vmpackc.low %vm1876_vm7, %vm1872_vm6  ;;  %17902 = vst [vmem:[#allocation76_spill] sm:$0xff] %v11719_v33  ;;  %v1467_v33 = vpop.f32.mrb[21].mxu0  ;;  %v2198_v13 = vsub.f32 %v11608_v28, %v11739_v21  ;;  %v1697_v34 = vpop.f32.mrb[23].mxu1  ;;  %v1753_v28 = vmul.f32 0.5, %v11670_v47 }
 0x191   : > { %9392 = vmatmul.mubr.msk.bf16.gmra.mrb[44].mxu0 %vm9391_vm8, %v17855_v30  ;;  %17903 = vst [vmem:[#allocation77_spill] sm:$0xff] %v11726_v15  ;;  %17904 = vst [vmem:[#allocation78_spill] sm:$0xff] %v11729_v7  ;;  %v1469_v22 = vpop.f32.mrb[22].mxu0  ;;  %v11748_v41 = vadd.f32 %v1467_v33, %v11384_v9  ;;  %v11756_v15 = vmul.f32 0.5, %v2194_v4  ;;  %v1755_v33 = vmul.f32 0.5, %v11673_v54  ;;  %v11772_v4 = vadd.f32 %v1697_v34, %v11386_v10  ;;  %v1701_v53 = vpop.f32.mrb[24].mxu1 }
 0x192   : > { %17905 = vst [vmem:[#allocation79_spill] sm:$0xff] %v11732_v42  ;;  %17906 = vst [vmem:[#allocation80_spill] sm:$0xff] %v11735_v55  ;;  %v11754_v16 = vadd.f32 %v1469_v22, %v11382_v8  ;;  %v1471_v39 = vpop.f32.mrb[23].mxu0  ;;  %v11763_v55 = vmul.f32 0.5, %v2198_v13  ;;  %vm1881_vm14 = vcmp.ge.f32.partialorder %v1753_v28, 1.0  ;;  %vm1887_vm4 = vcmp.ge.f32.partialorder %v1759_v59, 1.0  ;;  %6771 = vmatpush1.bf16.msra.mxu0 %v11325_v56 }
 0x193   : > { %17907 = vst [vmem:[#allocation81_spill] sm:$0xff] %v11737_v26  ;;  %17908 = vst [vmem:[#allocation82_spill] sm:$0xff] %v11739_v21  ;;  %v11759_v26 = vadd.f32 %v1695_v51, %v11388_v11  ;;  %v1757_v21 = vmul.f32 0.5, %v11695_v27  ;;  %v11768_v22 = vadd.f32 %v1471_v39, %v11384_v9  ;;  %v1752_v51 = vmul.f32 0.5, %v11660_v5  ;;  %6772 = vmatprep.subr.bf16.mxu0 %v17852_v36 }
 0x194   : > { %vm9647_vm13 = vmpackc.low %vm1878_vm12, %vm1874_vm9  ;;  %17909 = vst [vmem:[#allocation83_spill] sm:$0xff] %v11748_v41  ;;  %v11776_v13 = vsel %vm1881_vm14, 0.0, %v1753_v28  ;;  %vm1883_vm1 = vcmp.ge.f32.partialorder %v1755_v33, 1.0  ;;  %v1475_v28 = vpop.f32.mrb[24].mxu0 }
 0x195   : > { %9648 = vmatmul.mubr.msk.bf16.gmra.mrb[36].mxu1 %vm9647_vm13, %v17855_v30  ;;  %17910 = vst [vmem:[#allocation84_spill] sm:$0xff] %v11751_v29  ;;  %17911 = vst [vmem:[#allocation85_spill] sm:$0xff] %v11754_v16  ;;  %vm1885_vm15 = vcmp.ge.f32.partialorder %v1757_v21, 1.0  ;;  %v2201_v39 = vsub.f32 %v11670_v47, %v11776_v13  ;;  %v11785_v34 = vsel %vm1883_vm1, 0.0, %v1755_v33  ;;  %v1756_v47 = vmul.f32 0.5, %v11682_v2 }
 0x196   : > { %17912 = vst [vmem:[#allocation86_spill] sm:$0xff] %v11756_v15  ;;  %17913 = vst [vmem:[#allocation87_spill] sm:$0xff] %v11759_v26  ;;  %v11787_v15 = vsel %vm1887_vm4, 0.0, %v1759_v59  ;;  %vm1880_vm7 = vcmp.ge.f32.partialorder %v1752_v51, 1.0  ;;  %v11816_v19 = vadd.f32 %v1475_v28, %v11382_v8  ;;  %6773 = vmatpush1.bf16.msra.mxu0 %v11336_v58  ;;  %v1761_v58 = vmul.f32 0.5, %v11748_v41 }
 0x197   : > { %17914 = vst [vmem:[#allocation88_spill] sm:$0xff] %v11763_v55  ;;  %17915 = vst [vmem:[#allocation89_spill] sm:$0xff] %v11768_v22  ;;  %v11778_v55 = vsel %vm1885_vm15, 0.0, %v1757_v21  ;;  %v2203_v21 = vsub.f32 %v11673_v54, %v11785_v34  ;;  %v2207_v40 = vsub.f32 %v11704_v49, %v11787_v15  ;;  %v11796_v33 = vmul.f32 0.5, %v2201_v39  ;;  %6774 = vmatprep.subr.bf16.mxu0 %v17852_v36 }
 0x198   : > { %17916 = vst [vmem:[#allocation90_spill] sm:$0xff] %v11772_v4  ;;  %17917 = vst [vmem:[#allocation91_spill] sm:$0xff] %v11776_v13  ;;  %v2205_v45 = vsub.f32 %v11695_v27, %v11778_v55  ;;  %v1477_v27 = vpop.f32.mrb[25].mxu0  ;;  %v11801_v13 = vsel %vm1880_vm7, 0.0, %v1752_v51  ;;  %v1754_v54 = vmul.f32 0.5, %v11663_v23  ;;  %vm1884_vm8 = vcmp.ge.f32.partialorder %v1756_v47, 1.0 }
 0x199   : > { %17918 = vst [vmem:[#allocation92_spill] sm:$0xff] %v11778_v55  ;;  %vm9393_vm0 = vmpackc.low %vm1885_vm15, %vm1881_vm14  ;;  %v1703_v55 = vpop.f32.mrb[25].mxu1  ;;  %v11807_v12 = vmul.f32 0.5, %v2207_v40  ;;  %v2200_v56 = vsub.f32 %v11660_v5, %v11801_v13  ;;  %vm1889_vm15 = vcmp.ge.f32.partialorder %v1761_v58, 1.0 }
 0x19a   : > { %9394 = vmatprep.mubr.msk.bf16.mxu0 %vm9393_vm0, %v17855_v30  ;;  %17919 = vst [vmem:[#allocation93_spill] sm:$0xff] %v11785_v34  ;;  %17920 = vst [vmem:[#allocation94_spill] sm:$0xff] %v11787_v15  ;;  %v11798_v59 = vmul.f32 0.5, %v2205_v45  ;;  %v1479_v34 = vpop.f32.mrb[26].mxu0  ;;  %v1705_v49 = vpop.f32.mrb[26].mxu1  ;;  %v11805_v15 = vmul.f32 0.5, %v2203_v21  ;;  %v11834_v28 = vadd.f32 %v1703_v55, %v11386_v10  ;;  %6775 = vmatpush1.bf16.msra.mxu0 %v11347_v60 }
 0x19b   : > { %vm9649_vm6 = vmpackc.low %vm1887_vm4, %vm1883_vm1  ;;  %17921 = vst [vmem:[#allocation95_spill] sm:$0xff] %v11796_v33  ;;  %v1481_v39 = vpop.f32.mrb[27].mxu0  ;;  %v1707_v45 = vpop.f32.mrb[27].mxu1  ;;  %v1758_v33 = vmul.f32 0.5, %v11685_v35  ;;  %vm1882_vm12 = vcmp.ge.f32.partialorder %v1754_v54, 1.0  ;;  %v11820_v21 = vmul.f32 0.5, %v2200_v56  ;;  %6776 = vmatprep.subr.bf16.mxu0 %v17852_v36 }
 0x19c   : > { %9650 = vmatprep.mubr.msk.bf16.mxu1 %vm9649_vm6, %v17855_v30  ;;  %17922 = vst [vmem:[#allocation96_spill] sm:$0xff] %v11798_v59  ;;  %17923 = vst [vmem:[#allocation97_spill] sm:$0xff] %v11801_v13  ;;  %v11811_v59 = vsel %vm1884_vm8, 0.0, %v1756_v47  ;;  %v11823_v5 = vsel %vm1882_vm12, 0.0, %v1754_v54  ;;  %v11826_v47 = vadd.f32 %v1701_v53, %v11388_v11  ;;  %v11831_v13 = vadd.f32 %v1477_v27, %v11384_v9 }
 0x19d   : > { %17924 = vst [vmem:[#allocation98_spill] sm:$0xff] %v11805_v15  ;;  %17925 = vst [vmem:[#allocation99_spill] sm:$0xff] %v11807_v12  ;;  %v2204_v40 = vsub.f32 %v11682_v2, %v11811_v59  ;;  %vm1886_vm13 = vcmp.ge.f32.partialorder %v1758_v33, 1.0  ;;  %v2202_v51 = vsub.f32 %v11663_v23, %v11823_v5  ;;  %v11842_v54 = vadd.f32 %v1479_v34, %v11382_v8  ;;  %v1711_v23 = vpop.f32.mrb[28].mxu1 }
 0x19e   : > { %17926 = vst [vmem:[#allocation100_spill] sm:$0xff] %v11811_v59  ;;  %vm9395_vm9 = vmpackc.low %vm1884_vm8, %vm1880_vm7  ;;  %v11839_v2 = vsel %vm1886_vm13, 0.0, %v1758_v33  ;;  %v11845_v53 = vadd.f32 %v1705_v49, %v11388_v11  ;;  %v1765_v33 = vmul.f32 0.5, %v11768_v22  ;;  %v1763_v34 = vmul.f32 0.5, %v11751_v29  ;;  %6777 = vmatpush1.bf16.msra.mxu0 %v11355_v61 }
 0x19f   : > { %17927 = vst [vmem:[#allocation101_spill] sm:$0xff] %v11816_v19  ;;  %17928 = vst [vmem:[#allocation102_spill] sm:$0xff] %v11820_v21  ;;  %9396 = vmatmul.mubr.msk.bf16.gmra.mrb[48].mxu0 %vm9395_vm9, %v17855_v30  ;;  %v11837_v56 = vmul.f32 0.5, %v2204_v40  ;;  %v2206_v27 = vsub.f32 %v11685_v35, %v11839_v2  ;;  %v11850_v55 = vmul.f32 0.5, %v2202_v51  ;;  %v1485_v40 = vpop.f32.mrb[28].mxu0  ;;  %v1767_v49 = vmul.f32 0.5, %v11772_v4  ;;  %6778 = vmatprep.subr.bf16.mxu0 %v17852_v36 }
 0x1a0   : > { %17929 = vst [vmem:[#allocation103_spill] sm:$0xff] %v11823_v5  ;;  %17930 = vst [vmem:[#allocation104_spill] sm:$0xff] %v11826_v47  ;;  %v11858_v5 = vadd.f32 %v1481_v39, %v11384_v9  ;;  %v1487_v51 = vpop.f32.mrb[29].mxu0  ;;  %v1713_v35 = vpop.f32.mrb[29].mxu1  ;;  %vm1893_vm0 = vcmp.ge.f32.partialorder %v1765_v33, 1.0  ;;  %v11867_v12 = vsel %vm1889_vm15, 0.0, %v1761_v58 }
 0x1a1   : > { %17931 = vst [vmem:[#allocation105_spill] sm:$0xff] %v11831_v13  ;;  %17932 = vst [vmem:[#allocation106_spill] sm:$0xff] %v11834_v28  ;;  %v1489_v59 = vpop.f32.mrb[30].mxu0  ;;  %v1715_v21 = vpop.f32.mrb[30].mxu1  ;;  %v11869_v15 = vsel %vm1893_vm0, 0.0, %v1765_v33  ;;  %vm1891_vm4 = vcmp.ge.f32.partialorder %v1763_v34, 1.0 }
 0x1a2   : > { %17933 = vst [vmem:[#allocation107_spill] sm:$0xff] %v11837_v56  ;;  %17934 = vst [vmem:[#allocation108_spill] sm:$0xff] %v11839_v2  ;;  %v11861_v56 = vadd.f32 %v1707_v45, %v11386_v10  ;;  %v11863_v2 = vmul.f32 0.5, %v2206_v27  ;;  %vm1895_vm6 = vcmp.ge.f32.partialorder %v1767_v49, 1.0  ;;  %v1491_v39 = vpop.f32.mrb[31].mxu0  ;;  %v1717_v45 = vpop.f32.mrb[31].mxu1  ;;  %v2209_v27 = vsub.f32 %v11748_v41, %v11867_v12  ;;  %6779 = vmatpush1.bf16.msra.mxu0 %v11362_v62 }
 0x1a3   : > { %vm9651_vm14 = vmpackc.low %vm1886_vm13, %vm1882_vm12  ;;  %17935 = vst [vmem:[#allocation109_spill] sm:$0xff] %v11842_v54  ;;  %v11877_v60 = vsel %vm1891_vm4, 0.0, %v1763_v34  ;;  %v11879_v58 = vsel %vm1895_vm6, 0.0, %v1767_v49  ;;  %v1764_v41 = vmul.f32 0.5, %v11754_v16  ;;  %v1762_v49 = vmul.f32 0.5, %v11732_v42  ;;  %6780 = vmatprep.subr.bf16.mxu0 %v17852_v36 }
 0x1a4   : > { %17936 = vst [vmem:[#allocation110_spill] sm:$0xff] %v11845_v53  ;;  %17937 = vst [vmem:[#allocation111_spill] sm:$0xff] %v11850_v55  ;;  %9652 = vmatmul.mubr.msk.bf16.gmra.mrb[40].mxu1 %vm9651_vm14, %v17855_v30  ;;  %v1760_v55 = vmul.f32 0.5, %v11729_v7  ;;  %v2211_v33 = vsub.f32 %v11751_v29, %v11877_v60  ;;  %v2215_v3 = vsub.f32 %v11772_v4, %v11879_v58  ;;  %v1769_v62 = vmul.f32 0.5, %v11831_v13 }
 0x1a5   : > { %17938 = vst [vmem:[#allocation112_spill] sm:$0xff] %v11858_v5  ;;  %17939 = vst [vmem:[#allocation113_spill] sm:$0xff] %v11861_v56  ;;  %vm1892_vm9 = vcmp.ge.f32.partialorder %v1764_v41, 1.0  ;;  %vm1890_vm13 = vcmp.ge.f32.partialorder %v1762_v49, 1.0 }
 0x1a6   : > { %17940 = vst [vmem:[#allocation114_spill] sm:$0xff] %v11863_v2  ;;  %17941 = vst [vmem:[#allocation115_spill] sm:$0xff] %v11867_v12  ;;  %v2213_v2 = vsub.f32 %v11768_v22, %v11869_v15  ;;  %vm1888_vm8 = vcmp.ge.f32.partialorder %v1760_v55, 1.0  ;;  %v11887_v12 = vmul.f32 0.5, %v2209_v27  ;;  %v11897_v29 = vmul.f32 0.5, %v2215_v3  ;;  %6781 = vmatpush1.bf16.msra.mxu0 %v11369_v63 }
 0x1a7   : > { %17942 = vst [vmem:[#allocation116_spill] sm:$0xff] %v11869_v15  ;;  %vm9397_vm1 = vmpackc.low %vm1893_vm0, %vm1889_vm15  ;;  %v11891_v34 = vsel %vm1888_vm8, 0.0, %v1760_v55  ;;  %v11895_v15 = vmul.f32 0.5, %v2211_v33  ;;  %v11902_v27 = vsel %vm1892_vm9, 0.0, %v1764_v41  ;;  %v11906_v55 = vadd.f32 %v1485_v40, %v11382_v8  ;;  %6782 = vmatprep.subr.bf16.mxu0 %v17852_v36 }
 0x1a8   : > { %9398 = vmatprep.mubr.msk.bf16.mxu0 %vm9397_vm1, %v17855_v30  ;;  %vm9653_vm7 = vmpackc.low %vm1895_vm6, %vm1891_vm4  ;;  %v11889_v22 = vmul.f32 0.5, %v2213_v2  ;;  %17943 = vst [vmem:[#allocation117_spill] sm:$0xff] %v11891_v34  ;;  %v2208_v4 = vsub.f32 %v11729_v7, %v11891_v34  ;;  %v1766_v2 = vmul.f32 0.5, %v11759_v26  ;;  %v2212_v61 = vsub.f32 %v11754_v16, %v11902_v27 }
 0x1a9   : > { %9654 = vmatprep.mubr.msk.bf16.mxu1 %vm9653_vm7, %v17855_v30  ;;  %vm9399_vm12 = vmpackc.low %vm1892_vm9, %vm1888_vm8  ;;  %17944 = vst [vmem:[#allocation118_spill] sm:$0xff] %v11906_v55  ;;  %v11913_v33 = vsel %vm1890_vm13, 0.0, %v1762_v49  ;;  %v11916_v7 = vadd.f32 %v1711_v23, %v11388_v11  ;;  %v11921_v34 = vadd.f32 %v1487_v51, %v11384_v9  ;;  %v11924_v40 = vadd.f32 %v1713_v35, %v11386_v10 }
 0x1aa   : > { %v11910_v3 = vmul.f32 0.5, %v2208_v4  ;;  %9400 = vmatmul.mubr.msk.bf16.gmra.mrb[52].mxu0 %vm9399_vm12, %v17855_v30  ;;  %vm1894_vm14 = vcmp.ge.f32.partialorder %v1766_v2, 1.0  ;;  %v2210_v41 = vsub.f32 %v11732_v42, %v11913_v33  ;;  %v11927_v4 = vmul.f32 0.5, %v2212_v61 }
 0x1ab   : > { %17945 = vst [vmem:[#allocation119_spill] sm:$0xff] %v11916_v7  ;;  %17946 = vst [vmem:[#allocation120_spill] sm:$0xff] %v11921_v34  ;;  %v11929_v16 = vsel %vm1894_vm14, 0.0, %v1766_v2  ;;  %v11932_v23 = vadd.f32 %v1489_v59, %v11382_v8  ;;  %v11935_v49 = vadd.f32 %v1715_v21, %v11388_v11  ;;  %v1773_v2 = vmul.f32 0.5, %v11858_v5  ;;  %6783 = vmatpush1.bf16.msra.mxu0 %v11376_v0 }
 0x1ac   : > { %17947 = vst [vmem:[#allocation121_spill] sm:$0xff] %v11924_v40  ;;  %vm9655_vm15 = vmpackc.low %vm1894_vm14, %vm1890_vm13  ;;  %v2214_v51 = vsub.f32 %v11759_v26, %v11929_v16  ;;  %v11940_v35 = vmul.f32 0.5, %v2210_v41  ;;  %v1771_v61 = vmul.f32 0.5, %v11834_v28  ;;  %v1775_v8 = vmul.f32 0.5, %v11861_v56 }
 0x1ad   : > { %17948 = vst [vmem:[#allocation122_spill] sm:$0xff] %v11932_v23  ;;  %17949 = vst [vmem:[#allocation123_spill] sm:$0xff] %v11935_v49  ;;  %9656 = vmatmul.mubr.msk.bf16.gmra.mrb[44].mxu1 %vm9655_vm15, %v17855_v30  ;;  %v11948_v11 = vadd.f32 %v1491_v39, %v11384_v9  ;;  %v11951_v59 = vadd.f32 %v1717_v45, %v11386_v10  ;;  %vm1897_vm0 = vcmp.ge.f32.partialorder %v1769_v62, 1.0  ;;  %vm1901_vm1 = vcmp.ge.f32.partialorder %v1773_v2, 1.0 }
 0x1ae   : > { %v11953_v21 = vmul.f32 0.5, %v2214_v51  ;;  %v1768_v41 = vmul.f32 0.5, %v11816_v19  ;;  %v11957_v26 = vsel %vm1897_vm0, 0.0, %v1769_v62  ;;  %v11959_v42 = vsel %vm1901_vm1, 0.0, %v1773_v2  ;;  %vm9401_vm4 = vmpackc.low %vm1901_vm1, %vm1897_vm0 }
 0x1af   : > { %17950 = vst [vmem:[#allocation124_spill] sm:$0xff] %v11948_v11  ;;  %17951 = vst [vmem:[#allocation125_spill] sm:$0xff] %v11951_v59  ;;  %vm1899_vm6 = vcmp.ge.f32.partialorder %v1771_v61, 1.0  ;;  %vm1903_vm7 = vcmp.ge.f32.partialorder %v1775_v8, 1.0  ;;  %v2217_v9 = vsub.f32 %v11831_v13, %v11957_v26  ;;  %v2221_v10 = vsub.f32 %v11858_v5, %v11959_v42  ;;  %9402 = vmatprep.mubr.msk.bf16.mxu0 %vm9401_vm4, %v17855_v30 }
 0x1b0   : > { %v11967_v39 = vsel %vm1899_vm6, 0.0, %v1771_v61  ;;  %v11969_v63 = vsel %vm1903_vm7, 0.0, %v1775_v8  ;;  %vm9657_vm8 = vmpackc.low %vm1903_vm7, %vm1899_vm6  ;;  %v1772_v36 = vmul.f32 0.5, %v11842_v54  ;;  %vm1896_vm9 = vcmp.ge.f32.partialorder %v1768_v41, 1.0 }
 0x1b1   : > { %17952 = vst [vmem:[#allocation126_spill] sm:$0xff] %v11969_v63  ;;  %v2219_v45 = vsub.f32 %v11834_v28, %v11967_v39  ;;  %v2223_v51 = vsub.f32 %v11861_v56, %v11969_v63  ;;  %9658 = vmatprep.mubr.msk.bf16.mxu1 %vm9657_vm8, %v17855_v30  ;;  %v11977_v62 = vmul.f32 0.5, %v2217_v9  ;;  %v11979_v2 = vmul.f32 0.5, %v2221_v10 }
 0x1b2   : > { %v11981_v61 = vsel %vm1896_vm9, 0.0, %v1768_v41  ;;  %v1770_v8 = vmul.f32 0.5, %v11826_v47  ;;  %vm1900_vm12 = vcmp.ge.f32.partialorder %v1772_v36, 1.0  ;;  %vm2361_vm13 = vcmp.ge.f32.partialorder %v11494_v20, 1.0 }
 0x1b3   : > { %17953 = vst [vmem:[#allocation127_spill] sm:$0xff] %v11981_v61  ;;  %v11985_v5 = vmul.f32 0.5, %v2219_v45  ;;  %v11987_v28 = vmul.f32 0.5, %v2223_v51  ;;  %v2216_v56 = vsub.f32 %v11816_v19, %v11981_v61  ;;  %vm2365_vm14 = vcmp.ge.f32.partialorder %v11509_v43, 1.0  ;;  %vm9403_vm15 = vmpackc.low %vm1900_vm12, %vm1896_vm9 }
 0x1b4   : > { %v11993_v9 = vsel %vm1900_vm12, 0.0, %v1772_v36  ;;  %v1774_v41 = vmul.f32 0.5, %v11845_v53  ;;  %vm1898_vm0 = vcmp.ge.f32.partialorder %v1770_v8, 1.0  ;;  %v1777_v0 = vmul.f32 0.5, %v11921_v34  ;;  %9404 = vmatmul.mubr.msk.bf16.gmra.mrb[56].mxu0 %vm9403_vm15, %v17855_v30 }
 0x1b5   : > { %17954 = vst [vmem:[#allocation128_spill] sm:$0xff] %v11987_v28  ;;  %17955 = vst [vmem:[#allocation129_spill] sm:$0xff] %v11993_v9  ;;  %v2220_v10 = vsub.f32 %v11842_v54, %v11993_v9  ;;  %v11999_v45 = vmul.f32 0.5, %v2216_v56  ;;  %v12002_v51 = vsel %vm1898_vm0, 0.0, %v1770_v8  ;;  %v1781_v19 = vmul.f32 0.5, %v11948_v11 }
 0x1b6   : > { %vm1902_vm1 = vcmp.ge.f32.partialorder %v1774_v41, 1.0  ;;  %v2218_v36 = vsub.f32 %v11826_v47, %v12002_v51  ;;  %vm1905_vm4 = vcmp.ge.f32.partialorder %v1777_v0, 1.0  ;;  %v1779_v61 = vmul.f32 0.5, %v11924_v40 }
 0x1b7   : > { %v12008_v28 = vmul.f32 0.5, %v2220_v10  ;;  %v12010_v63 = vsel %vm1902_vm1, 0.0, %v1774_v41  ;;  %vm9659_vm6 = vmpackc.low %vm1902_vm1, %vm1898_vm0  ;;  %vm1909_vm7 = vcmp.ge.f32.partialorder %v1781_v19, 1.0  ;;  %v12012_v56 = vsel %vm1905_vm4, 0.0, %v1777_v0 }
 0x1b8   : > { %17956 = vst [vmem:[#allocation130_spill] sm:$0xff] %v12010_v63  ;;  %v2222_v8 = vsub.f32 %v11845_v53, %v12010_v63  ;;  %v12016_v54 = vmul.f32 0.5, %v2218_v36  ;;  %9660 = vmatmul.mubr.msk.bf16.gmra.mrb[48].mxu1 %vm9659_vm6, %v17855_v30  ;;  %v12019_v9 = vsel %vm1909_vm7, 0.0, %v1781_v19  ;;  %v2225_v47 = vsub.f32 %v11921_v34, %v12012_v56  ;;  %vm9405_vm8 = vmpackc.low %vm1909_vm7, %vm1905_vm4 }
 0x1b9   : > { %17957 = vst [vmem:[#allocation131_spill] sm:$0xff] %v12019_v9  ;;  %v2229_v41 = vsub.f32 %v11948_v11, %v12019_v9  ;;  %9406 = vmatprep.mubr.msk.bf16.mxu0 %vm9405_vm8, %v17855_v30  ;;  %v1783_v0 = vmul.f32 0.5, %v11951_v59  ;;  %vm1907_vm9 = vcmp.ge.f32.partialorder %v1779_v61, 1.0  ;;  %v1776_v10 = vmul.f32 0.5, %v11906_v55  ;;  %vm9409_vm8 = vmpackc.low %vm2365_vm14, %vm2361_vm13 }
 0x1ba   : > { %v12028_v36 = vmul.f32 0.5, %v2222_v8  ;;  %v12030_v53 = vmul.f32 0.5, %v2225_v47  ;;  %v12032_v19 = vsel %vm1907_vm9, 0.0, %v1779_v61  ;;  %v1780_v63 = vmul.f32 0.5, %v11932_v23 }
 0x1bb   : > { %vm17788_vm12 = vcmp.ge.f32.partialorder %v11440_v50, 1.0  ;;  %v12036_v34 = vmul.f32 0.5, %v2229_v41  ;;  %vm1911_vm15 = vcmp.ge.f32.partialorder %v1783_v0, 1.0  ;;  %v2227_v11 = vsub.f32 %v11924_v40, %v12032_v19 }
 0x1bc   : > { %17958 = vst [vmem:[#allocation132_spill] sm:$0xff] %v12030_v53  ;;  %vm1904_vm0 = vcmp.ge.f32.partialorder %v1776_v10, 1.0  ;;  %v12040_v9 = vsel %vm1911_vm15, 0.0, %v1783_v0  ;;  %vm9661_vm1 = vmpackc.low %vm1911_vm15, %vm1907_vm9  ;;  %vm1908_vm4 = vcmp.ge.f32.partialorder %v1780_v63, 1.0  ;;  %v1778_v47 = vmul.f32 0.5, %v11916_v7 }
 0x1bd   : > { %v12042_v8 = vsel %vm1904_vm0, 0.0, %v1776_v10  ;;  %v2231_v61 = vsub.f32 %v11951_v59, %v12040_v9  ;;  %v12047_v53 = vmul.f32 0.5, %v2227_v11  ;;  %9662 = vmatprep.mubr.msk.bf16.mxu1 %vm9661_vm1, %v17855_v30  ;;  %v12050_v41 = vsel %vm1908_vm4, 0.0, %v1780_v63  ;;  %vm9407_vm6 = vmpackc.low %vm1908_vm4, %vm1904_vm0 }
 0x1be   : > { %17959 = vst [vmem:[#allocation133_spill] sm:$0xff] %v12050_v41  ;;  %v2224_v40 = vsub.f32 %v11906_v55, %v12042_v8  ;;  %v2228_v0 = vsub.f32 %v11932_v23, %v12050_v41  ;;  %9408 = vmatmul.mubr.msk.bf16.gmra.mrb[60].mxu0 %vm9407_vm6, %v17855_v30  ;;  %v1782_v10 = vmul.f32 0.5, %v11935_v49  ;;  %vm1906_vm7 = vcmp.ge.f32.partialorder %v1778_v47, 1.0 }
 0x1bf   : > { %v12061_v11 = vsel %vm2361_vm13, 0.0, %v11494_v20  ;;  %v12067_v63 = vmul.f32 0.5, %v2231_v61  ;;  %v12071_v23 = vsel %vm1906_vm7, 0.0, %v1778_v47  ;;  %v12076_v59 = vsel %vm2365_vm14, 0.0, %v11509_v43  ;;  %9410 = vmatprep.mubr.msk.bf16.mxu0 %vm9409_vm8, %v17855_v30 }
 0x1c0   : > { %17960 = vst [vmem:[#allocation134_spill] sm:$0xff] %v12061_v11  ;;  %v12069_v55 = vmul.f32 0.5, %v2224_v40  ;;  %17962 = vst [vmem:[#allocation136_spill] sm:$0xff] %v12076_v59  ;;  %v12079_v41 = vmul.f32 0.5, %v2228_v0  ;;  %vm1910_vm9 = vcmp.ge.f32.partialorder %v1782_v10, 1.0  ;;  %v2226_v20 = vsub.f32 %v11916_v7, %v12071_v23 }
 0x1c1   : > { %v2681_v61 = vsub.f32 %v11394_v17, %v12061_v11  ;;  %v12085_v40 = vsel %vm1910_vm9, 0.0, %v1782_v10  ;;  %vm9663_vm13 = vmpackc.low %vm1910_vm9, %vm1906_vm7  ;;  %v2685_v47 = vsub.f32 %v11407_v31, %v12076_v59  ;;  %v17964_v43 = vsub.f32 %v11410_v32, %v11462_v6 }
 0x1c2   : > { %17961 = vst [vmem:[#allocation135_spill] sm:$0xff] %v12069_v55  ;;  %17963 = vst [vmem:[#allocation137_spill] sm:$0xff] %v12079_v41  ;;  %v2299_v0 = vadd.f32 %v11501_v1, %v11432_v44  ;;  %v2230_v41 = vsub.f32 %v11935_v49, %v12085_v40  ;;  %v12096_v7 = vmul.f32 0.5, %v2226_v20  ;;  %9664 = vmatmul.mubr.msk.bf16.gmra.mrb[52].mxu1 %vm9663_vm13, %v17855_v30  ;;  %v2108_v31 = vsel %vm1852_vm3, 0.0, %v11420_v38 }
 0x1c3   : > { %v2239_v55 = vmul.f32 0.5, %v17964_v43  ;;  %v12099_v10 = vmul.f32 0.5, %v2681_v61  ;;  %v12104_v17 = vmul.f32 0.5, %v2685_v47  ;;  %v2168_v44 = vsub.f32 %v11391_v14, %v11435_v46 }
 0x1c4   : > { %vm2363_vm14 = vcmp.ge.f32.partialorder %v2299_v0, 1.0  ;;  %v12109_v1 = vmul.f32 0.5, %v2230_v41  ;;  %v2172_v49 = vsub.f32 %v11403_v25, %v2108_v31  ;;  %vm17787_vm15 = vcmp.ge.f32.partialorder %v11449_v57, 1.0 }
 0x1c5   : > { %17965 = vst [vmem:[#allocation138_spill] sm:$0xff] %v12099_v10  ;;  %17966 = vst [vmem:[#allocation139_spill] sm:$0xff] %v12104_v17  ;;  %v2303_v43 = vadd.f32 %v2239_v55, %v11462_v6  ;;  %v12111_v20 = vsel %vm2363_vm14, 0.0, %v2299_v0  ;;  %v2232_v61 = vmul.f32 0.5, %v2168_v44  ;;  %v2106_v6 = vsel %vm17788_vm12, 0.0, %v11440_v50 }
 0x1c6   : > { %17967 = vst [vmem:[#allocation140_spill] sm:$0xff] %v12111_v20  ;;  %v2683_v38 = vsub.f32 %v11397_v18, %v12111_v20  ;;  %v2236_v41 = vmul.f32 0.5, %v2172_v49  ;;  %v2110_v47 = vsel %vm17787_vm15, 0.0, %v11449_v57  ;;  %v2170_v0 = vsub.f32 %v11400_v24, %v2106_v6  ;;  %v17970_v20 = vld [vmem:[#allocation27_spill] sm:$0xff]  ;;  %v17971_v57 = vld [vmem:[#allocation34_spill] sm:$0xff] }
 0x1c7   : > { %vm2367_vm0 = vcmp.ge.f32.partialorder %v2303_v43, 1.0  ;;  %v2296_v44 = vadd.f32 %v2232_v61, %v11435_v46  ;;  %v2305_v49 = vadd.f32 %v11531_v48, %v11497_v52  ;;  %v2309_v10 = vadd.f32 %v17971_v57, %v17970_v20  ;;  %v17980_v61 = vld [vmem:[#allocation16_spill] sm:$0xff] }
 0x1c8   : > { %v12120_v55 = vsel %vm2367_vm0, 0.0, %v2303_v43  ;;  %vm9665_vm3 = vmpackc.low %vm2367_vm0, %vm2363_vm14  ;;  %v12128_v59 = vmul.f32 0.5, %v2683_v38  ;;  %v2174_v43 = vsub.f32 %v11417_v37, %v2110_v47  ;;  %v2300_v50 = vadd.f32 %v2236_v41, %v2108_v31  ;;  %v17972_v38 = vld [vmem:[#allocation18_spill] sm:$0xff] }
 0x1c9   : > { %17968 = vst [vmem:[#allocation141_spill] sm:$0xff] %v12120_v55  ;;  %v2687_v17 = vsub.f32 %v11410_v32, %v12120_v55  ;;  %9666 = vmatprep.mubr.msk.bf16.mxu1 %vm9665_vm3, %v17855_v30  ;;  %v2234_v18 = vmul.f32 0.5, %v2170_v0  ;;  %vm2360_vm1 = vcmp.ge.f32.partialorder %v2296_v44, 1.0  ;;  %v12140_v55 = vmul.f32 0.5, %v17972_v38 }
 0x1ca   : > { %17969 = vst [vmem:[#allocation142_spill] sm:$0xff] %v12128_v59  ;;  %v2238_v32 = vmul.f32 0.5, %v2174_v43  ;;  %vm2364_vm4 = vcmp.ge.f32.partialorder %v2300_v50, 1.0  ;;  %v12142_v59 = vsel %vm2360_vm1, 0.0, %v2296_v44  ;;  %vm2369_vm6 = vcmp.ge.f32.partialorder %v2305_v49, 1.0 }
 0x1cb   : > { %v12137_v11 = vmul.f32 0.5, %v2687_v17  ;;  %17973 = vst [vmem:[#allocation27_spill] sm:$0xff] %v12140_v55  ;;  %17974 = vst [vmem:[#allocation34_spill] sm:$0xff] %v12142_v59  ;;  %v2298_v46 = vadd.f32 %v2234_v18, %v2106_v6  ;;  %v12144_v31 = vsel %vm2364_vm4, 0.0, %v2300_v50  ;;  %v2680_v52 = vsub.f32 %v11391_v14, %v12142_v59 }
 0x1cc   : > { %17975 = vst [vmem:[#allocation143_spill] sm:$0xff] %v12144_v31  ;;  %vm9411_vm7 = vmpackc.low %vm2364_vm4, %vm2360_vm1  ;;  %v2302_v48 = vadd.f32 %v2238_v32, %v2110_v47  ;;  %vm2373_vm8 = vcmp.ge.f32.partialorder %v2309_v10, 1.0  ;;  %v2684_v17 = vsub.f32 %v11403_v25, %v12144_v31  ;;  %v12151_v57 = vsel %vm2369_vm6, 0.0, %v2305_v49  ;;  %v17985_v49 = vld [vmem:[#allocation22_spill] sm:$0xff] }
 0x1cd   : > { %9412 = vmatmul.mubr.msk.bf16.gmra.mrb[64].mxu0 %vm9411_vm7, %v17855_v30  ;;  %vm2362_vm9 = vcmp.ge.f32.partialorder %v2298_v46, 1.0  ;;  %17976 = vst [vmem:[#allocation144_spill] sm:$0xff] %v12151_v57  ;;  %v12153_v20 = vsel %vm2373_vm8, 0.0, %v2309_v10  ;;  %vm9413_vm13 = vmpackc.low %vm2373_vm8, %vm2369_vm6  ;;  %v12155_v18 = vmul.f32 0.5, %v2680_v52  ;;  %v2689_v32 = vsub.f32 %v17980_v61, %v12151_v57  ;;  %v17983_v10 = vld [vmem:[#allocation21_spill] sm:$0xff]  ;;  %v17990_v61 = vld [vmem:[#allocation32_spill] sm:$0xff] }
 0x1ce   : > { %17977 = vst [vmem:[#allocation145_spill] sm:$0xff] %v12153_v20  ;;  %vm2366_vm14 = vcmp.ge.f32.partialorder %v2302_v48, 1.0  ;;  %v12157_v50 = vsel %vm2362_vm9, 0.0, %v2298_v46  ;;  %9414 = vmatprep.mubr.msk.bf16.mxu0 %vm9413_vm13, %v17855_v30  ;;  %v12162_v6 = vmul.f32 0.5, %v2684_v17  ;;  %v2693_v0 = vsub.f32 %v17983_v10, %v12153_v20  ;;  %v17989_v10 = vld [vmem:[#allocation23_spill] sm:$0xff]  ;;  %v17992_v20 = vld [vmem:[#allocation24_spill] sm:$0xff] }
 0x1cf   : > { %17978 = vst [vmem:[#allocation146_spill] sm:$0xff] %v12155_v18  ;;  %17979 = vst [vmem:[#allocation147_spill] sm:$0xff] %v12157_v50  ;;  %v12164_v41 = vsel %vm2366_vm14, 0.0, %v2302_v48  ;;  %v2682_v47 = vsub.f32 %v11400_v24, %v12157_v50  ;;  %v12173_v43 = vmul.f32 0.5, %v2689_v32  ;;  %v12176_v46 = vmul.f32 0.5, %v17985_v49  ;;  %v18001_v50 = vld [vmem:[#allocation19_spill] sm:$0xff] }
 0x1d0   : > { %17981 = vst [vmem:[#allocation148_spill] sm:$0xff] %v12162_v6  ;;  %17982 = vst [vmem:[#allocation149_spill] sm:$0xff] %v12164_v41  ;;  %v2686_v44 = vsub.f32 %v11417_v37, %v12164_v41  ;;  %vm17778_vm3 = vcmp.ge.f32.partialorder %v12140_v55, 1.0  ;;  %v12181_v48 = vmul.f32 0.5, %v2693_v0  ;;  %v2304_v37 = vadd.f32 %v17990_v61, %v17989_v10  ;;  %v17994_v0 = vld [vmem:[#allocation17_spill] sm:$0xff] }
 0x1d1   : > { %vm9667_vm0 = vmpackc.low %vm2366_vm14, %vm2362_vm9  ;;  %17984 = vst [vmem:[#allocation150_spill] sm:$0xff] %v12173_v43  ;;  %v12179_v52 = vmul.f32 0.5, %v2682_v47  ;;  %v2115_v17 = vsel %vm17778_vm3, 0.0, %v12140_v55  ;;  %vm17777_vm1 = vcmp.ge.f32.partialorder %v12176_v46, 1.0  ;;  %v17993_v43 = vld [vmem:[#allocation33_spill] sm:$0xff]  ;;  %v17996_v55 = vld [vmem:[#allocation20_spill] sm:$0xff] }
 0x1d2   : > { %9668 = vmatmul.mubr.msk.bf16.gmra.mrb[56].mxu1 %vm9667_vm0, %v17855_v30  ;;  %17986 = vst [vmem:[#allocation151_spill] sm:$0xff] %v12176_v46  ;;  %17988 = vst [vmem:[#allocation153_spill] sm:$0xff] %v12181_v48  ;;  %v12188_v24 = vmul.f32 0.5, %v2686_v44  ;;  %v2179_v32 = vsub.f32 %v17972_v38, %v2115_v17  ;;  %v2308_v57 = vadd.f32 %v17993_v43, %v17992_v20  ;;  %v2119_v47 = vsel %vm17777_vm1, 0.0, %v12176_v46  ;;  %v18000_v20 = vld [vmem:[#allocation14_spill] sm:$0xff] }
 0x1d3   : > { %17987 = vst [vmem:[#allocation152_spill] sm:$0xff] %v12179_v52  ;;  %vm2368_vm4 = vcmp.ge.f32.partialorder %v2304_v37, 1.0  ;;  %v12198_v48 = vmul.f32 0.5, %v17994_v0  ;;  %v12201_v41 = vmul.f32 0.5, %v17996_v55  ;;  %v2183_v61 = vsub.f32 %v17985_v49, %v2119_v47 }
 0x1d4   : > { %17991 = vst [vmem:[#allocation23_spill] sm:$0xff] %v12188_v24  ;;  %v2243_v10 = vmul.f32 0.5, %v2179_v32  ;;  %vm2372_vm6 = vcmp.ge.f32.partialorder %v2308_v57, 1.0  ;;  %v12204_v44 = vsel %vm2368_vm4, 0.0, %v2304_v37 }
 0x1d5   : > { %17995 = vst [vmem:[#allocation32_spill] sm:$0xff] %v12198_v48  ;;  %17997 = vst [vmem:[#allocation24_spill] sm:$0xff] %v12201_v41  ;;  %v12206_v24 = vsel %vm2372_vm6, 0.0, %v2308_v57  ;;  %v2688_v43 = vsub.f32 %v18000_v20, %v12204_v44  ;;  %vm17769_vm8 = vcmp.ge.f32.partialorder %v12198_v48, 1.0  ;;  %vm17456_vm9 = vcmp.ge.f32.partialorder %v12201_v41, 1.0 }
 0x1d6   : > { %17998 = vst [vmem:[#allocation33_spill] sm:$0xff] %v12204_v44  ;;  %17999 = vst [vmem:[#allocation154_spill] sm:$0xff] %v12206_v24  ;;  %v2247_v46 = vmul.f32 0.5, %v2183_v61  ;;  %v2307_v52 = vadd.f32 %v2243_v10, %v2115_v17  ;;  %v2692_v25 = vsub.f32 %v18001_v50, %v12206_v24  ;;  %v2114_v37 = vsel %vm17769_vm8, 0.0, %v12198_v48  ;;  %v18003_v44 = vld [vmem:[#allocation39_spill] sm:$0xff] }
 0x1d7   : > { %vm9415_vm7 = vmpackc.low %vm2372_vm6, %vm2368_vm4  ;;  %v12218_v57 = vmul.f32 0.5, %v2688_v43  ;;  %v2118_v32 = vsel %vm17456_vm9, 0.0, %v12201_v41  ;;  %v2178_v20 = vsub.f32 %v17994_v0, %v2114_v37  ;;  %v18004_v61 = vld [vmem:[#allocation47_spill] sm:$0xff] }
 0x1d8   : > { %9416 = vmatmul.mubr.msk.bf16.gmra.mrb[68].mxu0 %vm9415_vm7, %v17855_v30  ;;  %v2313_v17 = vadd.f32 %v18004_v61, %v18003_v44  ;;  %v2311_v10 = vadd.f32 %v2247_v46, %v2119_v47  ;;  %vm2371_vm13 = vcmp.ge.f32.partialorder %v2307_v52, 1.0  ;;  %v12226_v50 = vmul.f32 0.5, %v2692_v25  ;;  %v18007_v43 = vld [vmem:[#allocation43_spill] sm:$0xff] }
 0x1d9   : > { %18002 = vst [vmem:[#allocation155_spill] sm:$0xff] %v12218_v57  ;;  %v2182_v24 = vsub.f32 %v17996_v55, %v2118_v32  ;;  %v12229_v14 = vsel %vm2371_vm13, 0.0, %v2307_v52  ;;  %v2242_v48 = vmul.f32 0.5, %v2178_v20  ;;  %v18008_v57 = vld [vmem:[#allocation50_spill] sm:$0xff]  ;;  %v18011_v52 = vld [vmem:[#allocation28_spill] sm:$0xff] }
 0x1da   : > { %18005 = vst [vmem:[#allocation39_spill] sm:$0xff] %v12226_v50  ;;  %18006 = vst [vmem:[#allocation47_spill] sm:$0xff] %v12229_v14  ;;  %v2317_v6 = vadd.f32 %v18008_v57, %v18007_v43  ;;  %vm2377_vm14 = vcmp.ge.f32.partialorder %v2313_v17, 1.0  ;;  %vm2375_vm0 = vcmp.ge.f32.partialorder %v2311_v10, 1.0  ;;  %v2691_v41 = vsub.f32 %v17972_v38, %v12229_v14  ;;  %v18016_v43 = vld [vmem:[#allocation40_spill] sm:$0xff] }
 0x1db   : > { %v2246_v31 = vmul.f32 0.5, %v2182_v24  ;;  %v12236_v44 = vsel %vm2377_vm14, 0.0, %v2313_v17  ;;  %v12238_v46 = vsel %vm2375_vm0, 0.0, %v2311_v10  ;;  %vm9669_vm4 = vmpackc.low %vm2375_vm0, %vm2371_vm13  ;;  %v2306_v25 = vadd.f32 %v2242_v48, %v2114_v37  ;;  %v18014_v10 = vld [vmem:[#allocation35_spill] sm:$0xff] }
 0x1dc   : > { %18009 = vst [vmem:[#allocation43_spill] sm:$0xff] %v12236_v44  ;;  %18010 = vst [vmem:[#allocation50_spill] sm:$0xff] %v12238_v46  ;;  %vm2381_vm6 = vcmp.ge.f32.partialorder %v2317_v6, 1.0  ;;  %v2697_v47 = vsub.f32 %v18011_v52, %v12236_v44  ;;  %v2695_v20 = vsub.f32 %v17985_v49, %v12238_v46  ;;  %v12244_v57 = vmul.f32 0.5, %v2691_v41  ;;  %9670 = vmatprep.mubr.msk.bf16.mxu1 %vm9669_vm4, %v17855_v30  ;;  %v18017_v52 = vld [vmem:[#allocation54_spill] sm:$0xff]  ;;  %v18050_v46 = vld [vmem:[#allocation71_spill] sm:$0xff] }
 0x1dd   : > { %v2310_v61 = vadd.f32 %v2246_v31, %v2118_v32  ;;  %v12247_v24 = vsel %vm2381_vm6, 0.0, %v2317_v6  ;;  %vm9417_vm7 = vmpackc.low %vm2381_vm6, %vm2377_vm14  ;;  %vm2370_vm9 = vcmp.ge.f32.partialorder %v2306_v25, 1.0  ;;  %v2315_v44 = vadd.f32 %v18017_v52, %v18016_v43  ;;  %v18020_v31 = vld [vmem:[#allocation44_spill] sm:$0xff]  ;;  %v18021_v6 = vld [vmem:[#allocation55_spill] sm:$0xff] }
 0x1de   : > { %18012 = vst [vmem:[#allocation156_spill] sm:$0xff] %v12244_v57  ;;  %18013 = vst [vmem:[#allocation157_spill] sm:$0xff] %v12247_v24  ;;  %v2701_v48 = vsub.f32 %v18014_v10, %v12247_v24  ;;  %v12252_v37 = vmul.f32 0.5, %v2697_v47  ;;  %9418 = vmatprep.mubr.msk.bf16.mxu0 %vm9417_vm7, %v17855_v30  ;;  %v12257_v41 = vmul.f32 0.5, %v2695_v20  ;;  %v12259_v49 = vsel %vm2370_vm9, 0.0, %v2306_v25  ;;  %v18025_v20 = vld [vmem:[#allocation53_spill] sm:$0xff] }
 0x1df   : > { %vm2374_vm13 = vcmp.ge.f32.partialorder %v2310_v61, 1.0  ;;  %18019 = vst [vmem:[#allocation54_spill] sm:$0xff] %v12259_v49  ;;  %v2319_v32 = vadd.f32 %v18021_v6, %v18020_v31  ;;  %v2690_v10 = vsub.f32 %v17994_v0, %v12259_v49  ;;  %vm2379_vm0 = vcmp.ge.f32.partialorder %v2315_v44, 1.0  ;;  %v18026_v43 = vld [vmem:[#allocation57_spill] sm:$0xff]  ;;  %v18031_v24 = vld [vmem:[#allocation58_spill] sm:$0xff]  ;;  %v18045_v49 = vld [vmem:[#allocation67_spill] sm:$0xff] }
 0x1e0   : > { %18015 = vst [vmem:[#allocation158_spill] sm:$0xff] %v12252_v37  ;;  %18018 = vst [vmem:[#allocation40_spill] sm:$0xff] %v12257_v41  ;;  %v12263_v17 = vsel %vm2374_vm13, 0.0, %v2310_v61  ;;  %v12267_v47 = vmul.f32 0.5, %v2701_v48  ;;  %v12272_v25 = vsel %vm2379_vm0, 0.0, %v2315_v44  ;;  %v2312_v31 = vadd.f32 %v18026_v43, %v18025_v20  ;;  %v18029_v0 = vld [vmem:[#allocation29_spill] sm:$0xff] }
 0x1e1   : > { %18022 = vst [vmem:[#allocation44_spill] sm:$0xff] %v12263_v17  ;;  %vm9671_vm14 = vmpackc.low %vm2374_vm13, %vm2370_vm9  ;;  %v2694_v52 = vsub.f32 %v17996_v55, %v12263_v17  ;;  %vm2383_vm4 = vcmp.ge.f32.partialorder %v2319_v32, 1.0  ;;  %v12276_v61 = vmul.f32 0.5, %v2690_v10  ;;  %v2699_v48 = vsub.f32 %v18029_v0, %v12272_v25  ;;  %v18033_v17 = vld [vmem:[#allocation36_spill] sm:$0xff]  ;;  %v18034_v20 = vld [vmem:[#allocation37_spill] sm:$0xff] }
 0x1e2   : > { %18023 = vst [vmem:[#allocation55_spill] sm:$0xff] %v12267_v47  ;;  %9672 = vmatmul.mubr.msk.bf16.gmra.mrb[60].mxu1 %vm9671_vm14, %v17855_v30  ;;  %18024 = vst [vmem:[#allocation159_spill] sm:$0xff] %v12272_v25  ;;  %v12278_v6 = vsel %vm2383_vm4, 0.0, %v2319_v32  ;;  %v18030_v47 = vld [vmem:[#allocation56_spill] sm:$0xff]  ;;  %vm2376_vm6 = vcmp.ge.f32.partialorder %v2312_v31, 1.0  ;;  %v2122_v10 = vsel %vm1866_vm10, 0.0, %v18034_v20 }
 0x1e3   : > { %18027 = vst [vmem:[#allocation53_spill] sm:$0xff] %v12276_v61  ;;  %18028 = vst [vmem:[#allocation57_spill] sm:$0xff] %v12278_v6  ;;  %v2316_v37 = vadd.f32 %v18031_v24, %v18030_v47  ;;  %v12284_v55 = vmul.f32 0.5, %v2694_v52  ;;  %v2703_v44 = vsub.f32 %v18033_v17, %v12278_v6  ;;  %v12292_v32 = vmul.f32 0.5, %v2699_v48  ;;  %v18037_v0 = vld [vmem:[#allocation38_spill] sm:$0xff]  ;;  %v18040_v17 = vld [vmem:[#allocation25_spill] sm:$0xff] }
 0x1e4   : > { %vm9673_vm9 = vmpackc.low %vm2383_vm4, %vm2379_vm0  ;;  %v12294_v43 = vsel %vm2376_vm6, 0.0, %v2312_v31  ;;  %v2126_v24 = vsel %vm1870_vm11, 0.0, %v18037_v0  ;;  %v18041_v25 = vld [vmem:[#allocation26_spill] sm:$0xff]  ;;  %v18043_v31 = vld [vmem:[#allocation31_spill] sm:$0xff] }
 0x1e5   : > { %18032 = vst [vmem:[#allocation56_spill] sm:$0xff] %v12284_v55  ;;  %9674 = vmatprep.mubr.msk.bf16.mxu1 %vm9673_vm9, %v17855_v30  ;;  %18035 = vst [vmem:[#allocation58_spill] sm:$0xff] %v12292_v32  ;;  %vm2380_vm7 = vcmp.ge.f32.partialorder %v2316_v37, 1.0  ;;  %v12299_v47 = vmul.f32 0.5, %v2703_v44  ;;  %v2696_v6 = vsub.f32 %v18040_v17, %v12294_v43  ;;  %v2186_v55 = vsub.f32 %v18041_v25, %v2122_v10  ;;  %v18042_v48 = vld [vmem:[#allocation30_spill] sm:$0xff]  ;;  %v18044_v61 = vld [vmem:[#allocation61_spill] sm:$0xff] }
 0x1e6   : > { %18036 = vst [vmem:[#allocation37_spill] sm:$0xff] %v12294_v43  ;;  %v12301_v52 = vsel %vm2380_vm7, 0.0, %v2316_v37  ;;  %vm9419_vm13 = vmpackc.low %vm2380_vm7, %vm2376_vm6  ;;  %v2190_v32 = vsub.f32 %v18043_v31, %v2126_v24  ;;  %v2321_v0 = vadd.f32 %v18045_v49, %v18044_v61  ;;  %v18046_v44 = vld [vmem:[#allocation64_spill] sm:$0xff]  ;;  %v18049_v43 = vld [vmem:[#allocation73_spill] sm:$0xff] }
 0x1e7   : > { %18038 = vst [vmem:[#allocation38_spill] sm:$0xff] %v12299_v47  ;;  %18039 = vst [vmem:[#allocation160_spill] sm:$0xff] %v12301_v52  ;;  %v2700_v20 = vsub.f32 %v18042_v48, %v12301_v52  ;;  %9420 = vmatmul.mubr.msk.bf16.gmra.mrb[72].mxu0 %vm9419_vm13, %v17855_v30  ;;  %v18047_v47 = vld [vmem:[#allocation70_spill] sm:$0xff]  ;;  %v12314_v38 = vmul.f32 0.5, %v2696_v6  ;;  %v2250_v50 = vmul.f32 0.5, %v2186_v55  ;;  %v18048_v17 = vld [vmem:[#allocation68_spill] sm:$0xff] }
 0x1e8   : > { %v2325_v37 = vadd.f32 %v18047_v47, %v18046_v44  ;;  %v2323_v41 = vadd.f32 %v18049_v43, %v18048_v17  ;;  %v18051_v57 = vld [vmem:[#allocation76_spill] sm:$0xff]  ;;  %v2254_v52 = vmul.f32 0.5, %v2190_v32  ;;  %vm2385_vm10 = vcmp.ge.f32.partialorder %v2321_v0, 1.0  ;;  %v18053_v55 = vld [vmem:[#allocation45_spill] sm:$0xff]  ;;  %v18054_v17 = vld [vmem:[#allocation51_spill] sm:$0xff] }
 0x1e9   : > { %v2327_v14 = vadd.f32 %v18051_v57, %v18050_v46  ;;  %v12320_v48 = vmul.f32 0.5, %v2700_v20  ;;  %v2314_v18 = vadd.f32 %v2250_v50, %v2122_v10  ;;  %v12322_v59 = vsel %vm2385_vm10, 0.0, %v2321_v0  ;;  %v18059_v10 = vld [vmem:[#allocation74_spill] sm:$0xff]  ;;  %v18060_v32 = vld [vmem:[#allocation80_spill] sm:$0xff] }
 0x1ea   : > { %vm2389_vm11 = vcmp.ge.f32.partialorder %v2325_v37, 1.0  ;;  %vm2387_vm0 = vcmp.ge.f32.partialorder %v2323_v41, 1.0  ;;  %v2318_v61 = vadd.f32 %v2254_v52, %v2126_v24  ;;  %v2705_v6 = vsub.f32 %v18053_v55, %v12322_v59  ;;  %v18078_v57 = vld [vmem:[#allocation92_spill] sm:$0xff] }
 0x1eb   : > { %v12324_v49 = vsel %vm2389_vm11, 0.0, %v2325_v37  ;;  %vm9421_vm14 = vmpackc.low %vm2389_vm11, %vm2385_vm10  ;;  %vm2391_vm4 = vcmp.ge.f32.partialorder %v2327_v14, 1.0  ;;  %vm2378_vm9 = vcmp.ge.f32.partialorder %v2314_v18, 1.0  ;;  %v12331_v46 = vsel %vm2387_vm0, 0.0, %v2323_v41  ;;  %v18063_v41 = vld [vmem:[#allocation46_spill] sm:$0xff]  ;;  %v18064_v37 = vld [vmem:[#allocation52_spill] sm:$0xff] }
 0x1ec   : > { %18052 = vst [vmem:[#allocation61_spill] sm:$0xff] %v12324_v49  ;;  %v2709_v43 = vsub.f32 %v18054_v17, %v12324_v49  ;;  %9422 = vmatprep.mubr.msk.bf16.mxu0 %vm9421_vm14, %v17855_v30  ;;  %18055 = vst [vmem:[#allocation67_spill] sm:$0xff] %v12331_v46  ;;  %v12333_v50 = vsel %vm2391_vm4, 0.0, %v2327_v14  ;;  %v2320_v24 = vadd.f32 %v18060_v32, %v18059_v10  ;;  %vm2382_vm7 = vcmp.ge.f32.partialorder %v2318_v61, 1.0  ;;  %v18068_v32 = vld [vmem:[#allocation86_spill] sm:$0xff] }
 0x1ed   : > { %18056 = vst [vmem:[#allocation64_spill] sm:$0xff] %v12333_v50  ;;  %vm12335_vm6 = vmpackc.low %vm2391_vm4, %vm2387_vm0  ;;  %v12341_v47 = vsel %vm2378_vm9, 0.0, %v2314_v18  ;;  %v12343_v52 = vmul.f32 0.5, %v2705_v6  ;;  %v12347_v0 = vsel %vm2382_vm7, 0.0, %v2318_v61  ;;  %v2707_v44 = vsub.f32 %v18063_v41, %v12331_v46  ;;  %v18065_v6 = vld [vmem:[#allocation75_spill] sm:$0xff]  ;;  %v18067_v61 = vld [vmem:[#allocation77_spill] sm:$0xff] }
 0x1ee   : > { %v12345_v20 = vmul.f32 0.5, %v2709_v43  ;;  %v2698_v14 = vsub.f32 %v18041_v25, %v12341_v47  ;;  %vm9675_vm13 = vmpackc.low %vm2382_vm7, %vm2378_vm9  ;;  %v2711_v17 = vsub.f32 %v18064_v37, %v12333_v50  ;;  %v2702_v18 = vsub.f32 %v18043_v31, %v12347_v0  ;;  %v18066_v43 = vld [vmem:[#allocation81_spill] sm:$0xff]  ;;  %v18073_v46 = vld [vmem:[#allocation82_spill] sm:$0xff] }
 0x1ef   : > { %18061 = vst [vmem:[#allocation70_spill] sm:$0xff] %v12343_v52  ;;  %9676 = vmatmul.mubr.msk.bf16.gmra.mrb[64].mxu1 %vm9675_vm13, %v17855_v30  ;;  %v2324_v10 = vadd.f32 %v18066_v43, %v18065_v6  ;;  %vm2384_vm10 = vcmp.ge.f32.partialorder %v2320_v24, 1.0  ;;  %v2322_v55 = vadd.f32 %v18068_v32, %v18067_v61  ;;  %v18072_v6 = vld [vmem:[#allocation41_spill] sm:$0xff]  ;;  %v18074_v61 = vld [vmem:[#allocation88_spill] sm:$0xff] }
 0x1f0   : > { %18062 = vst [vmem:[#allocation68_spill] sm:$0xff] %v12345_v20  ;;  %v12362_v25 = vmul.f32 0.5, %v2698_v14  ;;  %v12364_v20 = vmul.f32 0.5, %v2707_v44  ;;  %v12366_v41 = vmul.f32 0.5, %v2711_v17  ;;  %9678 = vmatprep.mubr.msk.bf16.mxu1 %vm12335_vm6, %v17855_v30  ;;  %v12371_v37 = vsel %vm2384_vm10, 0.0, %v2320_v24  ;;  %v18076_v17 = vld [vmem:[#allocation91_spill] sm:$0xff] }
 0x1f1   : > { %18071 = vst [vmem:[#allocation76_spill] sm:$0xff] %v12371_v37  ;;  %v12373_v50 = vmul.f32 0.5, %v2702_v18  ;;  %vm2388_vm11 = vcmp.ge.f32.partialorder %v2324_v10, 1.0  ;;  %v2704_v43 = vsub.f32 %v18072_v6, %v12371_v37  ;;  %v2326_v14 = vadd.f32 %v18074_v61, %v18073_v46  ;;  %v18077_v44 = vld [vmem:[#allocation95_spill] sm:$0xff]  ;;  %v18080_v18 = vld [vmem:[#allocation48_spill] sm:$0xff] }
 0x1f2   : > { %18069 = vst [vmem:[#allocation73_spill] sm:$0xff] %v12364_v20  ;;  %18070 = vst [vmem:[#allocation71_spill] sm:$0xff] %v12366_v41  ;;  %v12379_v32 = vsel %vm2388_vm11, 0.0, %v2324_v10  ;;  %vm2386_vm0 = vcmp.ge.f32.partialorder %v2322_v55, 1.0  ;;  %v2329_v41 = vadd.f32 %v18077_v44, %v18076_v17  ;;  %v18079_v20 = vld [vmem:[#allocation96_spill] sm:$0xff]  ;;  %v18084_v10 = vld [vmem:[#allocation42_spill] sm:$0xff] }
 0x1f3   : > { %18075 = vst [vmem:[#allocation74_spill] sm:$0xff] %v12379_v32  ;;  %vm9423_vm14 = vmpackc.low %vm2388_vm11, %vm2384_vm10  ;;  %v2333_v24 = vadd.f32 %v18079_v20, %v18078_v57  ;;  %v2708_v31 = vsub.f32 %v18080_v18, %v12379_v32  ;;  %v12387_v49 = vmul.f32 0.5, %v2704_v43  ;;  %vm2390_vm4 = vcmp.ge.f32.partialorder %v2326_v14, 1.0  ;;  %v18086_v20 = vld [vmem:[#allocation49_spill] sm:$0xff]  ;;  %v18098_v37 = vld [vmem:[#allocation100_spill] sm:$0xff] }
 0x1f4   : > { %9424 = vmatmul.mubr.msk.bf16.gmra.mrb[76].mxu0 %vm9423_vm14, %v17855_v30  ;;  %v12390_v6 = vsel %vm2386_vm0, 0.0, %v2322_v55  ;;  %v12392_v46 = vsel %vm2390_vm4, 0.0, %v2326_v14  ;;  %vm9679_vm9 = vmpackc.low %vm2390_vm4, %vm2386_vm0  ;;  %vm2393_vm6 = vcmp.ge.f32.partialorder %v2329_v41, 1.0  ;;  %v18090_v14 = vld [vmem:[#allocation62_spill] sm:$0xff] }
 0x1f5   : > { %18081 = vst [vmem:[#allocation80_spill] sm:$0xff] %v12387_v49  ;;  %18082 = vst [vmem:[#allocation75_spill] sm:$0xff] %v12390_v6  ;;  %v2706_v61 = vsub.f32 %v18084_v10, %v12390_v6  ;;  %vm2397_vm7 = vcmp.ge.f32.partialorder %v2333_v24, 1.0  ;;  %v12396_v17 = vmul.f32 0.5, %v2708_v31  ;;  %v2710_v44 = vsub.f32 %v18086_v20, %v12392_v46  ;;  %v18091_v10 = vld [vmem:[#allocation69_spill] sm:$0xff] }
 0x1f6   : > { %18083 = vst [vmem:[#allocation81_spill] sm:$0xff] %v12392_v46  ;;  %v12400_v43 = vsel %vm2393_vm6, 0.0, %v2329_v41  ;;  %v12402_v57 = vsel %vm2397_vm7, 0.0, %v2333_v24  ;;  %vm9425_vm13 = vmpackc.low %vm2397_vm7, %vm2393_vm6  ;;  %v18092_v31 = vld [vmem:[#allocation93_spill] sm:$0xff]  ;;  %v18094_v41 = vld [vmem:[#allocation94_spill] sm:$0xff] }
 0x1f7   : > { %18085 = vst [vmem:[#allocation77_spill] sm:$0xff] %v12396_v17  ;;  %18087 = vst [vmem:[#allocation86_spill] sm:$0xff] %v12400_v43  ;;  %v12404_v55 = vmul.f32 0.5, %v2706_v61  ;;  %v2713_v18 = vsub.f32 %v18090_v14, %v12400_v43  ;;  %v2717_v6 = vsub.f32 %v18091_v10, %v12402_v57  ;;  %9426 = vmatprep.mubr.msk.bf16.mxu0 %vm9425_vm13, %v17855_v30  ;;  %v18093_v17 = vld [vmem:[#allocation98_spill] sm:$0xff]  ;;  %v12413_v49 = vmul.f32 0.5, %v2710_v44  ;;  %v18095_v24 = vld [vmem:[#allocation99_spill] sm:$0xff] }
 0x1f8   : > { %18088 = vst [vmem:[#allocation82_spill] sm:$0xff] %v12402_v57  ;;  %v2331_v32 = vadd.f32 %v18093_v17, %v18092_v31  ;;  %9680 = vmatmul.mubr.msk.bf16.gmra.mrb[68].mxu1 %vm9679_vm9, %v17855_v30  ;;  %v2335_v20 = vadd.f32 %v18095_v24, %v18094_v41  ;;  %v18096_v61 = vld [vmem:[#allocation97_spill] sm:$0xff]  ;;  %v18097_v46 = vld [vmem:[#allocation102_spill] sm:$0xff]  ;;  %v18099_v14 = vld [vmem:[#allocation107_spill] sm:$0xff] }
 0x1f9   : > { %18089 = vst [vmem:[#allocation88_spill] sm:$0xff] %v12404_v55  ;;  %v2328_v55 = vadd.f32 %v18097_v46, %v18096_v61  ;;  %v2332_v43 = vadd.f32 %v18099_v14, %v18098_v37  ;;  %v12422_v52 = vmul.f32 0.5, %v2713_v18  ;;  %v12424_v10 = vmul.f32 0.5, %v2717_v6  ;;  %v18102_v57 = vld [vmem:[#allocation103_spill] sm:$0xff]  ;;  %v18108_v6 = vld [vmem:[#allocation72_spill] sm:$0xff]  ;;  %v18110_v61 = vld [vmem:[#allocation65_spill] sm:$0xff] }
 0x1fa   : > { %vm2395_vm10 = vcmp.ge.f32.partialorder %v2331_v32, 1.0  ;;  %v18103_v17 = vld [vmem:[#allocation111_spill] sm:$0xff]  ;;  %vm2399_vm11 = vcmp.ge.f32.partialorder %v2335_v20, 1.0 }
 0x1fb   : > { %18100 = vst [vmem:[#allocation91_spill] sm:$0xff] %v12422_v52  ;;  %18101 = vst [vmem:[#allocation95_spill] sm:$0xff] %v12424_v10  ;;  %v2330_v44 = vadd.f32 %v18103_v17, %v18102_v57  ;;  %v12428_v31 = vsel %vm2395_vm10, 0.0, %v2331_v32  ;;  %vm2392_vm14 = vcmp.ge.f32.partialorder %v2328_v55, 1.0  ;;  %vm2396_vm0 = vcmp.ge.f32.partialorder %v2332_v43, 1.0  ;;  %v18106_v46 = vld [vmem:[#allocation63_spill] sm:$0xff] }
 0x1fc   : > { %18104 = vst [vmem:[#allocation92_spill] sm:$0xff] %v12428_v31  ;;  %v12430_v41 = vsel %vm2399_vm11, 0.0, %v2335_v20  ;;  %v2715_v24 = vsub.f32 %v18106_v46, %v12428_v31  ;;  %vm9681_vm4 = vmpackc.low %vm2399_vm11, %vm2395_vm10  ;;  %v12434_v37 = vsel %vm2392_vm14, 0.0, %v2328_v55  ;;  %v12436_v18 = vsel %vm2396_vm0, 0.0, %v2332_v43  ;;  %v18109_v32 = vld [vmem:[#allocation59_spill] sm:$0xff]  ;;  %v18111_v17 = vld [vmem:[#allocation108_spill] sm:$0xff] }
 0x1fd   : > { %18105 = vst [vmem:[#allocation96_spill] sm:$0xff] %v12430_v41  ;;  %18107 = vst [vmem:[#allocation93_spill] sm:$0xff] %v12436_v18  ;;  %v2719_v14 = vsub.f32 %v18108_v6, %v12430_v41  ;;  %9682 = vmatprep.mubr.msk.bf16.mxu1 %vm9681_vm4, %v17855_v30  ;;  %v2712_v57 = vsub.f32 %v18109_v32, %v12434_v37  ;;  %v2716_v20 = vsub.f32 %v18110_v61, %v12436_v18  ;;  %v18112_v10 = vld [vmem:[#allocation114_spill] sm:$0xff]  ;;  %v18113_v43 = vld [vmem:[#allocation115_spill] sm:$0xff] }
 0x1fe   : > { %vm9427_vm9 = vmpackc.low %vm2396_vm0, %vm2392_vm14  ;;  %v2334_v46 = vadd.f32 %v18112_v10, %v18111_v17  ;;  %v12447_v31 = vmul.f32 0.5, %v2715_v24  ;;  %vm2394_vm6 = vcmp.ge.f32.partialorder %v2330_v44, 1.0  ;;  %v2337_v55 = vadd.f32 %v11887_v12, %v18113_v43  ;;  %v18114_v6 = vld [vmem:[#allocation116_spill] sm:$0xff]  ;;  %v18117_v17 = vld [vmem:[#allocation66_spill] sm:$0xff] }
 0x1ff   : > { %9428 = vmatmul.mubr.msk.bf16.gmra.mrb[80].mxu0 %vm9427_vm9, %v17855_v30  ;;  %v2341_v41 = vadd.f32 %v11889_v22, %v18114_v6  ;;  %v12454_v52 = vmul.f32 0.5, %v2719_v14  ;;  %v12456_v32 = vmul.f32 0.5, %v2712_v57  ;;  %v12458_v61 = vmul.f32 0.5, %v2716_v20  ;;  %v18116_v24 = vld [vmem:[#allocation60_spill] sm:$0xff]  ;;  %v18120_v57 = vld [vmem:[#allocation89_spill] sm:$0xff] }
 0x200   : > { %vm2398_vm7 = vcmp.ge.f32.partialorder %v2334_v46, 1.0  ;;  %v12460_v18 = vsel %vm2394_vm6, 0.0, %v2330_v44  ;;  %vm2401_vm10 = vcmp.ge.f32.partialorder %v2337_v55, 1.0  ;;  %v18119_v44 = vld [vmem:[#allocation83_spill] sm:$0xff]  ;;  %v2339_v43 = vadd.f32 %v11895_v15, %v11877_v60 }
 0x201   : > { %v12462_v10 = vsel %vm2398_vm7, 0.0, %v2334_v46  ;;  %vm9683_vm13 = vmpackc.low %vm2398_vm7, %vm2394_vm6  ;;  %vm2405_vm11 = vcmp.ge.f32.partialorder %v2341_v41, 1.0  ;;  %v2714_v12 = vsub.f32 %v18116_v24, %v12460_v18  ;;  %v12469_v6 = vsel %vm2401_vm10, 0.0, %v2337_v55 }
 0x202   : > { %18115 = vst [vmem:[#allocation98_spill] sm:$0xff] %v12462_v10  ;;  %v2718_v22 = vsub.f32 %v18117_v17, %v12462_v10  ;;  %9684 = vmatmul.mubr.msk.bf16.gmra.mrb[72].mxu1 %vm9683_vm13, %v17855_v30  ;;  %18118 = vst [vmem:[#allocation94_spill] sm:$0xff] %v12469_v6  ;;  %v12471_v14 = vsel %vm2405_vm11, 0.0, %v2341_v41  ;;  %v2721_v46 = vsub.f32 %v18119_v44, %v12469_v6  ;;  %v18121_v41 = vld [vmem:[#allocation117_spill] sm:$0xff]  ;;  %vm2403_vm0 = vcmp.ge.f32.partialorder %v2339_v43, 1.0 }
 0x203   : > { %vm9429_vm14 = vmpackc.low %vm2405_vm11, %vm2401_vm10  ;;  %v2725_v20 = vsub.f32 %v18120_v57, %v12471_v14  ;;  %v2343_v17 = vadd.f32 %v11897_v29, %v11879_v58  ;;  %v12482_v24 = vmul.f32 0.5, %v2714_v12  ;;  %v2336_v10 = vadd.f32 %v11910_v3, %v18121_v41  ;;  %v18122_v29 = vld [vmem:[#allocation84_spill] sm:$0xff]  ;;  %v18123_v3 = vld [vmem:[#allocation90_spill] sm:$0xff] }
 0x204   : > { %9430 = vmatprep.mubr.msk.bf16.mxu0 %vm9429_vm14, %v17855_v30  ;;  %v12484_v55 = vmul.f32 0.5, %v2718_v22  ;;  %v2340_v44 = vadd.f32 %v11927_v4, %v11902_v27  ;;  %v12490_v6 = vmul.f32 0.5, %v2721_v46  ;;  %v12494_v15 = vsel %vm2403_vm0, 0.0, %v2339_v43  ;;  %v18124_v22 = vld [vmem:[#allocation78_spill] sm:$0xff]  ;;  %v18125_v46 = vld [vmem:[#allocation85_spill] sm:$0xff] }
 0x205   : > { %v12492_v57 = vmul.f32 0.5, %v2725_v20  ;;  %vm2407_vm4 = vcmp.ge.f32.partialorder %v2343_v17, 1.0  ;;  %vm2400_vm6 = vcmp.ge.f32.partialorder %v2336_v10, 1.0  ;;  %v2723_v58 = vsub.f32 %v18122_v29, %v12494_v15 }
 0x206   : > { %v12496_v60 = vsel %vm2407_vm4, 0.0, %v2343_v17  ;;  %vm9685_vm9 = vmpackc.low %vm2407_vm4, %vm2403_vm0  ;;  %vm2404_vm7 = vcmp.ge.f32.partialorder %v2340_v44, 1.0  ;;  %v12503_v27 = vsel %vm2400_vm6, 0.0, %v2336_v10  ;;  %v2338_v43 = vadd.f32 %v11940_v35, %v11913_v33 }
 0x207   : > { %v2727_v12 = vsub.f32 %v18123_v3, %v12496_v60  ;;  %9686 = vmatprep.mubr.msk.bf16.mxu1 %vm9685_vm9, %v17855_v30  ;;  %v12505_v4 = vsel %vm2404_vm7, 0.0, %v2340_v44  ;;  %vm9431_vm13 = vmpackc.low %vm2404_vm7, %vm2400_vm6  ;;  %v2720_v17 = vsub.f32 %v18124_v22, %v12503_v27  ;;  %v2342_v41 = vadd.f32 %v11953_v21, %v11929_v16  ;;  %v18128_v16 = vld [vmem:[#allocation79_spill] sm:$0xff] }
 0x208   : > { %v2724_v20 = vsub.f32 %v18125_v46, %v12505_v4  ;;  %9432 = vmatmul.mubr.msk.bf16.gmra.mrb[84].mxu0 %vm9431_vm13, %v17855_v30  ;;  %v12516_v3 = vmul.f32 0.5, %v2723_v58  ;;  %v2345_v44 = vadd.f32 %v11977_v62, %v11957_v26  ;;  %v2349_v22 = vadd.f32 %v11979_v2, %v11959_v42  ;;  %v18129_v26 = vld [vmem:[#allocation87_spill] sm:$0xff] }
 0x209   : > { %v12518_v10 = vmul.f32 0.5, %v2727_v12  ;;  %v12524_v29 = vmul.f32 0.5, %v2720_v17  ;;  %vm2402_vm10 = vcmp.ge.f32.partialorder %v2338_v43, 1.0  ;;  %vm2406_vm11 = vcmp.ge.f32.partialorder %v2342_v41, 1.0  ;;  %v18131_v12 = vld [vmem:[#allocation112_spill] sm:$0xff] }
 0x20a   : > { %v12526_v46 = vmul.f32 0.5, %v2724_v20  ;;  %v12528_v33 = vsel %vm2402_vm10, 0.0, %v2338_v43  ;;  %v12530_v35 = vsel %vm2406_vm11, 0.0, %v2342_v41  ;;  %vm9687_vm14 = vmpackc.low %vm2406_vm11, %vm2402_vm10  ;;  %vm2409_vm0 = vcmp.ge.f32.partialorder %v2345_v44, 1.0  ;;  %v18132_v43 = vld [vmem:[#allocation126_spill] sm:$0xff]  ;;  %v18133_v41 = vld [vmem:[#allocation128_spill] sm:$0xff] }
 0x20b   : > { %18126 = vst [vmem:[#allocation99_spill] sm:$0xff] %v12528_v33  ;;  %18127 = vst [vmem:[#allocation97_spill] sm:$0xff] %v12530_v35  ;;  %vm2413_vm4 = vcmp.ge.f32.partialorder %v2349_v22, 1.0  ;;  %v2722_v21 = vsub.f32 %v18128_v16, %v12528_v33  ;;  %v2726_v62 = vsub.f32 %v18129_v26, %v12530_v35  ;;  %9688 = vmatmul.mubr.msk.bf16.gmra.mrb[76].mxu1 %vm9687_vm14, %v17855_v30  ;;  %v12537_v42 = vsel %vm2409_vm0, 0.0, %v2345_v44  ;;  %v18135_v33 = vld [vmem:[#allocation129_spill] sm:$0xff] }
 0x20c   : > { %18130 = vst [vmem:[#allocation102_spill] sm:$0xff] %v12537_v42  ;;  %v12539_v2 = vsel %vm2413_vm4, 0.0, %v2349_v22  ;;  %vm9433_vm9 = vmpackc.low %vm2413_vm4, %vm2409_vm0  ;;  %v2729_v58 = vsub.f32 %v11831_v13, %v12537_v42  ;;  %v2347_v20 = vadd.f32 %v11985_v5, %v11967_v39  ;;  %v2351_v26 = vadd.f32 %v18133_v41, %v18132_v43  ;;  %v18134_v22 = vld [vmem:[#allocation127_spill] sm:$0xff] }
 0x20d   : > { %v2733_v17 = vsub.f32 %v18131_v12, %v12539_v2  ;;  %9434 = vmatprep.mubr.msk.bf16.mxu0 %vm9433_vm9, %v17855_v30  ;;  %v12550_v16 = vmul.f32 0.5, %v2722_v21  ;;  %v12552_v44 = vmul.f32 0.5, %v2726_v62  ;;  %v2344_v35 = vadd.f32 %v11999_v45, %v18134_v22  ;;  %v18138_v21 = vld [vmem:[#allocation106_spill] sm:$0xff]  ;;  %v18139_v45 = vld [vmem:[#allocation113_spill] sm:$0xff] }
 0x20e   : > { %v2348_v13 = vadd.f32 %v12008_v28, %v18135_v33  ;;  %v12558_v42 = vmul.f32 0.5, %v2729_v58  ;;  %vm2411_vm6 = vcmp.ge.f32.partialorder %v2347_v20, 1.0  ;;  %vm2415_vm7 = vcmp.ge.f32.partialorder %v2351_v26, 1.0  ;;  %v18141_v58 = vld [vmem:[#allocation101_spill] sm:$0xff]  ;;  %v18143_v22 = vld [vmem:[#allocation130_spill] sm:$0xff] }
 0x20f   : > { %v12560_v12 = vmul.f32 0.5, %v2733_v17  ;;  %v12562_v5 = vsel %vm2411_vm6, 0.0, %v2347_v20  ;;  %v12564_v39 = vsel %vm2415_vm7, 0.0, %v2351_v26  ;;  %vm9689_vm13 = vmpackc.low %vm2415_vm7, %vm2411_vm6  ;;  %vm2408_vm10 = vcmp.ge.f32.partialorder %v2344_v35, 1.0  ;;  %v18142_v17 = vld [vmem:[#allocation109_spill] sm:$0xff] }
 0x210   : > { %18136 = vst [vmem:[#allocation100_spill] sm:$0xff] %v12562_v5  ;;  %18137 = vst [vmem:[#allocation107_spill] sm:$0xff] %v12564_v39  ;;  %vm2412_vm11 = vcmp.ge.f32.partialorder %v2348_v13, 1.0  ;;  %v2731_v62 = vsub.f32 %v18138_v21, %v12562_v5  ;;  %v2735_v43 = vsub.f32 %v18139_v45, %v12564_v39  ;;  %9690 = vmatprep.mubr.msk.bf16.mxu1 %vm9689_vm13, %v17855_v30  ;;  %v12571_v28 = vsel %vm2408_vm10, 0.0, %v2344_v35  ;;  %v18145_v5 = vld [vmem:[#allocation131_spill] sm:$0xff] }
 0x211   : > { %18140 = vst [vmem:[#allocation103_spill] sm:$0xff] %v12571_v28  ;;  %v12573_v33 = vsel %vm2412_vm11, 0.0, %v2348_v13  ;;  %vm9435_vm14 = vmpackc.low %vm2412_vm11, %vm2408_vm10  ;;  %v2728_v26 = vsub.f32 %v18141_v58, %v12571_v28  ;;  %v2346_v41 = vadd.f32 %v12016_v54, %v12002_v51  ;;  %v2350_v45 = vadd.f32 %v12028_v36, %v18143_v22  ;;  %v18144_v13 = vld [vmem:[#allocation132_spill] sm:$0xff] }
 0x212   : > { %v2732_v20 = vsub.f32 %v18142_v17, %v12573_v33  ;;  %9436 = vmatmul.mubr.msk.bf16.gmra.mrb[88].mxu0 %vm9435_vm14, %v17855_v30  ;;  %v12584_v21 = vmul.f32 0.5, %v2731_v62  ;;  %v12586_v35 = vmul.f32 0.5, %v2735_v43  ;;  %v2353_v39 = vadd.f32 %v18144_v13, %v12012_v56  ;;  %v18148_v36 = vld [vmem:[#allocation104_spill] sm:$0xff]  ;;  %v18149_v56 = vld [vmem:[#allocation110_spill] sm:$0xff] }
 0x213   : > { %v2357_v58 = vadd.f32 %v12036_v34, %v18145_v5  ;;  %v12592_v28 = vmul.f32 0.5, %v2728_v26  ;;  %vm2410_vm0 = vcmp.ge.f32.partialorder %v2346_v41, 1.0  ;;  %vm2414_vm4 = vcmp.ge.f32.partialorder %v2350_v45, 1.0  ;;  %v18151_v26 = vld [vmem:[#allocation120_spill] sm:$0xff] }
 0x214   : > { %v12594_v17 = vmul.f32 0.5, %v2732_v20  ;;  %v12596_v54 = vsel %vm2410_vm0, 0.0, %v2346_v41  ;;  %v12598_v51 = vsel %vm2414_vm4, 0.0, %v2350_v45  ;;  %vm9691_vm9 = vmpackc.low %vm2414_vm4, %vm2410_vm0  ;;  %vm2417_vm6 = vcmp.ge.f32.partialorder %v2353_v39, 1.0  ;;  %v18152_v20 = vld [vmem:[#allocation124_spill] sm:$0xff] }
 0x215   : > { %18146 = vst [vmem:[#allocation111_spill] sm:$0xff] %v12596_v54  ;;  %18147 = vst [vmem:[#allocation108_spill] sm:$0xff] %v12598_v51  ;;  %vm2421_vm7 = vcmp.ge.f32.partialorder %v2357_v58, 1.0  ;;  %v2730_v62 = vsub.f32 %v18148_v36, %v12596_v54  ;;  %v2734_v43 = vsub.f32 %v18149_v56, %v12598_v51  ;;  %9692 = vmatmul.mubr.msk.bf16.gmra.mrb[80].mxu1 %vm9691_vm9, %v17855_v30  ;;  %v12605_v34 = vsel %vm2417_vm6, 0.0, %v2353_v39  ;;  %v18154_v51 = vld [vmem:[#allocation133_spill] sm:$0xff] }
 0x216   : > { %18150 = vst [vmem:[#allocation114_spill] sm:$0xff] %v12605_v34  ;;  %v12607_v5 = vsel %vm2421_vm7, 0.0, %v2357_v58  ;;  %vm9437_vm13 = vmpackc.low %vm2421_vm7, %vm2417_vm6  ;;  %v2737_v45 = vsub.f32 %v18151_v26, %v12605_v34  ;;  %v2355_v22 = vadd.f32 %v12047_v53, %v12032_v19  ;;  %v2359_v13 = vadd.f32 %v12067_v63, %v12040_v9  ;;  %v18153_v58 = vld [vmem:[#allocation135_spill] sm:$0xff]  ;;  %v18155_v26 = vld [vmem:[#allocation137_spill] sm:$0xff] }
 0x217   : > { %v2741_v41 = vsub.f32 %v18152_v20, %v12607_v5  ;;  %9438 = vmatprep.mubr.msk.bf16.mxu0 %vm9437_vm13, %v17855_v30  ;;  %v12618_v56 = vmul.f32 0.5, %v2730_v62  ;;  %v12620_v39 = vmul.f32 0.5, %v2734_v43  ;;  %v2352_v36 = vadd.f32 %v18153_v58, %v12042_v8  ;;  %v18159_v9 = vld [vmem:[#allocation121_spill] sm:$0xff] }
 0x218   : > { %v2356_v34 = vadd.f32 %v18155_v26, %v18154_v51  ;;  %v12626_v54 = vmul.f32 0.5, %v2737_v45  ;;  %vm2419_vm10 = vcmp.ge.f32.partialorder %v2355_v22, 1.0  ;;  %vm2423_vm11 = vcmp.ge.f32.partialorder %v2359_v13, 1.0  ;;  %v18160_v8 = vld [vmem:[#allocation125_spill] sm:$0xff]  ;;  %v18163_v26 = vld [vmem:[#allocation118_spill] sm:$0xff] }
 0x219   : > { %v12628_v20 = vmul.f32 0.5, %v2741_v41  ;;  %v12630_v53 = vsel %vm2419_vm10, 0.0, %v2355_v22  ;;  %v12632_v19 = vsel %vm2423_vm11, 0.0, %v2359_v13  ;;  %vm9693_vm14 = vmpackc.low %vm2423_vm11, %vm2419_vm10  ;;  %vm2416_vm0 = vcmp.ge.f32.partialorder %v2352_v36, 1.0  ;;  %v18164_v41 = vld [vmem:[#allocation122_spill] sm:$0xff] }
 0x21a   : > { %18157 = vst [vmem:[#allocation116_spill] sm:$0xff] %v12630_v53  ;;  %18158 = vst [vmem:[#allocation117_spill] sm:$0xff] %v12632_v19  ;;  %vm2420_vm4 = vcmp.ge.f32.partialorder %v2356_v34, 1.0  ;;  %v2739_v63 = vsub.f32 %v18159_v9, %v12630_v53  ;;  %v2743_v62 = vsub.f32 %v18160_v8, %v12632_v19  ;;  %9694 = vmatprep.mubr.msk.bf16.mxu1 %vm9693_vm14, %v17855_v30  ;;  %v12639_v51 = vsel %vm2416_vm0, 0.0, %v2352_v36  ;;  %v18167_v9 = vld [vmem:[#allocation138_spill] sm:$0xff]  ;;  %v18168_v53 = vld [vmem:[#allocation136_spill] sm:$0xff] }
 0x21b   : > { %18156 = vst [vmem:[#allocation115_spill] sm:$0xff] %v12628_v20  ;;  %18161 = vst [vmem:[#allocation126_spill] sm:$0xff] %v12639_v51  ;;  %v12641_v43 = vsel %vm2420_vm4, 0.0, %v2356_v34  ;;  %v2736_v45 = vsub.f32 %v18163_v26, %v12639_v51  ;;  %v2354_v13 = vadd.f32 %v12096_v7, %v12071_v23  ;;  %v2358_v58 = vadd.f32 %v12109_v1, %v12085_v40  ;;  %v18166_v34 = vld [vmem:[#allocation134_spill] sm:$0xff]  ;;  %v18169_v26 = vld [vmem:[#allocation139_spill] sm:$0xff] }
 0x21c   : > { %18162 = vst [vmem:[#allocation128_spill] sm:$0xff] %v12641_v43  ;;  %vm9439_vm9 = vmpackc.low %vm2420_vm4, %vm2416_vm0  ;;  %v2740_v22 = vsub.f32 %v18164_v41, %v12641_v43  ;;  %v12652_v8 = vmul.f32 0.5, %v2739_v63  ;;  %v12654_v36 = vmul.f32 0.5, %v2743_v62  ;;  %v2809_v19 = vadd.f32 %v18167_v9, %v18166_v34  ;;  %v18174_v40 = vld [vmem:[#allocation119_spill] sm:$0xff]  ;;  %v18181_v34 = vld [vmem:[#allocation142_spill] sm:$0xff] }
 0x21d   : > { %9440 = vmatmul.mubr.msk.bf16.gmra.mrb[92].mxu0 %vm9439_vm9, %v17855_v30  ;;  %v2813_v51 = vadd.f32 %v18169_v26, %v18168_v53  ;;  %v12660_v20 = vmul.f32 0.5, %v2736_v45  ;;  %vm2418_vm6 = vcmp.ge.f32.partialorder %v2354_v13, 1.0  ;;  %vm2422_vm7 = vcmp.ge.f32.partialorder %v2358_v58, 1.0  ;;  %v18175_v9 = vld [vmem:[#allocation123_spill] sm:$0xff]  ;;  %v18178_v26 = vld [vmem:[#allocation4_spill] sm:$0xff] }
 0x21e   : > { %18165 = vst [vmem:[#allocation127_spill] sm:$0xff] %v12654_v36  ;;  %v12662_v41 = vmul.f32 0.5, %v2740_v22  ;;  %v12664_v7 = vsel %vm2418_vm6, 0.0, %v2354_v13  ;;  %v12666_v23 = vsel %vm2422_vm7, 0.0, %v2358_v58  ;;  %vm9695_vm13 = vmpackc.low %vm2422_vm7, %vm2418_vm6  ;;  %vm2873_vm10 = vcmp.ge.f32.partialorder %v2809_v19, 1.0  ;;  %v18179_v22 = vld [vmem:[#allocation8_spill] sm:$0xff] }
 0x21f   : > { %18170 = vst [vmem:[#allocation129_spill] sm:$0xff] %v12660_v20  ;;  %18172 = vst [vmem:[#allocation132_spill] sm:$0xff] %v12664_v7  ;;  %vm2877_vm11 = vcmp.ge.f32.partialorder %v2813_v51, 1.0  ;;  %v2738_v1 = vsub.f32 %v18174_v40, %v12664_v7  ;;  %v2742_v63 = vsub.f32 %v18175_v9, %v12666_v23  ;;  %9696 = vmatmul.mubr.msk.bf16.gmra.mrb[84].mxu1 %vm9695_vm13, %v17855_v30  ;;  %v12673_v53 = vsel %vm2873_vm10, 0.0, %v2809_v19  ;;  %v18180_v58 = vld [vmem:[#allocation140_spill] sm:$0xff]  ;;  %v18182_v7 = vld [vmem:[#allocation141_spill] sm:$0xff] }
 0x220   : > { %18171 = vst [vmem:[#allocation130_spill] sm:$0xff] %v12662_v41  ;;  %18173 = vst [vmem:[#allocation131_spill] sm:$0xff] %v12666_v23  ;;  %v12675_v62 = vsel %vm2877_vm11, 0.0, %v2813_v51  ;;  %v3193_v45 = vsub.f32 %v18178_v26, %v12673_v53  ;;  %v2811_v40 = vadd.f32 %v18181_v34, %v18180_v58  ;;  %v2815_v9 = vadd.f32 %v12137_v11, %v18182_v7  ;;  %v18185_v51 = vld [vmem:[#allocation34_spill] sm:$0xff]  ;;  %v18187_v20 = vld [vmem:[#allocation143_spill] sm:$0xff] }
 0x221   : > { %18176 = vst [vmem:[#allocation135_spill] sm:$0xff] %v12673_v53  ;;  %18177 = vst [vmem:[#allocation133_spill] sm:$0xff] %v12675_v62  ;;  %v3197_v13 = vsub.f32 %v18179_v22, %v12675_v62  ;;  %v12686_v23 = vmul.f32 0.5, %v2738_v1  ;;  %v12688_v19 = vmul.f32 0.5, %v2742_v63  ;;  %v18186_v41 = vld [vmem:[#allocation146_spill] sm:$0xff]  ;;  %v18188_v26 = vld [vmem:[#allocation148_spill] sm:$0xff] }
 0x222   : > { %vm9441_vm14 = vmpackc.low %vm2877_vm11, %vm2873_vm10  ;;  %v2808_v43 = vadd.f32 %v18186_v41, %v18185_v51  ;;  %v2812_v53 = vadd.f32 %v18188_v26, %v18187_v20  ;;  %v12694_v36 = vmul.f32 0.5, %v3193_v45  ;;  %vm2875_vm0 = vcmp.ge.f32.partialorder %v2811_v40, 1.0  ;;  %v18193_v11 = vld [vmem:[#allocation5_spill] sm:$0xff]  ;;  %v18198_v26 = vld [vmem:[#allocation7_spill] sm:$0xff] }
 0x223   : > { %9442 = vmatprep.mubr.msk.bf16.mxu0 %vm9441_vm14, %v17855_v30  ;;  %18183 = vst [vmem:[#allocation137_spill] sm:$0xff] %v12686_v23  ;;  %18184 = vst [vmem:[#allocation134_spill] sm:$0xff] %v12688_v19  ;;  %v12696_v22 = vmul.f32 0.5, %v3197_v13  ;;  %vm2879_vm4 = vcmp.ge.f32.partialorder %v2815_v9, 1.0  ;;  %v12698_v58 = vsel %vm2875_vm0, 0.0, %v2811_v40  ;;  %v18194_v41 = vld [vmem:[#allocation9_spill] sm:$0xff] }
 0x224   : > { %18189 = vst [vmem:[#allocation138_spill] sm:$0xff] %v12694_v36  ;;  %18191 = vst [vmem:[#allocation139_spill] sm:$0xff] %v12698_v58  ;;  %v12700_v34 = vsel %vm2879_vm4, 0.0, %v2815_v9  ;;  %vm2872_vm6 = vcmp.ge.f32.partialorder %v2808_v43, 1.0  ;;  %vm2876_vm7 = vcmp.ge.f32.partialorder %v2812_v53, 1.0  ;;  %v3195_v7 = vsub.f32 %v18193_v11, %v12698_v58  ;;  %v18197_v40 = vld [vmem:[#allocation3_spill] sm:$0xff] }
 0x225   : > { %18190 = vst [vmem:[#allocation136_spill] sm:$0xff] %v12696_v22  ;;  %18192 = vst [vmem:[#allocation140_spill] sm:$0xff] %v12700_v34  ;;  %v3199_v1 = vsub.f32 %v18194_v41, %v12700_v34  ;;  %v12707_v20 = vsel %vm2872_vm6, 0.0, %v2808_v43  ;;  %v12709_v63 = vsel %vm2876_vm7, 0.0, %v2812_v53  ;;  %v18199_v13 = vld [vmem:[#allocation147_spill] sm:$0xff]  ;;  %v18200_v51 = vld [vmem:[#allocation152_spill] sm:$0xff] }
 0x226   : > { %vm9697_vm9 = vmpackc.low %vm2879_vm4, %vm2875_vm0  ;;  %18195 = vst [vmem:[#allocation142_spill] sm:$0xff] %v12707_v20  ;;  %v3192_v9 = vsub.f32 %v18197_v40, %v12707_v20  ;;  %v3196_v45 = vsub.f32 %v18198_v26, %v12709_v63  ;;  %v2810_v11 = vadd.f32 %v18200_v51, %v18199_v13  ;;  %v18201_v58 = vld [vmem:[#allocation149_spill] sm:$0xff]  ;;  %v18202_v41 = vld [vmem:[#allocation23_spill] sm:$0xff]  ;;  %v12720_v22 = vmul.f32 0.5, %v3195_v7 }
 0x227   : > { %9698 = vmatprep.mubr.msk.bf16.mxu1 %vm9697_vm9, %v17855_v30  ;;  %18196 = vst [vmem:[#allocation141_spill] sm:$0xff] %v12709_v63  ;;  %vm9443_vm13 = vmpackc.low %vm2876_vm7, %vm2872_vm6  ;;  %v2814_v34 = vadd.f32 %v18202_v41, %v18201_v58  ;;  %v12722_v43 = vmul.f32 0.5, %v3199_v1  ;;  %v18205_v53 = vld [vmem:[#allocation144_spill] sm:$0xff]  ;;  %v18206_v62 = vld [vmem:[#allocation150_spill] sm:$0xff] }
 0x228   : > { %9444 = vmatmul.mubr.msk.bf16.gmra.mrb[96].mxu0 %vm9443_vm13, %v17855_v30  ;;  %18203 = vst [vmem:[#allocation34_spill] sm:$0xff] %v12720_v22  ;;  %v2817_v36 = vadd.f32 %v18206_v62, %v18205_v53  ;;  %v18207_v19 = vld [vmem:[#allocation145_spill] sm:$0xff]  ;;  %v12728_v23 = vmul.f32 0.5, %v3192_v9  ;;  %v12730_v26 = vmul.f32 0.5, %v3196_v45  ;;  %vm2874_vm10 = vcmp.ge.f32.partialorder %v2810_v11, 1.0  ;;  %v18213_v58 = vld [vmem:[#allocation6_spill] sm:$0xff] }
 0x229   : > { %18204 = vst [vmem:[#allocation146_spill] sm:$0xff] %v12722_v43  ;;  %v18208_v40 = vld [vmem:[#allocation153_spill] sm:$0xff]  ;;  %vm2878_vm11 = vcmp.ge.f32.partialorder %v2814_v34, 1.0  ;;  %v12732_v13 = vsel %vm2874_vm10, 0.0, %v2810_v11  ;;  %v18214_v62 = vld [vmem:[#allocation11_spill] sm:$0xff]  ;;  %v18217_v11 = vld [vmem:[#allocation16_spill] sm:$0xff] }
 0x22a   : > { %v2821_v20 = vadd.f32 %v18208_v40, %v18207_v19  ;;  %18209 = vst [vmem:[#allocation143_spill] sm:$0xff] %v12728_v23  ;;  %18210 = vst [vmem:[#allocation148_spill] sm:$0xff] %v12730_v26  ;;  %v12734_v51 = vsel %vm2878_vm11, 0.0, %v2814_v34  ;;  %vm2881_vm0 = vcmp.ge.f32.partialorder %v2817_v36, 1.0  ;;  %v3194_v7 = vsub.f32 %v18213_v58, %v12732_v13  ;;  %v18218_v40 = vld [vmem:[#allocation21_spill] sm:$0xff]  ;;  %v18219_v45 = vld [vmem:[#allocation47_spill] sm:$0xff] }
 0x22b   : > { %18211 = vst [vmem:[#allocation147_spill] sm:$0xff] %v12732_v13  ;;  %18212 = vst [vmem:[#allocation152_spill] sm:$0xff] %v12734_v51  ;;  %v3198_v41 = vsub.f32 %v18214_v62, %v12734_v51  ;;  %v12741_v19 = vsel %vm2881_vm0, 0.0, %v2817_v36  ;;  %v18220_v53 = vld [vmem:[#allocation156_spill] sm:$0xff]  ;;  %v18221_v13 = vld [vmem:[#allocation50_spill] sm:$0xff] }
 0x22c   : > { %vm9699_vm14 = vmpackc.low %vm2878_vm11, %vm2874_vm10  ;;  %vm2885_vm4 = vcmp.ge.f32.partialorder %v2821_v20, 1.0  ;;  %18215 = vst [vmem:[#allocation149_spill] sm:$0xff] %v12741_v19  ;;  %v3201_v34 = vsub.f32 %v18217_v11, %v12741_v19  ;;  %v2819_v58 = vadd.f32 %v18220_v53, %v18219_v45  ;;  %v18222_v62 = vld [vmem:[#allocation40_spill] sm:$0xff]  ;;  %v12754_v26 = vmul.f32 0.5, %v3194_v7  ;;  %v18226_v63 = vld [vmem:[#allocation155_spill] sm:$0xff] }
 0x22d   : > { %9700 = vmatmul.mubr.msk.bf16.gmra.mrb[88].mxu1 %vm9699_vm14, %v17855_v30  ;;  %v12743_v1 = vsel %vm2885_vm4, 0.0, %v2821_v20  ;;  %vm9445_vm9 = vmpackc.low %vm2885_vm4, %vm2881_vm0  ;;  %v2823_v51 = vadd.f32 %v18222_v62, %v18221_v13  ;;  %v12756_v36 = vmul.f32 0.5, %v3198_v41  ;;  %v18225_v20 = vld [vmem:[#allocation33_spill] sm:$0xff]  ;;  %v18227_v43 = vld [vmem:[#allocation154_spill] sm:$0xff] }
 0x22e   : > { %18216 = vst [vmem:[#allocation23_spill] sm:$0xff] %v12743_v1  ;;  %v3205_v9 = vsub.f32 %v18218_v40, %v12743_v1  ;;  %9446 = vmatprep.mubr.msk.bf16.mxu0 %vm9445_vm9, %v17855_v30  ;;  %18223 = vst [vmem:[#allocation144_spill] sm:$0xff] %v12754_v26  ;;  %v2816_v23 = vadd.f32 %v18226_v63, %v18225_v20  ;;  %v18228_v11 = vld [vmem:[#allocation39_spill] sm:$0xff]  ;;  %v12762_v22 = vmul.f32 0.5, %v3201_v34  ;;  %vm2883_vm6 = vcmp.ge.f32.partialorder %v2819_v58, 1.0  ;;  %v18233_v13 = vld [vmem:[#allocation18_spill] sm:$0xff] }
 0x22f   : > { %18224 = vst [vmem:[#allocation150_spill] sm:$0xff] %v12756_v36  ;;  %v2820_v19 = vadd.f32 %v18228_v11, %v18227_v43  ;;  %vm2887_vm7 = vcmp.ge.f32.partialorder %v2823_v51, 1.0  ;;  %v12766_v45 = vsel %vm2883_vm6, 0.0, %v2819_v58  ;;  %v18234_v63 = vld [vmem:[#allocation22_spill] sm:$0xff]  ;;  %v18238_v11 = vld [vmem:[#allocation19_spill] sm:$0xff]  ;;  %v18240_v20 = vld [vmem:[#allocation53_spill] sm:$0xff] }
 0x230   : > { %18229 = vst [vmem:[#allocation145_spill] sm:$0xff] %v12762_v22  ;;  %v12764_v40 = vmul.f32 0.5, %v3205_v9  ;;  %18231 = vst [vmem:[#allocation47_spill] sm:$0xff] %v12766_v45  ;;  %v12768_v53 = vsel %vm2887_vm7, 0.0, %v2823_v51  ;;  %vm2880_vm10 = vcmp.ge.f32.partialorder %v2816_v23, 1.0  ;;  %v3203_v7 = vsub.f32 %v18233_v13, %v12766_v45  ;;  %v18237_v58 = vld [vmem:[#allocation14_spill] sm:$0xff] }
 0x231   : > { %18232 = vst [vmem:[#allocation156_spill] sm:$0xff] %v12768_v53  ;;  %vm9701_vm13 = vmpackc.low %vm2887_vm7, %vm2883_vm6  ;;  %vm2884_vm11 = vcmp.ge.f32.partialorder %v2820_v19, 1.0  ;;  %v3207_v62 = vsub.f32 %v18234_v63, %v12768_v53  ;;  %v12775_v43 = vsel %vm2880_vm10, 0.0, %v2816_v23  ;;  %v18239_v9 = vld [vmem:[#allocation54_spill] sm:$0xff]  ;;  %v18241_v45 = vld [vmem:[#allocation44_spill] sm:$0xff] }
 0x232   : > { %18230 = vst [vmem:[#allocation153_spill] sm:$0xff] %v12764_v40  ;;  %9702 = vmatprep.mubr.msk.bf16.mxu1 %vm9701_vm13, %v17855_v30  ;;  %18235 = vst [vmem:[#allocation50_spill] sm:$0xff] %v12775_v43  ;;  %v12777_v41 = vsel %vm2884_vm11, 0.0, %v2820_v19  ;;  %v3200_v51 = vsub.f32 %v18237_v58, %v12775_v43  ;;  %v2818_v13 = vadd.f32 %v18240_v20, %v18239_v9  ;;  %v18242_v63 = vld [vmem:[#allocation56_spill] sm:$0xff]  ;;  %v12788_v40 = vmul.f32 0.5, %v3203_v7  ;;  %v18243_v19 = vld [vmem:[#allocation43_spill] sm:$0xff] }
 0x233   : > { %18236 = vst [vmem:[#allocation40_spill] sm:$0xff] %v12777_v41  ;;  %vm9447_vm14 = vmpackc.low %vm2884_vm11, %vm2880_vm10  ;;  %v3204_v34 = vsub.f32 %v18238_v11, %v12777_v41  ;;  %v2822_v53 = vadd.f32 %v18242_v63, %v18241_v45  ;;  %v12790_v23 = vmul.f32 0.5, %v3207_v62  ;;  %v18244_v1 = vld [vmem:[#allocation158_spill] sm:$0xff]  ;;  %v18245_v36 = vld [vmem:[#allocation157_spill] sm:$0xff] }
 0x234   : > { %9448 = vmatmul.mubr.msk.bf16.gmra.mrb[100].mxu0 %vm9447_vm14, %v17855_v30  ;;  %v2825_v22 = vadd.f32 %v18244_v1, %v18243_v19  ;;  %v18246_v58 = vld [vmem:[#allocation55_spill] sm:$0xff]  ;;  %v12796_v26 = vmul.f32 0.5, %v3200_v51  ;;  %vm2882_vm0 = vcmp.ge.f32.partialorder %v2818_v13, 1.0  ;;  %v18251_v45 = vld [vmem:[#allocation17_spill] sm:$0xff]  ;;  %v18252_v1 = vld [vmem:[#allocation20_spill] sm:$0xff] }
 0x235   : > { %v2829_v43 = vadd.f32 %v18246_v58, %v18245_v36  ;;  %v12798_v11 = vmul.f32 0.5, %v3204_v34  ;;  %vm2886_vm4 = vcmp.ge.f32.partialorder %v2822_v53, 1.0  ;;  %v12800_v9 = vsel %vm2882_vm0, 0.0, %v2818_v13  ;;  %v18254_v13 = vld [vmem:[#allocation28_spill] sm:$0xff]  ;;  %v18255_v58 = vld [vmem:[#allocation35_spill] sm:$0xff]  ;;  %v18257_v19 = vld [vmem:[#allocation58_spill] sm:$0xff] }
 0x236   : > { %18247 = vst [vmem:[#allocation33_spill] sm:$0xff] %v12796_v26  ;;  %18249 = vst [vmem:[#allocation154_spill] sm:$0xff] %v12800_v9  ;;  %v12802_v20 = vsel %vm2886_vm4, 0.0, %v2822_v53  ;;  %vm2889_vm6 = vcmp.ge.f32.partialorder %v2825_v22, 1.0  ;;  %v3202_v7 = vsub.f32 %v18251_v45, %v12800_v9  ;;  %v18256_v34 = vld [vmem:[#allocation159_spill] sm:$0xff]  ;;  %v18258_v9 = vld [vmem:[#allocation57_spill] sm:$0xff] }
 0x237   : > { %18248 = vst [vmem:[#allocation155_spill] sm:$0xff] %v12798_v11  ;;  %18250 = vst [vmem:[#allocation39_spill] sm:$0xff] %v12802_v20  ;;  %vm2893_vm7 = vcmp.ge.f32.partialorder %v2829_v43, 1.0  ;;  %v3206_v63 = vsub.f32 %v18252_v1, %v12802_v20  ;;  %v12809_v36 = vsel %vm2889_vm6, 0.0, %v2825_v22  ;;  %v2827_v45 = vadd.f32 %v18257_v19, %v18256_v34  ;;  %v18259_v1 = vld [vmem:[#allocation38_spill] sm:$0xff]  ;;  %v18261_v26 = vld [vmem:[#allocation160_spill] sm:$0xff] }
 0x238   : > { %vm9703_vm9 = vmpackc.low %vm2886_vm4, %vm2882_vm0  ;;  %18253 = vst [vmem:[#allocation54_spill] sm:$0xff] %v12809_v36  ;;  %v12811_v62 = vsel %vm2893_vm7, 0.0, %v2829_v43  ;;  %v3209_v53 = vsub.f32 %v18254_v13, %v12809_v36  ;;  %v2831_v20 = vadd.f32 %v18259_v1, %v18258_v9  ;;  %v12822_v11 = vmul.f32 0.5, %v3202_v7  ;;  %v18260_v43 = vld [vmem:[#allocation37_spill] sm:$0xff] }
 0x239   : > { %9704 = vmatmul.mubr.msk.bf16.gmra.mrb[92].mxu1 %vm9703_vm9, %v17855_v30  ;;  %vm9449_vm13 = vmpackc.low %vm2893_vm7, %vm2889_vm6  ;;  %v3213_v51 = vsub.f32 %v18255_v58, %v12811_v62  ;;  %v12824_v22 = vmul.f32 0.5, %v3206_v63  ;;  %v2824_v41 = vadd.f32 %v12314_v38, %v18260_v43  ;;  %v2828_v13 = vadd.f32 %v12320_v48, %v18261_v26  ;;  %v18264_v9 = vld [vmem:[#allocation29_spill] sm:$0xff]  ;;  %v18265_v38 = vld [vmem:[#allocation36_spill] sm:$0xff] }
 0x23a   : > { %9450 = vmatprep.mubr.msk.bf16.mxu0 %vm9449_vm13, %v17855_v30  ;;  %v12830_v36 = vmul.f32 0.5, %v3209_v53  ;;  %vm2891_vm10 = vcmp.ge.f32.partialorder %v2827_v45, 1.0  ;;  %vm2895_vm11 = vcmp.ge.f32.partialorder %v2831_v20, 1.0  ;;  %v18269_v63 = vld [vmem:[#allocation30_spill] sm:$0xff]  ;;  %v2830_v43 = vadd.f32 %v12373_v50, %v12347_v0 }
 0x23b   : > { %v12832_v58 = vmul.f32 0.5, %v3213_v51  ;;  %v12834_v34 = vsel %vm2891_vm10, 0.0, %v2827_v45  ;;  %v12836_v19 = vsel %vm2895_vm11, 0.0, %v2831_v20  ;;  %vm9705_vm14 = vmpackc.low %vm2895_vm11, %vm2891_vm10  ;;  %vm2888_vm0 = vcmp.ge.f32.partialorder %v2824_v41, 1.0  ;;  %v18268_v45 = vld [vmem:[#allocation25_spill] sm:$0xff]  ;;  %v18279_v50 = vld [vmem:[#allocation26_spill] sm:$0xff] }
 0x23c   : > { %18262 = vst [vmem:[#allocation53_spill] sm:$0xff] %v12834_v34  ;;  %18263 = vst [vmem:[#allocation44_spill] sm:$0xff] %v12836_v19  ;;  %vm2892_vm4 = vcmp.ge.f32.partialorder %v2828_v13, 1.0  ;;  %v3211_v7 = vsub.f32 %v18264_v9, %v12834_v34  ;;  %v3215_v1 = vsub.f32 %v18265_v38, %v12836_v19  ;;  %9706 = vmatprep.mubr.msk.bf16.mxu1 %vm9705_vm14, %v17855_v30  ;;  %v12843_v48 = vsel %vm2888_vm0, 0.0, %v2824_v41  ;;  %v18273_v19 = vld [vmem:[#allocation61_spill] sm:$0xff] }
 0x23d   : > { %18266 = vst [vmem:[#allocation56_spill] sm:$0xff] %v12843_v48  ;;  %v12845_v26 = vsel %vm2892_vm4, 0.0, %v2828_v13  ;;  %vm9451_vm9 = vmpackc.low %vm2892_vm4, %vm2888_vm0  ;;  %v3208_v20 = vsub.f32 %v18268_v45, %v12843_v48  ;;  %v2826_v51 = vadd.f32 %v12362_v25, %v12341_v47  ;;  %v18272_v13 = vld [vmem:[#allocation70_spill] sm:$0xff]  ;;  %v18274_v45 = vld [vmem:[#allocation68_spill] sm:$0xff]  ;;  %vm2894_vm7 = vcmp.ge.f32.partialorder %v2830_v43, 1.0 }
 0x23e   : > { %18267 = vst [vmem:[#allocation43_spill] sm:$0xff] %v12845_v26  ;;  %v3212_v53 = vsub.f32 %v18269_v63, %v12845_v26  ;;  %9452 = vmatmul.mubr.msk.bf16.gmra.mrb[104].mxu0 %vm9451_vm9, %v17855_v30  ;;  %v12856_v38 = vmul.f32 0.5, %v3211_v7  ;;  %v12858_v41 = vmul.f32 0.5, %v3215_v1  ;;  %v2833_v9 = vadd.f32 %v18272_v13, %v12322_v59  ;;  %v18280_v59 = vld [vmem:[#allocation31_spill] sm:$0xff]  ;;  %v18286_v13 = vld [vmem:[#allocation73_spill] sm:$0xff]  ;;  %v18291_v26 = vld [vmem:[#allocation80_spill] sm:$0xff] }
 0x23f   : > { %v2837_v48 = vadd.f32 %v18274_v45, %v18273_v19  ;;  %v12864_v34 = vmul.f32 0.5, %v3208_v20  ;;  %vm2890_vm6 = vcmp.ge.f32.partialorder %v2826_v51, 1.0  ;;  %v12870_v47 = vsel %vm2894_vm7, 0.0, %v2830_v43  ;;  %v18283_v45 = vld [vmem:[#allocation45_spill] sm:$0xff]  ;;  %v18285_v43 = vld [vmem:[#allocation67_spill] sm:$0xff] }
 0x240   : > { %18270 = vst [vmem:[#allocation158_spill] sm:$0xff] %v12856_v38  ;;  %18271 = vst [vmem:[#allocation157_spill] sm:$0xff] %v12858_v41  ;;  %v12866_v63 = vmul.f32 0.5, %v3212_v53  ;;  %v12868_v25 = vsel %vm2890_vm6, 0.0, %v2826_v51  ;;  %vm2897_vm10 = vcmp.ge.f32.partialorder %v2833_v9, 1.0  ;;  %v3214_v7 = vsub.f32 %v18280_v59, %v12870_v47  ;;  %v18284_v53 = vld [vmem:[#allocation51_spill] sm:$0xff] }
 0x241   : > { %18275 = vst [vmem:[#allocation55_spill] sm:$0xff] %v12864_v34  ;;  %18277 = vst [vmem:[#allocation58_spill] sm:$0xff] %v12868_v25  ;;  %vm2901_vm11 = vcmp.ge.f32.partialorder %v2837_v48, 1.0  ;;  %v3210_v0 = vsub.f32 %v18279_v50, %v12868_v25  ;;  %v12877_v19 = vsel %vm2897_vm10, 0.0, %v2833_v9  ;;  %v2835_v50 = vadd.f32 %v18286_v13, %v18285_v43  ;;  %v18287_v25 = vld [vmem:[#allocation64_spill] sm:$0xff]  ;;  %v18288_v59 = vld [vmem:[#allocation71_spill] sm:$0xff] }
 0x242   : > { %18276 = vst [vmem:[#allocation159_spill] sm:$0xff] %v12866_v63  ;;  %18278 = vst [vmem:[#allocation57_spill] sm:$0xff] %v12870_v47  ;;  %v12879_v1 = vsel %vm2901_vm11, 0.0, %v2837_v48  ;;  %v3217_v20 = vsub.f32 %v18283_v45, %v12877_v19  ;;  %v2839_v47 = vadd.f32 %v18288_v59, %v18287_v25  ;;  %v12892_v9 = vmul.f32 0.5, %v3214_v7  ;;  %v18290_v48 = vld [vmem:[#allocation76_spill] sm:$0xff]  ;;  %v18292_v41 = vld [vmem:[#allocation74_spill] sm:$0xff] }
 0x243   : > { %vm9707_vm13 = vmpackc.low %vm2894_vm7, %vm2890_vm6  ;;  %18281 = vst [vmem:[#allocation38_spill] sm:$0xff] %v12877_v19  ;;  %v3221_v51 = vsub.f32 %v18284_v53, %v12879_v1  ;;  %v12890_v63 = vmul.f32 0.5, %v3210_v0  ;;  %v2832_v34 = vadd.f32 %v18291_v26, %v18290_v48  ;;  %v18293_v45 = vld [vmem:[#allocation77_spill] sm:$0xff]  ;;  %vm2899_vm0 = vcmp.ge.f32.partialorder %v2835_v50, 1.0  ;;  %v18298_v25 = vld [vmem:[#allocation46_spill] sm:$0xff] }
 0x244   : > { %9708 = vmatmul.mubr.msk.bf16.gmra.mrb[96].mxu1 %vm9707_vm13, %v17855_v30  ;;  %18282 = vst [vmem:[#allocation37_spill] sm:$0xff] %v12879_v1  ;;  %vm9453_vm14 = vmpackc.low %vm2901_vm11, %vm2897_vm10  ;;  %v2836_v19 = vadd.f32 %v18293_v45, %v18292_v41  ;;  %v12898_v38 = vmul.f32 0.5, %v3217_v20  ;;  %vm2903_vm4 = vcmp.ge.f32.partialorder %v2839_v47, 1.0  ;;  %v12902_v43 = vsel %vm2899_vm0, 0.0, %v2835_v50  ;;  %v18299_v26 = vld [vmem:[#allocation52_spill] sm:$0xff]  ;;  %v18301_v50 = vld [vmem:[#allocation41_spill] sm:$0xff] }
 0x245   : > { %9454 = vmatprep.mubr.msk.bf16.mxu0 %vm9453_vm14, %v17855_v30  ;;  %18289 = vst [vmem:[#allocation160_spill] sm:$0xff] %v12892_v9  ;;  %v12900_v53 = vmul.f32 0.5, %v3221_v51  ;;  %18296 = vst [vmem:[#allocation68_spill] sm:$0xff] %v12902_v43  ;;  %v12904_v13 = vsel %vm2903_vm4, 0.0, %v2839_v47  ;;  %vm2896_vm6 = vcmp.ge.f32.partialorder %v2832_v34, 1.0  ;;  %v3219_v0 = vsub.f32 %v18298_v25, %v12902_v43  ;;  %v18302_v45 = vld [vmem:[#allocation48_spill] sm:$0xff] }
 0x246   : > { %18294 = vst [vmem:[#allocation70_spill] sm:$0xff] %v12898_v38  ;;  %18297 = vst [vmem:[#allocation67_spill] sm:$0xff] %v12904_v13  ;;  %vm2900_vm7 = vcmp.ge.f32.partialorder %v2836_v19, 1.0  ;;  %v3223_v59 = vsub.f32 %v18299_v26, %v12904_v13  ;;  %v12911_v41 = vsel %vm2896_vm6, 0.0, %v2832_v34  ;;  %v18303_v51 = vld [vmem:[#allocation75_spill] sm:$0xff]  ;;  %v18304_v48 = vld [vmem:[#allocation88_spill] sm:$0xff] }
 0x247   : > { %18295 = vst [vmem:[#allocation61_spill] sm:$0xff] %v12900_v53  ;;  %vm9709_vm9 = vmpackc.low %vm2903_vm4, %vm2899_vm0  ;;  %v12913_v7 = vsel %vm2900_vm7, 0.0, %v2836_v19  ;;  %v3216_v47 = vsub.f32 %v18301_v50, %v12911_v41  ;;  %v2834_v25 = vadd.f32 %v18304_v48, %v18303_v51  ;;  %v18305_v43 = vld [vmem:[#allocation81_spill] sm:$0xff]  ;;  %v12924_v13 = vmul.f32 0.5, %v3219_v0  ;;  %v18306_v19 = vld [vmem:[#allocation86_spill] sm:$0xff] }
 0x248   : > { %9710 = vmatprep.mubr.msk.bf16.mxu1 %vm9709_vm9, %v17855_v30  ;;  %18300 = vst [vmem:[#allocation73_spill] sm:$0xff] %v12911_v41  ;;  %vm9455_vm13 = vmpackc.low %vm2900_vm7, %vm2896_vm6  ;;  %v3220_v20 = vsub.f32 %v18302_v45, %v12913_v7  ;;  %v2838_v26 = vadd.f32 %v12413_v49, %v18305_v43  ;;  %v12926_v34 = vmul.f32 0.5, %v3223_v59  ;;  %v18307_v53 = vld [vmem:[#allocation91_spill] sm:$0xff]  ;;  %v18308_v38 = vld [vmem:[#allocation82_spill] sm:$0xff] }
 0x249   : > { %9456 = vmatmul.mubr.msk.bf16.gmra.mrb[108].mxu0 %vm9455_vm13, %v17855_v30  ;;  %v2841_v1 = vadd.f32 %v18307_v53, %v18306_v19  ;;  %v18309_v50 = vld [vmem:[#allocation95_spill] sm:$0xff]  ;;  %v12932_v9 = vmul.f32 0.5, %v3216_v47  ;;  %vm2898_vm10 = vcmp.ge.f32.partialorder %v2834_v25, 1.0  ;;  %v18312_v49 = vld [vmem:[#allocation42_spill] sm:$0xff]  ;;  %v18313_v53 = vld [vmem:[#allocation49_spill] sm:$0xff] }
 0x24a   : > { %v2845_v41 = vadd.f32 %v18309_v50, %v18308_v38  ;;  %v12934_v45 = vmul.f32 0.5, %v3220_v20  ;;  %vm2902_vm11 = vcmp.ge.f32.partialorder %v2838_v26, 1.0  ;;  %v12936_v51 = vsel %vm2898_vm10, 0.0, %v2834_v25  ;;  %v18315_v25 = vld [vmem:[#allocation62_spill] sm:$0xff]  ;;  %v18316_v50 = vld [vmem:[#allocation69_spill] sm:$0xff]  ;;  %v18317_v20 = vld [vmem:[#allocation92_spill] sm:$0xff] }
 0x24b   : > { %18310 = vst [vmem:[#allocation64_spill] sm:$0xff] %v12936_v51  ;;  %v12938_v48 = vsel %vm2902_vm11, 0.0, %v2838_v26  ;;  %vm9711_vm14 = vmpackc.low %vm2902_vm11, %vm2898_vm10  ;;  %vm2905_vm0 = vcmp.ge.f32.partialorder %v2841_v1, 1.0  ;;  %v3218_v43 = vsub.f32 %v18312_v49, %v12936_v51  ;;  %v2843_v19 = vadd.f32 %v12447_v31, %v18317_v20  ;;  %v18318_v49 = vld [vmem:[#allocation96_spill] sm:$0xff]  ;;  %v18319_v51 = vld [vmem:[#allocation93_spill] sm:$0xff] }
 0x24c   : > { %18311 = vst [vmem:[#allocation71_spill] sm:$0xff] %v12938_v48  ;;  %vm2909_vm4 = vcmp.ge.f32.partialorder %v2845_v41, 1.0  ;;  %v3222_v0 = vsub.f32 %v18313_v53, %v12938_v48  ;;  %9712 = vmatmul.mubr.msk.bf16.gmra.mrb[100].mxu1 %vm9711_vm14, %v17855_v30  ;;  %v12945_v38 = vsel %vm2905_vm0, 0.0, %v2841_v1  ;;  %v2847_v53 = vadd.f32 %v12454_v52, %v18318_v49  ;;  %v18321_v52 = vld [vmem:[#allocation63_spill] sm:$0xff] }
 0x24d   : > { %18314 = vst [vmem:[#allocation76_spill] sm:$0xff] %v12945_v38  ;;  %v12947_v59 = vsel %vm2909_vm4, 0.0, %v2845_v41  ;;  %vm9457_vm9 = vmpackc.low %vm2909_vm4, %vm2905_vm0  ;;  %v3225_v26 = vsub.f32 %v18315_v25, %v12945_v38  ;;  %v12958_v48 = vmul.f32 0.5, %v3218_v43  ;;  %v2840_v41 = vadd.f32 %v12456_v32, %v12434_v37  ;;  %v18322_v37 = vld [vmem:[#allocation72_spill] sm:$0xff]  ;;  %v18324_v43 = vld [vmem:[#allocation59_spill] sm:$0xff] }
 0x24e   : > { %v3229_v47 = vsub.f32 %v18316_v50, %v12947_v59  ;;  %9458 = vmatprep.mubr.msk.bf16.mxu0 %vm9457_vm9, %v17855_v30  ;;  %v12960_v1 = vmul.f32 0.5, %v3222_v0  ;;  %v2844_v25 = vadd.f32 %v12458_v61, %v18319_v51  ;;  %vm2907_vm6 = vcmp.ge.f32.partialorder %v2843_v19, 1.0  ;;  %v18325_v0 = vld [vmem:[#allocation65_spill] sm:$0xff] }
 0x24f   : > { %v12966_v38 = vmul.f32 0.5, %v3225_v26  ;;  %vm2911_vm7 = vcmp.ge.f32.partialorder %v2847_v53, 1.0  ;;  %v12970_v31 = vsel %vm2907_vm6, 0.0, %v2843_v19  ;;  %vm2904_vm10 = vcmp.ge.f32.partialorder %v2840_v41, 1.0  ;;  %v18326_v19 = vld [vmem:[#allocation98_spill] sm:$0xff] }
 0x250   : > { %v12968_v50 = vmul.f32 0.5, %v3229_v47  ;;  %v12972_v20 = vsel %vm2911_vm7, 0.0, %v2847_v53  ;;  %vm9713_vm13 = vmpackc.low %vm2911_vm7, %vm2907_vm6  ;;  %vm2908_vm11 = vcmp.ge.f32.partialorder %v2844_v25, 1.0  ;;  %v3227_v49 = vsub.f32 %v18321_v52, %v12970_v31 }
 0x251   : > { %18320 = vst [vmem:[#allocation80_spill] sm:$0xff] %v12972_v20  ;;  %v3231_v32 = vsub.f32 %v18322_v37, %v12972_v20  ;;  %9714 = vmatprep.mubr.msk.bf16.mxu1 %vm9713_vm13, %v17855_v30  ;;  %v12979_v61 = vsel %vm2904_vm10, 0.0, %v2840_v41  ;;  %v12981_v51 = vsel %vm2908_vm11, 0.0, %v2844_v25  ;;  %vm9459_vm14 = vmpackc.low %vm2908_vm11, %vm2904_vm10  ;;  %v2842_v47 = vadd.f32 %v12482_v24, %v12460_v18  ;;  %v18327_v25 = vld [vmem:[#allocation94_spill] sm:$0xff] }
 0x252   : > { %18323 = vst [vmem:[#allocation74_spill] sm:$0xff] %v12979_v61  ;;  %v3224_v53 = vsub.f32 %v18324_v43, %v12979_v61  ;;  %v3228_v26 = vsub.f32 %v18325_v0, %v12981_v51  ;;  %9460 = vmatmul.mubr.msk.bf16.gmra.mrb[112].mxu0 %vm9459_vm14, %v17855_v30  ;;  %v2846_v37 = vadd.f32 %v12484_v55, %v18326_v19  ;;  %v12992_v52 = vmul.f32 0.5, %v3227_v49  ;;  %v18328_v55 = vld [vmem:[#allocation60_spill] sm:$0xff] }
 0x253   : > { %v12994_v41 = vmul.f32 0.5, %v3231_v32  ;;  %v2849_v20 = vadd.f32 %v12490_v6, %v18327_v25  ;;  %v2853_v43 = vadd.f32 %v12492_v57, %v12471_v14  ;;  %vm2906_vm0 = vcmp.ge.f32.partialorder %v2842_v47, 1.0  ;;  %v18329_v6 = vld [vmem:[#allocation66_spill] sm:$0xff] }
 0x254   : > { %v13000_v61 = vmul.f32 0.5, %v3224_v53  ;;  %v13002_v0 = vmul.f32 0.5, %v3228_v26  ;;  %vm2910_vm4 = vcmp.ge.f32.partialorder %v2846_v37, 1.0  ;;  %v13004_v18 = vsel %vm2906_vm0, 0.0, %v2842_v47  ;;  %v18330_v53 = vld [vmem:[#allocation83_spill] sm:$0xff]  ;;  %v18331_v26 = vld [vmem:[#allocation89_spill] sm:$0xff] }
 0x255   : > { %v13006_v24 = vsel %vm2910_vm4, 0.0, %v2846_v37  ;;  %vm9715_vm9 = vmpackc.low %vm2910_vm4, %vm2906_vm0  ;;  %vm2913_vm6 = vcmp.ge.f32.partialorder %v2849_v20, 1.0  ;;  %vm2917_vm7 = vcmp.ge.f32.partialorder %v2853_v43, 1.0  ;;  %v3226_v49 = vsub.f32 %v18328_v55, %v13004_v18 }
 0x256   : > { %v3230_v32 = vsub.f32 %v18329_v6, %v13006_v24  ;;  %9716 = vmatmul.mubr.msk.bf16.gmra.mrb[104].mxu1 %vm9715_vm9, %v17855_v30  ;;  %v13013_v14 = vsel %vm2913_vm6, 0.0, %v2849_v20  ;;  %v13015_v57 = vsel %vm2917_vm7, 0.0, %v2853_v43  ;;  %vm9461_vm13 = vmpackc.low %vm2917_vm7, %vm2913_vm6  ;;  %v2851_v19 = vadd.f32 %v12516_v3, %v12494_v15 }
 0x257   : > { %v3233_v37 = vsub.f32 %v18330_v53, %v13013_v14  ;;  %v3237_v47 = vsub.f32 %v18331_v26, %v13015_v57  ;;  %9462 = vmatprep.mubr.msk.bf16.mxu0 %vm9461_vm13, %v17855_v30  ;;  %v2855_v25 = vadd.f32 %v12518_v10, %v12496_v60  ;;  %v13026_v6 = vmul.f32 0.5, %v3226_v49  ;;  %v18334_v60 = vld [vmem:[#allocation84_spill] sm:$0xff]  ;;  %v18337_v49 = vld [vmem:[#allocation78_spill] sm:$0xff] }
 0x258   : > { %v13028_v20 = vmul.f32 0.5, %v3230_v32  ;;  %v2848_v43 = vadd.f32 %v12524_v29, %v12503_v27  ;;  %v2852_v53 = vadd.f32 %v12526_v46, %v12505_v4  ;;  %vm2915_vm10 = vcmp.ge.f32.partialorder %v2851_v19, 1.0  ;;  %v18335_v29 = vld [vmem:[#allocation90_spill] sm:$0xff] }
 0x259   : > { %v13034_v55 = vmul.f32 0.5, %v3233_v37  ;;  %v13036_v26 = vmul.f32 0.5, %v3237_v47  ;;  %vm2919_vm11 = vcmp.ge.f32.partialorder %v2855_v25, 1.0  ;;  %v13038_v15 = vsel %vm2915_vm10, 0.0, %v2851_v19  ;;  %v18338_v37 = vld [vmem:[#allocation85_spill] sm:$0xff]  ;;  %v18339_v19 = vld [vmem:[#allocation99_spill] sm:$0xff] }
 0x25a   : > { %18332 = vst [vmem:[#allocation77_spill] sm:$0xff] %v13038_v15  ;;  %v13040_v3 = vsel %vm2919_vm11, 0.0, %v2855_v25  ;;  %vm9717_vm14 = vmpackc.low %vm2919_vm11, %vm2915_vm10  ;;  %vm2912_vm0 = vcmp.ge.f32.partialorder %v2848_v43, 1.0  ;;  %vm2916_vm4 = vcmp.ge.f32.partialorder %v2852_v53, 1.0  ;;  %v3235_v10 = vsub.f32 %v18334_v60, %v13038_v15  ;;  %v18340_v60 = vld [vmem:[#allocation97_spill] sm:$0xff] }
 0x25b   : > { %18333 = vst [vmem:[#allocation75_spill] sm:$0xff] %v13040_v3  ;;  %v3239_v27 = vsub.f32 %v18335_v29, %v13040_v3  ;;  %9718 = vmatprep.mubr.msk.bf16.mxu1 %vm9717_vm14, %v17855_v30  ;;  %v13047_v4 = vsel %vm2912_vm0, 0.0, %v2848_v43  ;;  %v13049_v46 = vsel %vm2916_vm4, 0.0, %v2852_v53  ;;  %vm9463_vm9 = vmpackc.low %vm2916_vm4, %vm2912_vm0  ;;  %v2850_v25 = vadd.f32 %v12550_v16, %v18339_v19  ;;  %v18341_v53 = vld [vmem:[#allocation102_spill] sm:$0xff] }
 0x25c   : > { %18336 = vst [vmem:[#allocation88_spill] sm:$0xff] %v13047_v4  ;;  %v3232_v32 = vsub.f32 %v18337_v49, %v13047_v4  ;;  %v3236_v47 = vsub.f32 %v18338_v37, %v13049_v46  ;;  %9464 = vmatmul.mubr.msk.bf16.gmra.mrb[116].mxu0 %vm9463_vm9, %v17855_v30  ;;  %v2854_v29 = vadd.f32 %v12552_v44, %v18340_v60  ;;  %v13060_v3 = vmul.f32 0.5, %v3235_v10  ;;  %v18345_v44 = vld [vmem:[#allocation79_spill] sm:$0xff] }
 0x25d   : > { %v13062_v43 = vmul.f32 0.5, %v3239_v27  ;;  %v2857_v15 = vadd.f32 %v12558_v42, %v18341_v53  ;;  %v2861_v49 = vadd.f32 %v12560_v12, %v12539_v2  ;;  %vm2914_vm6 = vcmp.ge.f32.partialorder %v2850_v25, 1.0  ;;  %v18346_v42 = vld [vmem:[#allocation87_spill] sm:$0xff]  ;;  %v18349_v27 = vld [vmem:[#allocation105_spill] sm:$0xff] }
 0x25e   : > { %v13068_v4 = vmul.f32 0.5, %v3232_v32  ;;  %v13070_v37 = vmul.f32 0.5, %v3236_v47  ;;  %vm2918_vm7 = vcmp.ge.f32.partialorder %v2854_v29, 1.0  ;;  %v13072_v16 = vsel %vm2914_vm6, 0.0, %v2850_v25  ;;  %v18350_v32 = vld [vmem:[#allocation112_spill] sm:$0xff] }
 0x25f   : > { %18343 = vst [vmem:[#allocation86_spill] sm:$0xff] %v13072_v16  ;;  %v13074_v19 = vsel %vm2918_vm7, 0.0, %v2854_v29  ;;  %vm9719_vm13 = vmpackc.low %vm2918_vm7, %vm2914_vm6  ;;  %vm2921_vm10 = vcmp.ge.f32.partialorder %v2857_v15, 1.0  ;;  %vm2925_vm11 = vcmp.ge.f32.partialorder %v2861_v49, 1.0  ;;  %v3234_v60 = vsub.f32 %v18345_v44, %v13072_v16  ;;  %v18351_v25 = vld [vmem:[#allocation100_spill] sm:$0xff]  ;;  %v18352_v44 = vld [vmem:[#allocation107_spill] sm:$0xff] }
 0x260   : > { %18342 = vst [vmem:[#allocation81_spill] sm:$0xff] %v13070_v37  ;;  %18344 = vst [vmem:[#allocation91_spill] sm:$0xff] %v13074_v19  ;;  %v3238_v10 = vsub.f32 %v18346_v42, %v13074_v19  ;;  %9720 = vmatmul.mubr.msk.bf16.gmra.mrb[108].mxu1 %vm9719_vm13, %v17855_v30  ;;  %v13081_v2 = vsel %vm2921_vm10, 0.0, %v2857_v15  ;;  %v13083_v12 = vsel %vm2925_vm11, 0.0, %v2861_v49  ;;  %v2859_v53 = vadd.f32 %v12584_v21, %v18351_v25  ;;  %v13094_v19 = vpop.f32.mrb[40].mxu0  ;;  %v18354_v16 = vld [vmem:[#allocation103_spill] sm:$0xff] }
 0x261   : > { %18347 = vst [vmem:[#allocation82_spill] sm:$0xff] %v13081_v2  ;;  %18348 = vst [vmem:[#allocation95_spill] sm:$0xff] %v13083_v12  ;;  %v3241_v29 = vsub.f32 %v18349_v27, %v13081_v2  ;;  %v3245_v47 = vsub.f32 %v18350_v32, %v13083_v12  ;;  %v2863_v42 = vadd.f32 %v12586_v35, %v18352_v44  ;;  %v13096_v15 = vmul.f32 0.5, %v3234_v60  ;;  %v6259_v12 = vpop.f32.mrb[41].mxu0  ;;  %v18364_v25 = vld [vmem:[#allocation109_spill] sm:$0xff] }
 0x262   : > { %vm9465_vm14 = vmpackc.low %vm2925_vm11, %vm2921_vm10  ;;  %v13098_v49 = vmul.f32 0.5, %v3238_v10  ;;  %v2856_v27 = vadd.f32 %v12592_v28, %v18354_v16  ;;  %v2860_v32 = vadd.f32 %v12594_v17, %v12573_v33  ;;  %vm2923_vm0 = vcmp.ge.f32.partialorder %v2859_v53, 1.0  ;;  %v13108_v21 = vpop.f32.mrb[42].mxu0  ;;  %v18359_v16 = vld [vmem:[#allocation106_spill] sm:$0xff]  ;;  %v18360_v17 = vld [vmem:[#allocation113_spill] sm:$0xff] }
 0x263   : > { %9466 = vmatprep.mubr.msk.bf16.mxu0 %vm9465_vm14, %v17855_v30  ;;  %v13104_v2 = vmul.f32 0.5, %v3241_v29  ;;  %v13106_v37 = vmul.f32 0.5, %v3245_v47  ;;  %vm2927_vm4 = vcmp.ge.f32.partialorder %v2863_v42, 1.0  ;;  %v13110_v35 = vsel %vm2923_vm0, 0.0, %v2859_v53  ;;  %v6262_v28 = vpop.f32.mrb[43].mxu0  ;;  %v13123_v29 = vpop.f32.mrb[32].mxu1 }
 0x264   : > { %18353 = vst [vmem:[#allocation92_spill] sm:$0xff] %v13098_v49  ;;  %18357 = vst [vmem:[#allocation98_spill] sm:$0xff] %v13110_v35  ;;  %v13112_v44 = vsel %vm2927_vm4, 0.0, %v2863_v42  ;;  %vm2920_vm6 = vcmp.ge.f32.partialorder %v2856_v27, 1.0  ;;  %vm2924_vm7 = vcmp.ge.f32.partialorder %v2860_v32, 1.0  ;;  %v3243_v33 = vsub.f32 %v18359_v16, %v13110_v35  ;;  %v18363_v42 = vld [vmem:[#allocation101_spill] sm:$0xff] }
 0x265   : > { %18355 = vst [vmem:[#allocation96_spill] sm:$0xff] %v13104_v2  ;;  %18356 = vst [vmem:[#allocation93_spill] sm:$0xff] %v13106_v37  ;;  %v3247_v60 = vsub.f32 %v18360_v17, %v13112_v44  ;;  %v13119_v10 = vsel %vm2920_vm6, 0.0, %v2856_v27  ;;  %v13121_v12 = vsel %vm2924_vm7, 0.0, %v2860_v32  ;;  %v18365_v28 = vld [vmem:[#allocation111_spill] sm:$0xff]  ;;  %v18366_v16 = vld [vmem:[#allocation108_spill] sm:$0xff] }
 0x266   : > { %18358 = vst [vmem:[#allocation94_spill] sm:$0xff] %v13112_v44  ;;  %vm9721_vm9 = vmpackc.low %vm2927_vm4, %vm2923_vm0  ;;  %v3240_v47 = vsub.f32 %v18363_v42, %v13119_v10  ;;  %v3244_v53 = vsub.f32 %v18364_v25, %v13121_v12  ;;  %v2858_v17 = vadd.f32 %v12618_v56, %v18365_v28  ;;  %v2862_v27 = vadd.f32 %v12620_v39, %v18366_v16  ;;  %v6804_v44 = vpop.f32.mrb[33].mxu1  ;;  %v18369_v37 = vld [vmem:[#allocation114_spill] sm:$0xff]  ;;  %v18370_v42 = vld [vmem:[#allocation115_spill] sm:$0xff] }
 0x267   : > { %9722 = vmatprep.mubr.msk.bf16.mxu1 %vm9721_vm9, %v17855_v30  ;;  %18361 = vst [vmem:[#allocation99_spill] sm:$0xff] %v13119_v10  ;;  %18362 = vst [vmem:[#allocation97_spill] sm:$0xff] %v13121_v12  ;;  %v13134_v32 = vmul.f32 0.5, %v3243_v33  ;;  %v13136_v35 = vmul.f32 0.5, %v3247_v60  ;;  %v2865_v2 = vadd.f32 %v12626_v54, %v18369_v37  ;;  %v2869_v10 = vadd.f32 %v18370_v42, %v12607_v5  ;;  %v13142_v25 = vpop.f32.mrb[34].mxu1  ;;  %v18375_v54 = vld [vmem:[#allocation104_spill] sm:$0xff] }
 0x268   : > { %vm9467_vm13 = vmpackc.low %vm2924_vm7, %vm2920_vm6  ;;  %v13144_v12 = vmul.f32 0.5, %v3240_v47  ;;  %v13146_v49 = vmul.f32 0.5, %v3244_v53  ;;  %vm2922_vm10 = vcmp.ge.f32.partialorder %v2858_v17, 1.0  ;;  %vm2926_vm11 = vcmp.ge.f32.partialorder %v2862_v27, 1.0  ;;  %v6807_v56 = vpop.f32.mrb[35].mxu1  ;;  %v18376_v5 = vld [vmem:[#allocation110_spill] sm:$0xff] }
 0x269   : > { %9468 = vmatmul.mubr.msk.bf16.gmra.mrb[120].mxu0 %vm9467_vm13, %v17855_v30  ;;  %18367 = vst [vmem:[#allocation102_spill] sm:$0xff] %v13134_v32  ;;  %18368 = vst [vmem:[#allocation100_spill] sm:$0xff] %v13136_v35  ;;  %v13148_v39 = vsel %vm2922_vm10, 0.0, %v2858_v17  ;;  %v13150_v44 = vsel %vm2926_vm11, 0.0, %v2862_v27  ;;  %vm2929_vm0 = vcmp.ge.f32.partialorder %v2865_v2, 1.0  ;;  %vm2933_vm4 = vcmp.ge.f32.partialorder %v2869_v10, 1.0 }
 0x26a   : > { %18371 = vst [vmem:[#allocation107_spill] sm:$0xff] %v13144_v12  ;;  %18372 = vst [vmem:[#allocation103_spill] sm:$0xff] %v13146_v49  ;;  %v3242_v37 = vsub.f32 %v18375_v54, %v13148_v39  ;;  %v3246_v16 = vsub.f32 %v18376_v5, %v13150_v44  ;;  %v13157_v33 = vsel %vm2929_vm0, 0.0, %v2865_v2  ;;  %v13159_v60 = vsel %vm2933_vm4, 0.0, %v2869_v10  ;;  %v18379_v17 = vld [vmem:[#allocation120_spill] sm:$0xff]  ;;  %v18382_v56 = vld [vmem:[#allocation117_spill] sm:$0xff] }
 0x26b   : > { %18373 = vst [vmem:[#allocation111_spill] sm:$0xff] %v13148_v39  ;;  %18374 = vst [vmem:[#allocation108_spill] sm:$0xff] %v13150_v44  ;;  %v3249_v42 = vsub.f32 %v18379_v17, %v13157_v33  ;;  %v18380_v47 = vld [vmem:[#allocation124_spill] sm:$0xff]  ;;  %v18383_v5 = vld [vmem:[#allocation127_spill] sm:$0xff] }
 0x26c   : > { %vm9723_vm14 = vmpackc.low %vm2926_vm11, %vm2922_vm10  ;;  %18377 = vst [vmem:[#allocation114_spill] sm:$0xff] %v13157_v33  ;;  %v3253_v53 = vsub.f32 %v18380_v47, %v13159_v60  ;;  %v18381_v28 = vld [vmem:[#allocation116_spill] sm:$0xff]  ;;  %v2871_v54 = vadd.f32 %v18383_v5, %v18382_v56  ;;  %v13170_v44 = vmul.f32 0.5, %v3242_v37  ;;  %v13172_v2 = vmul.f32 0.5, %v3246_v16  ;;  %v18386_v10 = vld [vmem:[#allocation126_spill] sm:$0xff] }
 0x26d   : > { %9724 = vmatmul.mubr.msk.bf16.gmra.mrb[112].mxu1 %vm9723_vm14, %v17855_v30  ;;  %18378 = vst [vmem:[#allocation115_spill] sm:$0xff] %v13159_v60  ;;  %vm9469_vm9 = vmpackc.low %vm2933_vm4, %vm2929_vm0  ;;  %v2867_v27 = vadd.f32 %v12652_v8, %v18381_v28  ;;  %v18387_v39 = vld [vmem:[#allocation129_spill] sm:$0xff]  ;;  %v18388_v12 = vld [vmem:[#allocation128_spill] sm:$0xff]  ;;  %v13178_v35 = vmul.f32 0.5, %v3249_v42  ;;  %v13182_v8 = vpop.f32.mrb[44].mxu0  ;;  %v13208_v60 = vpop.f32.mrb[36].mxu1 }
 0x26e   : > { %9470 = vmatprep.mubr.msk.bf16.mxu0 %vm9469_vm9, %v17855_v30  ;;  %18384 = vst [vmem:[#allocation116_spill] sm:$0xff] %v13170_v44  ;;  %18385 = vst [vmem:[#allocation117_spill] sm:$0xff] %v13172_v2  ;;  %v2864_v49 = vadd.f32 %v18387_v39, %v18386_v10  ;;  %v18389_v17 = vld [vmem:[#allocation130_spill] sm:$0xff]  ;;  %v13180_v47 = vmul.f32 0.5, %v3253_v53  ;;  %vm2935_vm7 = vcmp.ge.f32.partialorder %v2871_v54, 1.0  ;;  %v6267_v5 = vpop.f32.mrb[45].mxu0 }
 0x26f   : > { %v2868_v33 = vadd.f32 %v18389_v17, %v18388_v12  ;;  %18390 = vst [vmem:[#allocation127_spill] sm:$0xff] %v13178_v35  ;;  %vm2931_vm6 = vcmp.ge.f32.partialorder %v2867_v27, 1.0  ;;  %18392 = vst [vmem:[#allocation129_spill] sm:$0xff] %v13182_v8  ;;  %v13186_v37 = vsel %vm2935_vm7, 0.0, %v2871_v54  ;;  %v18395_v39 = vld [vmem:[#allocation121_spill] sm:$0xff]  ;;  %v18400_v54 = vld [vmem:[#allocation118_spill] sm:$0xff] }
 0x270   : > { %18391 = vst [vmem:[#allocation126_spill] sm:$0xff] %v13180_v47  ;;  %v13184_v28 = vsel %vm2931_vm6, 0.0, %v2867_v27  ;;  %18394 = vst [vmem:[#allocation130_spill] sm:$0xff] %v13186_v37  ;;  %vm2928_vm10 = vcmp.ge.f32.partialorder %v2864_v49, 1.0  ;;  %v18396_v12 = vld [vmem:[#allocation125_spill] sm:$0xff]  ;;  %v13197_v27 = vpop.f32.mrb[46].mxu0 }
 0x271   : > { %18393 = vst [vmem:[#allocation128_spill] sm:$0xff] %v13184_v28  ;;  %vm9725_vm13 = vmpackc.low %vm2935_vm7, %vm2931_vm6  ;;  %vm2932_vm11 = vcmp.ge.f32.partialorder %v2868_v33, 1.0  ;;  %v3251_v16 = vsub.f32 %v18395_v39, %v13184_v28  ;;  %v3255_v17 = vsub.f32 %v18396_v12, %v13186_v37  ;;  %v13193_v42 = vsel %vm2928_vm10, 0.0, %v2864_v49  ;;  %v18401_v10 = vld [vmem:[#allocation122_spill] sm:$0xff]  ;;  %v18402_v39 = vld [vmem:[#allocation132_spill] sm:$0xff]  ;;  %v6812_v8 = vpop.f32.mrb[37].mxu1 }
 0x272   : > { %9726 = vmatprep.mubr.msk.bf16.mxu1 %vm9725_vm13, %v17855_v30  ;;  %18397 = vst [vmem:[#allocation161_spill] sm:$0xff] %v13193_v42  ;;  %v13195_v53 = vsel %vm2932_vm11, 0.0, %v2868_v33  ;;  %vm9471_vm14 = vmpackc.low %vm2932_vm11, %vm2928_vm10  ;;  %v3248_v56 = vsub.f32 %v18400_v54, %v13193_v42  ;;  %v18403_v28 = vld [vmem:[#allocation137_spill] sm:$0xff]  ;;  %v18404_v37 = vld [vmem:[#allocation131_spill] sm:$0xff]  ;;  %v6270_v33 = vpop.f32.mrb[47].mxu0 }
 0x273   : > { %18398 = vst [vmem:[#allocation162_spill] sm:$0xff] %v13195_v53  ;;  %18399 = vst [vmem:[#allocation163_spill] sm:$0xff] %v13197_v27  ;;  %v3252_v5 = vsub.f32 %v18401_v10, %v13195_v53  ;;  %9472 = vmatmul.mubr.msk.bf16.gmra.mrb[124].mxu0 %vm9471_vm14, %v17855_v30  ;;  %v2866_v12 = vadd.f32 %v18403_v28, %v18402_v39  ;;  %v18405_v47 = vld [vmem:[#allocation134_spill] sm:$0xff]  ;;  %v13210_v35 = vmul.f32 0.5, %v3251_v16  ;;  %v13212_v2 = vmul.f32 0.5, %v3255_v17  ;;  %v18409_v44 = vld [vmem:[#allocation135_spill] sm:$0xff] }
 0x274   : > { %v2870_v49 = vadd.f32 %v18405_v47, %v18404_v37  ;;  %18406 = vst [vmem:[#allocation132_spill] sm:$0xff] %v13208_v60  ;;  %v18410_v54 = vld [vmem:[#allocation138_spill] sm:$0xff]  ;;  %v18411_v27 = vld [vmem:[#allocation133_spill] sm:$0xff]  ;;  %v18412_v10 = vld [vmem:[#allocation136_spill] sm:$0xff]  ;;  %v13218_v32 = vmul.f32 0.5, %v3248_v56  ;;  %v13222_v47 = vpop.f32.mrb[38].mxu1 }
 0x275   : > { %18407 = vst [vmem:[#allocation137_spill] sm:$0xff] %v13210_v35  ;;  %18408 = vst [vmem:[#allocation131_spill] sm:$0xff] %v13212_v2  ;;  %v3321_v42 = vadd.f32 %v18410_v54, %v18409_v44  ;;  %v3325_v53 = vadd.f32 %v18412_v10, %v18411_v27  ;;  %v13220_v28 = vmul.f32 0.5, %v3252_v5  ;;  %vm2930_vm0 = vcmp.ge.f32.partialorder %v2866_v12, 1.0  ;;  %v6815_v44 = vpop.f32.mrb[39].mxu1  ;;  %v18418_v16 = vld [vmem:[#allocation119_spill] sm:$0xff] }
 0x276   : > { %18413 = vst [vmem:[#allocation134_spill] sm:$0xff] %v13218_v32  ;;  %vm2934_vm4 = vcmp.ge.f32.partialorder %v2870_v49, 1.0  ;;  %18415 = vst [vmem:[#allocation138_spill] sm:$0xff] %v13222_v47  ;;  %v13224_v37 = vsel %vm2930_vm0, 0.0, %v2866_v12  ;;  %v18419_v8 = vld [vmem:[#allocation123_spill] sm:$0xff]  ;;  %v18422_v12 = vld [vmem:[#allocation4_spill] sm:$0xff] }
 0x277   : > { %18414 = vst [vmem:[#allocation135_spill] sm:$0xff] %v13220_v28  ;;  %18416 = vst [vmem:[#allocation133_spill] sm:$0xff] %v13224_v37  ;;  %v13226_v39 = vsel %vm2934_vm4, 0.0, %v2870_v49  ;;  %vm3385_vm6 = vcmp.ge.f32.partialorder %v3321_v42, 1.0  ;;  %vm3389_vm7 = vcmp.ge.f32.partialorder %v3325_v53, 1.0  ;;  %v3250_v17 = vsub.f32 %v18418_v16, %v13224_v37  ;;  %v18423_v5 = vld [vmem:[#allocation8_spill] sm:$0xff] }
 0x278   : > { %18417 = vst [vmem:[#allocation136_spill] sm:$0xff] %v13226_v39  ;;  %vm9727_vm9 = vmpackc.low %vm2934_vm4, %vm2930_vm0  ;;  %v3254_v27 = vsub.f32 %v18419_v8, %v13226_v39  ;;  %v13233_v54 = vsel %vm3385_vm6, 0.0, %v3321_v42  ;;  %v13235_v56 = vsel %vm3389_vm7, 0.0, %v3325_v53  ;;  %v18424_v33 = vld [vmem:[#allocation139_spill] sm:$0xff]  ;;  %v18425_v44 = vld [vmem:[#allocation34_spill] sm:$0xff] }
 0x279   : > { %9728 = vmatmul.mubr.msk.bf16.gmra.mrb[116].mxu1 %vm9727_vm9, %v17855_v30  ;;  %18420 = vst [vmem:[#allocation164_spill] sm:$0xff] %v13233_v54  ;;  %18421 = vst [vmem:[#allocation165_spill] sm:$0xff] %v13235_v56  ;;  %v3705_v10 = vsub.f32 %v18422_v12, %v13233_v54  ;;  %v3709_v49 = vsub.f32 %v18423_v5, %v13235_v56  ;;  %v3323_v16 = vadd.f32 %v18425_v44, %v18424_v33  ;;  %v18426_v37 = vld [vmem:[#allocation140_spill] sm:$0xff]  ;;  %v18427_v8 = vld [vmem:[#allocation146_spill] sm:$0xff] }
 0x27a   : > { %vm9473_vm13 = vmpackc.low %vm3389_vm7, %vm3385_vm6  ;;  %v3327_v39 = vadd.f32 %v18427_v8, %v18426_v37  ;;  %v13246_v28 = vmul.f32 0.5, %v3250_v17  ;;  %v13248_v42 = vmul.f32 0.5, %v3254_v27  ;;  %v18430_v53 = vld [vmem:[#allocation142_spill] sm:$0xff]  ;;  %v18431_v32 = vld [vmem:[#allocation143_spill] sm:$0xff] }
 0x27b   : > { %9474 = vmatprep.mubr.msk.bf16.mxu0 %vm9473_vm13, %v17855_v30  ;;  %v3320_v2 = vadd.f32 %v18431_v32, %v18430_v53  ;;  %v18432_v35 = vld [vmem:[#allocation141_spill] sm:$0xff]  ;;  %v18433_v12 = vld [vmem:[#allocation148_spill] sm:$0xff]  ;;  %v13254_v47 = vmul.f32 0.5, %v3705_v10  ;;  %v13256_v5 = vmul.f32 0.5, %v3709_v49  ;;  %vm3387_vm10 = vcmp.ge.f32.partialorder %v3323_v16, 1.0  ;;  %v18444_v49 = vld [vmem:[#allocation147_spill] sm:$0xff] }
 0x27c   : > { %18428 = vst [vmem:[#allocation139_spill] sm:$0xff] %v13246_v28  ;;  %18429 = vst [vmem:[#allocation34_spill] sm:$0xff] %v13248_v42  ;;  %v3324_v54 = vadd.f32 %v18433_v12, %v18432_v35  ;;  %vm3391_vm11 = vcmp.ge.f32.partialorder %v3327_v39, 1.0  ;;  %v13258_v33 = vsel %vm3387_vm10, 0.0, %v3323_v16  ;;  %v18438_v37 = vld [vmem:[#allocation5_spill] sm:$0xff]  ;;  %v18442_v16 = vld [vmem:[#allocation3_spill] sm:$0xff] }
 0x27d   : > { %18434 = vst [vmem:[#allocation140_spill] sm:$0xff] %v13254_v47  ;;  %18435 = vst [vmem:[#allocation146_spill] sm:$0xff] %v13256_v5  ;;  %v13260_v44 = vsel %vm3391_vm11, 0.0, %v3327_v39  ;;  %vm3384_vm0 = vcmp.ge.f32.partialorder %v3320_v2, 1.0  ;;  %v3707_v17 = vsub.f32 %v18438_v37, %v13258_v33  ;;  %v18439_v32 = vld [vmem:[#allocation9_spill] sm:$0xff]  ;;  %v18443_v12 = vld [vmem:[#allocation7_spill] sm:$0xff] }
 0x27e   : > { %18436 = vst [vmem:[#allocation142_spill] sm:$0xff] %v13258_v33  ;;  %18437 = vst [vmem:[#allocation143_spill] sm:$0xff] %v13260_v44  ;;  %vm3388_vm4 = vcmp.ge.f32.partialorder %v3324_v54, 1.0  ;;  %v3711_v8 = vsub.f32 %v18439_v32, %v13260_v44  ;;  %v13267_v35 = vsel %vm3384_vm0, 0.0, %v3320_v2  ;;  %v18445_v53 = vld [vmem:[#allocation144_spill] sm:$0xff]  ;;  %v18447_v32 = vld [vmem:[#allocation150_spill] sm:$0xff] }
 0x27f   : > { %vm9729_vm14 = vmpackc.low %vm3391_vm11, %vm3387_vm10  ;;  %18440 = vst [vmem:[#allocation141_spill] sm:$0xff] %v13267_v35  ;;  %v13269_v27 = vsel %vm3388_vm4, 0.0, %v3324_v54  ;;  %v3704_v39 = vsub.f32 %v18442_v16, %v13267_v35  ;;  %v3322_v37 = vadd.f32 %v18445_v53, %v18444_v49  ;;  %v18446_v33 = vld [vmem:[#allocation152_spill] sm:$0xff]  ;;  %v13280_v5 = vpop.f32.mrb[48].mxu0  ;;  %v13282_v2 = vmul.f32 0.5, %v3707_v17  ;;  %v18450_v56 = vld [vmem:[#allocation149_spill] sm:$0xff] }
 0x280   : > { %9730 = vmatprep.mubr.msk.bf16.mxu1 %vm9729_vm14, %v17855_v30  ;;  %18441 = vst [vmem:[#allocation148_spill] sm:$0xff] %v13269_v27  ;;  %vm9475_vm9 = vmpackc.low %vm3388_vm4, %vm3384_vm0  ;;  %v3708_v10 = vsub.f32 %v18443_v12, %v13269_v27  ;;  %v3326_v44 = vadd.f32 %v18447_v32, %v18446_v33  ;;  %v13284_v54 = vmul.f32 0.5, %v3711_v8  ;;  %v18451_v47 = vld [vmem:[#allocation145_spill] sm:$0xff]  ;;  %v18452_v35 = vld [vmem:[#allocation23_spill] sm:$0xff]  ;;  %v6275_v27 = vpop.f32.mrb[49].mxu0 }
 0x281   : > { %9476 = vmatmul.mubr.msk.bf16.gmra.mrb[128].mxu0 %vm9475_vm9, %v17855_v30  ;;  %18448 = vst [vmem:[#allocation147_spill] sm:$0xff] %v13282_v2  ;;  %v3329_v16 = vadd.f32 %v18451_v47, %v18450_v56  ;;  %v18453_v42 = vld [vmem:[#allocation153_spill] sm:$0xff]  ;;  %v13290_v28 = vmul.f32 0.5, %v3704_v39  ;;  %vm3386_vm6 = vcmp.ge.f32.partialorder %v3322_v37, 1.0  ;;  %v13294_v33 = vpop.f32.mrb[50].mxu0  ;;  %v13300_v47 = vpop.f32.mrb[40].mxu1 }
 0x282   : > { %18449 = vst [vmem:[#allocation144_spill] sm:$0xff] %v13284_v54  ;;  %v3333_v12 = vadd.f32 %v18453_v42, %v18452_v35  ;;  %v13292_v60 = vmul.f32 0.5, %v3708_v10  ;;  %vm3390_vm7 = vcmp.ge.f32.partialorder %v3326_v44, 1.0  ;;  %v13296_v32 = vsel %vm3386_vm6, 0.0, %v3322_v37  ;;  %18458 = vst [vmem:[#allocation23_spill] sm:$0xff] %v13300_v47  ;;  %v6278_v56 = vpop.f32.mrb[51].mxu0 }
 0x283   : > { %18454 = vst [vmem:[#allocation152_spill] sm:$0xff] %v13290_v28  ;;  %18456 = vst [vmem:[#allocation149_spill] sm:$0xff] %v13296_v32  ;;  %v13298_v17 = vsel %vm3390_vm7, 0.0, %v3326_v44  ;;  %vm3393_vm10 = vcmp.ge.f32.partialorder %v3329_v16, 1.0  ;;  %v18459_v42 = vld [vmem:[#allocation6_spill] sm:$0xff]  ;;  %v18460_v35 = vld [vmem:[#allocation11_spill] sm:$0xff] }
 0x284   : > { %18455 = vst [vmem:[#allocation150_spill] sm:$0xff] %v13292_v60  ;;  %18457 = vst [vmem:[#allocation145_spill] sm:$0xff] %v13298_v17  ;;  %vm3397_vm11 = vcmp.ge.f32.partialorder %v3333_v12, 1.0  ;;  %v3706_v8 = vsub.f32 %v18459_v42, %v13296_v32  ;;  %v3710_v27 = vsub.f32 %v18460_v35, %v13298_v17  ;;  %v13307_v39 = vsel %vm3393_vm10, 0.0, %v3329_v16  ;;  %v6820_v44 = vpop.f32.mrb[41].mxu1  ;;  %v18463_v10 = vld [vmem:[#allocation16_spill] sm:$0xff] }
 0x285   : > { %vm9731_vm13 = vmpackc.low %vm3390_vm7, %vm3386_vm6  ;;  %18461 = vst [vmem:[#allocation153_spill] sm:$0xff] %v13307_v39  ;;  %v13309_v37 = vsel %vm3397_vm11, 0.0, %v3333_v12  ;;  %v3713_v49 = vsub.f32 %v18463_v10, %v13307_v39  ;;  %v18464_v53 = vld [vmem:[#allocation21_spill] sm:$0xff]  ;;  %v18465_v42 = vld [vmem:[#allocation47_spill] sm:$0xff]  ;;  %v13320_v16 = vpop.f32.mrb[42].mxu1 }
 0x286   : > { %9732 = vmatmul.mubr.msk.bf16.gmra.mrb[120].mxu1 %vm9731_vm13, %v17855_v30  ;;  %18462 = vst [vmem:[#allocation166_spill] sm:$0xff] %v13309_v37  ;;  %vm9477_vm14 = vmpackc.low %vm3397_vm11, %vm3393_vm10  ;;  %v3717_v56 = vsub.f32 %v18464_v53, %v13309_v37  ;;  %v3331_v32 = vadd.f32 %v12788_v40, %v18465_v42  ;;  %v18466_v35 = vld [vmem:[#allocation156_spill] sm:$0xff]  ;;  %v13322_v12 = vmul.f32 0.5, %v3706_v8  ;;  %v13324_v60 = vmul.f32 0.5, %v3710_v27  ;;  %v18467_v44 = vld [vmem:[#allocation50_spill] sm:$0xff]  ;;  %v6823_v37 = vpop.f32.mrb[43].mxu1 }
 0x287   : > { %9478 = vmatprep.mubr.msk.bf16.mxu0 %vm9477_vm14, %v17855_v30  ;;  %v3335_v17 = vadd.f32 %v12790_v23, %v18466_v35  ;;  %v18468_v28 = vld [vmem:[#allocation33_spill] sm:$0xff]  ;;  %v18469_v39 = vld [vmem:[#allocation40_spill] sm:$0xff]  ;;  %v18470_v54 = vld [vmem:[#allocation155_spill] sm:$0xff]  ;;  %v13330_v2 = vmul.f32 0.5, %v3713_v49 }
 0x288   : > { %v3328_v10 = vadd.f32 %v18468_v28, %v18467_v44  ;;  %v3332_v53 = vadd.f32 %v18470_v54, %v18469_v39  ;;  %v13332_v47 = vmul.f32 0.5, %v3717_v56  ;;  %vm3395_vm0 = vcmp.ge.f32.partialorder %v3331_v32, 1.0  ;;  %v18475_v42 = vld [vmem:[#allocation18_spill] sm:$0xff]  ;;  %v18480_v39 = vld [vmem:[#allocation19_spill] sm:$0xff] }
 0x289   : > { %18471 = vst [vmem:[#allocation47_spill] sm:$0xff] %v13330_v2  ;;  %vm3399_vm4 = vcmp.ge.f32.partialorder %v3335_v17, 1.0  ;;  %v13334_v40 = vsel %vm3395_vm0, 0.0, %v3331_v32  ;;  %v18476_v8 = vld [vmem:[#allocation22_spill] sm:$0xff]  ;;  %v18482_v44 = vld [vmem:[#allocation39_spill] sm:$0xff] }
 0x28a   : > { %18472 = vst [vmem:[#allocation156_spill] sm:$0xff] %v13332_v47  ;;  %18473 = vst [vmem:[#allocation50_spill] sm:$0xff] %v13334_v40  ;;  %v13336_v23 = vsel %vm3399_vm4, 0.0, %v3335_v17  ;;  %vm3392_vm6 = vcmp.ge.f32.partialorder %v3328_v10, 1.0  ;;  %vm3396_vm7 = vcmp.ge.f32.partialorder %v3332_v53, 1.0  ;;  %v3715_v28 = vsub.f32 %v18475_v42, %v13334_v40  ;;  %v18479_v32 = vld [vmem:[#allocation14_spill] sm:$0xff] }
 0x28b   : > { %18474 = vst [vmem:[#allocation33_spill] sm:$0xff] %v13336_v23  ;;  %vm9733_vm9 = vmpackc.low %vm3399_vm4, %vm3395_vm0  ;;  %v3719_v54 = vsub.f32 %v18476_v8, %v13336_v23  ;;  %v13343_v35 = vsel %vm3392_vm6, 0.0, %v3328_v10  ;;  %v13345_v27 = vsel %vm3396_vm7, 0.0, %v3332_v53  ;;  %v18481_v49 = vld [vmem:[#allocation154_spill] sm:$0xff]  ;;  %v3334_v8 = vadd.f32 %v12824_v22, %v18482_v44  ;;  %v18504_v40 = vld [vmem:[#allocation43_spill] sm:$0xff] }
 0x28c   : > { %9734 = vmatprep.mubr.msk.bf16.mxu1 %vm9733_vm9, %v17855_v30  ;;  %18477 = vst [vmem:[#allocation40_spill] sm:$0xff] %v13343_v35  ;;  %18478 = vst [vmem:[#allocation155_spill] sm:$0xff] %v13345_v27  ;;  %v3712_v17 = vsub.f32 %v18479_v32, %v13343_v35  ;;  %v3716_v37 = vsub.f32 %v18480_v39, %v13345_v27  ;;  %v3330_v56 = vadd.f32 %v12822_v11, %v18481_v49  ;;  %v18485_v53 = vld [vmem:[#allocation54_spill] sm:$0xff]  ;;  %v13368_v11 = vpop.f32.mrb[52].mxu0  ;;  %v13394_v27 = vpop.f32.mrb[44].mxu1 }
 0x28d   : > { %vm9479_vm13 = vmpackc.low %vm3396_vm7, %vm3392_vm6  ;;  %v13356_v42 = vmul.f32 0.5, %v3715_v28  ;;  %v13358_v10 = vmul.f32 0.5, %v3719_v54  ;;  %v3337_v23 = vadd.f32 %v12830_v36, %v18485_v53  ;;  %v3341_v32 = vadd.f32 %v12832_v58, %v12811_v62  ;;  %v6283_v28 = vpop.f32.mrb[53].mxu0  ;;  %v18490_v36 = vld [vmem:[#allocation17_spill] sm:$0xff]  ;;  %v18491_v62 = vld [vmem:[#allocation20_spill] sm:$0xff]  ;;  %v6828_v47 = vpop.f32.mrb[45].mxu1 }
 0x28e   : > { %9480 = vmatmul.mubr.msk.bf16.gmra.mrb[132].mxu0 %vm9479_vm13, %v17855_v30  ;;  %v13364_v35 = vmul.f32 0.5, %v3712_v17  ;;  %v13366_v39 = vmul.f32 0.5, %v3716_v37  ;;  %vm3394_vm10 = vcmp.ge.f32.partialorder %v3330_v56, 1.0  ;;  %vm3398_vm11 = vcmp.ge.f32.partialorder %v3334_v8, 1.0  ;;  %v18495_v53 = vld [vmem:[#allocation35_spill] sm:$0xff]  ;;  %v18511_v47 = vld [vmem:[#allocation36_spill] sm:$0xff] }
 0x28f   : > { %18483 = vst [vmem:[#allocation154_spill] sm:$0xff] %v13356_v42  ;;  %18484 = vst [vmem:[#allocation39_spill] sm:$0xff] %v13358_v10  ;;  %v13370_v49 = vsel %vm3394_vm10, 0.0, %v3330_v56  ;;  %v13372_v22 = vsel %vm3398_vm11, 0.0, %v3334_v8  ;;  %vm3401_vm0 = vcmp.ge.f32.partialorder %v3337_v23, 1.0  ;;  %vm3405_vm4 = vcmp.ge.f32.partialorder %v3341_v32, 1.0 }
 0x290   : > { %18486 = vst [vmem:[#allocation54_spill] sm:$0xff] %v13364_v35  ;;  %18487 = vst [vmem:[#allocation167_spill] sm:$0xff] %v13366_v39  ;;  %v3714_v54 = vsub.f32 %v18490_v36, %v13370_v49  ;;  %v3718_v58 = vsub.f32 %v18491_v62, %v13372_v22  ;;  %v13379_v17 = vsel %vm3401_vm0, 0.0, %v3337_v23  ;;  %v13381_v37 = vsel %vm3405_vm4, 0.0, %v3341_v32  ;;  %v13383_v56 = vpop.f32.mrb[54].mxu0  ;;  %v18494_v8 = vld [vmem:[#allocation28_spill] sm:$0xff] }
 0x291   : > { %18488 = vst [vmem:[#allocation168_spill] sm:$0xff] %v13370_v49  ;;  %18489 = vst [vmem:[#allocation169_spill] sm:$0xff] %v13372_v22  ;;  %v3721_v44 = vsub.f32 %v18494_v8, %v13379_v17  ;;  %v3725_v28 = vsub.f32 %v18495_v53, %v13381_v37  ;;  %v18496_v36 = vld [vmem:[#allocation53_spill] sm:$0xff]  ;;  %v18497_v49 = vld [vmem:[#allocation158_spill] sm:$0xff]  ;;  %v6286_v32 = vpop.f32.mrb[55].mxu0 }
 0x292   : > { %vm9735_vm14 = vmpackc.low %vm3398_vm11, %vm3394_vm10  ;;  %18492 = vst [vmem:[#allocation170_spill] sm:$0xff] %v13379_v17  ;;  %v3339_v62 = vadd.f32 %v18497_v49, %v18496_v36  ;;  %v18498_v22 = vld [vmem:[#allocation44_spill] sm:$0xff]  ;;  %v18499_v39 = vld [vmem:[#allocation157_spill] sm:$0xff]  ;;  %v13396_v35 = vmul.f32 0.5, %v3714_v54  ;;  %v13398_v10 = vmul.f32 0.5, %v3718_v58 }
 0x293   : > { %9736 = vmatmul.mubr.msk.bf16.gmra.mrb[124].mxu1 %vm9735_vm14, %v17855_v30  ;;  %18493 = vst [vmem:[#allocation171_spill] sm:$0xff] %v13381_v37  ;;  %vm9481_vm9 = vmpackc.low %vm3405_vm4, %vm3401_vm0  ;;  %v3343_v23 = vadd.f32 %v18499_v39, %v18498_v22  ;;  %v18502_v42 = vld [vmem:[#allocation56_spill] sm:$0xff]  ;;  %v18503_v8 = vld [vmem:[#allocation55_spill] sm:$0xff]  ;;  %v13404_v2 = vmul.f32 0.5, %v3721_v44  ;;  %v13406_v49 = vmul.f32 0.5, %v3725_v28  ;;  %v13408_v39 = vpop.f32.mrb[46].mxu1 }
 0x294   : > { %9482 = vmatprep.mubr.msk.bf16.mxu0 %vm9481_vm9, %v17855_v30  ;;  %18500 = vst [vmem:[#allocation53_spill] sm:$0xff] %v13396_v35  ;;  %18501 = vst [vmem:[#allocation158_spill] sm:$0xff] %v13398_v10  ;;  %v3336_v17 = vadd.f32 %v18503_v8, %v18502_v42  ;;  %v18505_v53 = vld [vmem:[#allocation159_spill] sm:$0xff]  ;;  %vm3403_vm6 = vcmp.ge.f32.partialorder %v3339_v62, 1.0  ;;  %v6831_v42 = vpop.f32.mrb[47].mxu1  ;;  %v18510_v54 = vld [vmem:[#allocation29_spill] sm:$0xff] }
 0x295   : > { %v3340_v37 = vadd.f32 %v18505_v53, %v18504_v40  ;;  %18506 = vst [vmem:[#allocation44_spill] sm:$0xff] %v13404_v2  ;;  %18507 = vst [vmem:[#allocation157_spill] sm:$0xff] %v13406_v49  ;;  %vm3407_vm7 = vcmp.ge.f32.partialorder %v3343_v23, 1.0  ;;  %v13410_v22 = vsel %vm3403_vm6, 0.0, %v3339_v62  ;;  %v18514_v62 = vld [vmem:[#allocation25_spill] sm:$0xff]  ;;  %v18515_v28 = vld [vmem:[#allocation30_spill] sm:$0xff] }
 0x296   : > { %18508 = vst [vmem:[#allocation56_spill] sm:$0xff] %v13410_v22  ;;  %v13412_v36 = vsel %vm3407_vm7, 0.0, %v3343_v23  ;;  %vm9737_vm13 = vmpackc.low %vm3407_vm7, %vm3403_vm6  ;;  %vm3400_vm10 = vcmp.ge.f32.partialorder %v3336_v17, 1.0  ;;  %v3723_v40 = vsub.f32 %v18510_v54, %v13410_v22  ;;  %v18516_v32 = vld [vmem:[#allocation58_spill] sm:$0xff]  ;;  %v18517_v54 = vld [vmem:[#allocation57_spill] sm:$0xff] }
 0x297   : > { %18509 = vst [vmem:[#allocation55_spill] sm:$0xff] %v13412_v36  ;;  %vm3404_vm11 = vcmp.ge.f32.partialorder %v3340_v37, 1.0  ;;  %v3727_v58 = vsub.f32 %v18511_v47, %v13412_v36  ;;  %9738 = vmatprep.mubr.msk.bf16.mxu1 %vm9737_vm13, %v17855_v30  ;;  %v13419_v8 = vsel %vm3400_vm10, 0.0, %v3336_v17  ;;  %v3338_v42 = vadd.f32 %v12890_v63, %v18516_v32  ;;  %v18518_v47 = vld [vmem:[#allocation160_spill] sm:$0xff]  ;;  %v18520_v49 = vld [vmem:[#allocation70_spill] sm:$0xff]  ;;  %v18521_v10 = vld [vmem:[#allocation37_spill] sm:$0xff] }
 0x298   : > { %18512 = vst [vmem:[#allocation43_spill] sm:$0xff] %v13419_v8  ;;  %v13421_v44 = vsel %vm3404_vm11, 0.0, %v3340_v37  ;;  %vm9483_vm14 = vmpackc.low %vm3404_vm11, %vm3400_vm10  ;;  %v3720_v53 = vsub.f32 %v18514_v62, %v13419_v8  ;;  %v3342_v36 = vadd.f32 %v18518_v47, %v18517_v54  ;;  %v13432_v22 = vmul.f32 0.5, %v3723_v40  ;;  %v18519_v37 = vld [vmem:[#allocation38_spill] sm:$0xff]  ;;  %v18522_v62 = vld [vmem:[#allocation61_spill] sm:$0xff] }
 0x299   : > { %18513 = vst [vmem:[#allocation159_spill] sm:$0xff] %v13421_v44  ;;  %v3724_v23 = vsub.f32 %v18515_v28, %v13421_v44  ;;  %9484 = vmatmul.mubr.msk.bf16.gmra.mrb[136].mxu0 %vm9483_vm14, %v17855_v30  ;;  %v13434_v17 = vmul.f32 0.5, %v3727_v58  ;;  %v3345_v2 = vadd.f32 %v18520_v49, %v18519_v37  ;;  %v3349_v8 = vadd.f32 %v18522_v62, %v18521_v10  ;;  %v18526_v54 = vld [vmem:[#allocation26_spill] sm:$0xff]  ;;  %v18527_v49 = vld [vmem:[#allocation31_spill] sm:$0xff]  ;;  %v13457_v62 = vpop.f32.mrb[56].mxu0  ;;  %v18532_v37 = vld [vmem:[#allocation68_spill] sm:$0xff] }
 0x29a   : > { %v13440_v35 = vmul.f32 0.5, %v3720_v53  ;;  %vm3402_vm0 = vcmp.ge.f32.partialorder %v3338_v42, 1.0  ;;  %vm3406_vm4 = vcmp.ge.f32.partialorder %v3342_v36, 1.0 }
 0x29b   : > { %v13442_v28 = vmul.f32 0.5, %v3724_v23  ;;  %v13444_v63 = vsel %vm3402_vm0, 0.0, %v3338_v42  ;;  %v13446_v32 = vsel %vm3406_vm4, 0.0, %v3342_v36  ;;  %vm9739_vm9 = vmpackc.low %vm3406_vm4, %vm3402_vm0  ;;  %vm3409_vm6 = vcmp.ge.f32.partialorder %v3345_v2, 1.0  ;;  %v18530_v36 = vld [vmem:[#allocation45_spill] sm:$0xff]  ;;  %v18531_v23 = vld [vmem:[#allocation51_spill] sm:$0xff] }
 0x29c   : > { %18524 = vst [vmem:[#allocation57_spill] sm:$0xff] %v13444_v63  ;;  %18525 = vst [vmem:[#allocation160_spill] sm:$0xff] %v13446_v32  ;;  %vm3413_vm7 = vcmp.ge.f32.partialorder %v3349_v8, 1.0  ;;  %v3722_v40 = vsub.f32 %v18526_v54, %v13444_v63  ;;  %v3726_v47 = vsub.f32 %v18527_v49, %v13446_v32  ;;  %9740 = vmatmul.mubr.msk.bf16.gmra.mrb[128].mxu1 %vm9739_vm9, %v17855_v30  ;;  %v13453_v10 = vsel %vm3409_vm6, 0.0, %v3345_v2  ;;  %v18533_v54 = vld [vmem:[#allocation67_spill] sm:$0xff]  ;;  %v6291_v32 = vpop.f32.mrb[57].mxu0 }
 0x29d   : > { %18523 = vst [vmem:[#allocation58_spill] sm:$0xff] %v13442_v28  ;;  %18528 = vst [vmem:[#allocation38_spill] sm:$0xff] %v13453_v10  ;;  %v13455_v58 = vsel %vm3413_vm7, 0.0, %v3349_v8  ;;  %v3729_v53 = vsub.f32 %v18530_v36, %v13453_v10  ;;  %v3347_v49 = vadd.f32 %v12924_v13, %v18532_v37  ;;  %v3351_v2 = vadd.f32 %v12926_v34, %v18533_v54  ;;  %v18534_v28 = vld [vmem:[#allocation73_spill] sm:$0xff]  ;;  %v13482_v13 = vpop.f32.mrb[48].mxu1 }
 0x29e   : > { %18529 = vst [vmem:[#allocation70_spill] sm:$0xff] %v13455_v58  ;;  %vm9485_vm13 = vmpackc.low %vm3413_vm7, %vm3409_vm6  ;;  %v3733_v42 = vsub.f32 %v18531_v23, %v13455_v58  ;;  %v13468_v8 = vmul.f32 0.5, %v3722_v40  ;;  %v13470_v63 = vmul.f32 0.5, %v3726_v47  ;;  %v3344_v44 = vadd.f32 %v12932_v9, %v18534_v28  ;;  %v13476_v23 = vpop.f32.mrb[58].mxu0  ;;  %v6836_v9 = vpop.f32.mrb[49].mxu1  ;;  %v18540_v28 = vld [vmem:[#allocation52_spill] sm:$0xff] }
 0x29f   : > { %9486 = vmatprep.mubr.msk.bf16.mxu0 %vm9485_vm13, %v17855_v30  ;;  %v3348_v36 = vadd.f32 %v12934_v45, %v12913_v7  ;;  %v13478_v58 = vmul.f32 0.5, %v3729_v53  ;;  %vm3411_vm10 = vcmp.ge.f32.partialorder %v3347_v49, 1.0  ;;  %vm3415_vm11 = vcmp.ge.f32.partialorder %v3351_v2, 1.0  ;;  %v6294_v34 = vpop.f32.mrb[59].mxu0  ;;  %v18539_v7 = vld [vmem:[#allocation46_spill] sm:$0xff]  ;;  %v18544_v9 = vld [vmem:[#allocation64_spill] sm:$0xff] }
 0x2a0   : > { %v13480_v10 = vmul.f32 0.5, %v3733_v42  ;;  %v13484_v32 = vsel %vm3411_vm10, 0.0, %v3347_v49  ;;  %v13486_v54 = vsel %vm3415_vm11, 0.0, %v3351_v2  ;;  %vm9741_vm14 = vmpackc.low %vm3415_vm11, %vm3411_vm10  ;;  %vm3408_vm0 = vcmp.ge.f32.partialorder %v3344_v44, 1.0  ;;  %v13497_v49 = vpop.f32.mrb[50].mxu1  ;;  %v18542_v42 = vld [vmem:[#allocation41_spill] sm:$0xff] }
 0x2a1   : > { %18535 = vst [vmem:[#allocation37_spill] sm:$0xff] %v13478_v58  ;;  %18537 = vst [vmem:[#allocation68_spill] sm:$0xff] %v13484_v32  ;;  %vm3412_vm4 = vcmp.ge.f32.partialorder %v3348_v36, 1.0  ;;  %v3731_v45 = vsub.f32 %v18539_v7, %v13484_v32  ;;  %v3735_v40 = vsub.f32 %v18540_v28, %v13486_v54  ;;  %9742 = vmatprep.mubr.msk.bf16.mxu1 %vm9741_vm14, %v17855_v30  ;;  %v13493_v47 = vsel %vm3408_vm0, 0.0, %v3344_v44  ;;  %v18543_v2 = vld [vmem:[#allocation48_spill] sm:$0xff]  ;;  %v18545_v7 = vld [vmem:[#allocation71_spill] sm:$0xff] }
 0x2a2   : > { %18536 = vst [vmem:[#allocation61_spill] sm:$0xff] %v13480_v10  ;;  %18538 = vst [vmem:[#allocation67_spill] sm:$0xff] %v13486_v54  ;;  %v13495_v53 = vsel %vm3412_vm4, 0.0, %v3348_v36  ;;  %v3728_v37 = vsub.f32 %v18542_v42, %v13493_v47  ;;  %v3346_v28 = vadd.f32 %v12958_v48, %v18544_v9  ;;  %v3350_v44 = vadd.f32 %v12960_v1, %v18545_v7  ;;  %v6839_v54 = vpop.f32.mrb[51].mxu1  ;;  %v18546_v10 = vld [vmem:[#allocation76_spill] sm:$0xff] }
 0x2a3   : > { %18541 = vst [vmem:[#allocation73_spill] sm:$0xff] %v13495_v53  ;;  %vm9487_vm9 = vmpackc.low %vm3412_vm4, %vm3408_vm0  ;;  %v3732_v34 = vsub.f32 %v18543_v2, %v13495_v53  ;;  %v13508_v36 = vmul.f32 0.5, %v3731_v45  ;;  %v13510_v32 = vmul.f32 0.5, %v3735_v40  ;;  %v3353_v58 = vadd.f32 %v12966_v38, %v18546_v10  ;;  %v13524_v54 = vpop.f32.mrb[60].mxu0  ;;  %v18549_v38 = vld [vmem:[#allocation42_spill] sm:$0xff] }
 0x2a4   : > { %9488 = vmatmul.mubr.msk.bf16.gmra.mrb[140].mxu0 %vm9487_vm9, %v17855_v30  ;;  %v3357_v42 = vadd.f32 %v12968_v50, %v12947_v59  ;;  %v13516_v2 = vmul.f32 0.5, %v3728_v37  ;;  %vm3410_vm6 = vcmp.ge.f32.partialorder %v3346_v28, 1.0  ;;  %vm3414_vm7 = vcmp.ge.f32.partialorder %v3350_v44, 1.0  ;;  %v18550_v59 = vld [vmem:[#allocation49_spill] sm:$0xff]  ;;  %v18553_v40 = vld [vmem:[#allocation62_spill] sm:$0xff] }
 0x2a5   : > { %v13518_v53 = vmul.f32 0.5, %v3732_v34  ;;  %v13520_v48 = vsel %vm3410_vm6, 0.0, %v3346_v28  ;;  %v13522_v1 = vsel %vm3414_vm7, 0.0, %v3350_v44  ;;  %vm9743_vm13 = vmpackc.low %vm3414_vm7, %vm3410_vm6  ;;  %vm3417_vm10 = vcmp.ge.f32.partialorder %v3353_v58, 1.0  ;;  %v6299_v28 = vpop.f32.mrb[61].mxu0  ;;  %v18554_v34 = vld [vmem:[#allocation69_spill] sm:$0xff] }
 0x2a6   : > { %18547 = vst [vmem:[#allocation64_spill] sm:$0xff] %v13520_v48  ;;  %18548 = vst [vmem:[#allocation71_spill] sm:$0xff] %v13522_v1  ;;  %vm3421_vm11 = vcmp.ge.f32.partialorder %v3357_v42, 1.0  ;;  %v3730_v10 = vsub.f32 %v18549_v38, %v13520_v48  ;;  %v3734_v50 = vsub.f32 %v18550_v59, %v13522_v1  ;;  %9744 = vmatmul.mubr.msk.bf16.gmra.mrb[132].mxu1 %vm9743_vm13, %v17855_v30  ;;  %v13531_v7 = vsel %vm3417_vm10, 0.0, %v3353_v58  ;;  %v18555_v59 = vld [vmem:[#allocation80_spill] sm:$0xff]  ;;  %v13544_v58 = vpop.f32.mrb[62].mxu0 }
 0x2a7   : > { %18551 = vst [vmem:[#allocation76_spill] sm:$0xff] %v13531_v7  ;;  %v13533_v45 = vsel %vm3421_vm11, 0.0, %v3357_v42  ;;  %vm9489_vm14 = vmpackc.low %vm3421_vm11, %vm3417_vm10  ;;  %v3737_v37 = vsub.f32 %v18553_v40, %v13531_v7  ;;  %v3355_v44 = vadd.f32 %v12992_v52, %v12970_v31  ;;  %v3359_v38 = vadd.f32 %v12994_v41, %v18555_v59  ;;  %v18556_v28 = vld [vmem:[#allocation74_spill] sm:$0xff]  ;;  %v13558_v31 = vpop.f32.mrb[52].mxu1 }
 0x2a8   : > { %18552 = vst [vmem:[#allocation172_spill] sm:$0xff] %v13533_v45  ;;  %v3741_v9 = vsub.f32 %v18554_v34, %v13533_v45  ;;  %9490 = vmatprep.mubr.msk.bf16.mxu0 %vm9489_vm14, %v17855_v30  ;;  %v13546_v42 = vmul.f32 0.5, %v3730_v10  ;;  %v13548_v1 = vmul.f32 0.5, %v3734_v50  ;;  %v3352_v40 = vadd.f32 %v13000_v61, %v18556_v28  ;;  %v6302_v45 = vpop.f32.mrb[63].mxu0  ;;  %v6844_v61 = vpop.f32.mrb[53].mxu1  ;;  %v18558_v10 = vld [vmem:[#allocation63_spill] sm:$0xff] }
 0x2a9   : > { %v3356_v34 = vadd.f32 %v13002_v0, %v12981_v51  ;;  %v13554_v7 = vmul.f32 0.5, %v3737_v37  ;;  %vm3419_vm0 = vcmp.ge.f32.partialorder %v3355_v44, 1.0  ;;  %vm3423_vm4 = vcmp.ge.f32.partialorder %v3359_v38, 1.0  ;;  %v18559_v0 = vld [vmem:[#allocation72_spill] sm:$0xff]  ;;  %v13573_v37 = vpop.f32.mrb[54].mxu1 }
 0x2aa   : > { %v13556_v48 = vmul.f32 0.5, %v3741_v9  ;;  %v13560_v52 = vsel %vm3419_vm0, 0.0, %v3355_v44  ;;  %v13562_v41 = vsel %vm3423_vm4, 0.0, %v3359_v38  ;;  %vm9745_vm9 = vmpackc.low %vm3423_vm4, %vm3419_vm0  ;;  %vm3416_vm6 = vcmp.ge.f32.partialorder %v3352_v40, 1.0  ;;  %v18562_v38 = vld [vmem:[#allocation59_spill] sm:$0xff]  ;;  %v18563_v44 = vld [vmem:[#allocation65_spill] sm:$0xff] }
 0x2ab   : > { %18557 = vst [vmem:[#allocation80_spill] sm:$0xff] %v13562_v41  ;;  %vm3420_vm7 = vcmp.ge.f32.partialorder %v3356_v34, 1.0  ;;  %v3739_v51 = vsub.f32 %v18558_v10, %v13560_v52  ;;  %v3743_v59 = vsub.f32 %v18559_v0, %v13562_v41  ;;  %9746 = vmatprep.mubr.msk.bf16.mxu1 %vm9745_vm9, %v17855_v30  ;;  %v13569_v50 = vsel %vm3416_vm6, 0.0, %v3352_v40  ;;  %v6847_v0 = vpop.f32.mrb[55].mxu1 }
 0x2ac   : > { %18560 = vst [vmem:[#allocation74_spill] sm:$0xff] %v13569_v50  ;;  %v13571_v45 = vsel %vm3420_vm7, 0.0, %v3356_v34  ;;  %vm9491_vm13 = vmpackc.low %vm3420_vm7, %vm3416_vm6  ;;  %v3736_v9 = vsub.f32 %v18562_v38, %v13569_v50  ;;  %v3354_v61 = vadd.f32 %v13026_v6, %v13004_v18  ;;  %v3358_v40 = vadd.f32 %v13028_v20, %v13006_v24  ;;  %v18568_v6 = vld [vmem:[#allocation60_spill] sm:$0xff]  ;;  %v18572_v0 = vld [vmem:[#allocation83_spill] sm:$0xff] }
 0x2ad   : > { %18561 = vst [vmem:[#allocation173_spill] sm:$0xff] %v13571_v45  ;;  %v3740_v28 = vsub.f32 %v18563_v44, %v13571_v45  ;;  %9492 = vmatmul.mubr.msk.bf16.gmra.mrb[144].mxu0 %vm9491_vm13, %v17855_v30  ;;  %v13584_v34 = vmul.f32 0.5, %v3739_v51  ;;  %v13586_v10 = vmul.f32 0.5, %v3743_v59  ;;  %v3361_v41 = vadd.f32 %v13034_v55, %v13013_v14  ;;  %v13603_v55 = vld [vmem:[%s17269_s4] ss:$0 sm:$0xff] }
 0x2ae   : > { %v3365_v38 = vadd.f32 %v13036_v26, %v13015_v57  ;;  %v13592_v44 = vmul.f32 0.5, %v3736_v9  ;;  %vm3418_vm10 = vcmp.ge.f32.partialorder %v3354_v61, 1.0  ;;  %vm3422_vm11 = vcmp.ge.f32.partialorder %v3358_v40, 1.0  ;;  %v18569_v57 = vld [vmem:[#allocation66_spill] sm:$0xff]  ;;  %v18573_v9 = vld [vmem:[#allocation89_spill] sm:$0xff] }
 0x2af   : > { %v13594_v45 = vmul.f32 0.5, %v3740_v28  ;;  %v13596_v18 = vsel %vm3418_vm10, 0.0, %v3354_v61  ;;  %v13598_v24 = vsel %vm3422_vm11, 0.0, %v3358_v40  ;;  %vm9747_vm14 = vmpackc.low %vm3422_vm11, %vm3418_vm10  ;;  %vm3425_vm0 = vcmp.ge.f32.partialorder %v3361_v41, 1.0  ;;  %v18574_v61 = vld [vmem:[#allocation77_spill] sm:$0xff] }
 0x2b0   : > { %18564 = vst [vmem:[#allocation174_spill] sm:$0xff] %v13592_v44  ;;  %18566 = vst [vmem:[#allocation176_spill] sm:$0xff] %v13596_v18  ;;  %vm3429_vm4 = vcmp.ge.f32.partialorder %v3365_v38, 1.0  ;;  %v3738_v14 = vsub.f32 %v18568_v6, %v13596_v18  ;;  %v3742_v26 = vsub.f32 %v18569_v57, %v13598_v24  ;;  %9748 = vmatmul.mubr.msk.bf16.gmra.mrb[136].mxu1 %vm9747_vm14, %v17855_v30  ;;  %v13610_v20 = vsel %vm3425_vm0, 0.0, %v3361_v41  ;;  %v18575_v6 = vld [vmem:[#allocation75_spill] sm:$0xff]  ;;  %v18632_v44 = vld [vmem:[#allocation138_spill] sm:$0xff] }
 0x2b1   : > { %18565 = vst [vmem:[#allocation175_spill] sm:$0xff] %v13594_v45  ;;  %18567 = vst [vmem:[#allocation177_spill] sm:$0xff] %v13598_v24  ;;  %v13612_v51 = vsel %vm3429_vm4, 0.0, %v3365_v38  ;;  %v3745_v59 = vsub.f32 %v18572_v0, %v13610_v20  ;;  %v3363_v40 = vadd.f32 %v13060_v3, %v18574_v61  ;;  %v3367_v57 = vadd.f32 %v13062_v43, %v18575_v6  ;;  %v13635_v3 = vpop.f32.mrb[64].mxu0  ;;  %v18631_v45 = vld [vmem:[#allocation132_spill] sm:$0xff] }
 0x2b2   : > { %18570 = vst [vmem:[#allocation178_spill] sm:$0xff] %v13610_v20  ;;  %18571 = vst [vmem:[#allocation179_spill] sm:$0xff] %v13612_v51  ;;  %v3749_v28 = vsub.f32 %v18573_v9, %v13612_v51  ;;  %v13623_v24 = vmul.f32 0.5, %v3738_v14  ;;  %v13625_v41 = vmul.f32 0.5, %v3742_v26  ;;  %v6258_v38 = vadd.f32 %v13603_v55, %v13094_v19  ;;  %v6307_v14 = vpop.f32.mrb[65].mxu0 }
 0x2b3   : > { %vm9493_vm9 = vmpackc.low %vm3429_vm4, %vm3425_vm0  ;;  %v6261_v0 = vadd.f32 %v13603_v55, %v13108_v21  ;;  %v13631_v20 = vmul.f32 0.5, %v3745_v59  ;;  %vm3427_vm6 = vcmp.ge.f32.partialorder %v3363_v40, 1.0  ;;  %vm3431_vm7 = vcmp.ge.f32.partialorder %v3367_v57, 1.0  ;;  %v18582_v21 = vld [vmem:[#allocation84_spill] sm:$0xff]  ;;  %v18583_v59 = vld [vmem:[#allocation90_spill] sm:$0xff] }
 0x2b4   : > { %9494 = vmatprep.mubr.msk.bf16.mxu0 %vm9493_vm9, %v17855_v30  ;;  %18576 = vst [vmem:[#allocation77_spill] sm:$0xff] %v13623_v24  ;;  %18577 = vst [vmem:[#allocation75_spill] sm:$0xff] %v13625_v41  ;;  %v13633_v9 = vmul.f32 0.5, %v3749_v28  ;;  %v13637_v61 = vsel %vm3427_vm6, 0.0, %v3363_v40  ;;  %v13639_v43 = vsel %vm3431_vm7, 0.0, %v3367_v57  ;;  %v6803_v6 = vadd.f32 %v13123_v29, %v6258_v38  ;;  %v18585_v57 = vld [vmem:[#allocation81_spill] sm:$0xff] }
 0x2b5   : > { %18578 = vst [vmem:[#allocation180_spill] sm:$0xff] %v13631_v20  ;;  %18580 = vst [vmem:[#allocation182_spill] sm:$0xff] %v13637_v61  ;;  %v6806_v19 = vadd.f32 %v13142_v25, %v6261_v0  ;;  %v3747_v26 = vsub.f32 %v18582_v21, %v13637_v61  ;;  %v3751_v28 = vsub.f32 %v18583_v59, %v13639_v43  ;;  %v13652_v20 = vpop.f32.mrb[66].mxu0  ;;  %v18588_v0 = vld [vmem:[#allocation86_spill] sm:$0xff]  ;;  %v18589_v14 = vld [vmem:[#allocation91_spill] sm:$0xff] }
 0x2b6   : > { %18579 = vst [vmem:[#allocation181_spill] sm:$0xff] %v13633_v9  ;;  %18581 = vst [vmem:[#allocation183_spill] sm:$0xff] %v13639_v43  ;;  %v18584_v9 = vld [vmem:[#allocation88_spill] sm:$0xff]  ;;  %v3364_v51 = vadd.f32 %v18585_v57, %v13049_v46  ;;  %v13654_v29 = vmul.f32 0.5, %v6803_v6  ;;  %v3362_v38 = vadd.f32 %v13096_v15, %v18588_v0  ;;  %v13662_v43 = vpop.f32.mrb[56].mxu1  ;;  %v6310_v61 = vpop.f32.mrb[67].mxu0 }
 0x2b7   : > { %vm9749_vm13 = vmpackc.low %vm3431_vm7, %vm3427_vm6  ;;  %v3360_v40 = vadd.f32 %v13068_v4, %v18584_v9  ;;  %v13656_v25 = vmul.f32 0.5, %v6806_v19  ;;  %v18590_v21 = vld [vmem:[#allocation92_spill] sm:$0xff]  ;;  %v13664_v41 = vmul.f32 0.5, %v3747_v26  ;;  %v13666_v4 = vmul.f32 0.5, %v3751_v28  ;;  %v6852_v46 = vpop.f32.mrb[57].mxu1  ;;  %v18595_v19 = vld [vmem:[#allocation78_spill] sm:$0xff] }
 0x2b8   : > { %9750 = vmatprep.mubr.msk.bf16.mxu1 %vm9749_vm13, %v17855_v30  ;;  %18586 = vst [vmem:[#allocation88_spill] sm:$0xff] %v13654_v29  ;;  %v3366_v59 = vadd.f32 %v18590_v21, %v18589_v14  ;;  %vm3428_vm11 = vcmp.ge.f32.partialorder %v3364_v51, 1.0  ;;  %vm3426_vm0 = vcmp.ge.f32.partialorder %v3362_v38, 1.0  ;;  %v13672_v15 = vpop.f32.mrb[58].mxu1  ;;  %v18596_v61 = vld [vmem:[#allocation85_spill] sm:$0xff]  ;;  %v18600_v14 = vld [vmem:[#allocation87_spill] sm:$0xff] }
 0x2b9   : > { %18587 = vst [vmem:[#allocation81_spill] sm:$0xff] %v13656_v25  ;;  %18591 = vst [vmem:[#allocation86_spill] sm:$0xff] %v13664_v41  ;;  %vm3424_vm10 = vcmp.ge.f32.partialorder %v3360_v40, 1.0  ;;  %v13670_v6 = vsel %vm3428_vm11, 0.0, %v3364_v51  ;;  %v13679_v28 = vsel %vm3426_vm0, 0.0, %v3362_v38  ;;  %v6855_v51 = vpop.f32.mrb[59].mxu1 }
 0x2ba   : > { %18592 = vst [vmem:[#allocation91_spill] sm:$0xff] %v13666_v4  ;;  %v13668_v9 = vsel %vm3424_vm10, 0.0, %v3360_v40  ;;  %18594 = vst [vmem:[#allocation184_spill] sm:$0xff] %v13670_v6  ;;  %vm3430_vm4 = vcmp.ge.f32.partialorder %v3366_v59, 1.0  ;;  %v3748_v26 = vsub.f32 %v18596_v61, %v13670_v6  ;;  %v18599_v40 = vld [vmem:[#allocation79_spill] sm:$0xff]  ;;  %v18604_v6 = vld [vmem:[#allocation93_spill] sm:$0xff] }
 0x2bb   : > { %18593 = vst [vmem:[#allocation92_spill] sm:$0xff] %v13668_v9  ;;  %vm9495_vm14 = vmpackc.low %vm3428_vm11, %vm3424_vm10  ;;  %v3744_v21 = vsub.f32 %v18595_v19, %v13668_v9  ;;  %v13681_v57 = vsel %vm3430_vm4, 0.0, %v3366_v59  ;;  %v3746_v0 = vsub.f32 %v18599_v40, %v13679_v28  ;;  %v18601_v19 = vld [vmem:[#allocation82_spill] sm:$0xff]  ;;  %v18602_v9 = vld [vmem:[#allocation96_spill] sm:$0xff] }
 0x2bc   : > { %9496 = vmatmul.mubr.msk.bf16.gmra.mrb[148].mxu0 %vm9495_vm14, %v17855_v30  ;;  %18597 = vst [vmem:[#allocation185_spill] sm:$0xff] %v13679_v28  ;;  %18598 = vst [vmem:[#allocation186_spill] sm:$0xff] %v13681_v57  ;;  %v3750_v46 = vsub.f32 %v18600_v14, %v13681_v57  ;;  %v3369_v25 = vadd.f32 %v18602_v9, %v18601_v19  ;;  %v18603_v61 = vld [vmem:[#allocation95_spill] sm:$0xff]  ;;  %v13694_v59 = vmul.f32 0.5, %v3748_v26  ;;  %v18607_v4 = vld [vmem:[#allocation98_spill] sm:$0xff]  ;;  %v13704_v9 = vpop.f32.mrb[68].mxu0 }
 0x2bd   : > { %vm9751_vm9 = vmpackc.low %vm3430_vm4, %vm3426_vm0  ;;  %v3373_v29 = vadd.f32 %v18604_v6, %v18603_v61  ;;  %v13692_v38 = vmul.f32 0.5, %v3744_v21  ;;  %v18608_v51 = vld [vmem:[#allocation102_spill] sm:$0xff]  ;;  %v18610_v40 = vld [vmem:[#allocation100_spill] sm:$0xff]  ;;  %v13700_v18 = vmul.f32 0.5, %v3746_v0  ;;  %v6315_v21 = vpop.f32.mrb[69].mxu0 }
 0x2be   : > { %9752 = vmatmul.mubr.msk.bf16.gmra.mrb[140].mxu1 %vm9751_vm9, %v17855_v30  ;;  %18606 = vst [vmem:[#allocation96_spill] sm:$0xff] %v13694_v59  ;;  %v3371_v41 = vadd.f32 %v18608_v51, %v18607_v4  ;;  %v18609_v24 = vld [vmem:[#allocation94_spill] sm:$0xff]  ;;  %v13702_v14 = vmul.f32 0.5, %v3750_v46  ;;  %vm3433_vm6 = vcmp.ge.f32.partialorder %v3369_v25, 1.0  ;;  %v18615_v4 = vld [vmem:[#allocation105_spill] sm:$0xff]  ;;  %v18625_v57 = vld [vmem:[#allocation99_spill] sm:$0xff] }
 0x2bf   : > { %18605 = vst [vmem:[#allocation82_spill] sm:$0xff] %v13692_v38  ;;  %v3375_v28 = vadd.f32 %v18610_v40, %v18609_v24  ;;  %18611 = vst [vmem:[#allocation95_spill] sm:$0xff] %v13700_v18  ;;  %vm3437_vm7 = vcmp.ge.f32.partialorder %v3373_v29, 1.0  ;;  %v13706_v19 = vsel %vm3433_vm6, 0.0, %v3369_v25  ;;  %v18616_v24 = vld [vmem:[#allocation112_spill] sm:$0xff]  ;;  %v13719_v25 = vpop.f32.mrb[70].mxu0 }
 0x2c0   : > { %18612 = vst [vmem:[#allocation93_spill] sm:$0xff] %v13702_v14  ;;  %18613 = vst [vmem:[#allocation98_spill] sm:$0xff] %v13706_v19  ;;  %v13708_v6 = vsel %vm3437_vm7, 0.0, %v3373_v29  ;;  %vm3435_vm10 = vcmp.ge.f32.partialorder %v3371_v41, 1.0  ;;  %v3753_v61 = vsub.f32 %v18615_v4, %v13706_v19  ;;  %v18619_v29 = vld [vmem:[#allocation106_spill] sm:$0xff]  ;;  %v18620_v51 = vld [vmem:[#allocation113_spill] sm:$0xff] }
 0x2c1   : > { %18614 = vst [vmem:[#allocation102_spill] sm:$0xff] %v13708_v6  ;;  %vm9497_vm13 = vmpackc.low %vm3437_vm7, %vm3433_vm6  ;;  %vm3439_vm11 = vcmp.ge.f32.partialorder %v3375_v28, 1.0  ;;  %v3757_v26 = vsub.f32 %v18616_v24, %v13708_v6  ;;  %v13715_v40 = vsel %vm3435_vm10, 0.0, %v3371_v41  ;;  %v18621_v4 = vld [vmem:[#allocation129_spill] sm:$0xff]  ;;  %v18622_v6 = vld [vmem:[#allocation163_spill] sm:$0xff]  ;;  %v6318_v19 = vpop.f32.mrb[71].mxu0 }
 0x2c2   : > { %9498 = vmatprep.mubr.msk.bf16.mxu0 %vm9497_vm13, %v17855_v30  ;;  %18617 = vst [vmem:[#allocation94_spill] sm:$0xff] %v13715_v40  ;;  %v13717_v0 = vsel %vm3439_vm11, 0.0, %v3375_v28  ;;  %vm9753_vm14 = vmpackc.low %vm3439_vm11, %vm3435_vm10  ;;  %v3755_v46 = vsub.f32 %v18619_v29, %v13715_v40  ;;  %v6266_v24 = vadd.f32 %v13603_v55, %v18621_v4  ;;  %v6269_v41 = vadd.f32 %v13603_v55, %v18622_v6  ;;  %v18626_v18 = vld [vmem:[#allocation107_spill] sm:$0xff]  ;;  %v18627_v29 = vld [vmem:[#allocation97_spill] sm:$0xff] }
 0x2c3   : > { %18618 = vst [vmem:[#allocation100_spill] sm:$0xff] %v13717_v0  ;;  %v3759_v21 = vsub.f32 %v18620_v51, %v13717_v0  ;;  %9754 = vmatprep.mubr.msk.bf16.mxu1 %vm9753_vm14, %v17855_v30  ;;  %v13730_v28 = vmul.f32 0.5, %v3753_v61  ;;  %v13732_v14 = vmul.f32 0.5, %v3757_v26  ;;  %v3368_v59 = vadd.f32 %v18626_v18, %v18625_v57  ;;  %v18628_v40 = vld [vmem:[#allocation103_spill] sm:$0xff]  ;;  %v18634_v6 = vld [vmem:[#allocation116_spill] sm:$0xff] }
 0x2c4   : > { %v3372_v38 = vadd.f32 %v18628_v40, %v18627_v29  ;;  %v13738_v51 = vmul.f32 0.5, %v3755_v46  ;;  %v6811_v4 = vadd.f32 %v18631_v45, %v6266_v24  ;;  %v6814_v50 = vadd.f32 %v18632_v44, %v6269_v41  ;;  %v18633_v19 = vld [vmem:[#allocation111_spill] sm:$0xff]  ;;  %v18635_v26 = vld [vmem:[#allocation108_spill] sm:$0xff]  ;;  %v18641_v45 = vld [vmem:[#allocation101_spill] sm:$0xff] }
 0x2c5   : > { %18623 = vst [vmem:[#allocation129_spill] sm:$0xff] %v13730_v28  ;;  %18624 = vst [vmem:[#allocation163_spill] sm:$0xff] %v13732_v14  ;;  %v13740_v0 = vmul.f32 0.5, %v3759_v21  ;;  %vm3432_vm0 = vcmp.ge.f32.partialorder %v3368_v59, 1.0  ;;  %v3370_v61 = vadd.f32 %v18634_v6, %v18633_v19  ;;  %v18636_v14 = vld [vmem:[#allocation117_spill] sm:$0xff]  ;;  %v18647_v41 = vld [vmem:[#allocation115_spill] sm:$0xff] }
 0x2c6   : > { %18629 = vst [vmem:[#allocation99_spill] sm:$0xff] %v13738_v51  ;;  %vm3436_vm4 = vcmp.ge.f32.partialorder %v3372_v38, 1.0  ;;  %v3374_v28 = vadd.f32 %v18636_v14, %v18635_v26  ;;  %v13748_v18 = vmul.f32 0.5, %v6811_v4  ;;  %v13750_v57 = vmul.f32 0.5, %v6814_v50  ;;  %v18642_v24 = vld [vmem:[#allocation109_spill] sm:$0xff]  ;;  %v18645_v50 = vld [vmem:[#allocation114_spill] sm:$0xff] }
 0x2c7   : > { %18630 = vst [vmem:[#allocation107_spill] sm:$0xff] %v13740_v0  ;;  %v13752_v40 = vsel %vm3432_vm0, 0.0, %v3368_v59  ;;  %v13754_v29 = vsel %vm3436_vm4, 0.0, %v3372_v38  ;;  %vm9499_vm9 = vmpackc.low %vm3436_vm4, %vm3432_vm0  ;;  %vm3434_vm6 = vcmp.ge.f32.partialorder %v3370_v61, 1.0  ;;  %v18646_v59 = vld [vmem:[#allocation127_spill] sm:$0xff]  ;;  %v18648_v4 = vld [vmem:[#allocation126_spill] sm:$0xff] }
 0x2c8   : > { %18637 = vst [vmem:[#allocation97_spill] sm:$0xff] %v13748_v18  ;;  %18638 = vst [vmem:[#allocation103_spill] sm:$0xff] %v13750_v57  ;;  %v3752_v44 = vsub.f32 %v18641_v45, %v13752_v40  ;;  %v3756_v46 = vsub.f32 %v18642_v24, %v13754_v29  ;;  %9500 = vmatmul.mubr.msk.bf16.gmra.mrb[152].mxu0 %vm9499_vm9, %v17855_v30  ;;  %vm3438_vm7 = vcmp.ge.f32.partialorder %v3374_v28, 1.0  ;;  %v13761_v14 = vsel %vm3434_vm6, 0.0, %v3370_v61  ;;  %v18651_v24 = vld [vmem:[#allocation104_spill] sm:$0xff] }
 0x2c9   : > { %18639 = vst [vmem:[#allocation132_spill] sm:$0xff] %v13752_v40  ;;  %18640 = vst [vmem:[#allocation138_spill] sm:$0xff] %v13754_v29  ;;  %v13763_v21 = vsel %vm3438_vm7, 0.0, %v3374_v28  ;;  %v3377_v38 = vadd.f32 %v18646_v59, %v18645_v50  ;;  %v3381_v19 = vadd.f32 %v18648_v4, %v18647_v41  ;;  %v3754_v45 = vsub.f32 %v18651_v24, %v13761_v14  ;;  %v18652_v29 = vld [vmem:[#allocation110_spill] sm:$0xff]  ;;  %v13778_v28 = vpop.f32.mrb[60].mxu1  ;;  %v18653_v50 = vld [vmem:[#allocation128_spill] sm:$0xff] }
 0x2ca   : > { %18643 = vst [vmem:[#allocation111_spill] sm:$0xff] %v13761_v14  ;;  %18644 = vst [vmem:[#allocation116_spill] sm:$0xff] %v13763_v21  ;;  %v13769_v6 = vmul.f32 0.5, %v3752_v44  ;;  %v13771_v26 = vmul.f32 0.5, %v3756_v46  ;;  %v3758_v61 = vsub.f32 %v18652_v29, %v13763_v21  ;;  %v18654_v59 = vld [vmem:[#allocation137_spill] sm:$0xff]  ;;  %v18655_v41 = vld [vmem:[#allocation130_spill] sm:$0xff] }
 0x2cb   : > { %vm9755_vm13 = vmpackc.low %vm3438_vm7, %vm3434_vm6  ;;  %vm3441_vm10 = vcmp.ge.f32.partialorder %v3377_v38, 1.0  ;;  %vm3445_vm11 = vcmp.ge.f32.partialorder %v3381_v19, 1.0  ;;  %v3379_v40 = vadd.f32 %v18654_v59, %v18653_v50  ;;  %v18656_v44 = vld [vmem:[#allocation131_spill] sm:$0xff]  ;;  %v6860_v46 = vpop.f32.mrb[61].mxu1  ;;  %v18661_v14 = vld [vmem:[#allocation120_spill] sm:$0xff] }
 0x2cc   : > { %18649 = vst [vmem:[#allocation108_spill] sm:$0xff] %v13769_v6  ;;  %18650 = vst [vmem:[#allocation117_spill] sm:$0xff] %v13771_v26  ;;  %9756 = vmatmul.mubr.msk.bf16.gmra.mrb[144].mxu1 %vm9755_vm13, %v17855_v30  ;;  %v3383_v4 = vadd.f32 %v18656_v44, %v18655_v41  ;;  %v13784_v26 = vmul.f32 0.5, %v3754_v45  ;;  %v13786_v6 = vmul.f32 0.5, %v3758_v61  ;;  %v13788_v24 = vsel %vm3441_vm10, 0.0, %v3377_v38  ;;  %v13792_v21 = vpop.f32.mrb[62].mxu1 }
 0x2cd   : > { %18659 = vst [vmem:[#allocation115_spill] sm:$0xff] %v13788_v24  ;;  %v13790_v29 = vsel %vm3445_vm11, 0.0, %v3381_v19  ;;  %vm9501_vm14 = vmpackc.low %vm3445_vm11, %vm3441_vm10  ;;  %v3761_v57 = vsub.f32 %v18661_v14, %v13788_v24  ;;  %v18662_v50 = vld [vmem:[#allocation124_spill] sm:$0xff]  ;;  %vm3443_vm0 = vcmp.ge.f32.partialorder %v3379_v40, 1.0  ;;  %v6863_v45 = vpop.f32.mrb[63].mxu1  ;;  %v6274_v19 = vadd.f32 %v13603_v55, %v13280_v5 }
 0x2ce   : > { %18657 = vst [vmem:[#allocation114_spill] sm:$0xff] %v13784_v26  ;;  %18658 = vst [vmem:[#allocation127_spill] sm:$0xff] %v13786_v6  ;;  %v3765_v59 = vsub.f32 %v18662_v50, %v13790_v29  ;;  %9502 = vmatprep.mubr.msk.bf16.mxu0 %vm9501_vm14, %v17855_v30  ;;  %vm3447_vm4 = vcmp.ge.f32.partialorder %v3383_v4, 1.0  ;;  %v13799_v61 = vsel %vm3443_vm0, 0.0, %v3379_v40  ;;  %v6277_v41 = vadd.f32 %v13603_v55, %v13294_v33  ;;  %v18667_v50 = vld [vmem:[#allocation121_spill] sm:$0xff]  ;;  %v18671_v33 = vld [vmem:[#allocation134_spill] sm:$0xff] }
 0x2cf   : > { %18660 = vst [vmem:[#allocation126_spill] sm:$0xff] %v13790_v29  ;;  %18663 = vst [vmem:[#allocation128_spill] sm:$0xff] %v13799_v61  ;;  %v13801_v38 = vsel %vm3447_vm4, 0.0, %v3383_v4  ;;  %v13807_v44 = vmul.f32 0.5, %v3761_v57  ;;  %v3763_v14 = vsub.f32 %v18667_v50, %v13799_v61  ;;  %v18668_v45 = vld [vmem:[#allocation125_spill] sm:$0xff]  ;;  %v13816_v4 = vpop.f32.mrb[72].mxu0 }
 0x2d0   : > { %18664 = vst [vmem:[#allocation137_spill] sm:$0xff] %v13801_v38  ;;  %vm9757_vm9 = vmpackc.low %vm3447_vm4, %vm3443_vm0  ;;  %v13809_v46 = vmul.f32 0.5, %v3765_v59  ;;  %v3767_v40 = vsub.f32 %v18668_v45, %v13801_v38  ;;  %v18669_v29 = vld [vmem:[#allocation23_spill] sm:$0xff]  ;;  %v6822_v5 = vadd.f32 %v13320_v16, %v6277_v41  ;;  %v18670_v6 = vld [vmem:[#allocation161_spill] sm:$0xff] }
 0x2d1   : > { %18665 = vst [vmem:[#allocation130_spill] sm:$0xff] %v13807_v44  ;;  %9758 = vmatprep.mubr.msk.bf16.mxu1 %vm9757_vm9, %v17855_v30  ;;  %v6819_v24 = vadd.f32 %v18669_v29, %v6274_v19  ;;  %v3376_v57 = vadd.f32 %v18671_v33, %v18670_v6  ;;  %v6323_v44 = vpop.f32.mrb[73].mxu0  ;;  %v13822_v59 = vmul.f32 0.5, %v3763_v14  ;;  %v18673_v50 = vld [vmem:[#allocation162_spill] sm:$0xff]  ;;  %v18674_v61 = vld [vmem:[#allocation135_spill] sm:$0xff]  ;;  %v18675_v45 = vld [vmem:[#allocation133_spill] sm:$0xff] }
 0x2d2   : > { %18666 = vst [vmem:[#allocation131_spill] sm:$0xff] %v13809_v46  ;;  %v13824_v46 = vmul.f32 0.5, %v3767_v40  ;;  %v3380_v26 = vadd.f32 %v18674_v61, %v18673_v50  ;;  %v18676_v38 = vld [vmem:[#allocation139_spill] sm:$0xff]  ;;  %v13830_v0 = vpop.f32.mrb[74].mxu0  ;;  %v7306_v29 = vmul.f32 0.5, %v6822_v5  ;;  %v18677_v16 = vld [vmem:[#allocation136_spill] sm:$0xff] }
 0x2d3   : > { %v3378_v18 = vadd.f32 %v18676_v38, %v18675_v45  ;;  %v7305_v51 = vmul.f32 0.5, %v6819_v24  ;;  %vm3440_vm6 = vcmp.ge.f32.partialorder %v3376_v57, 1.0  ;;  %v18678_v19 = vld [vmem:[#allocation34_spill] sm:$0xff]  ;;  %v6326_v6 = vpop.f32.mrb[75].mxu0  ;;  %v18680_v44 = vld [vmem:[#allocation164_spill] sm:$0xff]  ;;  %v17621_v38 = vmov 0.0  }
 0x2d4   : > { %18672 = vst [vmem:[#allocation23_spill] sm:$0xff] %v13824_v46  ;;  %v3382_v41 = vadd.f32 %v18678_v19, %v18677_v16  ;;  %vm3444_vm7 = vcmp.ge.f32.partialorder %v3380_v26, 1.0  ;;  %v13834_v14 = vsel %vm3440_vm6, 0.0, %v3376_v57  ;;  %v18681_v40 = vld [vmem:[#allocation140_spill] sm:$0xff]  ;;  %vm7338_vm11 = vcmp.ge.f32.partialorder %v7306_v29, 1.0  ;;  %v18683_v61 = vld [vmem:[#allocation118_spill] sm:$0xff] }
 0x2d5   : > { %18679 = vst [vmem:[#allocation161_spill] sm:$0xff] %v13834_v14  ;;  %vm3442_vm13 = vcmp.ge.f32.partialorder %v3378_v18, 1.0  ;;  %v3833_v33 = vadd.f32 %v18681_v40, %v18680_v44  ;;  %vm7337_vm10 = vcmp.ge.f32.partialorder %v7305_v51, 1.0  ;;  %v13838_v50 = vsel %vm3444_vm7, 0.0, %v3380_v26  ;;  %vm9503_vm14 = vmpackc.low %vm3444_vm7, %vm3440_vm6  ;;  %v18688_v26 = vld [vmem:[#allocation122_spill] sm:$0xff] }
 0x2d6   : > { %18682 = vst [vmem:[#allocation134_spill] sm:$0xff] %v13838_v50  ;;  %v3760_v24 = vsub.f32 %v18683_v61, %v13834_v14  ;;  %v13843_v45 = vsel %vm7337_vm10, 1.0, %v17621_v38  ;;  %v13845_v5 = vsel %vm7337_vm10, 0.0, %v7305_v51  ;;  %v13848_v57 = vsel %vm7338_vm11, 1.0, %v17621_v38  ;;  %9504 = vmatmul.mubr.msk.bf16.gmra.mrb[156].mxu0 %vm9503_vm14, %v17855_v30  ;;  %v18692_v51 = vld [vmem:[#allocation119_spill] sm:$0xff]  ;;  %v18694_v38 = vld [vmem:[#allocation146_spill] sm:$0xff] }
 0x2d7   : > { %18684 = vst [vmem:[#allocation162_spill] sm:$0xff] %v13843_v45  ;;  %18685 = vst [vmem:[#allocation135_spill] sm:$0xff] %v13845_v5  ;;  %v13850_v16 = vsel %vm7338_vm11, 0.0, %v7306_v29  ;;  %v3764_v19 = vsub.f32 %v18688_v26, %v13838_v50  ;;  %vm3446_vm0 = vcmp.ge.f32.partialorder %v3382_v41, 1.0  ;;  %v13858_v44 = vsel %vm3442_vm13, 0.0, %v3378_v18  ;;  %v18693_v29 = vld [vmem:[#allocation165_spill] sm:$0xff] }
 0x2d8   : > { %18686 = vst [vmem:[#allocation133_spill] sm:$0xff] %v13848_v57  ;;  %18687 = vst [vmem:[#allocation139_spill] sm:$0xff] %v13850_v16  ;;  %v13855_v6 = vmul.f32 0.5, %v3760_v24  ;;  %v13860_v40 = vsel %vm3446_vm0, 0.0, %v3382_v41  ;;  %v3762_v45 = vsub.f32 %v18692_v51, %v13858_v44  ;;  %v3837_v57 = vadd.f32 %v18694_v38, %v18693_v29  ;;  %v13867_v61 = vpop.f32.mrb[64].mxu1  ;;  %v18696_v24 = vld [vmem:[#allocation123_spill] sm:$0xff] }
 0x2d9   : > { %18690 = vst [vmem:[#allocation34_spill] sm:$0xff] %v13858_v44  ;;  %18691 = vst [vmem:[#allocation164_spill] sm:$0xff] %v13860_v40  ;;  %vm3897_vm9 = vcmp.ge.f32.partialorder %v3833_v33, 1.0  ;;  %v13869_v26 = vmul.f32 0.5, %v3764_v19  ;;  %v3766_v16 = vsub.f32 %v18696_v24, %v13860_v40  ;;  %v18698_v5 = vld [vmem:[#allocation142_spill] sm:$0xff]  ;;  %v18699_v51 = vld [vmem:[#allocation147_spill] sm:$0xff] }
 0x2da   : > { %18689 = vst [vmem:[#allocation136_spill] sm:$0xff] %v13855_v6  ;;  %vm9759_vm4 = vmpackc.low %vm3446_vm0, %vm3442_vm13  ;;  %v13875_v41 = vsel %vm3897_vm9, 0.0, %v3833_v33  ;;  %v3835_v18 = vadd.f32 %v18699_v51, %v18698_v5  ;;  %v6868_v44 = vpop.f32.mrb[65].mxu1  ;;  %v13879_v50 = vmul.f32 0.5, %v3762_v45  ;;  %vm3901_vm6 = vcmp.ge.f32.partialorder %v3837_v57, 1.0  ;;  %v18701_v38 = vld [vmem:[#allocation4_spill] sm:$0xff] }
 0x2db   : > { %18695 = vst [vmem:[#allocation140_spill] sm:$0xff] %v13869_v26  ;;  %9760 = vmatmul.mubr.msk.bf16.gmra.mrb[148].mxu1 %vm9759_vm4, %v17855_v30  ;;  %18697 = vst [vmem:[#allocation165_spill] sm:$0xff] %v13875_v41  ;;  %v4217_v29 = vsub.f32 %v18701_v38, %v13875_v41  ;;  %v18702_v19 = vld [vmem:[#allocation143_spill] sm:$0xff]  ;;  %v18703_v26 = vld [vmem:[#allocation144_spill] sm:$0xff]  ;;  %v13885_v14 = vpop.f32.mrb[66].mxu1  ;;  %v13887_v24 = vmul.f32 0.5, %v3766_v16  ;;  %v6282_v45 = vadd.f32 %v13603_v55, %v13368_v11 }
 0x2dc   : > { %18700 = vst [vmem:[#allocation146_spill] sm:$0xff] %v13879_v50  ;;  %v3839_v6 = vadd.f32 %v18703_v26, %v18702_v19  ;;  %v13889_v40 = vsel %vm3901_vm6, 0.0, %v3837_v57  ;;  %vm9505_vm7 = vmpackc.low %vm3901_vm6, %vm3897_vm9  ;;  %vm3899_vm13 = vcmp.ge.f32.partialorder %v3835_v18, 1.0  ;;  %v6871_v5 = vpop.f32.mrb[67].mxu1  ;;  %v18706_v44 = vld [vmem:[#allocation8_spill] sm:$0xff]  ;;  %v13901_v16 = vpop.f32.mrb[76].mxu0  ;;  %v6285_v11 = vadd.f32 %v13603_v55, %v13383_v56 }
 0x2dd   : > { %18704 = vst [vmem:[#allocation142_spill] sm:$0xff] %v13887_v24  ;;  %18705 = vst [vmem:[#allocation147_spill] sm:$0xff] %v13889_v40  ;;  %v4221_v51 = vsub.f32 %v18706_v44, %v13889_v40  ;;  %v13896_v38 = vmul.f32 0.5, %v4217_v29  ;;  %9506 = vmatprep.mubr.msk.bf16.mxu0 %vm9505_vm7, %v17855_v30  ;;  %v13899_v26 = vsel %vm3899_vm13, 0.0, %v3835_v18  ;;  %v18710_v33 = vld [vmem:[#allocation5_spill] sm:$0xff]  ;;  %v6827_v5 = vadd.f32 %v13394_v27, %v6282_v45  ;;  %v6331_v29 = vpop.f32.mrb[77].mxu0 }
 0x2de   : > { %vm3903_vm10 = vcmp.ge.f32.partialorder %v3839_v6, 1.0  ;;  %18708 = vst [vmem:[#allocation144_spill] sm:$0xff] %v13899_v26  ;;  %v4219_v19 = vsub.f32 %v18710_v33, %v13899_v26  ;;  %v18712_v40 = vld [vmem:[#allocation9_spill] sm:$0xff]  ;;  %v18715_v24 = vld [vmem:[#allocation148_spill] sm:$0xff]  ;;  %v18716_v50 = vld [vmem:[#allocation150_spill] sm:$0xff]  ;;  %v13919_v26 = vpop.f32.mrb[78].mxu0  ;;  %v6830_v27 = vadd.f32 %v13408_v39, %v6285_v11 }
 0x2df   : > { %18707 = vst [vmem:[#allocation143_spill] sm:$0xff] %v13896_v38  ;;  %v13903_v57 = vsel %vm3903_vm10, 0.0, %v3839_v6  ;;  %vm9761_vm11 = vmpackc.low %vm3903_vm10, %vm3899_vm13  ;;  %v13910_v44 = vmul.f32 0.5, %v4221_v51  ;;  %v18713_v38 = vld [vmem:[#allocation141_spill] sm:$0xff]  ;;  %v18714_v6 = vld [vmem:[#allocation152_spill] sm:$0xff]  ;;  %v3836_v33 = vadd.f32 %v18716_v50, %v18715_v24  ;;  %v7307_v56 = vmul.f32 0.5, %v6827_v5 }
 0x2e0   : > { %18709 = vst [vmem:[#allocation187_spill] sm:$0xff] %v13903_v57  ;;  %v4223_v18 = vsub.f32 %v18712_v40, %v13903_v57  ;;  %9762 = vmatprep.mubr.msk.bf16.mxu1 %vm9761_vm11, %v17855_v30  ;;  %v3832_v41 = vadd.f32 %v18714_v6, %v18713_v38  ;;  %v13921_v46 = vmul.f32 0.5, %v4219_v19  ;;  %v18718_v45 = vld [vmem:[#allocation149_spill] sm:$0xff]  ;;  %v6334_v29 = vpop.f32.mrb[79].mxu0  ;;  %v13930_v6 = vpop.f32.mrb[68].mxu1  ;;  %v7308_v50 = vmul.f32 0.5, %v6830_v27 }
 0x2e1   : > { %18711 = vst [vmem:[#allocation188_spill] sm:$0xff] %v13910_v44  ;;  %v3834_v51 = vadd.f32 %v13322_v12, %v18718_v45  ;;  %vm3900_vm0 = vcmp.ge.f32.partialorder %v3836_v33, 1.0  ;;  %v18720_v57 = vld [vmem:[#allocation145_spill] sm:$0xff]  ;;  %vm7339_vm4 = vcmp.ge.f32.partialorder %v7307_v56, 1.0  ;;  %v6876_v39 = vpop.f32.mrb[69].mxu1  ;;  %v18723_v11 = vmov 0.0  }
 0x2e2   : > { %18717 = vst [vmem:[#allocation141_spill] sm:$0xff] %v13921_v46  ;;  %v13926_v40 = vmul.f32 0.5, %v4223_v18  ;;  %vm3896_vm14 = vcmp.ge.f32.partialorder %v3832_v41, 1.0  ;;  %v3838_v38 = vadd.f32 %v13324_v60, %v18720_v57  ;;  %v13934_v19 = vsel %vm3900_vm0, 0.0, %v3836_v33  ;;  %v18726_v18 = vld [vmem:[#allocation3_spill] sm:$0xff]  ;;  %v13946_v27 = vpop.f32.mrb[70].mxu1 }
 0x2e3   : > { %v13932_v24 = vsel %vm3896_vm14, 0.0, %v3832_v41  ;;  %18722 = vst [vmem:[#allocation150_spill] sm:$0xff] %v13934_v19  ;;  %vm9507_vm9 = vmpackc.low %vm3900_vm0, %vm3896_vm14  ;;  %v13937_v12 = vsel %vm7339_vm4, 1.0, %v18723_v11  ;;  %v13939_v5 = vsel %vm7339_vm4, 0.0, %v7307_v56  ;;  %v18727_v60 = vld [vmem:[#allocation7_spill] sm:$0xff]  ;;  %vm7340_vm6 = vcmp.ge.f32.partialorder %v7308_v50, 1.0 }
 0x2e4   : > { %18719 = vst [vmem:[#allocation152_spill] sm:$0xff] %v13926_v40  ;;  %18721 = vst [vmem:[#allocation148_spill] sm:$0xff] %v13932_v24  ;;  %v4216_v45 = vsub.f32 %v18726_v18, %v13932_v24  ;;  %v4220_v57 = vsub.f32 %v18727_v60, %v13934_v19  ;;  %9508 = vmatmul.mubr.msk.bf16.gmra.mrb[160].mxu0 %vm9507_vm9, %v17855_v30  ;;  %vm3898_vm7 = vcmp.ge.f32.partialorder %v3834_v51, 1.0  ;;  %vm3902_vm13 = vcmp.ge.f32.partialorder %v3838_v38, 1.0  ;;  %v18728_v41 = vld [vmem:[#allocation153_spill] sm:$0xff]  ;;  %v18729_v33 = vld [vmem:[#allocation47_spill] sm:$0xff] }
 0x2e5   : > { %18724 = vst [vmem:[#allocation149_spill] sm:$0xff] %v13937_v12  ;;  %18725 = vst [vmem:[#allocation145_spill] sm:$0xff] %v13939_v5  ;;  %v3841_v29 = vadd.f32 %v18729_v33, %v18728_v41  ;;  %v6879_v39 = vpop.f32.mrb[71].mxu1  ;;  %v13951_v56 = vsel %vm7340_vm6, 1.0, %v18723_v11  ;;  %v13953_v12 = vsel %vm7340_vm6, 0.0, %v7308_v50  ;;  %v13959_v60 = vsel %vm3898_vm7, 0.0, %v3834_v51 }
 0x2e6   : > { %18730 = vst [vmem:[#allocation153_spill] sm:$0xff] %v13951_v56  ;;  %18731 = vst [vmem:[#allocation47_spill] sm:$0xff] %v13953_v12  ;;  %v13955_v18 = vmul.f32 0.5, %v4216_v45  ;;  %v13957_v5 = vmul.f32 0.5, %v4220_v57  ;;  %v13961_v19 = vsel %vm3902_vm13, 0.0, %v3838_v38  ;;  %v18736_v24 = vld [vmem:[#allocation166_spill] sm:$0xff] }
 0x2e7   : > { %vm9763_vm10 = vmpackc.low %vm3902_vm13, %vm3898_vm7  ;;  %18734 = vst [vmem:[#allocation191_spill] sm:$0xff] %v13959_v60  ;;  %v18737_v40 = vld [vmem:[#allocation156_spill] sm:$0xff]  ;;  %vm3905_vm11 = vcmp.ge.f32.partialorder %v3841_v29, 1.0  ;;  %v13966_v33 = vpop.f32.mrb[80].mxu0  ;;  %v18739_v50 = vld [vmem:[#allocation6_spill] sm:$0xff] }
 0x2e8   : > { %18732 = vst [vmem:[#allocation189_spill] sm:$0xff] %v13955_v18  ;;  %18733 = vst [vmem:[#allocation190_spill] sm:$0xff] %v13957_v5  ;;  %9764 = vmatmul.mubr.msk.bf16.gmra.mrb[152].mxu1 %vm9763_vm10, %v17855_v30  ;;  %v3845_v41 = vadd.f32 %v18737_v40, %v18736_v24  ;;  %v4218_v39 = vsub.f32 %v18739_v50, %v13959_v60  ;;  %v18740_v45 = vld [vmem:[#allocation11_spill] sm:$0xff]  ;;  %v13973_v56 = vsel %vm3905_vm11, 0.0, %v3841_v29  ;;  %v18742_v51 = vld [vmem:[#allocation50_spill] sm:$0xff]  ;;  %v6339_v5 = vpop.f32.mrb[81].mxu0 }
 0x2e9   : > { %18735 = vst [vmem:[#allocation192_spill] sm:$0xff] %v13961_v19  ;;  %18738 = vst [vmem:[#allocation166_spill] sm:$0xff] %v13966_v33  ;;  %v4222_v57 = vsub.f32 %v18740_v45, %v13961_v19  ;;  %v18743_v38 = vld [vmem:[#allocation154_spill] sm:$0xff]  ;;  %v18744_v18 = vld [vmem:[#allocation16_spill] sm:$0xff]  ;;  %v6290_v50 = vadd.f32 %v13603_v55, %v13457_v62  ;;  %v13983_v60 = vpop.f32.mrb[82].mxu0  ;;  %v13992_v5 = vpop.f32.mrb[72].mxu1 }
 0x2ea   : > { %18741 = vst [vmem:[#allocation156_spill] sm:$0xff] %v13973_v56  ;;  %v3843_v12 = vadd.f32 %v18743_v38, %v18742_v51  ;;  %vm3909_vm14 = vcmp.ge.f32.partialorder %v3845_v41, 1.0  ;;  %v4225_v40 = vsub.f32 %v18744_v18, %v13973_v56  ;;  %v18745_v24 = vld [vmem:[#allocation33_spill] sm:$0xff]  ;;  %v18746_v46 = vld [vmem:[#allocation39_spill] sm:$0xff]  ;;  %v13985_v45 = vmul.f32 0.5, %v4218_v39  ;;  %v6342_v51 = vpop.f32.mrb[83].mxu0 }
 0x2eb   : > { %v3847_v44 = vadd.f32 %v18746_v46, %v18745_v24  ;;  %v13987_v19 = vmul.f32 0.5, %v4222_v57  ;;  %v13989_v33 = vsel %vm3909_vm14, 0.0, %v3845_v41  ;;  %vm9509_vm0 = vmpackc.low %vm3909_vm14, %vm3905_vm11  ;;  %18750 = vst [vmem:[#allocation39_spill] sm:$0xff] %v13992_v5  ;;  %v18751_v38 = vld [vmem:[#allocation21_spill] sm:$0xff]  ;;  %v6884_v39 = vpop.f32.mrb[73].mxu1  ;;  %v18755_v29 = vld [vmem:[#allocation18_spill] sm:$0xff]  ;;  %v6293_v51 = vadd.f32 %v13603_v55, %v13476_v23 }
 0x2ec   : > { %18747 = vst [vmem:[#allocation50_spill] sm:$0xff] %v13985_v45  ;;  %18749 = vst [vmem:[#allocation33_spill] sm:$0xff] %v13989_v33  ;;  %vm3907_vm4 = vcmp.ge.f32.partialorder %v3843_v12, 1.0  ;;  %v4229_v46 = vsub.f32 %v18751_v38, %v13989_v33  ;;  %v13996_v24 = vmul.f32 0.5, %v4225_v40  ;;  %9510 = vmatprep.mubr.msk.bf16.mxu0 %vm9509_vm0, %v17855_v30  ;;  %v6835_v18 = vadd.f32 %v13482_v13, %v6290_v50  ;;  %v14008_v38 = vpop.f32.mrb[74].mxu1  ;;  %v18758_v33 = vld [vmem:[#allocation22_spill] sm:$0xff] }
 0x2ed   : > { %18748 = vst [vmem:[#allocation154_spill] sm:$0xff] %v13987_v19  ;;  %vm3911_vm9 = vcmp.ge.f32.partialorder %v3847_v44, 1.0  ;;  %v13999_v62 = vsel %vm3907_vm4, 0.0, %v3843_v12  ;;  %18756 = vst [vmem:[#allocation196_spill] sm:$0xff] %v14008_v38  ;;  %v18760_v39 = vld [vmem:[#allocation54_spill] sm:$0xff]  ;;  %v18761_v56 = vld [vmem:[#allocation155_spill] sm:$0xff]  ;;  %v6838_v13 = vadd.f32 %v13497_v49, %v6293_v51 }
 0x2ee   : > { %18752 = vst [vmem:[#allocation193_spill] sm:$0xff] %v13996_v24  ;;  %18753 = vst [vmem:[#allocation194_spill] sm:$0xff] %v13999_v62  ;;  %v14001_v57 = vsel %vm3911_vm9, 0.0, %v3847_v44  ;;  %v4227_v41 = vsub.f32 %v18755_v29, %v13999_v62  ;;  %v14010_v40 = vmul.f32 0.5, %v4229_v46  ;;  %v18759_v44 = vld [vmem:[#allocation40_spill] sm:$0xff]  ;;  %v18762_v29 = vld [vmem:[#allocation167_spill] sm:$0xff] }
 0x2ef   : > { %18754 = vst [vmem:[#allocation195_spill] sm:$0xff] %v14001_v57  ;;  %vm9765_vm6 = vmpackc.low %vm3911_vm9, %vm3907_vm4  ;;  %v4231_v12 = vsub.f32 %v18758_v33, %v14001_v57  ;;  %v3840_v24 = vadd.f32 %v18760_v39, %v18759_v44  ;;  %v3844_v62 = vadd.f32 %v18762_v29, %v18761_v56  ;;  %v6887_v19 = vpop.f32.mrb[75].mxu1  ;;  %v7309_v23 = vmul.f32 0.5, %v6835_v18  ;;  %v18763_v50 = vld [vmem:[#allocation168_spill] sm:$0xff]  ;;  %v18764_v46 = vld [vmem:[#allocation53_spill] sm:$0xff]  ;;  %v14032_v18 = vpop.f32.mrb[84].mxu0 }
 0x2f0   : > { %18757 = vst [vmem:[#allocation197_spill] sm:$0xff] %v14010_v40  ;;  %9766 = vmatprep.mubr.msk.bf16.mxu1 %vm9765_vm6, %v17855_v30  ;;  %v14019_v45 = vmul.f32 0.5, %v4227_v41  ;;  %v3842_v40 = vadd.f32 %v18764_v46, %v18763_v50  ;;  %v18765_v33 = vld [vmem:[#allocation169_spill] sm:$0xff]  ;;  %v18766_v57 = vld [vmem:[#allocation158_spill] sm:$0xff]  ;;  %v7310_v44 = vmul.f32 0.5, %v6838_v13  ;;  %v18772_v51 = vld [vmem:[#allocation19_spill] sm:$0xff] }
 0x2f1   : > { %v14024_v38 = vmul.f32 0.5, %v4231_v12  ;;  %vm3904_vm7 = vcmp.ge.f32.partialorder %v3840_v24, 1.0  ;;  %vm3908_vm13 = vcmp.ge.f32.partialorder %v3844_v62, 1.0  ;;  %v3846_v5 = vadd.f32 %v18766_v57, %v18765_v33  ;;  %v18771_v29 = vld [vmem:[#allocation14_spill] sm:$0xff]  ;;  %v18774_v57 = vld [vmem:[#allocation44_spill] sm:$0xff] }
 0x2f2   : > { %vm7341_vm10 = vcmp.ge.f32.partialorder %v7309_v23, 1.0  ;;  %v14028_v39 = vsel %vm3904_vm7, 0.0, %v3840_v24  ;;  %v14030_v19 = vsel %vm3908_vm13, 0.0, %v3844_v62  ;;  %vm9511_vm11 = vmpackc.low %vm3908_vm13, %vm3904_vm7  ;;  %v6347_v24 = vpop.f32.mrb[85].mxu0  ;;  %vm7342_vm14 = vcmp.ge.f32.partialorder %v7310_v44, 1.0  ;;  %v18773_v62 = vld [vmem:[#allocation170_spill] sm:$0xff] }
 0x2f3   : > { %18767 = vst [vmem:[#allocation40_spill] sm:$0xff] %v14028_v39  ;;  %18768 = vst [vmem:[#allocation54_spill] sm:$0xff] %v14030_v19  ;;  %v14035_v49 = vsel %vm7341_vm10, 1.0, %v18723_v11  ;;  %v14037_v56 = vsel %vm7341_vm10, 0.0, %v7309_v23  ;;  %v4224_v41 = vsub.f32 %v18771_v29, %v14028_v39  ;;  %v4228_v33 = vsub.f32 %v18772_v51, %v14030_v19  ;;  %9512 = vmatmul.mubr.msk.bf16.gmra.mrb[164].mxu0 %vm9511_vm11, %v17855_v30  ;;  %v14046_v13 = vpop.f32.mrb[86].mxu0  ;;  %v14064_v19 = vpop.f32.mrb[76].mxu1 }
 0x2f4   : > { %18769 = vst [vmem:[#allocation155_spill] sm:$0xff] %v14035_v49  ;;  %18770 = vst [vmem:[#allocation167_spill] sm:$0xff] %v14037_v56  ;;  %vm3906_vm0 = vcmp.ge.f32.partialorder %v3842_v40, 1.0  ;;  %vm3910_vm4 = vcmp.ge.f32.partialorder %v3846_v5, 1.0  ;;  %v3849_v12 = vadd.f32 %v18774_v57, %v18773_v62  ;;  %v14049_v23 = vsel %vm7342_vm14, 1.0, %v18723_v11  ;;  %v6350_v51 = vpop.f32.mrb[87].mxu0 }
 0x2f5   : > { %18775 = vst [vmem:[#allocation168_spill] sm:$0xff] %v14049_v23  ;;  %v14051_v50 = vsel %vm7342_vm14, 0.0, %v7310_v44  ;;  %v14053_v46 = vmul.f32 0.5, %v4224_v41  ;;  %v14055_v49 = vmul.f32 0.5, %v4228_v33  ;;  %vm9767_vm9 = vmpackc.low %vm3910_vm4, %vm3906_vm0  ;;  %v14057_v24 = vsel %vm3906_vm0, 0.0, %v3842_v40  ;;  %v18781_v62 = vld [vmem:[#allocation171_spill] sm:$0xff] }
 0x2f6   : > { %18776 = vst [vmem:[#allocation53_spill] sm:$0xff] %v14051_v50  ;;  %18779 = vst [vmem:[#allocation170_spill] sm:$0xff] %v14057_v24  ;;  %v14059_v29 = vsel %vm3910_vm4, 0.0, %v3846_v5  ;;  %9768 = vmatmul.mubr.msk.bf16.gmra.mrb[156].mxu1 %vm9767_vm9, %v17855_v30  ;;  %v18782_v57 = vld [vmem:[#allocation157_spill] sm:$0xff]  ;;  %vm3913_vm6 = vcmp.ge.f32.partialorder %v3849_v12, 1.0  ;;  %v18784_v33 = vld [vmem:[#allocation20_spill] sm:$0xff] }
 0x2f7   : > { %18777 = vst [vmem:[#allocation169_spill] sm:$0xff] %v14053_v46  ;;  %18778 = vst [vmem:[#allocation158_spill] sm:$0xff] %v14055_v49  ;;  %v3853_v56 = vadd.f32 %v18782_v57, %v18781_v62  ;;  %v18783_v44 = vld [vmem:[#allocation17_spill] sm:$0xff]  ;;  %v4230_v23 = vsub.f32 %v18784_v33, %v14059_v29  ;;  %v14071_v51 = vsel %vm3913_vm6, 0.0, %v3849_v12  ;;  %v18785_v40 = vld [vmem:[#allocation56_spill] sm:$0xff]  ;;  %v6892_v50 = vpop.f32.mrb[77].mxu1  ;;  %v6301_v12 = vadd.f32 %v13603_v55, %v13544_v58 }
 0x2f8   : > { %18780 = vst [vmem:[#allocation44_spill] sm:$0xff] %v14059_v29  ;;  %v4226_v41 = vsub.f32 %v18783_v44, %v14057_v24  ;;  %v3851_v5 = vadd.f32 %v13432_v22, %v18785_v40  ;;  %v18786_v49 = vld [vmem:[#allocation28_spill] sm:$0xff]  ;;  %v18787_v57 = vld [vmem:[#allocation55_spill] sm:$0xff]  ;;  %v6298_v44 = vadd.f32 %v13603_v55, %v13524_v54  ;;  %v14081_v24 = vpop.f32.mrb[78].mxu1 }
 0x2f9   : > { %vm3917_vm7 = vcmp.ge.f32.partialorder %v3853_v56, 1.0  ;;  %v4233_v62 = vsub.f32 %v18786_v49, %v14071_v51  ;;  %v3855_v46 = vadd.f32 %v13434_v17, %v18787_v57  ;;  %v14085_v29 = vmul.f32 0.5, %v4230_v23  ;;  %v6895_v22 = vpop.f32.mrb[79].mxu1  ;;  %v18789_v50 = vld [vmem:[#allocation35_spill] sm:$0xff]  ;;  %v18793_v23 = vld [vmem:[#allocation29_spill] sm:$0xff] }
 0x2fa   : > { %v14083_v33 = vmul.f32 0.5, %v4226_v41  ;;  %v14087_v39 = vsel %vm3917_vm7, 0.0, %v3853_v56  ;;  %vm9513_vm13 = vmpackc.low %vm3917_vm7, %vm3913_vm6  ;;  %vm3915_vm10 = vcmp.ge.f32.partialorder %v3851_v5, 1.0  ;;  %v6843_v41 = vadd.f32 %v13558_v31, %v6298_v44  ;;  %v18799_v44 = vld [vmem:[#allocation57_spill] sm:$0xff] }
 0x2fb   : > { %18788 = vst [vmem:[#allocation171_spill] sm:$0xff] %v14087_v39  ;;  %v4237_v40 = vsub.f32 %v18789_v50, %v14087_v39  ;;  %v14092_v49 = vmul.f32 0.5, %v4233_v62  ;;  %9514 = vmatprep.mubr.msk.bf16.mxu0 %vm9513_vm13, %v17855_v30  ;;  %vm3919_vm11 = vcmp.ge.f32.partialorder %v3855_v46, 1.0  ;;  %v14095_v17 = vsel %vm3915_vm10, 0.0, %v3851_v5  ;;  %v18795_v62 = vld [vmem:[#allocation36_spill] sm:$0xff]  ;;  %v18796_v5 = vld [vmem:[#allocation43_spill] sm:$0xff] }
 0x2fc   : > { %18791 = vst [vmem:[#allocation56_spill] sm:$0xff] %v14095_v17  ;;  %v14097_v54 = vsel %vm3919_vm11, 0.0, %v3855_v46  ;;  %v4235_v56 = vsub.f32 %v18793_v23, %v14095_v17  ;;  %vm9769_vm14 = vmpackc.low %vm3919_vm11, %vm3915_vm10  ;;  %v3848_v46 = vadd.f32 %v13440_v35, %v18796_v5  ;;  %v18797_v50 = vld [vmem:[#allocation159_spill] sm:$0xff]  ;;  %v18798_v39 = vld [vmem:[#allocation58_spill] sm:$0xff]  ;;  %v14113_v23 = vpop.f32.mrb[88].mxu0  ;;  %v7311_v58 = vmul.f32 0.5, %v6843_v41 }
 0x2fd   : > { %18790 = vst [vmem:[#allocation157_spill] sm:$0xff] %v14092_v49  ;;  %18792 = vst [vmem:[#allocation55_spill] sm:$0xff] %v14097_v54  ;;  %v14104_v57 = vmul.f32 0.5, %v4237_v40  ;;  %v4239_v22 = vsub.f32 %v18795_v62, %v14097_v54  ;;  %9770 = vmatprep.mubr.msk.bf16.mxu1 %vm9769_vm14, %v17855_v30  ;;  %v3852_v49 = vadd.f32 %v18798_v39, %v18797_v50  ;;  %v18801_v54 = vld [vmem:[#allocation160_spill] sm:$0xff]  ;;  %v18806_v41 = vld [vmem:[#allocation25_spill] sm:$0xff] }
 0x2fe   : > { %v14115_v17 = vmul.f32 0.5, %v4235_v56  ;;  %v6846_v31 = vadd.f32 %v13573_v37, %v6301_v12  ;;  %v3850_v40 = vadd.f32 %v13468_v8, %v18799_v44  ;;  %vm3912_vm0 = vcmp.ge.f32.partialorder %v3848_v46, 1.0 }
 0x2ff   : > { %18794 = vst [vmem:[#allocation198_spill] sm:$0xff] %v14104_v57  ;;  %v6355_v57 = vpop.f32.mrb[89].mxu0  ;;  %v14120_v62 = vmul.f32 0.5, %v4239_v22  ;;  %vm3916_vm4 = vcmp.ge.f32.partialorder %v3852_v49, 1.0  ;;  %v3854_v35 = vadd.f32 %v13470_v63, %v18801_v54  ;;  %vm7343_vm9 = vcmp.ge.f32.partialorder %v7311_v58, 1.0  ;;  %v18807_v63 = vld [vmem:[#allocation30_spill] sm:$0xff] }
 0x300   : > { %v14124_v5 = vpop.f32.mrb[90].mxu0  ;;  %v7312_v39 = vmul.f32 0.5, %v6846_v31  ;;  %v14126_v50 = vsel %vm3912_vm0, 0.0, %v3848_v46  ;;  %v14128_v56 = vsel %vm3916_vm4, 0.0, %v3852_v49  ;;  %vm9515_vm6 = vmpackc.low %vm3916_vm4, %vm3912_vm0  ;;  %v14131_v8 = vsel %vm7343_vm9, 1.0, %v18723_v11  ;;  %v14140_v22 = vpop.f32.mrb[80].mxu1 }
 0x301   : > { %18800 = vst [vmem:[#allocation43_spill] sm:$0xff] %v14120_v62  ;;  %18802 = vst [vmem:[#allocation159_spill] sm:$0xff] %v14126_v50  ;;  %v6358_v37 = vpop.f32.mrb[91].mxu0  ;;  %v14133_v12 = vsel %vm7343_vm9, 0.0, %v7311_v58  ;;  %v4232_v57 = vsub.f32 %v18806_v41, %v14126_v50  ;;  %v4236_v54 = vsub.f32 %v18807_v63, %v14128_v56  ;;  %9516 = vmatmul.mubr.msk.bf16.gmra.mrb[168].mxu0 %vm9515_vm6, %v17855_v30  ;;  %vm3914_vm13 = vcmp.ge.f32.partialorder %v3850_v40, 1.0  ;;  %v18808_v49 = vld [vmem:[#allocation38_spill] sm:$0xff] }
 0x302   : > { %18803 = vst [vmem:[#allocation58_spill] sm:$0xff] %v14128_v56  ;;  %18804 = vst [vmem:[#allocation57_spill] sm:$0xff] %v14131_v8  ;;  %vm7344_vm7 = vcmp.ge.f32.partialorder %v7312_v39, 1.0  ;;  %vm3918_vm10 = vcmp.ge.f32.partialorder %v3854_v35, 1.0  ;;  %v18809_v46 = vld [vmem:[#allocation37_spill] sm:$0xff]  ;;  %v6900_v44 = vpop.f32.mrb[81].mxu1 }
 0x303   : > { %18805 = vst [vmem:[#allocation160_spill] sm:$0xff] %v14133_v12  ;;  %v3857_v31 = vadd.f32 %v18809_v46, %v18808_v49  ;;  %v14145_v58 = vsel %vm7344_vm7, 1.0, %v18723_v11  ;;  %v14147_v37 = vsel %vm7344_vm7, 0.0, %v7312_v39  ;;  %v14149_v8 = vmul.f32 0.5, %v4232_v57  ;;  %vm9771_vm11 = vmpackc.low %vm3918_vm10, %vm3914_vm13  ;;  %v14153_v63 = vpop.f32.mrb[82].mxu1  ;;  %v18814_v49 = vld [vmem:[#allocation70_spill] sm:$0xff] }
 0x304   : > { %18810 = vst [vmem:[#allocation38_spill] sm:$0xff] %v14145_v58  ;;  %18811 = vst [vmem:[#allocation37_spill] sm:$0xff] %v14147_v37  ;;  %v14151_v41 = vmul.f32 0.5, %v4236_v54  ;;  %v14155_v12 = vsel %vm3914_vm13, 0.0, %v3850_v40  ;;  %v14157_v56 = vsel %vm3918_vm10, 0.0, %v3854_v35  ;;  %9772 = vmatmul.mubr.msk.bf16.gmra.mrb[160].mxu1 %vm9771_vm11, %v17855_v30  ;;  %v18815_v46 = vld [vmem:[#allocation61_spill] sm:$0xff] }
 0x305   : > { %18812 = vst [vmem:[#allocation199_spill] sm:$0xff] %v14149_v8  ;;  %v3861_v44 = vadd.f32 %v18815_v46, %v18814_v49  ;;  %vm3921_vm14 = vcmp.ge.f32.partialorder %v3857_v31, 1.0  ;;  %v6903_v58 = vpop.f32.mrb[83].mxu1  ;;  %v18816_v39 = vld [vmem:[#allocation26_spill] sm:$0xff]  ;;  %v18817_v54 = vld [vmem:[#allocation31_spill] sm:$0xff]  ;;  %v18818_v8 = vld [vmem:[#allocation68_spill] sm:$0xff] }
 0x306   : > { %18813 = vst [vmem:[#allocation200_spill] sm:$0xff] %v14151_v41  ;;  %v4234_v57 = vsub.f32 %v18816_v39, %v14155_v12  ;;  %v4238_v37 = vsub.f32 %v18817_v54, %v14157_v56  ;;  %v14166_v41 = vsel %vm3921_vm14, 0.0, %v3857_v31  ;;  %v3859_v40 = vadd.f32 %v13508_v36, %v18818_v8  ;;  %v18819_v35 = vld [vmem:[#allocation45_spill] sm:$0xff]  ;;  %v18820_v62 = vld [vmem:[#allocation67_spill] sm:$0xff]  ;;  %v14182_v31 = vpop.f32.mrb[92].mxu0 }
 0x307   : > { %vm3925_vm0 = vcmp.ge.f32.partialorder %v3861_v44, 1.0  ;;  %v4241_v50 = vsub.f32 %v18819_v35, %v14166_v41  ;;  %v3863_v49 = vadd.f32 %v13510_v32, %v18820_v62  ;;  %v6306_v58 = vadd.f32 %v13603_v55, %v13635_v3  ;;  %v18822_v36 = vld [vmem:[#allocation51_spill] sm:$0xff]  ;;  %v6363_v3 = vpop.f32.mrb[93].mxu0 }
 0x308   : > { %v14176_v46 = vmul.f32 0.5, %v4234_v57  ;;  %v14178_v39 = vmul.f32 0.5, %v4238_v37  ;;  %v14180_v54 = vsel %vm3925_vm0, 0.0, %v3861_v44  ;;  %vm9517_vm4 = vmpackc.low %vm3925_vm0, %vm3921_vm14  ;;  %vm3923_vm9 = vcmp.ge.f32.partialorder %v3859_v40, 1.0  ;;  %v18826_v37 = vld [vmem:[#allocation46_spill] sm:$0xff]  ;;  %v18830_v3 = vld [vmem:[#allocation73_spill] sm:$0xff] }
 0x309   : > { %18821 = vst [vmem:[#allocation70_spill] sm:$0xff] %v14180_v54  ;;  %v4245_v8 = vsub.f32 %v18822_v36, %v14180_v54  ;;  %v14186_v35 = vmul.f32 0.5, %v4241_v50  ;;  %9518 = vmatprep.mubr.msk.bf16.mxu0 %vm9517_vm4, %v17855_v30  ;;  %vm3927_vm6 = vcmp.ge.f32.partialorder %v3863_v49, 1.0  ;;  %v14189_v32 = vsel %vm3923_vm9, 0.0, %v3859_v40  ;;  %v14200_v50 = vpop.f32.mrb[94].mxu0  ;;  %v18829_v40 = vld [vmem:[#allocation52_spill] sm:$0xff] }
 0x30a   : > { %18824 = vst [vmem:[#allocation68_spill] sm:$0xff] %v14189_v32  ;;  %v14191_v62 = vsel %vm3927_vm6, 0.0, %v3863_v49  ;;  %v4243_v44 = vsub.f32 %v18826_v37, %v14189_v32  ;;  %vm9773_vm7 = vmpackc.low %vm3927_vm6, %vm3923_vm9  ;;  %v14196_v57 = vadd.f32 %v13662_v43, %v6306_v58  ;;  %v6309_v36 = vadd.f32 %v13603_v55, %v13652_v20  ;;  %v6366_v43 = vpop.f32.mrb[95].mxu0  ;;  %v18833_v32 = vld [vmem:[#allocation71_spill] sm:$0xff] }
 0x30b   : > { %18823 = vst [vmem:[#allocation61_spill] sm:$0xff] %v14186_v35  ;;  %18825 = vst [vmem:[#allocation67_spill] sm:$0xff] %v14191_v62  ;;  %v14202_v54 = vmul.f32 0.5, %v4245_v8  ;;  %v4247_v35 = vsub.f32 %v18829_v40, %v14191_v62  ;;  %9774 = vmatprep.mubr.msk.bf16.mxu1 %vm9773_vm7, %v17855_v30  ;;  %v3856_v49 = vadd.f32 %v13516_v2, %v13493_v47  ;;  %v14220_v62 = vpop.f32.mrb[84].mxu1  ;;  %v18834_v47 = vld [vmem:[#allocation76_spill] sm:$0xff]  ;;  %v18841_v43 = vld [vmem:[#allocation49_spill] sm:$0xff] }
 0x30c   : > { %18827 = vst [vmem:[#allocation201_spill] sm:$0xff] %v14196_v57  ;;  %v3860_v37 = vadd.f32 %v13518_v53, %v18830_v3  ;;  %v14211_v58 = vmul.f32 0.5, %v4243_v44  ;;  %v14214_v20 = vadd.f32 %v13672_v15, %v6309_v36  ;;  %v18832_v57 = vld [vmem:[#allocation64_spill] sm:$0xff]  ;;  %v3862_v40 = vadd.f32 %v13548_v1, %v18833_v32  ;;  %v6908_v2 = vpop.f32.mrb[85].mxu1  ;;  %v18836_v1 = vld [vmem:[#allocation41_spill] sm:$0xff] }
 0x30d   : > { %18828 = vst [vmem:[#allocation202_spill] sm:$0xff] %v14202_v54  ;;  %v3858_v8 = vadd.f32 %v13546_v42, %v18832_v57  ;;  %v14222_v54 = vmul.f32 0.5, %v4247_v35  ;;  %vm3920_vm13 = vcmp.ge.f32.partialorder %v3856_v49, 1.0  ;;  %v3865_v53 = vadd.f32 %v13554_v7, %v18834_v47  ;;  %v14230_v42 = vpop.f32.mrb[86].mxu1  ;;  %v18837_v35 = vld [vmem:[#allocation48_spill] sm:$0xff] }
 0x30e   : > { %18831 = vst [vmem:[#allocation73_spill] sm:$0xff] %v14214_v20  ;;  %vm3924_vm10 = vcmp.ge.f32.partialorder %v3860_v37, 1.0  ;;  %v14226_v44 = vsel %vm3920_vm13, 0.0, %v3856_v49  ;;  %vm3926_vm0 = vcmp.ge.f32.partialorder %v3862_v40, 1.0  ;;  %v18840_v49 = vld [vmem:[#allocation42_spill] sm:$0xff]  ;;  %v18842_v2 = vld [vmem:[#allocation172_spill] sm:$0xff] }
 0x30f   : > { %v14228_v15 = vsel %vm3924_vm10, 0.0, %v3860_v37  ;;  %vm9519_vm11 = vmpackc.low %vm3924_vm10, %vm3920_vm13  ;;  %vm3922_vm14 = vcmp.ge.f32.partialorder %v3858_v8, 1.0  ;;  %v4240_v36 = vsub.f32 %v18836_v1, %v14226_v44  ;;  %v14239_v7 = vsel %vm3926_vm0, 0.0, %v3862_v40  ;;  %v6911_v37 = vpop.f32.mrb[87].mxu1 }
 0x310   : > { %18835 = vst [vmem:[#allocation64_spill] sm:$0xff] %v14228_v15  ;;  %v4244_v32 = vsub.f32 %v18837_v35, %v14228_v15  ;;  %9520 = vmatmul.mubr.msk.bf16.gmra.mrb[172].mxu0 %vm9519_vm11, %v17855_v30  ;;  %v14237_v57 = vsel %vm3922_vm14, 0.0, %v3858_v8  ;;  %18839 = vst [vmem:[#allocation76_spill] sm:$0xff] %v14239_v7  ;;  %v4246_v47 = vsub.f32 %v18841_v43, %v14239_v7  ;;  %vm3929_vm9 = vcmp.ge.f32.partialorder %v3865_v53, 1.0  ;;  %v18848_v43 = vld [vmem:[#allocation62_spill] sm:$0xff] }
 0x311   : > { %18838 = vst [vmem:[#allocation71_spill] sm:$0xff] %v14237_v57  ;;  %vm9775_vm4 = vmpackc.low %vm3926_vm0, %vm3922_vm14  ;;  %v4242_v3 = vsub.f32 %v18840_v49, %v14237_v57  ;;  %v3869_v20 = vadd.f32 %v13556_v48, %v18842_v2  ;;  %v14248_v35 = vmul.f32 0.5, %v4240_v36  ;;  %v14252_v40 = vsel %vm3929_vm9, 0.0, %v3865_v53  ;;  %v14262_v57 = vpop.f32.mrb[96].mxu0  ;;  %v18850_v36 = vld [vmem:[#allocation80_spill] sm:$0xff] }
 0x312   : > { %9776 = vmatmul.mubr.msk.bf16.gmra.mrb[164].mxu1 %vm9775_vm4, %v17855_v30  ;;  %v14250_v8 = vmul.f32 0.5, %v4244_v32  ;;  %18845 = vst [vmem:[#allocation204_spill] sm:$0xff] %v14252_v40  ;;  %v3867_v37 = vadd.f32 %v13584_v34, %v13560_v52  ;;  %v14258_v49 = vmul.f32 0.5, %v4246_v47  ;;  %v4249_v7 = vsub.f32 %v18848_v43, %v14252_v40  ;;  %v6371_v34 = vpop.f32.mrb[97].mxu0  ;;  %v18851_v32 = vld [vmem:[#allocation69_spill] sm:$0xff] }
 0x313   : > { %18843 = vst [vmem:[#allocation172_spill] sm:$0xff] %v14248_v35  ;;  %v14256_v1 = vmul.f32 0.5, %v4242_v3  ;;  %vm3933_vm6 = vcmp.ge.f32.partialorder %v3869_v20, 1.0  ;;  %v3871_v53 = vadd.f32 %v13586_v10, %v18850_v36  ;;  %v6314_v52 = vadd.f32 %v13603_v55, %v13704_v9  ;;  %v14280_v43 = vpop.f32.mrb[98].mxu0  ;;  %v18854_v10 = vld [vmem:[#allocation63_spill] sm:$0xff]  ;;  %v18856_v34 = vld [vmem:[#allocation74_spill] sm:$0xff] }
 0x314   : > { %18844 = vst [vmem:[#allocation203_spill] sm:$0xff] %v14250_v8  ;;  %18847 = vst [vmem:[#allocation206_spill] sm:$0xff] %v14258_v49  ;;  %v14264_v48 = vsel %vm3933_vm6, 0.0, %v3869_v20  ;;  %vm3931_vm13 = vcmp.ge.f32.partialorder %v3867_v37, 1.0  ;;  %v14272_v47 = vmul.f32 0.5, %v4249_v7  ;;  %v6317_v20 = vadd.f32 %v13603_v55, %v13719_v25  ;;  %v18857_v7 = vld [vmem:[#allocation174_spill] sm:$0xff] }
 0x315   : > { %18846 = vst [vmem:[#allocation205_spill] sm:$0xff] %v14256_v1  ;;  %18849 = vst [vmem:[#allocation207_spill] sm:$0xff] %v14264_v48  ;;  %v4253_v3 = vsub.f32 %v18851_v32, %v14264_v48  ;;  %v14276_v2 = vsel %vm3931_vm13, 0.0, %v3867_v37  ;;  %vm3935_vm10 = vcmp.ge.f32.partialorder %v3871_v53, 1.0  ;;  %v14285_v36 = vadd.f32 %v13778_v28, %v6314_v52  ;;  %v6374_v48 = vpop.f32.mrb[99].mxu0  ;;  %v18861_v25 = vld [vmem:[#allocation173_spill] sm:$0xff] }
 0x316   : > { %vm9521_vm7 = vmpackc.low %vm3933_vm6, %vm3929_vm9  ;;  %18852 = vst [vmem:[#allocation80_spill] sm:$0xff] %v14272_v47  ;;  %v4251_v9 = vsub.f32 %v18854_v10, %v14276_v2  ;;  %v3864_v32 = vadd.f32 %v18857_v7, %v18856_v34  ;;  %v14291_v40 = vsel %vm3935_vm10, 0.0, %v3871_v53  ;;  %v14295_v55 = vadd.f32 %v13792_v21, %v6317_v20  ;;  %v18862_v49 = vld [vmem:[#allocation175_spill] sm:$0xff]  ;;  %v14299_v10 = vpop.f32.mrb[88].mxu1  ;;  %v18863_v28 = vld [vmem:[#allocation72_spill] sm:$0xff] }
 0x317   : > { %9522 = vmatprep.mubr.msk.bf16.mxu0 %vm9521_vm7, %v17855_v30  ;;  %18853 = vst [vmem:[#allocation208_spill] sm:$0xff] %v14276_v2  ;;  %18855 = vst [vmem:[#allocation209_spill] sm:$0xff] %v14285_v36  ;;  %v14289_v47 = vmul.f32 0.5, %v4253_v3  ;;  %v3868_v1 = vadd.f32 %v18862_v49, %v18861_v25  ;;  %v4255_v52 = vsub.f32 %v18863_v28, %v14291_v40  ;;  %v18865_v48 = vld [vmem:[#allocation176_spill] sm:$0xff]  ;;  %v18866_v53 = vld [vmem:[#allocation77_spill] sm:$0xff]  ;;  %v6916_v3 = vpop.f32.mrb[89].mxu1 }
 0x318   : > { %18859 = vst [vmem:[#allocation174_spill] sm:$0xff] %v14291_v40  ;;  %vm9777_vm11 = vmpackc.low %vm3935_vm10, %vm3931_vm13  ;;  %v14303_v36 = vmul.f32 0.5, %v4251_v9  ;;  %vm3928_vm14 = vcmp.ge.f32.partialorder %v3864_v32, 1.0  ;;  %v3866_v37 = vadd.f32 %v18866_v53, %v18865_v48  ;;  %v18868_v20 = vld [vmem:[#allocation177_spill] sm:$0xff]  ;;  %v18869_v34 = vld [vmem:[#allocation75_spill] sm:$0xff]  ;;  %v14314_v2 = vpop.f32.mrb[90].mxu1 }
 0x319   : > { %18858 = vst [vmem:[#allocation74_spill] sm:$0xff] %v14289_v47  ;;  %18860 = vst [vmem:[#allocation210_spill] sm:$0xff] %v14295_v55  ;;  %9778 = vmatprep.mubr.msk.bf16.mxu1 %vm9777_vm11, %v17855_v30  ;;  %vm3932_vm0 = vcmp.ge.f32.partialorder %v3868_v1, 1.0  ;;  %v14308_v21 = vsel %vm3928_vm14, 0.0, %v3864_v32  ;;  %v3870_v49 = vadd.f32 %v18869_v34, %v18868_v20  ;;  %v18870_v7 = vld [vmem:[#allocation178_spill] sm:$0xff]  ;;  %v18871_v25 = vld [vmem:[#allocation180_spill] sm:$0xff] }
 0x31a   : > { %18864 = vst [vmem:[#allocation173_spill] sm:$0xff] %v14303_v36  ;;  %18867 = vst [vmem:[#allocation175_spill] sm:$0xff] %v14308_v21  ;;  %v3873_v55 = vadd.f32 %v18871_v25, %v18870_v7  ;;  %v14316_v9 = vmul.f32 0.5, %v4255_v52  ;;  %v14318_v28 = vsel %vm3932_vm0, 0.0, %v3868_v1  ;;  %v18874_v40 = vld [vmem:[#allocation59_spill] sm:$0xff]  ;;  %vm3930_vm9 = vcmp.ge.f32.partialorder %v3866_v37, 1.0 }
 0x31b   : > { %18873 = vst [vmem:[#allocation77_spill] sm:$0xff] %v14318_v28  ;;  %v4248_v36 = vsub.f32 %v18874_v40, %v14308_v21  ;;  %vm9523_vm4 = vmpackc.low %vm3932_vm0, %vm3928_vm14  ;;  %v6919_v48 = vpop.f32.mrb[91].mxu1  ;;  %v18875_v32 = vld [vmem:[#allocation65_spill] sm:$0xff]  ;;  %vm3934_vm6 = vcmp.ge.f32.partialorder %v3870_v49, 1.0  ;;  %v14325_v3 = vsel %vm3930_vm9, 0.0, %v3866_v37  ;;  %v18877_v20 = vld [vmem:[#allocation179_spill] sm:$0xff] }
 0x31c   : > { %18872 = vst [vmem:[#allocation176_spill] sm:$0xff] %v14316_v9  ;;  %v4252_v53 = vsub.f32 %v18875_v32, %v14318_v28  ;;  %9524 = vmatmul.mubr.msk.bf16.gmra.mrb[176].mxu0 %vm9523_vm4, %v17855_v30  ;;  %18876 = vst [vmem:[#allocation177_spill] sm:$0xff] %v14325_v3  ;;  %v18878_v34 = vld [vmem:[#allocation181_spill] sm:$0xff]  ;;  %v14331_v1 = vsel %vm3934_vm6, 0.0, %v3870_v49  ;;  %v18881_v25 = vld [vmem:[#allocation60_spill] sm:$0xff]  ;;  %vm3937_vm13 = vcmp.ge.f32.partialorder %v3873_v55, 1.0 }
 0x31d   : > { %v3877_v52 = vadd.f32 %v18878_v34, %v18877_v20  ;;  %v14329_v7 = vmul.f32 0.5, %v4248_v36  ;;  %18880 = vst [vmem:[#allocation178_spill] sm:$0xff] %v14331_v1  ;;  %v4250_v40 = vsub.f32 %v18881_v25, %v14325_v3  ;;  %vm9779_vm7 = vmpackc.low %vm3934_vm6, %vm3930_vm9  ;;  %v18883_v32 = vld [vmem:[#allocation66_spill] sm:$0xff]  ;;  %v14340_v37 = vsel %vm3937_vm13, 0.0, %v3873_v55  ;;  %v14342_v20 = vpop.f32.mrb[100].mxu0  ;;  %v18888_v34 = vld [vmem:[#allocation83_spill] sm:$0xff] }
 0x31e   : > { %v14335_v48 = vmul.f32 0.5, %v4252_v53  ;;  %v4254_v28 = vsub.f32 %v18883_v32, %v14331_v1  ;;  %9780 = vmatmul.mubr.msk.bf16.gmra.mrb[168].mxu1 %vm9779_vm7, %v17855_v30  ;;  %18884 = vst [vmem:[#allocation179_spill] sm:$0xff] %v14340_v37  ;;  %18885 = vst [vmem:[#allocation181_spill] sm:$0xff] %v14342_v20  ;;  %v4257_v25 = vsub.f32 %v18888_v34, %v14340_v37  ;;  %v18889_v53 = vld [vmem:[#allocation182_spill] sm:$0xff]  ;;  %v18892_v1 = vld [vmem:[#allocation89_spill] sm:$0xff]  ;;  %v14378_v37 = vpop.f32.mrb[92].mxu1 }
 0x31f   : > { %18879 = vst [vmem:[#allocation75_spill] sm:$0xff] %v14329_v7  ;;  %vm3941_vm10 = vcmp.ge.f32.partialorder %v3877_v52, 1.0  ;;  %v14344_v36 = vmul.f32 0.5, %v4250_v40  ;;  %v18890_v3 = vld [vmem:[#allocation86_spill] sm:$0xff]  ;;  %v6379_v7 = vpop.f32.mrb[101].mxu0  ;;  %v18893_v21 = vld [vmem:[#allocation183_spill] sm:$0xff] }
 0x320   : > { %18882 = vst [vmem:[#allocation180_spill] sm:$0xff] %v14335_v48  ;;  %v14346_v49 = vsel %vm3941_vm10, 0.0, %v3877_v52  ;;  %vm9525_vm11 = vmpackc.low %vm3941_vm10, %vm3937_vm13  ;;  %v3875_v48 = vadd.f32 %v18890_v3, %v18889_v53  ;;  %v14352_v32 = vmul.f32 0.5, %v4254_v28  ;;  %v18894_v40 = vld [vmem:[#allocation91_spill] sm:$0xff]  ;;  %v14366_v3 = vpop.f32.mrb[102].mxu0  ;;  %v14368_v28 = vmul.f32 0.5, %v4257_v25 }
 0x321   : > { %18886 = vst [vmem:[#allocation211_spill] sm:$0xff] %v14344_v36  ;;  %18887 = vst [vmem:[#allocation212_spill] sm:$0xff] %v14346_v49  ;;  %v4261_v55 = vsub.f32 %v18892_v1, %v14346_v49  ;;  %9526 = vmatprep.mubr.msk.bf16.mxu0 %vm9525_vm11, %v17855_v30  ;;  %v3879_v36 = vadd.f32 %v18894_v40, %v18893_v21  ;;  %v14362_v52 = vld [vmem:[%s17269_s4] ss:$0 sm:$0xff]  ;;  %v18897_v7 = vld [vmem:[#allocation88_spill] sm:$0xff]  ;;  %v6382_v1 = vpop.f32.mrb[103].mxu0 }
 0x322   : > { %18891 = vst [vmem:[#allocation182_spill] sm:$0xff] %v14352_v32  ;;  %v6322_v34 = vadd.f32 %v14362_v52, %v13816_v4  ;;  %18895 = vst [vmem:[#allocation86_spill] sm:$0xff] %v14366_v3  ;;  %vm3939_vm14 = vcmp.ge.f32.partialorder %v3875_v48, 1.0  ;;  %vm7333_vm0 = vcmp.ge.f32.partialorder %v18897_v7, 1.0  ;;  %v6325_v53 = vadd.f32 %v14362_v52, %v13830_v0  ;;  %v18902_v25 = vld [vmem:[#allocation84_spill] sm:$0xff]  ;;  %v6924_v1 = vpop.f32.mrb[93].mxu1 }
 0x323   : > { %18896 = vst [vmem:[#allocation183_spill] sm:$0xff] %v14368_v28  ;;  %v14373_v21 = vmul.f32 0.5, %v4261_v55  ;;  %vm3943_vm4 = vcmp.ge.f32.partialorder %v3879_v36, 1.0  ;;  %v14375_v40 = vsel %vm3939_vm14, 0.0, %v3875_v48  ;;  %18900 = vst [vmem:[#allocation213_spill] sm:$0xff] %v14378_v37  ;;  %v14385_v32 = vsel %vm7333_vm0, 1.0, %v18723_v11 }
 0x324   : > { %18899 = vst [vmem:[#allocation88_spill] sm:$0xff] %v14375_v40  ;;  %v6867_v49 = vadd.f32 %v13867_v61, %v6322_v34  ;;  %v14380_v4 = vsel %vm3943_vm4, 0.0, %v3879_v36  ;;  %v4259_v28 = vsub.f32 %v18902_v25, %v14375_v40  ;;  %vm9781_vm9 = vmpackc.low %vm3943_vm4, %vm3939_vm14  ;;  %v7397_v0 = vsel %vm7333_vm0, 0.0, %v18897_v7  ;;  %v18904_v55 = vld [vmem:[#allocation90_spill] sm:$0xff]  ;;  %v18905_v36 = vld [vmem:[#allocation81_spill] sm:$0xff] }
 0x325   : > { %18898 = vst [vmem:[#allocation91_spill] sm:$0xff] %v14373_v21  ;;  %18901 = vst [vmem:[#allocation214_spill] sm:$0xff] %v14380_v4  ;;  %v4263_v48 = vsub.f32 %v18904_v55, %v14380_v4  ;;  %9782 = vmatprep.mubr.msk.bf16.mxu1 %vm9781_vm9, %v17855_v30  ;;  %v6870_v34 = vadd.f32 %v13885_v14, %v6325_v53  ;;  %vm7334_vm6 = vcmp.ge.f32.partialorder %v18905_v36, 1.0  ;;  %v14393_v21 = vpop.f32.mrb[94].mxu1  ;;  %v18909_v1 = vld [vmem:[#allocation92_spill] sm:$0xff]  ;;  %v18915_v9 = vld [vmem:[#allocation186_spill] sm:$0xff] }
 0x326   : > { %18903 = vst [vmem:[#allocation215_spill] sm:$0xff] %v14385_v32  ;;  %v7413_v61 = vsub.f32 %v6867_v49, %v7397_v0  ;;  %18906 = vst [vmem:[#allocation81_spill] sm:$0xff] %v14393_v21  ;;  %v14395_v25 = vmul.f32 0.5, %v4259_v28  ;;  %v14398_v40 = vsel %vm7334_vm6, 1.0, %v18723_v11  ;;  %v7398_v7 = vsel %vm7334_vm6, 0.0, %v18905_v36  ;;  %v18910_v32 = vld [vmem:[#allocation82_spill] sm:$0xff] }
 0x327   : > { %18908 = vst [vmem:[#allocation217_spill] sm:$0xff] %v14398_v40  ;;  %v3872_v37 = vadd.f32 %v18910_v32, %v18909_v1  ;;  %v6927_v55 = vpop.f32.mrb[95].mxu1  ;;  %v14403_v4 = vmul.f32 0.5, %v4263_v48  ;;  %v7414_v3 = vsub.f32 %v6870_v34, %v7398_v7  ;;  %v18911_v14 = vld [vmem:[#allocation184_spill] sm:$0xff]  ;;  %v18913_v21 = vld [vmem:[#allocation185_spill] sm:$0xff]  ;;  %v18914_v28 = vld [vmem:[#allocation95_spill] sm:$0xff] }
 0x328   : > { %18907 = vst [vmem:[#allocation216_spill] sm:$0xff] %v14395_v25  ;;  %v7429_v49 = vmul.f32 0.5, %v7413_v61  ;;  %v18912_v53 = vld [vmem:[#allocation96_spill] sm:$0xff]  ;;  %v3874_v25 = vadd.f32 %v18914_v28, %v18913_v21  ;;  %v18916_v47 = vld [vmem:[#allocation93_spill] sm:$0xff]  ;;  %v18917_v8 = vld [vmem:[#allocation98_spill] sm:$0xff]  ;;  %v14417_v48 = vpop.f32.mrb[104].mxu0 }
 0x329   : > { %v3876_v20 = vadd.f32 %v18912_v53, %v18911_v14  ;;  %vm3936_vm7 = vcmp.ge.f32.partialorder %v3872_v37, 1.0  ;;  %v3878_v40 = vadd.f32 %v18916_v47, %v18915_v9  ;;  %v18918_v36 = vld [vmem:[#allocation129_spill] sm:$0xff]  ;;  %v7430_v32 = vmul.f32 0.5, %v7414_v3  ;;  %v18921_v34 = vld [vmem:[#allocation78_spill] sm:$0xff]  ;;  %v6387_v47 = vpop.f32.mrb[105].mxu0 }
 0x32a   : > { %v3881_v15 = vadd.f32 %v18918_v36, %v18917_v8  ;;  %v14413_v35 = vadd.f32 %v7429_v49, %v7397_v0  ;;  %v14415_v55 = vsel %vm3936_vm7, 0.0, %v3872_v37  ;;  %vm3938_vm11 = vcmp.ge.f32.partialorder %v3874_v25, 1.0  ;;  %v18923_v8 = vld [vmem:[#allocation85_spill] sm:$0xff]  ;;  %v18928_v49 = vld [vmem:[#allocation79_spill] sm:$0xff]  ;;  %v18930_v28 = vld [vmem:[#allocation102_spill] sm:$0xff] }
 0x32b   : > { %vm3940_vm13 = vcmp.ge.f32.partialorder %v3876_v20, 1.0  ;;  %18919 = vst [vmem:[#allocation92_spill] sm:$0xff] %v14415_v55  ;;  %v4256_v1 = vsub.f32 %v18921_v34, %v14415_v55  ;;  %vm3942_vm14 = vcmp.ge.f32.partialorder %v3878_v40, 1.0  ;;  %v14423_v9 = vadd.f32 %v7430_v32, %v7398_v7  ;;  %v18929_v7 = vld [vmem:[#allocation87_spill] sm:$0xff]  ;;  %v18966_v55 = vld [vmem:[#allocation130_spill] sm:$0xff] }
 0x32c   : > { %v14419_v61 = vsel %vm3940_vm13, 0.0, %v3876_v20  ;;  %vm9527_vm10 = vmpackc.low %vm3940_vm13, %vm3936_vm7  ;;  %v14428_v37 = vsel %vm3938_vm11, 0.0, %v3874_v25  ;;  %v14430_v3 = vsel %vm3942_vm14, 0.0, %v3878_v40  ;;  %v14432_v20 = vpop.f32.mrb[106].mxu0  ;;  %v18931_v36 = vld [vmem:[#allocation163_spill] sm:$0xff]  ;;  %vm3945_vm4 = vcmp.ge.f32.partialorder %v3881_v15, 1.0 }
 0x32d   : > { %18920 = vst [vmem:[#allocation82_spill] sm:$0xff] %v14419_v61  ;;  %18922 = vst [vmem:[#allocation184_spill] sm:$0xff] %v14423_v9  ;;  %v4260_v21 = vsub.f32 %v18923_v8, %v14419_v61  ;;  %9528 = vmatmul.mubr.msk.bf16.gmra.mrb[180].mxu0 %vm9527_vm10, %v17855_v30  ;;  %v14434_v0 = vmul.f32 0.5, %v4256_v1  ;;  %v4258_v14 = vsub.f32 %v18928_v49, %v14428_v37  ;;  %v6390_v25 = vpop.f32.mrb[107].mxu0  ;;  %v18933_v40 = vld [vmem:[#allocation94_spill] sm:$0xff]  ;;  %v18934_v8 = vld [vmem:[#allocation99_spill] sm:$0xff] }
 0x32e   : > { %18924 = vst [vmem:[#allocation96_spill] sm:$0xff] %v14428_v37  ;;  %18925 = vst [vmem:[#allocation185_spill] sm:$0xff] %v14430_v3  ;;  %v4262_v53 = vsub.f32 %v18929_v7, %v14430_v3  ;;  %v3885_v32 = vadd.f32 %v18931_v36, %v18930_v28  ;;  %v3883_v34 = vadd.f32 %v18934_v8, %v18933_v40  ;;  %v18935_v1 = vld [vmem:[#allocation100_spill] sm:$0xff]  ;;  %v18936_v61 = vld [vmem:[#allocation107_spill] sm:$0xff]  ;;  %v14455_v3 = vpop.f32.mrb[96].mxu1  ;;  %v14461_v36 = vsel %vm3945_vm4, 0.0, %v3881_v15 }
 0x32f   : > { %vm9783_vm0 = vmpackc.low %vm3942_vm14, %vm3938_vm11  ;;  %18926 = vst [vmem:[#allocation95_spill] sm:$0xff] %v14432_v20  ;;  %v14443_v47 = vmul.f32 0.5, %v4260_v21  ;;  %v8289_v49 = vld [vmem:[%s17270_s5] sm:$0xff]  ;;  %v8290_v7 = vld [vmem:[%s17270_s5 + $0x8] sm:$0xff]  ;;  %v14457_v28 = vmul.f32 0.5, %v4258_v14  ;;  %v6932_v8 = vpop.f32.mrb[97].mxu1 }
 0x330   : > { %18927 = vst [vmem:[#allocation186_spill] sm:$0xff] %v14434_v0  ;;  %9784 = vmatmul.mubr.msk.bf16.gmra.mrb[172].mxu1 %vm9783_vm0, %v17855_v30  ;;  %v3887_v0 = vadd.f32 %v18936_v61, %v18935_v1  ;;  %v14459_v21 = vmul.f32 0.5, %v4262_v53  ;;  %vm3949_vm9 = vcmp.ge.f32.partialorder %v3885_v32, 1.0  ;;  %18939 = vst [vmem:[#allocation102_spill] sm:$0xff] %v14461_v36  ;;  %v18941_v61 = vld [vmem:[#allocation105_spill] sm:$0xff]  ;;  %vm3947_vm7 = vcmp.ge.f32.partialorder %v3883_v34, 1.0 }
 0x331   : > { %18932 = vst [vmem:[#allocation93_spill] sm:$0xff] %v14443_v47  ;;  %18937 = vst [vmem:[#allocation98_spill] sm:$0xff] %v14457_v28  ;;  %v14463_v25 = vsel %vm3949_vm9, 0.0, %v3885_v32  ;;  %v4265_v40 = vsub.f32 %v18941_v61, %v14461_v36  ;;  %v14467_v1 = vpop.f32.mrb[98].mxu1  ;;  %v18943_v37 = vld [vmem:[#allocation112_spill] sm:$0xff]  ;;  %v14472_v53 = vsel %vm3947_vm7, 0.0, %v3883_v34  ;;  %v9977_v32 = vpack.c.bf16 %v8290_v7, %v8289_v49 }
 0x332   : > { %18938 = vst [vmem:[#allocation129_spill] sm:$0xff] %v14459_v21  ;;  %18940 = vst [vmem:[#allocation163_spill] sm:$0xff] %v14463_v25  ;;  %vm3951_vm13 = vcmp.ge.f32.partialorder %v3887_v0, 1.0  ;;  %v4269_v14 = vsub.f32 %v18943_v37, %v14463_v25  ;;  %v6935_v8 = vpop.f32.mrb[99].mxu1  ;;  %v18947_v61 = vld [vmem:[#allocation106_spill] sm:$0xff]  ;;  %v18948_v28 = vld [vmem:[#allocation113_spill] sm:$0xff]  ;;  %v6330_v37 = vadd.f32 %v14362_v52, %v13901_v16  ;;  %v6333_v49 = vadd.f32 %v14362_v52, %v13919_v26 }
 0x333   : > { %vm9529_vm6 = vmpackc.low %vm3949_vm9, %vm3945_vm4  ;;  %18942 = vst [vmem:[#allocation94_spill] sm:$0xff] %v14467_v1  ;;  %v14474_v15 = vsel %vm3951_vm13, 0.0, %v3887_v0  ;;  %v14476_v21 = vmul.f32 0.5, %v4265_v40  ;;  %v4267_v36 = vsub.f32 %v18947_v61, %v14472_v53  ;;  %9978 = vmatprep.subr.bf16.mxu1 %v9977_v32  ;;  %v18950_v0 = vld [vmem:[#allocation97_spill] sm:$0xff]  ;;  %v18951_v7 = vld [vmem:[#allocation103_spill] sm:$0xff]  ;;  %v14499_v16 = vpop.f32.mrb[108].mxu0 }
 0x334   : > { %9530 = vmatprep.mubr.msk.bf16.mxu0 %vm9529_vm6, %v17855_v30  ;;  %18944 = vst [vmem:[#allocation99_spill] sm:$0xff] %v14472_v53  ;;  %18945 = vst [vmem:[#allocation100_spill] sm:$0xff] %v14474_v15  ;;  %v4271_v1 = vsub.f32 %v18948_v28, %v14474_v15  ;;  %v14485_v34 = vmul.f32 0.5, %v4269_v14  ;;  %vm7335_vm11 = vcmp.ge.f32.partialorder %v18950_v0, 1.0  ;;  %vm7336_vm14 = vcmp.ge.f32.partialorder %v18951_v7, 1.0  ;;  %9980 = vmatpush3.bf16.msra.mxu1 %v9977_v32  ;;  %v18958_v53 = vld [vmem:[#allocation108_spill] sm:$0xff] }
 0x335   : > { %vm9785_vm10 = vmpackc.low %vm3951_vm13, %vm3947_vm7  ;;  %18946 = vst [vmem:[#allocation107_spill] sm:$0xff] %v14476_v21  ;;  %v14491_v40 = vmul.f32 0.5, %v4267_v36  ;;  %v6875_v28 = vadd.f32 %v13930_v6, %v6330_v37  ;;  %v14497_v61 = vsel %vm7335_vm11, 1.0, %v18723_v11  ;;  %v7399_v14 = vsel %vm7335_vm11, 0.0, %v18950_v0  ;;  %v18959_v37 = vld [vmem:[#allocation138_spill] sm:$0xff]  ;;  %v18961_v32 = vld [vmem:[#allocation111_spill] sm:$0xff] }
 0x336   : > { %9786 = vmatprep.mubr.msk.bf16.mxu1 %vm9785_vm10, %v17855_v30  ;;  %18949 = vst [vmem:[#allocation218_spill] sm:$0xff] %v14485_v34  ;;  %v14493_v8 = vmul.f32 0.5, %v4271_v1  ;;  %18954 = vst [vmem:[#allocation219_spill] sm:$0xff] %v14497_v61  ;;  %v6878_v15 = vadd.f32 %v13946_v27, %v6333_v49  ;;  %v14504_v26 = vsel %vm7336_vm14, 1.0, %v18723_v11  ;;  %v7400_v36 = vsel %vm7336_vm14, 0.0, %v18951_v7  ;;  %v18960_v34 = vld [vmem:[#allocation117_spill] sm:$0xff] }
 0x337   : > { %18952 = vst [vmem:[#allocation97_spill] sm:$0xff] %v14491_v40  ;;  %18955 = vst [vmem:[#allocation220_spill] sm:$0xff] %v14499_v16  ;;  %v6395_v40 = vpop.f32.mrb[109].mxu0  ;;  %v7415_v1 = vsub.f32 %v6875_v28, %v7399_v14  ;;  %v3884_v61 = vadd.f32 %v18960_v34, %v18959_v37  ;;  %v18962_v25 = vld [vmem:[#allocation114_spill] sm:$0xff]  ;;  %v18963_v27 = vld [vmem:[#allocation116_spill] sm:$0xff]  ;;  %v14521_v34 = vpop.f32.mrb[100].mxu1 }
 0x338   : > { %18953 = vst [vmem:[#allocation103_spill] sm:$0xff] %v14493_v8  ;;  %18956 = vst [vmem:[#allocation221_spill] sm:$0xff] %v14504_v26  ;;  %v18957_v8 = vld [vmem:[#allocation132_spill] sm:$0xff]  ;;  %v3882_v16 = vadd.f32 %v18962_v25, %v18961_v32  ;;  %v14513_v21 = vpop.f32.mrb[110].mxu0  ;;  %v7416_v0 = vsub.f32 %v6878_v15, %v7400_v36  ;;  %v18964_v49 = vld [vmem:[#allocation127_spill] sm:$0xff]  ;;  %v6940_v37 = vpop.f32.mrb[101].mxu1 }
 0x339   : > { %v3880_v6 = vadd.f32 %v18958_v53, %v18957_v8  ;;  %v3886_v47 = vadd.f32 %v18964_v49, %v18963_v27  ;;  %v18965_v26 = vld [vmem:[#allocation115_spill] sm:$0xff]  ;;  %v18967_v40 = vld [vmem:[#allocation126_spill] sm:$0xff]  ;;  %v6398_v20 = vpop.f32.mrb[111].mxu0  ;;  %v7431_v53 = vmul.f32 0.5, %v7415_v1  ;;  %vm3948_vm4 = vcmp.ge.f32.partialorder %v3884_v61, 1.0 }
 0x33a   : > { %v3889_v7 = vadd.f32 %v18966_v55, %v18965_v26  ;;  %v18968_v28 = vld [vmem:[#allocation131_spill] sm:$0xff]  ;;  %vm3946_vm9 = vcmp.ge.f32.partialorder %v3882_v16, 1.0  ;;  %v7432_v25 = vmul.f32 0.5, %v7416_v0  ;;  %v14525_v15 = vsel %vm3948_vm4, 0.0, %v3884_v61  ;;  %v18970_v55 = vld [vmem:[#allocation101_spill] sm:$0xff] }
 0x33b   : > { %v3893_v9 = vadd.f32 %v18968_v28, %v18967_v40  ;;  %vm3944_vm0 = vcmp.ge.f32.partialorder %v3880_v6, 1.0  ;;  %18969 = vst [vmem:[#allocation132_spill] sm:$0xff] %v14525_v15  ;;  %vm3950_vm7 = vcmp.ge.f32.partialorder %v3886_v47, 1.0  ;;  %v14527_v32 = vadd.f32 %v7431_v53, %v7399_v14  ;;  %v18971_v20 = vld [vmem:[#allocation109_spill] sm:$0xff]  ;;  %v18974_v14 = vld [vmem:[#allocation104_spill] sm:$0xff] }
 0x33c   : > { %v14523_v8 = vsel %vm3944_vm0, 0.0, %v3880_v6  ;;  %vm9531_vm6 = vmpackc.low %vm3948_vm4, %vm3944_vm0  ;;  %v4268_v1 = vsub.f32 %v18971_v20, %v14525_v15  ;;  %v14534_v27 = vsel %vm3946_vm9, 0.0, %v3882_v16  ;;  %v14536_v6 = vpop.f32.mrb[102].mxu1  ;;  %v14538_v61 = vadd.f32 %v7432_v25, %v7400_v36  ;;  %v18977_v16 = vld [vmem:[#allocation110_spill] sm:$0xff]  ;;  %v18981_v25 = vld [vmem:[#allocation128_spill] sm:$0xff] }
 0x33d   : > { %v4264_v26 = vsub.f32 %v18970_v55, %v14523_v8  ;;  %9532 = vmatmul.mubr.msk.bf16.gmra.mrb[184].mxu0 %vm9531_vm6, %v17855_v30  ;;  %18972 = vst [vmem:[#allocation108_spill] sm:$0xff] %v14534_v27  ;;  %vm9787_vm13 = vmpackc.low %vm3950_vm7, %vm3946_vm9  ;;  %v14540_v0 = vsel %vm3950_vm7, 0.0, %v3886_v47  ;;  %v4266_v49 = vsub.f32 %v18974_v14, %v14534_v27  ;;  %vm3953_vm10 = vcmp.ge.f32.partialorder %v3889_v7, 1.0  ;;  %v6943_v40 = vpop.f32.mrb[103].mxu1  ;;  %v18998_v15 = vld [vmem:[#allocation196_spill] sm:$0xff] }
 0x33e   : > { %18973 = vst [vmem:[#allocation138_spill] sm:$0xff] %v14540_v0  ;;  %9788 = vmatmul.mubr.msk.bf16.gmra.mrb[176].mxu1 %vm9787_vm13, %v17855_v30  ;;  %v14547_v53 = vmul.f32 0.5, %v4268_v1  ;;  %v4270_v37 = vsub.f32 %v18977_v16, %v14540_v0  ;;  %vm3957_vm11 = vcmp.ge.f32.partialorder %v3893_v9, 1.0  ;;  %v14553_v36 = vsel %vm3953_vm10, 0.0, %v3889_v7  ;;  %v18984_v40 = vld [vmem:[#allocation124_spill] sm:$0xff]  ;;  %v18986_v16 = vld [vmem:[#allocation23_spill] sm:$0xff] }
 0x33f   : > { %v14545_v28 = vmul.f32 0.5, %v4264_v26  ;;  %v14551_v20 = vmul.f32 0.5, %v4266_v49  ;;  %18979 = vst [vmem:[#allocation116_spill] sm:$0xff] %v14553_v36  ;;  %v14555_v47 = vsel %vm3957_vm11, 0.0, %v3893_v9  ;;  %vm9533_vm14 = vmpackc.low %vm3957_vm11, %vm3953_vm10  ;;  %v3891_v14 = vadd.f32 %v13822_v59, %v18981_v25  ;;  %v18983_v26 = vld [vmem:[#allocation120_spill] sm:$0xff]  ;;  %v18985_v49 = vld [vmem:[#allocation137_spill] sm:$0xff] }
 0x340   : > { %18976 = vst [vmem:[#allocation111_spill] sm:$0xff] %v14547_v53  ;;  %18980 = vst [vmem:[#allocation127_spill] sm:$0xff] %v14555_v47  ;;  %v14559_v55 = vmul.f32 0.5, %v4270_v37  ;;  %v4273_v1 = vsub.f32 %v18983_v26, %v14553_v36  ;;  %v4277_v27 = vsub.f32 %v18984_v40, %v14555_v47  ;;  %9534 = vmatprep.mubr.msk.bf16.mxu0 %vm9533_vm14, %v17855_v30  ;;  %v14568_v0 = vpop.f32.mrb[112].mxu0  ;;  %v18988_v9 = vld [vmem:[#allocation166_spill] sm:$0xff]  ;;  %v18989_v37 = vld [vmem:[#allocation161_spill] sm:$0xff] }
 0x341   : > { %18975 = vst [vmem:[#allocation117_spill] sm:$0xff] %v14545_v28  ;;  %18978 = vst [vmem:[#allocation114_spill] sm:$0xff] %v14551_v20  ;;  %v3895_v7 = vadd.f32 %v18986_v16, %v18985_v49  ;;  %vm3955_vm0 = vcmp.ge.f32.partialorder %v3891_v14, 1.0  ;;  %v6338_v20 = vadd.f32 %v14362_v52, %v18988_v9  ;;  %v6341_v59 = vadd.f32 %v14362_v52, %v13983_v60  ;;  %v18990_v25 = vld [vmem:[#allocation136_spill] sm:$0xff]  ;;  %v6403_v36 = vpop.f32.mrb[113].mxu0  ;;  %v18996_v9 = vld [vmem:[#allocation121_spill] sm:$0xff] }
 0x342   : > { %18982 = vst [vmem:[#allocation115_spill] sm:$0xff] %v14559_v55  ;;  %18987 = vst [vmem:[#allocation130_spill] sm:$0xff] %v14568_v0  ;;  %v3888_v26 = vadd.f32 %v18990_v25, %v18989_v37  ;;  %v14576_v55 = vmul.f32 0.5, %v4273_v1  ;;  %v14578_v40 = vmul.f32 0.5, %v4277_v27  ;;  %v14580_v47 = vsel %vm3955_vm0, 0.0, %v3891_v14  ;;  %v14582_v16 = vpop.f32.mrb[114].mxu0 }
 0x343   : > { %vm3959_vm4 = vcmp.ge.f32.partialorder %v3895_v7, 1.0  ;;  %18993 = vst [vmem:[#allocation128_spill] sm:$0xff] %v14580_v47  ;;  %18994 = vst [vmem:[#allocation137_spill] sm:$0xff] %v14582_v16  ;;  %v4275_v0 = vsub.f32 %v18996_v9, %v14580_v47  ;;  %v18997_v60 = vld [vmem:[#allocation39_spill] sm:$0xff]  ;;  %v6886_v37 = vadd.f32 %v18998_v15, %v6341_v59  ;;  %v6406_v36 = vpop.f32.mrb[115].mxu0  ;;  %v18999_v1 = vld [vmem:[#allocation125_spill] sm:$0xff] }
 0x344   : > { %18991 = vst [vmem:[#allocation126_spill] sm:$0xff] %v14576_v55  ;;  %18992 = vst [vmem:[#allocation131_spill] sm:$0xff] %v14578_v40  ;;  %v14584_v49 = vsel %vm3959_vm4, 0.0, %v3895_v7  ;;  %v6883_v53 = vadd.f32 %v18997_v60, %v6338_v20  ;;  %v19000_v14 = vld [vmem:[#allocation134_spill] sm:$0xff]  ;;  %v19001_v25 = vld [vmem:[#allocation140_spill] sm:$0xff]  ;;  %vm3952_vm6 = vcmp.ge.f32.partialorder %v3888_v26, 1.0 }
 0x345   : > { %18995 = vst [vmem:[#allocation23_spill] sm:$0xff] %v14584_v49  ;;  %vm9789_vm9 = vmpackc.low %vm3959_vm4, %vm3955_vm0  ;;  %v4279_v27 = vsub.f32 %v18999_v1, %v14584_v49  ;;  %v3892_v40 = vadd.f32 %v19001_v25, %v19000_v14  ;;  %v19002_v7 = vld [vmem:[#allocation34_spill] sm:$0xff]  ;;  %v14597_v28 = vpop.f32.mrb[104].mxu1  ;;  %v14599_v9 = vmul.f32 0.5, %v4275_v0  ;;  %v19006_v20 = vld [vmem:[#allocation135_spill] sm:$0xff]  ;;  %v14604_v36 = vsel %vm3952_vm6, 0.0, %v3888_v26 }
 0x346   : > { %9790 = vmatprep.mubr.msk.bf16.mxu1 %vm9789_vm9, %v17855_v30  ;;  %v19003_v16 = vld [vmem:[#allocation146_spill] sm:$0xff]  ;;  %19004 = vst [vmem:[#allocation166_spill] sm:$0xff] %v14597_v28  ;;  %v7417_v60 = vsub.f32 %v6883_v53, %v19006_v20  ;;  %v19007_v15 = vld [vmem:[#allocation139_spill] sm:$0xff]  ;;  %19008 = vst [vmem:[#allocation136_spill] sm:$0xff] %v14604_v36  ;;  %v6948_v1 = vpop.f32.mrb[105].mxu1 }
 0x347   : > { %v3890_v55 = vadd.f32 %v19003_v16, %v19002_v7  ;;  %19005 = vst [vmem:[#allocation161_spill] sm:$0xff] %v14599_v9  ;;  %v7418_v59 = vsub.f32 %v6886_v37, %v19007_v15  ;;  %v14606_v49 = vmul.f32 0.5, %v4279_v27  ;;  %vm3956_vm7 = vcmp.ge.f32.partialorder %v3892_v40, 1.0  ;;  %v19010_v14 = vld [vmem:[#allocation118_spill] sm:$0xff]  ;;  %v19011_v47 = vld [vmem:[#allocation164_spill] sm:$0xff]  ;;  %v14612_v28 = vpop.f32.mrb[106].mxu1 }
 0x348   : > { %v4272_v25 = vsub.f32 %v19010_v14, %v14604_v36  ;;  %v19012_v16 = vld [vmem:[#allocation142_spill] sm:$0xff]  ;;  %19013 = vst [vmem:[#allocation196_spill] sm:$0xff] %v14612_v28  ;;  %v7433_v0 = vmul.f32 0.5, %v7417_v60  ;;  %v14614_v53 = vsel %vm3956_vm7, 0.0, %v3892_v40  ;;  %vm9535_vm13 = vmpackc.low %vm3956_vm7, %vm3952_vm6  ;;  %v6951_v37 = vpop.f32.mrb[107].mxu1  ;;  %v19019_v60 = vld [vmem:[#allocation119_spill] sm:$0xff] }
 0x349   : > { %19009 = vst [vmem:[#allocation39_spill] sm:$0xff] %v14606_v49  ;;  %v3894_v7 = vadd.f32 %v19012_v16, %v19011_v47  ;;  %v7434_v9 = vmul.f32 0.5, %v7418_v59  ;;  %19014 = vst [vmem:[#allocation134_spill] sm:$0xff] %v14614_v53  ;;  %vm3954_vm10 = vcmp.ge.f32.partialorder %v3890_v55, 1.0  ;;  %v19015_v1 = vld [vmem:[#allocation122_spill] sm:$0xff]  ;;  %9536 = vmatmul.mubr.msk.bf16.gmra.mrb[188].mxu0 %vm9535_vm13, %v17855_v30 }
 0x34a   : > { %v4276_v27 = vsub.f32 %v19015_v1, %v14614_v53  ;;  %v14619_v49 = vmul.f32 0.5, %v4272_v25  ;;  %v14622_v14 = vsel %vm3954_vm10, 0.0, %v3890_v55  ;;  %v14625_v47 = vadd.f32 %v7433_v0, %v19006_v20  ;;  %v19021_v25 = vld [vmem:[#allocation123_spill] sm:$0xff]  ;;  %v19022_v55 = vld [vmem:[#allocation165_spill] sm:$0xff]  ;;  %v19025_v53 = vld [vmem:[#allocation188_spill] sm:$0xff] }
 0x34b   : > { %vm3958_vm11 = vcmp.ge.f32.partialorder %v3894_v7, 1.0  ;;  %19017 = vst [vmem:[#allocation34_spill] sm:$0xff] %v14622_v14  ;;  %v14628_v40 = vadd.f32 %v7434_v9, %v19007_v15  ;;  %v4274_v59 = vsub.f32 %v19019_v60, %v14622_v14  ;;  %v19023_v1 = vld [vmem:[#allocation143_spill] sm:$0xff]  ;;  %v14643_v15 = vpop.f32.mrb[116].mxu0  ;;  %v19028_v60 = vld [vmem:[#allocation141_spill] sm:$0xff] }
 0x34c   : > { %19016 = vst [vmem:[#allocation140_spill] sm:$0xff] %v14619_v49  ;;  %v14630_v26 = vsel %vm3958_vm11, 0.0, %v3894_v7  ;;  %vm9791_vm14 = vmpackc.low %vm3958_vm11, %vm3954_vm10  ;;  %v14634_v16 = vmul.f32 0.5, %v4276_v27  ;;  %v4345_v20 = vadd.f32 %v19023_v1, %v19022_v55  ;;  %v19024_v0 = vld [vmem:[#allocation147_spill] sm:$0xff]  ;;  %v19027_v49 = vld [vmem:[#allocation144_spill] sm:$0xff] }
 0x34d   : > { %19018 = vst [vmem:[#allocation146_spill] sm:$0xff] %v14630_v26  ;;  %v4278_v37 = vsub.f32 %v19021_v25, %v14630_v26  ;;  %9792 = vmatmul.mubr.msk.bf16.gmra.mrb[180].mxu1 %vm9791_vm14, %v17855_v30  ;;  %v4349_v9 = vadd.f32 %v19025_v53, %v19024_v0  ;;  %19026 = vst [vmem:[#allocation139_spill] sm:$0xff] %v14643_v15  ;;  %v14645_v7 = vmul.f32 0.5, %v4274_v59  ;;  %v19029_v27 = vld [vmem:[#allocation187_spill] sm:$0xff]  ;;  %v6411_v26 = vpop.f32.mrb[117].mxu0  ;;  %v19040_v0 = vld [vmem:[#allocation5_spill] sm:$0xff] }
 0x34e   : > { %19020 = vst [vmem:[#allocation135_spill] sm:$0xff] %v14634_v16  ;;  %v4347_v14 = vadd.f32 %v19028_v60, %v19027_v49  ;;  %v19030_v16 = vld [vmem:[#allocation152_spill] sm:$0xff]  ;;  %v6346_v25 = vadd.f32 %v14362_v52, %v14032_v18  ;;  %vm4409_vm0 = vcmp.ge.f32.partialorder %v4345_v20, 1.0  ;;  %v6349_v53 = vadd.f32 %v14362_v52, %v14046_v13  ;;  %v14657_v1 = vpop.f32.mrb[118].mxu0 }
 0x34f   : > { %v4351_v36 = vadd.f32 %v19030_v16, %v19029_v27  ;;  %v14653_v28 = vmul.f32 0.5, %v4278_v37  ;;  %vm4413_vm4 = vcmp.ge.f32.partialorder %v4349_v9, 1.0  ;;  %19032 = vst [vmem:[#allocation142_spill] sm:$0xff] %v14657_v1  ;;  %v14659_v59 = vsel %vm4409_vm0, 0.0, %v4345_v20  ;;  %v6414_v49 = vpop.f32.mrb[119].mxu0  ;;  %v19035_v18 = vld [vmem:[#allocation4_spill] sm:$0xff] }
 0x350   : > { %19033 = vst [vmem:[#allocation165_spill] sm:$0xff] %v14659_v59  ;;  %v14661_v55 = vsel %vm4413_vm4, 0.0, %v4349_v9  ;;  %vm9537_vm9 = vmpackc.low %vm4413_vm4, %vm4409_vm0  ;;  %vm4411_vm6 = vcmp.ge.f32.partialorder %v4347_v14, 1.0  ;;  %v4729_v26 = vsub.f32 %v19035_v18, %v14659_v59  ;;  %v19036_v60 = vld [vmem:[#allocation8_spill] sm:$0xff]  ;;  %v14672_v20 = vpop.f32.mrb[108].mxu1  ;;  %v19041_v27 = vld [vmem:[#allocation9_spill] sm:$0xff]  ;;  %v6891_v1 = vadd.f32 %v14064_v19, %v6346_v25 }
 0x351   : > { %19031 = vst [vmem:[#allocation164_spill] sm:$0xff] %v14653_v28  ;;  %19034 = vst [vmem:[#allocation143_spill] sm:$0xff] %v14661_v55  ;;  %vm4415_vm7 = vcmp.ge.f32.partialorder %v4351_v36, 1.0  ;;  %v4733_v16 = vsub.f32 %v19036_v60, %v14661_v55  ;;  %9538 = vmatprep.mubr.msk.bf16.mxu0 %vm9537_vm9, %v17855_v30  ;;  %v14668_v37 = vsel %vm4411_vm6, 0.0, %v4347_v14  ;;  %v6894_v15 = vadd.f32 %v14081_v24, %v6349_v53  ;;  %v6956_v60 = vpop.f32.mrb[109].mxu1  ;;  %v19044_v18 = vld [vmem:[#allocation148_spill] sm:$0xff] }
 0x352   : > { %19037 = vst [vmem:[#allocation147_spill] sm:$0xff] %v14668_v37  ;;  %v14670_v13 = vsel %vm4415_vm7, 0.0, %v4351_v36  ;;  %vm9793_vm13 = vmpackc.low %vm4415_vm7, %vm4411_vm6  ;;  %v4731_v9 = vsub.f32 %v19040_v0, %v14668_v37  ;;  %v14681_v14 = vmul.f32 0.5, %v4729_v26  ;;  %v19045_v55 = vld [vmem:[#allocation189_spill] sm:$0xff]  ;;  %v19046_v59 = vld [vmem:[#allocation150_spill] sm:$0xff]  ;;  %v14689_v37 = vpop.f32.mrb[110].mxu1 }
 0x353   : > { %19038 = vst [vmem:[#allocation188_spill] sm:$0xff] %v14670_v13  ;;  %19039 = vst [vmem:[#allocation144_spill] sm:$0xff] %v14672_v20  ;;  %v4735_v49 = vsub.f32 %v19041_v27, %v14670_v13  ;;  %9794 = vmatprep.mubr.msk.bf16.mxu1 %vm9793_vm13, %v17855_v30  ;;  %v14683_v36 = vmul.f32 0.5, %v4733_v16  ;;  %v4344_v20 = vadd.f32 %v19045_v55, %v19044_v18  ;;  %v19047_v28 = vld [vmem:[#allocation190_spill] sm:$0xff]  ;;  %v19049_v19 = vld [vmem:[#allocation145_spill] sm:$0xff]  ;;  %v6959_v26 = vpop.f32.mrb[111].mxu1 }
 0x354   : > { %19042 = vst [vmem:[#allocation141_spill] sm:$0xff] %v14681_v14  ;;  %v4348_v0 = vadd.f32 %v19047_v28, %v19046_v59  ;;  %19048 = vst [vmem:[#allocation152_spill] sm:$0xff] %v14689_v37  ;;  %v14691_v27 = vmul.f32 0.5, %v4731_v9  ;;  %v7419_v25 = vsub.f32 %v6891_v1, %v19049_v19  ;;  %v19050_v24 = vld [vmem:[#allocation47_spill] sm:$0xff]  ;;  %v19052_v16 = vld [vmem:[#allocation50_spill] sm:$0xff] }
 0x355   : > { %19043 = vst [vmem:[#allocation187_spill] sm:$0xff] %v14683_v36  ;;  %v14693_v13 = vmul.f32 0.5, %v4735_v49  ;;  %v7420_v53 = vsub.f32 %v6894_v15, %v19050_v24  ;;  %vm4408_vm10 = vcmp.ge.f32.partialorder %v4344_v20, 1.0  ;;  %v19051_v60 = vld [vmem:[#allocation191_spill] sm:$0xff]  ;;  %v19053_v55 = vld [vmem:[#allocation192_spill] sm:$0xff]  ;;  %v19054_v18 = vld [vmem:[#allocation154_spill] sm:$0xff] }
 0x356   : > { %vm4412_vm11 = vcmp.ge.f32.partialorder %v4348_v0, 1.0  ;;  %v4346_v36 = vadd.f32 %v19052_v16, %v19051_v60  ;;  %v4350_v14 = vadd.f32 %v19054_v18, %v19053_v55  ;;  %v7435_v28 = vmul.f32 0.5, %v7419_v25  ;;  %v19056_v1 = vld [vmem:[#allocation3_spill] sm:$0xff]  ;;  %v14710_v60 = vpop.f32.mrb[120].mxu0 }
 0x357   : > { %v7436_v59 = vmul.f32 0.5, %v7420_v53  ;;  %v14701_v37 = vsel %vm4408_vm10, 0.0, %v4344_v20  ;;  %v14703_v9 = vsel %vm4412_vm11, 0.0, %v4348_v0  ;;  %vm9539_vm14 = vmpackc.low %vm4412_vm11, %vm4408_vm10  ;;  %v19057_v15 = vld [vmem:[#allocation7_spill] sm:$0xff]  ;;  %19058 = vst [vmem:[#allocation189_spill] sm:$0xff] %v14710_v60  ;;  %v6419_v16 = vpop.f32.mrb[121].mxu0 }
 0x358   : > { %19055 = vst [vmem:[#allocation148_spill] sm:$0xff] %v14703_v9  ;;  %v4728_v49 = vsub.f32 %v19056_v1, %v14701_v37  ;;  %v4732_v26 = vsub.f32 %v19057_v15, %v14703_v9  ;;  %9540 = vmatmul.mubr.msk.bf16.gmra.mrb[192].mxu0 %vm9539_vm14, %v17855_v30  ;;  %vm4410_vm0 = vcmp.ge.f32.partialorder %v4346_v36, 1.0  ;;  %vm4414_vm4 = vcmp.ge.f32.partialorder %v4350_v14, 1.0  ;;  %v19063_v15 = vld [vmem:[#allocation6_spill] sm:$0xff]  ;;  %v19064_v60 = vld [vmem:[#allocation11_spill] sm:$0xff]  ;;  %v19069_v9 = vld [vmem:[#allocation197_spill] sm:$0xff] }
 0x359   : > { %v14713_v25 = vadd.f32 %v7435_v28, %v19049_v19  ;;  %v14716_v20 = vadd.f32 %v7436_v59, %v19050_v24  ;;  %v14718_v0 = vsel %vm4410_vm0, 0.0, %v4346_v36  ;;  %v14720_v53 = vsel %vm4414_vm4, 0.0, %v4350_v14  ;;  %vm9795_vm9 = vmpackc.low %vm4414_vm4, %vm4410_vm0  ;;  %v14731_v24 = vpop.f32.mrb[122].mxu0  ;;  %v19066_v36 = vld [vmem:[#allocation156_spill] sm:$0xff]  ;;  %v19067_v28 = vld [vmem:[#allocation193_spill] sm:$0xff] }
 0x35a   : > { %19059 = vst [vmem:[#allocation150_spill] sm:$0xff] %v14718_v0  ;;  %19060 = vst [vmem:[#allocation190_spill] sm:$0xff] %v14720_v53  ;;  %v14722_v55 = vmul.f32 0.5, %v4728_v49  ;;  %v14724_v18 = vmul.f32 0.5, %v4732_v26  ;;  %v4730_v1 = vsub.f32 %v19063_v15, %v14718_v0  ;;  %v4734_v19 = vsub.f32 %v19064_v60, %v14720_v53  ;;  %9796 = vmatmul.mubr.msk.bf16.gmra.mrb[184].mxu1 %vm9795_vm9, %v17855_v30  ;;  %v19068_v59 = vld [vmem:[#allocation33_spill] sm:$0xff]  ;;  %v19070_v49 = vld [vmem:[#allocation194_spill] sm:$0xff] }
 0x35b   : > { %19065 = vst [vmem:[#allocation191_spill] sm:$0xff] %v14731_v24  ;;  %v4353_v14 = vadd.f32 %v19067_v28, %v19066_v36  ;;  %v4357_v16 = vadd.f32 %v19069_v9, %v19068_v59  ;;  %v4355_v26 = vadd.f32 %v14019_v45, %v19070_v49  ;;  %v6422_v15 = vpop.f32.mrb[123].mxu0  ;;  %v6354_v24 = vadd.f32 %v14362_v52, %v14113_v23  ;;  %v14749_v28 = vpop.f32.mrb[112].mxu1 }
 0x35c   : > { %19061 = vst [vmem:[#allocation145_spill] sm:$0xff] %v14722_v55  ;;  %19062 = vst [vmem:[#allocation47_spill] sm:$0xff] %v14724_v18  ;;  %v19071_v18 = vld [vmem:[#allocation195_spill] sm:$0xff]  ;;  %v14741_v0 = vmul.f32 0.5, %v4730_v1  ;;  %v14743_v60 = vmul.f32 0.5, %v4734_v19  ;;  %v6357_v36 = vadd.f32 %v14362_v52, %v14124_v5  ;;  %v6964_v45 = vpop.f32.mrb[113].mxu1 }
 0x35d   : > { %v4359_v55 = vadd.f32 %v14024_v38, %v19071_v18  ;;  %19074 = vst [vmem:[#allocation154_spill] sm:$0xff] %v14749_v28  ;;  %vm4417_vm6 = vcmp.ge.f32.partialorder %v4353_v14, 1.0  ;;  %vm4421_vm7 = vcmp.ge.f32.partialorder %v4357_v16, 1.0  ;;  %vm4419_vm13 = vcmp.ge.f32.partialorder %v4355_v26, 1.0  ;;  %v14759_v23 = vpop.f32.mrb[114].mxu1  ;;  %v19080_v5 = vld [vmem:[#allocation16_spill] sm:$0xff] }
 0x35e   : > { %19072 = vst [vmem:[#allocation50_spill] sm:$0xff] %v14741_v0  ;;  %19073 = vst [vmem:[#allocation192_spill] sm:$0xff] %v14743_v60  ;;  %v14751_v9 = vsel %vm4417_vm6, 0.0, %v4353_v14  ;;  %v14753_v38 = vsel %vm4421_vm7, 0.0, %v4357_v16  ;;  %v14755_v1 = vsel %vm4419_vm13, 0.0, %v4355_v26  ;;  %v19081_v19 = vld [vmem:[#allocation21_spill] sm:$0xff] }
 0x35f   : > { %vm4423_vm10 = vcmp.ge.f32.partialorder %v4359_v55, 1.0  ;;  %19075 = vst [vmem:[#allocation156_spill] sm:$0xff] %v14751_v9  ;;  %19076 = vst [vmem:[#allocation193_spill] sm:$0xff] %v14753_v38  ;;  %v4737_v18 = vsub.f32 %v19080_v5, %v14751_v9  ;;  %v4741_v59 = vsub.f32 %v19081_v19, %v14753_v38  ;;  %v19082_v14 = vld [vmem:[#allocation18_spill] sm:$0xff]  ;;  %v6967_v26 = vpop.f32.mrb[115].mxu1  ;;  %v19084_v28 = vld [vmem:[#allocation40_spill] sm:$0xff] }
 0x360   : > { %vm9541_vm11 = vmpackc.low %vm4421_vm7, %vm4417_vm6  ;;  %19077 = vst [vmem:[#allocation33_spill] sm:$0xff] %v14755_v1  ;;  %v14757_v15 = vsel %vm4423_vm10, 0.0, %v4359_v55  ;;  %v4739_v49 = vsub.f32 %v19082_v14, %v14755_v1  ;;  %v19083_v16 = vld [vmem:[#allocation22_spill] sm:$0xff]  ;;  %v6899_v55 = vadd.f32 %v14140_v22, %v6354_v24  ;;  %v19085_v5 = vld [vmem:[#allocation169_spill] sm:$0xff] }
 0x361   : > { %19078 = vst [vmem:[#allocation197_spill] sm:$0xff] %v14757_v15  ;;  %19079 = vst [vmem:[#allocation194_spill] sm:$0xff] %v14759_v23  ;;  %9542 = vmatprep.mubr.msk.bf16.mxu0 %vm9541_vm11, %v17855_v30  ;;  %v4743_v45 = vsub.f32 %v19083_v16, %v14757_v15  ;;  %v6902_v23 = vadd.f32 %v14153_v63, %v6357_v36  ;;  %v4352_v9 = vadd.f32 %v19085_v5, %v19084_v28  ;;  %v19086_v19 = vld [vmem:[#allocation54_spill] sm:$0xff]  ;;  %v19088_v26 = vld [vmem:[#allocation167_spill] sm:$0xff]  ;;  %v14787_v63 = vpop.f32.mrb[124].mxu0 }
 0x362   : > { %vm9797_vm14 = vmpackc.low %vm4423_vm10, %vm4419_vm13  ;;  %v19087_v38 = vld [vmem:[#allocation158_spill] sm:$0xff]  ;;  %v14777_v53 = vmul.f32 0.5, %v4737_v18  ;;  %v14779_v14 = vmul.f32 0.5, %v4741_v59  ;;  %v14781_v1 = vmul.f32 0.5, %v4739_v49  ;;  %v7421_v15 = vsub.f32 %v6899_v55, %v19088_v26  ;;  %v19089_v0 = vld [vmem:[#allocation53_spill] sm:$0xff]  ;;  %19090 = vst [vmem:[#allocation195_spill] sm:$0xff] %v14787_v63 }
 0x363   : > { %9798 = vmatprep.mubr.msk.bf16.mxu1 %vm9797_vm14, %v17855_v30  ;;  %v4356_v60 = vadd.f32 %v19087_v38, %v19086_v19  ;;  %v14783_v16 = vmul.f32 0.5, %v4743_v45  ;;  %v7422_v22 = vsub.f32 %v6902_v23, %v19089_v0  ;;  %vm4416_vm0 = vcmp.ge.f32.partialorder %v4352_v9, 1.0  ;;  %v19092_v28 = vld [vmem:[#allocation170_spill] sm:$0xff]  ;;  %v19093_v5 = vld [vmem:[#allocation44_spill] sm:$0xff]  ;;  %v6427_v19 = vpop.f32.mrb[125].mxu0  ;;  %v19095_v55 = vld [vmem:[#allocation19_spill] sm:$0xff] }
 0x364   : > { %v14789_v24 = vsel %vm4416_vm0, 0.0, %v4352_v9  ;;  %v4354_v38 = vadd.f32 %v14083_v33, %v19092_v28  ;;  %v4358_v18 = vadd.f32 %v14085_v29, %v19093_v5  ;;  %v7437_v59 = vmul.f32 0.5, %v7421_v15  ;;  %v19094_v23 = vld [vmem:[#allocation14_spill] sm:$0xff]  ;;  %v19097_v33 = vld [vmem:[#allocation157_spill] sm:$0xff]  ;;  %v19098_v28 = vld [vmem:[#allocation171_spill] sm:$0xff] }
 0x365   : > { %vm4420_vm4 = vcmp.ge.f32.partialorder %v4356_v60, 1.0  ;;  %v7438_v49 = vmul.f32 0.5, %v7422_v22  ;;  %v4736_v45 = vsub.f32 %v19094_v23, %v14789_v24  ;;  %v4361_v9 = vadd.f32 %v19097_v33, %v14071_v51  ;;  %v19099_v29 = vld [vmem:[#allocation198_spill] sm:$0xff] }
 0x366   : > { %v14791_v36 = vsel %vm4420_vm4, 0.0, %v4356_v60  ;;  %vm9543_vm9 = vmpackc.low %vm4420_vm4, %vm4416_vm0  ;;  %v14802_v60 = vpop.f32.mrb[126].mxu0  ;;  %vm4418_vm6 = vcmp.ge.f32.partialorder %v4354_v38, 1.0  ;;  %vm4422_vm7 = vcmp.ge.f32.partialorder %v4358_v18, 1.0  ;;  %v4365_v5 = vadd.f32 %v19099_v29, %v19098_v28  ;;  %v19109_v29 = vld [vmem:[#allocation35_spill] sm:$0xff] }
 0x367   : > { %19091 = vst [vmem:[#allocation40_spill] sm:$0xff] %v14791_v36  ;;  %v4740_v63 = vsub.f32 %v19095_v55, %v14791_v36  ;;  %9544 = vmatmul.mubr.msk.bf16.gmra.mrb[196].mxu0 %vm9543_vm9, %v17855_v30  ;;  %19096 = vst [vmem:[#allocation169_spill] sm:$0xff] %v14802_v60  ;;  %v6430_v15 = vpop.f32.mrb[127].mxu0  ;;  %v14809_v22 = vadd.f32 %v7437_v59, %v19088_v26  ;;  %v14812_v19 = vadd.f32 %v7438_v49, %v19089_v0  ;;  %v14818_v60 = vpop.f32.mrb[116].mxu1  ;;  %v19103_v59 = vld [vmem:[#allocation17_spill] sm:$0xff]  ;;  %v19104_v49 = vld [vmem:[#allocation20_spill] sm:$0xff] }
 0x368   : > { %v14814_v55 = vmul.f32 0.5, %v4736_v45  ;;  %vm9799_vm13 = vmpackc.low %vm4422_vm7, %vm4418_vm6  ;;  %19100 = vst [vmem:[#allocation54_spill] sm:$0xff] %v14818_v60  ;;  %v14820_v36 = vsel %vm4418_vm6, 0.0, %v4354_v38  ;;  %v14822_v51 = vsel %vm4422_vm7, 0.0, %v4358_v18  ;;  %vm4425_vm10 = vcmp.ge.f32.partialorder %v4361_v9, 1.0  ;;  %v6972_v26 = vpop.f32.mrb[117].mxu1 }
 0x369   : > { %v14816_v23 = vmul.f32 0.5, %v4740_v63  ;;  %19101 = vst [vmem:[#allocation158_spill] sm:$0xff] %v14820_v36  ;;  %19102 = vst [vmem:[#allocation167_spill] sm:$0xff] %v14822_v51  ;;  %9800 = vmatmul.mubr.msk.bf16.gmra.mrb[188].mxu1 %vm9799_vm13, %v17855_v30  ;;  %vm4429_vm11 = vcmp.ge.f32.partialorder %v4365_v5, 1.0  ;;  %v4738_v0 = vsub.f32 %v19103_v59, %v14820_v36  ;;  %v4742_v45 = vsub.f32 %v19104_v49, %v14822_v51  ;;  %v14833_v38 = vpop.f32.mrb[118].mxu1  ;;  %v19108_v18 = vld [vmem:[#allocation28_spill] sm:$0xff] }
 0x36a   : > { %v14829_v63 = vsel %vm4425_vm10, 0.0, %v4361_v9  ;;  %v14831_v33 = vsel %vm4429_vm11, 0.0, %v4365_v5  ;;  %vm9545_vm14 = vmpackc.low %vm4429_vm11, %vm4425_vm10  ;;  %19107 = vst [vmem:[#allocation44_spill] sm:$0xff] %v14833_v38  ;;  %v19110_v26 = vld [vmem:[#allocation56_spill] sm:$0xff]  ;;  %v19111_v59 = vld [vmem:[#allocation55_spill] sm:$0xff]  ;;  %v6975_v51 = vpop.f32.mrb[119].mxu1  ;;  %v6362_v38 = vadd.f32 %v14362_v52, %v14182_v31 }
 0x36b   : > { %19105 = vst [vmem:[#allocation53_spill] sm:$0xff] %v14829_v63  ;;  %19106 = vst [vmem:[#allocation170_spill] sm:$0xff] %v14831_v33  ;;  %v4745_v28 = vsub.f32 %v19108_v18, %v14829_v63  ;;  %v4749_v15 = vsub.f32 %v19109_v29, %v14831_v33  ;;  %9546 = vmatprep.mubr.msk.bf16.mxu0 %vm9545_vm14, %v17855_v30  ;;  %v4363_v60 = vadd.f32 %v14115_v17, %v19110_v26  ;;  %v19112_v49 = vld [vmem:[#allocation43_spill] sm:$0xff]  ;;  %v19118_v31 = vld [vmem:[#allocation29_spill] sm:$0xff] }
 0x36c   : > { %v4367_v9 = vadd.f32 %v19112_v49, %v19111_v59  ;;  %v14844_v5 = vmul.f32 0.5, %v4738_v0  ;;  %v14846_v36 = vmul.f32 0.5, %v4742_v45  ;;  %v6365_v18 = vadd.f32 %v14362_v52, %v14200_v50  ;;  %v14862_v49 = vpop.f32.mrb[128].mxu0  ;;  %v19119_v45 = vld [vmem:[#allocation36_spill] sm:$0xff] }
 0x36d   : > { %v14852_v29 = vmul.f32 0.5, %v4745_v28  ;;  %v14854_v33 = vmul.f32 0.5, %v4749_v15  ;;  %vm4427_vm0 = vcmp.ge.f32.partialorder %v4363_v60, 1.0  ;;  %v6907_v51 = vadd.f32 %v14220_v62, %v6362_v38  ;;  %19117 = vst [vmem:[#allocation55_spill] sm:$0xff] %v14862_v49  ;;  %v19120_v15 = vld [vmem:[#allocation159_spill] sm:$0xff]  ;;  %v6435_v63 = vpop.f32.mrb[129].mxu0 }
 0x36e   : > { %vm4431_vm4 = vcmp.ge.f32.partialorder %v4367_v9, 1.0  ;;  %v14856_v17 = vsel %vm4427_vm0, 0.0, %v4363_v60  ;;  %v6910_v0 = vadd.f32 %v14230_v42, %v6365_v18  ;;  %v19121_v60 = vld [vmem:[#allocation199_spill] sm:$0xff]  ;;  %v19124_v62 = vld [vmem:[#allocation160_spill] sm:$0xff]  ;;  %v19125_v42 = vld [vmem:[#allocation37_spill] sm:$0xff]  ;;  %v4362_v49 = vadd.f32 %v14176_v46, %v14155_v12  ;;  %v14889_v12 = vpop.f32.mrb[120].mxu1 }
 0x36f   : > { %19113 = vst [vmem:[#allocation157_spill] sm:$0xff] %v14852_v29  ;;  %19114 = vst [vmem:[#allocation171_spill] sm:$0xff] %v14854_v33  ;;  %v14858_v59 = vsel %vm4431_vm4, 0.0, %v4367_v9  ;;  %v4747_v50 = vsub.f32 %v19118_v31, %v14856_v17  ;;  %v4360_v26 = vadd.f32 %v19121_v60, %v19120_v15  ;;  %v19122_v9 = vld [vmem:[#allocation58_spill] sm:$0xff]  ;;  %v19123_v33 = vld [vmem:[#allocation200_spill] sm:$0xff]  ;;  %v7423_v38 = vsub.f32 %v6907_v51, %v19124_v62 }
 0x370   : > { %19115 = vst [vmem:[#allocation198_spill] sm:$0xff] %v14856_v17  ;;  %19116 = vst [vmem:[#allocation56_spill] sm:$0xff] %v14858_v59  ;;  %v4751_v28 = vsub.f32 %v19119_v45, %v14858_v59  ;;  %v4364_v29 = vadd.f32 %v19123_v33, %v19122_v9  ;;  %v7424_v18 = vsub.f32 %v6910_v0, %v19125_v42  ;;  %v14879_v45 = vpop.f32.mrb[130].mxu0  ;;  %v19129_v46 = vld [vmem:[#allocation30_spill] sm:$0xff]  ;;  %vm4426_vm10 = vcmp.ge.f32.partialorder %v4362_v49, 1.0 }
 0x371   : > { %vm9801_vm9 = vmpackc.low %vm4431_vm4, %vm4427_vm0  ;;  %v4366_v31 = vadd.f32 %v14178_v39, %v14157_v56  ;;  %19126 = vst [vmem:[#allocation43_spill] sm:$0xff] %v14879_v45  ;;  %v14881_v59 = vmul.f32 0.5, %v4747_v50  ;;  %vm4424_vm6 = vcmp.ge.f32.partialorder %v4360_v26, 1.0  ;;  %v6438_v33 = vpop.f32.mrb[131].mxu0  ;;  %v7439_v63 = vmul.f32 0.5, %v7423_v38  ;;  %v19128_v56 = vld [vmem:[#allocation25_spill] sm:$0xff] }
 0x372   : > { %9802 = vmatprep.mubr.msk.bf16.mxu1 %vm9801_vm9, %v17855_v30  ;;  %v14883_v17 = vmul.f32 0.5, %v4751_v28  ;;  %vm4428_vm7 = vcmp.ge.f32.partialorder %v4364_v29, 1.0  ;;  %v7440_v15 = vmul.f32 0.5, %v7424_v18  ;;  %v14885_v51 = vsel %vm4424_vm6, 0.0, %v4360_v26  ;;  %19127 = vst [vmem:[#allocation159_spill] sm:$0xff] %v14889_v12  ;;  %v6980_v28 = vpop.f32.mrb[121].mxu1 }
 0x373   : > { %v14887_v0 = vsel %vm4428_vm7, 0.0, %v4364_v29  ;;  %vm9547_vm13 = vmpackc.low %vm4428_vm7, %vm4424_vm6  ;;  %v4744_v39 = vsub.f32 %v19128_v56, %v14885_v51  ;;  %vm4430_vm11 = vcmp.ge.f32.partialorder %v4366_v31, 1.0  ;;  %v14897_v60 = vadd.f32 %v7439_v63, %v19124_v62  ;;  %v14906_v38 = vpop.f32.mrb[122].mxu1  ;;  %v19132_v12 = vld [vmem:[#allocation26_spill] sm:$0xff]  ;;  %v19133_v62 = vld [vmem:[#allocation31_spill] sm:$0xff] }
 0x374   : > { %v4748_v50 = vsub.f32 %v19129_v46, %v14887_v0  ;;  %9548 = vmatmul.mubr.msk.bf16.gmra.mrb[200].mxu0 %vm9547_vm13, %v17855_v30  ;;  %v14900_v29 = vadd.f32 %v7440_v15, %v19125_v42  ;;  %v14902_v26 = vsel %vm4426_vm10, 0.0, %v4362_v49  ;;  %v14904_v9 = vsel %vm4430_vm11, 0.0, %v4366_v31  ;;  %vm9803_vm14 = vmpackc.low %vm4430_vm11, %vm4426_vm10  ;;  %19130 = vst [vmem:[#allocation199_spill] sm:$0xff] %v14906_v38  ;;  %v6983_v42 = vpop.f32.mrb[123].mxu1  ;;  %v19134_v49 = vld [vmem:[#allocation61_spill] sm:$0xff]  ;;  %v19135_v15 = vld [vmem:[#allocation70_spill] sm:$0xff] }
 0x375   : > { %v14908_v18 = vmul.f32 0.5, %v4744_v39  ;;  %v4746_v28 = vsub.f32 %v19132_v12, %v14902_v26  ;;  %v4750_v63 = vsub.f32 %v19133_v62, %v14904_v9  ;;  %9804 = vmatmul.mubr.msk.bf16.gmra.mrb[192].mxu1 %vm9803_vm14, %v17855_v30  ;;  %v4369_v31 = vadd.f32 %v19134_v49, %v14166_v41  ;;  %v19136_v45 = vld [vmem:[#allocation202_spill] sm:$0xff]  ;;  %v19137_v38 = vld [vmem:[#allocation68_spill] sm:$0xff]  ;;  %v14933_v41 = vpop.f32.mrb[132].mxu0 }
 0x376   : > { %v14910_v33 = vmul.f32 0.5, %v4748_v50  ;;  %v4373_v46 = vadd.f32 %v19136_v45, %v19135_v15  ;;  %v4371_v39 = vadd.f32 %v14211_v58, %v19137_v38  ;;  %v19138_v50 = vld [vmem:[#allocation67_spill] sm:$0xff]  ;;  %v6370_v62 = vadd.f32 %v14362_v52, %v14262_v57  ;;  %19140 = vst [vmem:[#allocation160_spill] sm:$0xff] %v14933_v41  ;;  %v19145_v57 = vld [vmem:[#allocation45_spill] sm:$0xff]  ;;  %v19147_v15 = vld [vmem:[#allocation46_spill] sm:$0xff] }
 0x377   : > { %v4375_v56 = vadd.f32 %v14222_v54, %v19138_v50  ;;  %v14927_v12 = vmul.f32 0.5, %v4750_v63  ;;  %v6373_v42 = vadd.f32 %v14362_v52, %v14280_v43  ;;  %vm4433_vm0 = vcmp.ge.f32.partialorder %v4369_v31, 1.0  ;;  %v19146_v43 = vld [vmem:[#allocation51_spill] sm:$0xff]  ;;  %v19152_v41 = vld [vmem:[#allocation172_spill] sm:$0xff] }
 0x378   : > { %19131 = vst [vmem:[#allocation58_spill] sm:$0xff] %v14910_v33  ;;  %v14925_v33 = vmul.f32 0.5, %v4746_v28  ;;  %vm4437_vm4 = vcmp.ge.f32.partialorder %v4373_v46, 1.0  ;;  %vm4435_vm9 = vcmp.ge.f32.partialorder %v4371_v39, 1.0  ;;  %v14935_v58 = vsel %vm4433_vm0, 0.0, %v4369_v31  ;;  %v6443_v28 = vpop.f32.mrb[133].mxu0 }
 0x379   : > { %19139 = vst [vmem:[#allocation200_spill] sm:$0xff] %v14927_v12  ;;  %vm4439_vm6 = vcmp.ge.f32.partialorder %v4375_v56, 1.0  ;;  %19141 = vst [vmem:[#allocation37_spill] sm:$0xff] %v14935_v58  ;;  %v14937_v45 = vsel %vm4437_vm4, 0.0, %v4373_v46  ;;  %v14939_v54 = vsel %vm4435_vm9, 0.0, %v4371_v39  ;;  %v4753_v63 = vsub.f32 %v19145_v57, %v14935_v58  ;;  %v19148_v46 = vld [vmem:[#allocation52_spill] sm:$0xff] }
 0x37a   : > { %19142 = vst [vmem:[#allocation61_spill] sm:$0xff] %v14937_v45  ;;  %vm9549_vm7 = vmpackc.low %vm4437_vm4, %vm4433_vm0  ;;  %v14941_v38 = vsel %vm4439_vm6, 0.0, %v4375_v56  ;;  %v4757_v49 = vsub.f32 %v19146_v43, %v14937_v45  ;;  %v4755_v31 = vsub.f32 %v19147_v15, %v14939_v54  ;;  %v14952_v39 = vpop.f32.mrb[134].mxu0  ;;  %v14956_v56 = vadd.f32 %v14299_v10, %v6370_v62  ;;  %v19153_v57 = vld [vmem:[#allocation64_spill] sm:$0xff]  ;;  %v19154_v45 = vld [vmem:[#allocation203_spill] sm:$0xff]  ;;  %v14973_v10 = vpop.f32.mrb[124].mxu1 }
 0x37b   : > { %19143 = vst [vmem:[#allocation70_spill] sm:$0xff] %v14939_v54  ;;  %19144 = vst [vmem:[#allocation202_spill] sm:$0xff] %v14941_v38  ;;  %9550 = vmatprep.mubr.msk.bf16.mxu0 %vm9549_vm7, %v17855_v30  ;;  %v4759_v50 = vsub.f32 %v19148_v46, %v14941_v38  ;;  %v14959_v28 = vadd.f32 %v14314_v2, %v6373_v42  ;;  %v4368_v43 = vadd.f32 %v19152_v41, %v14226_v44  ;;  %v6446_v54 = vpop.f32.mrb[135].mxu0  ;;  %v19160_v2 = vld [vmem:[#allocation71_spill] sm:$0xff]  ;;  %v19161_v62 = vld [vmem:[#allocation205_spill] sm:$0xff] }
 0x37c   : > { %vm9805_vm13 = vmpackc.low %vm4439_vm6, %vm4435_vm9  ;;  %19149 = vst [vmem:[#allocation68_spill] sm:$0xff] %v14952_v39  ;;  %v4372_v15 = vadd.f32 %v19154_v45, %v19153_v57  ;;  %v14965_v58 = vmul.f32 0.5, %v4753_v63  ;;  %v14967_v46 = vmul.f32 0.5, %v4757_v49  ;;  %v14969_v39 = vmul.f32 0.5, %v4755_v31  ;;  %v19162_v44 = vld [vmem:[#allocation76_spill] sm:$0xff]  ;;  %v19163_v41 = vld [vmem:[#allocation206_spill] sm:$0xff] }
 0x37d   : > { %9806 = vmatprep.mubr.msk.bf16.mxu1 %vm9805_vm13, %v17855_v30  ;;  %19150 = vst [vmem:[#allocation67_spill] sm:$0xff] %v14956_v56  ;;  %19151 = vst [vmem:[#allocation222_spill] sm:$0xff] %v14959_v28  ;;  %v14971_v38 = vmul.f32 0.5, %v4759_v50  ;;  %vm4432_vm10 = vcmp.ge.f32.partialorder %v4368_v43, 1.0  ;;  %v4370_v42 = vadd.f32 %v19161_v62, %v19160_v2  ;;  %v4374_v28 = vadd.f32 %v19163_v41, %v19162_v44  ;;  %v6988_v45 = vpop.f32.mrb[125].mxu1  ;;  %v19166_v63 = vld [vmem:[#allocation204_spill] sm:$0xff] }
 0x37e   : > { %19155 = vst [vmem:[#allocation172_spill] sm:$0xff] %v14965_v58  ;;  %19156 = vst [vmem:[#allocation64_spill] sm:$0xff] %v14967_v46  ;;  %vm4436_vm11 = vcmp.ge.f32.partialorder %v4372_v15, 1.0  ;;  %v14979_v54 = vsel %vm4432_vm10, 0.0, %v4368_v43  ;;  %v19167_v49 = vld [vmem:[#allocation80_spill] sm:$0xff]  ;;  %v19168_v50 = vld [vmem:[#allocation207_spill] sm:$0xff] }
 0x37f   : > { %19157 = vst [vmem:[#allocation203_spill] sm:$0xff] %v14969_v39  ;;  %19158 = vst [vmem:[#allocation223_spill] sm:$0xff] %v14971_v38  ;;  %v14981_v57 = vsel %vm4436_vm11, 0.0, %v4372_v15  ;;  %v4377_v31 = vadd.f32 %v19167_v49, %v19166_v63  ;;  %v19169_v56 = vld [vmem:[#allocation74_spill] sm:$0xff]  ;;  %v14987_v38 = vpop.f32.mrb[126].mxu1  ;;  %v19171_v39 = vld [vmem:[#allocation41_spill] sm:$0xff] }
 0x380   : > { %19159 = vst [vmem:[#allocation224_spill] sm:$0xff] %v14973_v10  ;;  %19164 = vst [vmem:[#allocation71_spill] sm:$0xff] %v14979_v54  ;;  %v4381_v10 = vadd.f32 %v19169_v56, %v19168_v50  ;;  %v4752_v2 = vsub.f32 %v19171_v39, %v14979_v54  ;;  %v19172_v62 = vld [vmem:[#allocation48_spill] sm:$0xff]  ;;  %vm4434_vm0 = vcmp.ge.f32.partialorder %v4370_v42, 1.0  ;;  %vm4438_vm4 = vcmp.ge.f32.partialorder %v4374_v28, 1.0  ;;  %v6991_v43 = vpop.f32.mrb[127].mxu1 }
 0x381   : > { %19165 = vst [vmem:[#allocation205_spill] sm:$0xff] %v14981_v57  ;;  %vm9551_vm14 = vmpackc.low %vm4436_vm11, %vm4432_vm10  ;;  %v4756_v44 = vsub.f32 %v19172_v62, %v14981_v57  ;;  %v14994_v15 = vsel %vm4434_vm0, 0.0, %v4370_v42  ;;  %v14996_v41 = vsel %vm4438_vm4, 0.0, %v4374_v28  ;;  %vm4441_vm6 = vcmp.ge.f32.partialorder %v4377_v31, 1.0  ;;  %v19177_v63 = vld [vmem:[#allocation42_spill] sm:$0xff]  ;;  %v19178_v50 = vld [vmem:[#allocation49_spill] sm:$0xff] }
 0x382   : > { %19170 = vst [vmem:[#allocation76_spill] sm:$0xff] %v14987_v38  ;;  %9552 = vmatmul.mubr.msk.bf16.gmra.mrb[204].mxu0 %vm9551_vm14, %v17855_v30  ;;  %19173 = vst [vmem:[#allocation206_spill] sm:$0xff] %v14994_v15  ;;  %vm4445_vm7 = vcmp.ge.f32.partialorder %v4381_v10, 1.0  ;;  %v14998_v56 = vmul.f32 0.5, %v4752_v2  ;;  %v4754_v49 = vsub.f32 %v19177_v63, %v14994_v15  ;;  %v4758_v38 = vsub.f32 %v19178_v50, %v14996_v41  ;;  %v19181_v43 = vld [vmem:[#allocation208_spill] sm:$0xff]  ;;  %v19182_v2 = vld [vmem:[#allocation173_spill] sm:$0xff] }
 0x383   : > { %19174 = vst [vmem:[#allocation204_spill] sm:$0xff] %v14996_v41  ;;  %vm9807_vm9 = vmpackc.low %vm4438_vm4, %vm4434_vm0  ;;  %v15000_v45 = vmul.f32 0.5, %v4756_v44  ;;  %v15007_v42 = vsel %vm4441_vm6, 0.0, %v4377_v31  ;;  %v15009_v28 = vsel %vm4445_vm7, 0.0, %v4381_v10  ;;  %v4379_v62 = vadd.f32 %v19182_v2, %v19181_v43  ;;  %v19183_v44 = vld [vmem:[#allocation174_spill] sm:$0xff]  ;;  %v19184_v39 = vld [vmem:[#allocation176_spill] sm:$0xff] }
 0x384   : > { %19175 = vst [vmem:[#allocation80_spill] sm:$0xff] %v14998_v56  ;;  %9808 = vmatmul.mubr.msk.bf16.gmra.mrb[196].mxu1 %vm9807_vm9, %v17855_v30  ;;  %vm9553_vm13 = vmpackc.low %vm4445_vm7, %vm4441_vm6  ;;  %v15016_v57 = vpop.f32.mrb[136].mxu0  ;;  %v15018_v63 = vmul.f32 0.5, %v4754_v49  ;;  %v15020_v50 = vmul.f32 0.5, %v4758_v38  ;;  %v19188_v41 = vld [vmem:[#allocation62_spill] sm:$0xff]  ;;  %v19189_v10 = vld [vmem:[#allocation69_spill] sm:$0xff] }
 0x385   : > { %19176 = vst [vmem:[#allocation207_spill] sm:$0xff] %v15000_v45  ;;  %19179 = vst [vmem:[#allocation74_spill] sm:$0xff] %v15007_v42  ;;  %9554 = vmatprep.mubr.msk.bf16.mxu0 %vm9553_vm13, %v17855_v30  ;;  %v4383_v45 = vadd.f32 %v19184_v39, %v19183_v44  ;;  %v4761_v31 = vsub.f32 %v19188_v41, %v15007_v42  ;;  %v4765_v15 = vsub.f32 %v19189_v10, %v15009_v28  ;;  %v6451_v56 = vpop.f32.mrb[137].mxu0  ;;  %v19190_v54 = vld [vmem:[#allocation181_spill] sm:$0xff]  ;;  %v19191_v2 = vld [vmem:[#allocation86_spill] sm:$0xff] }
 0x386   : > { %19180 = vst [vmem:[#allocation225_spill] sm:$0xff] %v15009_v28  ;;  %19185 = vst [vmem:[#allocation208_spill] sm:$0xff] %v15016_v57  ;;  %vm4443_vm10 = vcmp.ge.f32.partialorder %v4379_v62, 1.0  ;;  %v6378_v43 = vadd.f32 %v14362_v52, %v19190_v54  ;;  %v6381_v39 = vadd.f32 %v14362_v52, %v19191_v2  ;;  %v19196_v10 = vld [vmem:[#allocation63_spill] sm:$0xff]  ;;  %v19197_v41 = vld [vmem:[#allocation72_spill] sm:$0xff] }
 0x387   : > { %19186 = vst [vmem:[#allocation173_spill] sm:$0xff] %v15018_v63  ;;  %19187 = vst [vmem:[#allocation174_spill] sm:$0xff] %v15020_v50  ;;  %vm4447_vm11 = vcmp.ge.f32.partialorder %v4383_v45, 1.0  ;;  %v15030_v44 = vmul.f32 0.5, %v4761_v31  ;;  %v15032_v49 = vmul.f32 0.5, %v4765_v15  ;;  %v15034_v38 = vsel %vm4443_vm10, 0.0, %v4379_v62 }
 0x388   : > { %19194 = vst [vmem:[#allocation86_spill] sm:$0xff] %v15034_v38  ;;  %v15036_v57 = vsel %vm4447_vm11, 0.0, %v4383_v45  ;;  %vm9809_vm14 = vmpackc.low %vm4447_vm11, %vm4443_vm10  ;;  %v4763_v56 = vsub.f32 %v19196_v10, %v15034_v38  ;;  %v19198_v54 = vld [vmem:[#allocation213_spill] sm:$0xff]  ;;  %v15049_v15 = vpop.f32.mrb[128].mxu1  ;;  %v15051_v62 = vpop.f32.mrb[138].mxu0  ;;  %v19204_v45 = vld [vmem:[#allocation175_spill] sm:$0xff] }
 0x389   : > { %19192 = vst [vmem:[#allocation176_spill] sm:$0xff] %v15030_v44  ;;  %19193 = vst [vmem:[#allocation181_spill] sm:$0xff] %v15032_v49  ;;  %v4767_v28 = vsub.f32 %v19197_v41, %v15036_v57  ;;  %9810 = vmatprep.mubr.msk.bf16.mxu1 %vm9809_vm14, %v17855_v30  ;;  %v15044_v42 = vadd.f32 %v19198_v54, %v6378_v43  ;;  %v19200_v52 = vld [vmem:[#allocation81_spill] sm:$0xff]  ;;  %v19205_v2 = vld [vmem:[#allocation75_spill] sm:$0xff]  ;;  %v6996_v54 = vpop.f32.mrb[129].mxu1 }
 0x38a   : > { %19195 = vst [vmem:[#allocation226_spill] sm:$0xff] %v15036_v57  ;;  %v15047_v31 = vadd.f32 %v19200_v52, %v6381_v39  ;;  %19202 = vst [vmem:[#allocation227_spill] sm:$0xff] %v15049_v15  ;;  %v4376_v49 = vadd.f32 %v19205_v2, %v19204_v45  ;;  %v19206_v44 = vld [vmem:[#allocation77_spill] sm:$0xff]  ;;  %v19207_v10 = vld [vmem:[#allocation180_spill] sm:$0xff]  ;;  %v15061_v39 = vmul.f32 0.5, %v4763_v56  ;;  %v15069_v12 = vpop.f32.mrb[130].mxu1 }
 0x38b   : > { %19199 = vst [vmem:[#allocation213_spill] sm:$0xff] %v15044_v42  ;;  %19203 = vst [vmem:[#allocation228_spill] sm:$0xff] %v15051_v62  ;;  %v4380_v38 = vadd.f32 %v19207_v10, %v19206_v44  ;;  %v19208_v50 = vld [vmem:[#allocation177_spill] sm:$0xff]  ;;  %v19209_v41 = vld [vmem:[#allocation211_spill] sm:$0xff]  ;;  %v6454_v42 = vpop.f32.mrb[139].mxu0  ;;  %v15063_v52 = vmul.f32 0.5, %v4767_v28 }
 0x38c   : > { %19201 = vst [vmem:[#allocation81_spill] sm:$0xff] %v15047_v31  ;;  %v4378_v57 = vadd.f32 %v19209_v41, %v19208_v50  ;;  %v19210_v63 = vld [vmem:[#allocation178_spill] sm:$0xff]  ;;  %v19212_v31 = vld [vmem:[#allocation179_spill] sm:$0xff]  ;;  %v19214_v58 = vld [vmem:[#allocation212_spill] sm:$0xff]  ;;  %vm4440_vm0 = vcmp.ge.f32.partialorder %v4376_v49, 1.0  ;;  %v6999_v41 = vpop.f32.mrb[131].mxu1 }
 0x38d   : > { %v19211_v46 = vld [vmem:[#allocation182_spill] sm:$0xff]  ;;  %v19213_v62 = vld [vmem:[#allocation183_spill] sm:$0xff]  ;;  %19216 = vst [vmem:[#allocation175_spill] sm:$0xff] %v15069_v12  ;;  %vm4444_vm4 = vcmp.ge.f32.partialorder %v4380_v38, 1.0  ;;  %v19222_v56 = vld [vmem:[#allocation60_spill] sm:$0xff] }
 0x38e   : > { %v4382_v43 = vadd.f32 %v19211_v46, %v19210_v63  ;;  %v4385_v15 = vadd.f32 %v19213_v62, %v19212_v31  ;;  %v19215_v45 = vld [vmem:[#allocation91_spill] sm:$0xff]  ;;  %vm4442_vm9 = vcmp.ge.f32.partialorder %v4378_v57, 1.0  ;;  %v15071_v46 = vsel %vm4440_vm0, 0.0, %v4376_v49  ;;  %vm9555_vm7 = vmpackc.low %vm4444_vm4, %vm4440_vm0  ;;  %v19223_v49 = vld [vmem:[#allocation66_spill] sm:$0xff] }
 0x38f   : > { %v4389_v2 = vadd.f32 %v19215_v45, %v19214_v58  ;;  %v15073_v63 = vsel %vm4444_vm4, 0.0, %v4380_v38  ;;  %v15075_v50 = vsel %vm4442_vm9, 0.0, %v4378_v57  ;;  %v19220_v28 = vld [vmem:[#allocation59_spill] sm:$0xff]  ;;  %v19221_v58 = vld [vmem:[#allocation65_spill] sm:$0xff]  ;;  %9556 = vmatmul.mubr.msk.bf16.gmra.mrb[208].mxu0 %vm9555_vm7, %v17855_v30  ;;  %v19224_v57 = vld [vmem:[#allocation88_spill] sm:$0xff] }
 0x390   : > { %vm4446_vm6 = vcmp.ge.f32.partialorder %v4382_v43, 1.0  ;;  %19217 = vst [vmem:[#allocation75_spill] sm:$0xff] %v15073_v63  ;;  %19218 = vst [vmem:[#allocation77_spill] sm:$0xff] %v15075_v50  ;;  %v4760_v10 = vsub.f32 %v19220_v28, %v15071_v46  ;;  %v4764_v44 = vsub.f32 %v19221_v58, %v15073_v63  ;;  %v4762_v31 = vsub.f32 %v19222_v56, %v15075_v50  ;;  %v19225_v62 = vld [vmem:[#allocation216_spill] sm:$0xff]  ;;  %v19226_v54 = vld [vmem:[#allocation214_spill] sm:$0xff] }
 0x391   : > { %v15077_v42 = vsel %vm4446_vm6, 0.0, %v4382_v43  ;;  %vm9811_vm13 = vmpackc.low %vm4446_vm6, %vm4442_vm9  ;;  %vm4449_vm10 = vcmp.ge.f32.partialorder %v4385_v15, 1.0  ;;  %vm4453_vm11 = vcmp.ge.f32.partialorder %v4389_v2, 1.0  ;;  %v4387_v43 = vadd.f32 %v19225_v62, %v19224_v57  ;;  %v19232_v57 = vld [vmem:[#allocation83_spill] sm:$0xff] }
 0x392   : > { %19219 = vst [vmem:[#allocation180_spill] sm:$0xff] %v15077_v42  ;;  %v4766_v38 = vsub.f32 %v19223_v49, %v15077_v42  ;;  %9812 = vmatmul.mubr.msk.bf16.gmra.mrb[200].mxu1 %vm9811_vm13, %v17855_v30  ;;  %v4391_v45 = vadd.f32 %v14403_v4, %v19226_v54  ;;  %v15093_v41 = vmul.f32 0.5, %v4760_v10  ;;  %v15095_v12 = vmul.f32 0.5, %v4764_v44  ;;  %vm9557_vm14 = vmpackc.low %vm4453_vm11, %vm4449_vm10  ;;  %v19233_v10 = vld [vmem:[#allocation89_spill] sm:$0xff] }
 0x393   : > { %v15097_v58 = vmul.f32 0.5, %v4762_v31  ;;  %v15101_v49 = vsel %vm4449_vm10, 0.0, %v4385_v15  ;;  %v15103_v28 = vsel %vm4453_vm11, 0.0, %v4389_v2  ;;  %9558 = vmatprep.mubr.msk.bf16.mxu0 %vm9557_vm14, %v17855_v30  ;;  %vm4451_vm0 = vcmp.ge.f32.partialorder %v4387_v43, 1.0  ;;  %v19236_v15 = vld [vmem:[#allocation84_spill] sm:$0xff]  ;;  %v19237_v2 = vld [vmem:[#allocation90_spill] sm:$0xff] }
 0x394   : > { %19227 = vst [vmem:[#allocation177_spill] sm:$0xff] %v15095_v12  ;;  %v15099_v56 = vmul.f32 0.5, %v4766_v38  ;;  %19230 = vst [vmem:[#allocation182_spill] sm:$0xff] %v15101_v49  ;;  %vm4455_vm4 = vcmp.ge.f32.partialorder %v4391_v45, 1.0  ;;  %v4769_v4 = vsub.f32 %v19232_v57, %v15101_v49  ;;  %v4773_v44 = vsub.f32 %v19233_v10, %v15103_v28  ;;  %v15122_v57 = vld [vmem:[%s17269_s4] ss:$0 sm:$0xff] }
 0x395   : > { %19228 = vst [vmem:[#allocation211_spill] sm:$0xff] %v15097_v58  ;;  %19231 = vst [vmem:[#allocation179_spill] sm:$0xff] %v15103_v28  ;;  %v15110_v62 = vsel %vm4451_vm0, 0.0, %v4387_v43  ;;  %v15112_v31 = vsel %vm4455_vm4, 0.0, %v4391_v45  ;;  %v6386_v43 = vadd.f32 %v15122_v57, %v14417_v48  ;;  %vm7461_vm6 = vcmp.ge.f32.partialorder %v14413_v35, 1.0  ;;  %v15127_v45 = vpop.f32.mrb[140].mxu0 }
 0x396   : > { %19229 = vst [vmem:[#allocation178_spill] sm:$0xff] %v15099_v56  ;;  %19234 = vst [vmem:[#allocation183_spill] sm:$0xff] %v15110_v62  ;;  %v4771_v38 = vsub.f32 %v19236_v15, %v15110_v62  ;;  %v4775_v54 = vsub.f32 %v19237_v2, %v15112_v31  ;;  %v15129_v10 = vpop.f32.mrb[132].mxu1  ;;  %v15131_v15 = vmul.f32 0.5, %v4769_v4  ;;  %v15133_v62 = vmul.f32 0.5, %v4773_v44  ;;  %v6459_v28 = vpop.f32.mrb[141].mxu0 }
 0x397   : > { %19235 = vst [vmem:[#allocation212_spill] sm:$0xff] %v15112_v31  ;;  %vm9813_vm9 = vmpackc.low %vm4455_vm4, %vm4451_vm0  ;;  %v9265_v2 = vsel %vm7461_vm6, 1.0, %v18723_v11  ;;  %v7525_v31 = vsel %vm7461_vm6, 0.0, %v14413_v35  ;;  %v7004_v49 = vpop.f32.mrb[133].mxu1  ;;  %v6931_v48 = vadd.f32 %v14455_v3, %v6386_v43  ;;  %v19244_v58 = vld [vmem:[#allocation215_spill] sm:$0xff]  ;;  %v19247_v44 = vld [vmem:[#allocation184_spill] sm:$0xff] }
 0x398   : > { %9814 = vmatprep.mubr.msk.bf16.mxu1 %vm9813_vm9, %v17855_v30  ;;  %19238 = vst [vmem:[#allocation91_spill] sm:$0xff] %v15127_v45  ;;  %19239 = vst [vmem:[#allocation88_spill] sm:$0xff] %v15129_v10  ;;  %v15137_v56 = vmul.f32 0.5, %v4771_v38  ;;  %v15139_v42 = vmul.f32 0.5, %v4775_v54  ;;  %v15143_v45 = vadd.f32 %v9265_v2, %v19244_v58  ;;  %v19246_v10 = vld [vmem:[#allocation95_spill] sm:$0xff]  ;;  %vm7462_vm7 = vcmp.ge.f32.partialorder %v19247_v44, 1.0 }
 0x399   : > { %19240 = vst [vmem:[#allocation216_spill] sm:$0xff] %v15131_v15  ;;  %19241 = vst [vmem:[#allocation214_spill] sm:$0xff] %v15133_v62  ;;  %v6389_v4 = vadd.f32 %v15122_v57, %v19246_v10  ;;  %v19248_v62 = vld [vmem:[#allocation92_spill] sm:$0xff]  ;;  %v19249_v15 = vld [vmem:[#allocation186_spill] sm:$0xff]  ;;  %v7541_v38 = vsub.f32 %v6931_v48, %v7525_v31  ;;  %v9266_v54 = vsel %vm7462_vm7, 1.0, %v18723_v11  ;;  %vm7463_vm9 = vcmp.ge.f32.partialorder %v14527_v32, 1.0 }
 0x39a   : > { %19242 = vst [vmem:[#allocation229_spill] sm:$0xff] %v15137_v56  ;;  %19243 = vst [vmem:[#allocation230_spill] sm:$0xff] %v15139_v42  ;;  %v4384_v50 = vadd.f32 %v19249_v15, %v19248_v62  ;;  %v19250_v35 = vld [vmem:[#allocation82_spill] sm:$0xff]  ;;  %v19251_v28 = vld [vmem:[#allocation93_spill] sm:$0xff]  ;;  %v7526_v42 = vsel %vm7462_vm7, 0.0, %v19247_v44 }
 0x39b   : > { %19245 = vst [vmem:[#allocation215_spill] sm:$0xff] %v15143_v45  ;;  %v4388_v49 = vadd.f32 %v19251_v28, %v19250_v35  ;;  %v19252_v3 = vld [vmem:[#allocation96_spill] sm:$0xff]  ;;  %v19253_v43 = vld [vmem:[#allocation98_spill] sm:$0xff]  ;;  %v19255_v56 = vld [vmem:[#allocation217_spill] sm:$0xff]  ;;  %v7557_v48 = vmul.f32 0.5, %v7541_v38 }
 0x39c   : > { %v4386_v58 = vadd.f32 %v19253_v43, %v19252_v3  ;;  %v19254_v2 = vld [vmem:[#allocation94_spill] sm:$0xff]  ;;  %v15158_v10 = vadd.f32 %v9266_v54, %v19255_v56  ;;  %vm4448_vm13 = vcmp.ge.f32.partialorder %v4384_v50, 1.0  ;;  %v8291_v62 = vld [vmem:[%s17270_s5 + $0x10] sm:$0xff]  ;;  %v15172_v54 = vpop.f32.mrb[142].mxu0  ;;  %v15174_v3 = vpop.f32.mrb[134].mxu1 }
 0x39d   : > { %v6934_v45 = vadd.f32 %v19254_v2, %v6389_v4  ;;  %vm4452_vm10 = vcmp.ge.f32.partialorder %v4388_v49, 1.0  ;;  %v8292_v15 = vld [vmem:[%s17270_s5 + $0x18] sm:$0xff]  ;;  %v15166_v44 = vsel %vm4448_vm13, 0.0, %v4384_v50  ;;  %v19258_v4 = vld [vmem:[#allocation185_spill] sm:$0xff]  ;;  %19260 = vst [vmem:[#allocation92_spill] sm:$0xff] %v15172_v54  ;;  %19261 = vst [vmem:[#allocation186_spill] sm:$0xff] %v15174_v3  ;;  %v15181_v38 = vadd.f32 %v7557_v48, %v7525_v31 }
 0x39e   : > { %19256 = vst [vmem:[#allocation95_spill] sm:$0xff] %v15158_v10  ;;  %v15168_v35 = vsel %vm4452_vm10, 0.0, %v4388_v49  ;;  %vm9559_vm11 = vmpackc.low %vm4452_vm10, %vm4448_vm13  ;;  %v19259_v28 = vld [vmem:[#allocation129_spill] sm:$0xff]  ;;  %v19262_v2 = vld [vmem:[#allocation78_spill] sm:$0xff]  ;;  %vm4450_vm14 = vcmp.ge.f32.partialorder %v4386_v58, 1.0  ;;  %v6462_v50 = vpop.f32.mrb[143].mxu0 }
 0x39f   : > { %19257 = vst [vmem:[#allocation184_spill] sm:$0xff] %v15168_v35  ;;  %v4390_v56 = vadd.f32 %v19259_v28, %v19258_v4  ;;  %v7542_v43 = vsub.f32 %v6934_v45, %v7526_v42  ;;  %v4768_v10 = vsub.f32 %v19262_v2, %v15166_v44  ;;  %v19263_v12 = vld [vmem:[#allocation85_spill] sm:$0xff]  ;;  %9560 = vmatmul.mubr.msk.bf16.gmra.mrb[212].mxu0 %vm9559_vm11, %v17855_v30  ;;  %v7007_v49 = vpop.f32.mrb[135].mxu1  ;;  %v15183_v4 = vsel %vm4450_vm14, 0.0, %v4386_v58  ;;  %v19269_v50 = vld [vmem:[#allocation87_spill] sm:$0xff]  ;;  %v19270_v31 = vld [vmem:[#allocation102_spill] sm:$0xff] }
 0x3a0   : > { %v4772_v63 = vsub.f32 %v19263_v12, %v15168_v35  ;;  %19264 = vst [vmem:[#allocation82_spill] sm:$0xff] %v15183_v4  ;;  %v9981_v28 = vpack.c.bf16 %v8292_v15, %v8291_v62  ;;  %v19268_v12 = vld [vmem:[#allocation79_spill] sm:$0xff]  ;;  %v19273_v15 = vld [vmem:[#allocation218_spill] sm:$0xff]  ;;  %vm7589_vm5 = vcmp.ge.f32.partialorder %v15181_v38, 1.0 }
 0x3a1   : > { %vm4454_vm0 = vcmp.ge.f32.partialorder %v4390_v56, 1.0  ;;  %v7558_v54 = vmul.f32 0.5, %v7542_v43  ;;  %v15185_v3 = vmul.f32 0.5, %v4768_v10  ;;  %v4770_v35 = vsub.f32 %v19268_v12, %v15183_v4  ;;  %v19271_v58 = vld [vmem:[#allocation107_spill] sm:$0xff]  ;;  %v19275_v43 = vld [vmem:[#allocation97_spill] sm:$0xff]  ;;  %v19276_v12 = vld [vmem:[#allocation100_spill] sm:$0xff] }
 0x3a2   : > { %v15187_v45 = vmul.f32 0.5, %v4772_v63  ;;  %v15189_v2 = vsel %vm4454_vm0, 0.0, %v4390_v56  ;;  %vm9815_vm4 = vmpackc.low %vm4454_vm0, %vm4450_vm14  ;;  %9982 = vmatprep.subr.bf16.mxu1 %v9981_v28  ;;  %v4393_v62 = vadd.f32 %v19271_v58, %v19270_v31  ;;  %v19272_v63 = vld [vmem:[#allocation163_spill] sm:$0xff]  ;;  %v19278_v31 = vld [vmem:[#allocation220_spill] sm:$0xff]  ;;  %vm7464_vm0 = vcmp.ge.f32.partialorder %v14538_v61, 1.0 }
 0x3a3   : > { %19265 = vst [vmem:[#allocation93_spill] sm:$0xff] %v15185_v3  ;;  %19267 = vst [vmem:[#allocation98_spill] sm:$0xff] %v15189_v2  ;;  %v4774_v49 = vsub.f32 %v19269_v50, %v15189_v2  ;;  %9816 = vmatmul.mubr.msk.bf16.gmra.mrb[204].mxu1 %vm9815_vm4, %v17855_v30  ;;  %v15199_v10 = vadd.f32 %v7558_v54, %v7526_v42  ;;  %v4397_v48 = vadd.f32 %v19273_v15, %v19272_v63  ;;  %v19274_v56 = vld [vmem:[#allocation99_spill] sm:$0xff]  ;;  %v19280_v63 = vld [vmem:[#allocation105_spill] sm:$0xff] }
 0x3a4   : > { %19266 = vst [vmem:[#allocation96_spill] sm:$0xff] %v15187_v45  ;;  %v4395_v45 = vadd.f32 %v19275_v43, %v19274_v56  ;;  %v19277_v4 = vld [vmem:[#allocation103_spill] sm:$0xff]  ;;  %9984 = vmatpush3.bf16.msra.mxu1 %v9981_v28  ;;  %v15207_v50 = vmul.f32 0.5, %v4770_v35  ;;  %vm4457_vm6 = vcmp.ge.f32.partialorder %v4393_v62, 1.0  ;;  %v6394_v58 = vadd.f32 %v15122_v57, %v19278_v31  ;;  %v19285_v56 = vld [vmem:[#allocation113_spill] sm:$0xff]  ;;  %v15231_v31 = vpop.f32.mrb[144].mxu0 }
 0x3a5   : > { %v4399_v3 = vadd.f32 %v19277_v4, %v19276_v12  ;;  %v15209_v2 = vmul.f32 0.5, %v4774_v49  ;;  %vm4461_vm7 = vcmp.ge.f32.partialorder %v4397_v48, 1.0  ;;  %v15213_v42 = vsel %vm4457_vm6, 0.0, %v4393_v62  ;;  %v19283_v4 = vld [vmem:[#allocation112_spill] sm:$0xff]  ;;  %v19284_v49 = vld [vmem:[#allocation106_spill] sm:$0xff]  ;;  %19286 = vst [vmem:[#allocation129_spill] sm:$0xff] %v15231_v31 }
 0x3a6   : > { %vm4459_vm13 = vcmp.ge.f32.partialorder %v4395_v45, 1.0  ;;  %v15215_v54 = vsel %vm4461_vm7, 0.0, %v4397_v48  ;;  %v4777_v15 = vsub.f32 %v19280_v63, %v15213_v42  ;;  %vm9561_vm11 = vmpackc.low %vm4461_vm7, %vm4457_vm6  ;;  %v6939_v43 = vadd.f32 %v14521_v34, %v6394_v58  ;;  %v6467_v34 = vpop.f32.mrb[145].mxu0 }
 0x3a7   : > { %vm4463_vm10 = vcmp.ge.f32.partialorder %v4399_v3, 1.0  ;;  %19279 = vst [vmem:[#allocation94_spill] sm:$0xff] %v15215_v54  ;;  %v15219_v12 = vsel %vm4459_vm13, 0.0, %v4395_v45  ;;  %v4781_v28 = vsub.f32 %v19283_v4, %v15215_v54  ;;  %9562 = vmatprep.mubr.msk.bf16.mxu0 %vm9561_vm11, %v17855_v30  ;;  %v15233_v45 = vpop.f32.mrb[136].mxu1  ;;  %v9267_v4 = vsel %vm7463_vm9, 1.0, %v18723_v11  ;;  %v19295_v34 = vld [vmem:[#allocation132_spill] sm:$0xff] }
 0x3a8   : > { %19281 = vst [vmem:[#allocation217_spill] sm:$0xff] %v15219_v12  ;;  %v15221_v35 = vsel %vm4463_vm10, 0.0, %v4399_v3  ;;  %v4779_v62 = vsub.f32 %v19284_v49, %v15219_v12  ;;  %vm9817_vm14 = vmpackc.low %vm4463_vm10, %vm4459_vm13  ;;  %v15235_v3 = vmul.f32 0.5, %v4777_v15  ;;  %v7527_v49 = vsel %vm7463_vm9, 0.0, %v14527_v32  ;;  %v7012_v58 = vpop.f32.mrb[137].mxu1  ;;  %v19294_v32 = vld [vmem:[#allocation117_spill] sm:$0xff] }
 0x3a9   : > { %19282 = vst [vmem:[#allocation185_spill] sm:$0xff] %v15221_v35  ;;  %v4783_v48 = vsub.f32 %v19285_v56, %v15221_v35  ;;  %19287 = vst [vmem:[#allocation102_spill] sm:$0xff] %v15233_v45  ;;  %9818 = vmatprep.mubr.msk.bf16.mxu1 %vm9817_vm14, %v17855_v30  ;;  %v6397_v56 = vadd.f32 %v15122_v57, %v14513_v21  ;;  %v15246_v31 = vmul.f32 0.5, %v4781_v28  ;;  %v19292_v35 = vld [vmem:[#allocation219_spill] sm:$0xff]  ;;  %v9268_v21 = vsel %vm7464_vm0, 1.0, %v18723_v11 }
 0x3aa   : > { %19288 = vst [vmem:[#allocation107_spill] sm:$0xff] %v15235_v3  ;;  %v15248_v45 = vmul.f32 0.5, %v4779_v62  ;;  %v15253_v63 = vadd.f32 %v9267_v4, %v19292_v35  ;;  %v7543_v12 = vsub.f32 %v6939_v43, %v7527_v49  ;;  %v4392_v3 = vadd.f32 %v19294_v32, %v14523_v8  ;;  %v19296_v62 = vld [vmem:[#allocation111_spill] sm:$0xff]  ;;  %v19299_v4 = vld [vmem:[#allocation221_spill] sm:$0xff]  ;;  %v19302_v8 = vld [vmem:[#allocation138_spill] sm:$0xff] }
 0x3ab   : > { %19289 = vst [vmem:[#allocation163_spill] sm:$0xff] %v15246_v31  ;;  %v15250_v15 = vmul.f32 0.5, %v4783_v48  ;;  %v6942_v54 = vadd.f32 %v14536_v6, %v6397_v56  ;;  %v7528_v28 = vsel %vm7464_vm0, 0.0, %v14538_v61  ;;  %v4396_v58 = vadd.f32 %v19296_v62, %v19295_v34  ;;  %v19297_v48 = vld [vmem:[#allocation108_spill] sm:$0xff]  ;;  %v19303_v32 = vld [vmem:[#allocation115_spill] sm:$0xff]  ;;  %v15272_v61 = vpop.f32.mrb[146].mxu0 }
 0x3ac   : > { %19290 = vst [vmem:[#allocation218_spill] sm:$0xff] %v15248_v45  ;;  %19293 = vst [vmem:[#allocation97_spill] sm:$0xff] %v15253_v63  ;;  %v7559_v35 = vmul.f32 0.5, %v7543_v12  ;;  %v15266_v43 = vadd.f32 %v9268_v21, %v19299_v4  ;;  %vm4456_vm4 = vcmp.ge.f32.partialorder %v4392_v3, 1.0  ;;  %v4398_v63 = vadd.f32 %v19303_v32, %v19302_v8  ;;  %v15274_v31 = vpop.f32.mrb[138].mxu1  ;;  %v19308_v21 = vld [vmem:[#allocation101_spill] sm:$0xff] }
 0x3ad   : > { %19291 = vst [vmem:[#allocation99_spill] sm:$0xff] %v15250_v15  ;;  %v19298_v15 = vld [vmem:[#allocation114_spill] sm:$0xff]  ;;  %v7544_v6 = vsub.f32 %v6942_v54, %v7528_v28  ;;  %vm4460_vm9 = vcmp.ge.f32.partialorder %v4396_v58, 1.0  ;;  %v15268_v56 = vsel %vm4456_vm4, 0.0, %v4392_v3  ;;  %19304 = vst [vmem:[#allocation220_spill] sm:$0xff] %v15272_v61  ;;  %v6470_v62 = vpop.f32.mrb[147].mxu0 }
 0x3ae   : > { %v4394_v45 = vadd.f32 %v19298_v15, %v19297_v48  ;;  %19300 = vst [vmem:[#allocation100_spill] sm:$0xff] %v15266_v43  ;;  %19301 = vst [vmem:[#allocation103_spill] sm:$0xff] %v15268_v56  ;;  %v15276_v34 = vadd.f32 %v7559_v35, %v7527_v49  ;;  %v15278_v12 = vsel %vm4460_vm9, 0.0, %v4396_v58  ;;  %v4776_v54 = vsub.f32 %v19308_v21, %v15268_v56  ;;  %v7015_v3 = vpop.f32.mrb[139].mxu1  ;;  %v19309_v48 = vld [vmem:[#allocation109_spill] sm:$0xff]  ;;  %v19311_v49 = vld [vmem:[#allocation116_spill] sm:$0xff] }
 0x3af   : > { %19305 = vst [vmem:[#allocation219_spill] sm:$0xff] %v15274_v31  ;;  %v7560_v15 = vmul.f32 0.5, %v7544_v6  ;;  %19307 = vst [vmem:[#allocation132_spill] sm:$0xff] %v15278_v12  ;;  %v4780_v4 = vsub.f32 %v19309_v48, %v15278_v12  ;;  %vm4462_vm13 = vcmp.ge.f32.partialorder %v4398_v63, 1.0  ;;  %v19312_v35 = vld [vmem:[#allocation126_spill] sm:$0xff]  ;;  %v19316_v62 = vld [vmem:[#allocation104_spill] sm:$0xff] }
 0x3b0   : > { %vm4458_vm6 = vcmp.ge.f32.partialorder %v4394_v45, 1.0  ;;  %19306 = vst [vmem:[#allocation117_spill] sm:$0xff] %v15276_v34  ;;  %vm9563_vm7 = vmpackc.low %vm4460_vm9, %vm4456_vm4  ;;  %v4401_v6 = vadd.f32 %v19312_v35, %v19311_v49  ;;  %v15292_v32 = vmul.f32 0.5, %v4776_v54  ;;  %v15294_v31 = vsel %vm4462_vm13, 0.0, %v4398_v63  ;;  %v19318_v48 = vld [vmem:[#allocation110_spill] sm:$0xff]  ;;  %v19319_v43 = vld [vmem:[#allocation127_spill] sm:$0xff] }
 0x3b1   : > { %9564 = vmatmul.mubr.msk.bf16.gmra.mrb[216].mxu0 %vm9563_vm7, %v17855_v30  ;;  %v15286_v8 = vsel %vm4458_vm6, 0.0, %v4394_v45  ;;  %v15290_v58 = vadd.f32 %v7560_v15, %v7528_v28  ;;  %19315 = vst [vmem:[#allocation221_spill] sm:$0xff] %v15294_v31  ;;  %vm9819_vm10 = vmpackc.low %vm4462_vm13, %vm4458_vm6  ;;  %v15299_v61 = vmul.f32 0.5, %v4780_v4  ;;  %v4782_v21 = vsub.f32 %v19318_v48, %v15294_v31  ;;  %v19320_v49 = vld [vmem:[#allocation131_spill] sm:$0xff]  ;;  %v19323_v54 = vld [vmem:[#allocation128_spill] sm:$0xff] }
 0x3b2   : > { %19310 = vst [vmem:[#allocation111_spill] sm:$0xff] %v15286_v8  ;;  %19314 = vst [vmem:[#allocation114_spill] sm:$0xff] %v15292_v32  ;;  %v4778_v3 = vsub.f32 %v19316_v62, %v15286_v8  ;;  %9820 = vmatmul.mubr.msk.bf16.gmra.mrb[208].mxu1 %vm9819_vm10, %v17855_v30  ;;  %v4405_v28 = vadd.f32 %v19320_v49, %v19319_v43  ;;  %vm4465_vm11 = vcmp.ge.f32.partialorder %v4401_v6, 1.0  ;;  %v19324_v35 = vld [vmem:[#allocation161_spill] sm:$0xff]  ;;  %v19325_v45 = vld [vmem:[#allocation23_spill] sm:$0xff]  ;;  %vm7465_vm6 = vcmp.ge.f32.partialorder %v14625_v47, 1.0 }
 0x3b3   : > { %19313 = vst [vmem:[#allocation108_spill] sm:$0xff] %v15290_v58  ;;  %19317 = vst [vmem:[#allocation138_spill] sm:$0xff] %v15299_v61  ;;  %v15308_v63 = vsel %vm4465_vm11, 0.0, %v4401_v6  ;;  %v4403_v62 = vadd.f32 %v19324_v35, %v19323_v54  ;;  %v19326_v8 = vld [vmem:[#allocation39_spill] sm:$0xff]  ;;  %v15314_v61 = vmul.f32 0.5, %v4782_v21  ;;  %v19328_v48 = vld [vmem:[#allocation120_spill] sm:$0xff] }
 0x3b4   : > { %v15306_v15 = vmul.f32 0.5, %v4778_v3  ;;  %19322 = vst [vmem:[#allocation116_spill] sm:$0xff] %v15308_v63  ;;  %v4407_v4 = vadd.f32 %v19326_v8, %v19325_v45  ;;  %vm4469_vm14 = vcmp.ge.f32.partialorder %v4405_v28, 1.0  ;;  %v4785_v31 = vsub.f32 %v19328_v48, %v15308_v63  ;;  %v19329_v12 = vld [vmem:[#allocation130_spill] sm:$0xff]  ;;  %v19331_v6 = vld [vmem:[#allocation124_spill] sm:$0xff]  ;;  %v19336_v35 = vld [vmem:[#allocation125_spill] sm:$0xff] }
 0x3b5   : > { %19327 = vst [vmem:[#allocation126_spill] sm:$0xff] %v15314_v61  ;;  %v6402_v43 = vadd.f32 %v15122_v57, %v19329_v12  ;;  %v15320_v49 = vsel %vm4469_vm14, 0.0, %v4405_v28  ;;  %vm9565_vm0 = vmpackc.low %vm4469_vm14, %vm4465_vm11  ;;  %vm4467_vm4 = vcmp.ge.f32.partialorder %v4403_v62, 1.0  ;;  %v19335_v12 = vld [vmem:[#allocation121_spill] sm:$0xff]  ;;  %v19337_v48 = vld [vmem:[#allocation166_spill] sm:$0xff]  ;;  %vm7466_vm13 = vcmp.ge.f32.partialorder %v14628_v40, 1.0 }
 0x3b6   : > { %19321 = vst [vmem:[#allocation115_spill] sm:$0xff] %v15306_v15  ;;  %19330 = vst [vmem:[#allocation127_spill] sm:$0xff] %v15320_v49  ;;  %vm4471_vm9 = vcmp.ge.f32.partialorder %v4407_v4, 1.0  ;;  %v4789_v3 = vsub.f32 %v19331_v6, %v15320_v49  ;;  %v15325_v8 = vmul.f32 0.5, %v4785_v31  ;;  %9566 = vmatprep.mubr.msk.bf16.mxu0 %vm9565_vm0, %v17855_v30  ;;  %v15328_v21 = vsel %vm4467_vm4, 0.0, %v4403_v62  ;;  %v19339_v49 = vld [vmem:[#allocation162_spill] sm:$0xff] }
 0x3b7   : > { %19333 = vst [vmem:[#allocation128_spill] sm:$0xff] %v15328_v21  ;;  %v15330_v54 = vsel %vm4471_vm9, 0.0, %v4407_v4  ;;  %vm9821_vm7 = vmpackc.low %vm4471_vm9, %vm4467_vm4  ;;  %v4787_v28 = vsub.f32 %v19335_v12, %v15328_v21  ;;  %v6947_v63 = vadd.f32 %v19337_v48, %v6402_v43  ;;  %v9269_v31 = vsel %vm7465_vm6, 1.0, %v18723_v11  ;;  %v15352_v48 = vpop.f32.mrb[148].mxu0  ;;  %v15354_v43 = vpop.f32.mrb[140].mxu1  ;;  %v19351_v15 = vld [vmem:[#allocation135_spill] sm:$0xff] }
 0x3b8   : > { %19332 = vst [vmem:[#allocation131_spill] sm:$0xff] %v15325_v8  ;;  %19334 = vst [vmem:[#allocation161_spill] sm:$0xff] %v15330_v54  ;;  %v4791_v45 = vsub.f32 %v19336_v35, %v15330_v54  ;;  %9822 = vmatprep.mubr.msk.bf16.mxu1 %vm9821_vm7, %v17855_v30  ;;  %v15339_v6 = vmul.f32 0.5, %v4789_v3  ;;  %v15342_v62 = vadd.f32 %v9269_v31, %v19339_v49  ;;  %v7529_v4 = vsel %vm7465_vm6, 0.0, %v14625_v47  ;;  %v19341_v8 = vld [vmem:[#allocation137_spill] sm:$0xff]  ;;  %v19346_v3 = vld [vmem:[#allocation196_spill] sm:$0xff] }
 0x3b9   : > { %v6405_v61 = vadd.f32 %v15122_v57, %v19341_v8  ;;  %v15347_v12 = vmul.f32 0.5, %v4787_v28  ;;  %v7545_v35 = vsub.f32 %v6947_v63, %v7529_v4  ;;  %19344 = vst [vmem:[#allocation162_spill] sm:$0xff] %v15352_v48  ;;  %19345 = vst [vmem:[#allocation137_spill] sm:$0xff] %v15354_v43  ;;  %v9270_v49 = vsel %vm7466_vm13, 1.0, %v18723_v11  ;;  %v19347_v31 = vld [vmem:[#allocation136_spill] sm:$0xff]  ;;  %v6475_v28 = vpop.f32.mrb[149].mxu0 }
 0x3ba   : > { %19338 = vst [vmem:[#allocation23_spill] sm:$0xff] %v15339_v6  ;;  %19340 = vst [vmem:[#allocation39_spill] sm:$0xff] %v15342_v62  ;;  %v15349_v21 = vmul.f32 0.5, %v4791_v45  ;;  %v7530_v47 = vsel %vm7466_vm13, 0.0, %v14628_v40  ;;  %v19348_v62 = vld [vmem:[#allocation140_spill] sm:$0xff]  ;;  %v19350_v6 = vld [vmem:[#allocation134_spill] sm:$0xff] }
 0x3bb   : > { %19342 = vst [vmem:[#allocation130_spill] sm:$0xff] %v15347_v12  ;;  %v6950_v54 = vadd.f32 %v19346_v3, %v6405_v61  ;;  %v4400_v8 = vadd.f32 %v19348_v62, %v19347_v31  ;;  %v7020_v12 = vpop.f32.mrb[141].mxu1  ;;  %v7561_v45 = vmul.f32 0.5, %v7545_v35  ;;  %v4404_v48 = vadd.f32 %v19351_v15, %v19350_v6  ;;  %v19352_v32 = vld [vmem:[#allocation34_spill] sm:$0xff]  ;;  %v19354_v56 = vld [vmem:[#allocation164_spill] sm:$0xff]  ;;  %v19355_v58 = vld [vmem:[#allocation165_spill] sm:$0xff] }
 0x3bc   : > { %19343 = vst [vmem:[#allocation166_spill] sm:$0xff] %v15349_v21  ;;  %v19349_v21 = vld [vmem:[#allocation133_spill] sm:$0xff]  ;;  %v4402_v43 = vadd.f32 %v14645_v7, %v19352_v32  ;;  %v19353_v3 = vld [vmem:[#allocation146_spill] sm:$0xff]  ;;  %v15378_v15 = vpop.f32.mrb[142].mxu1 }
 0x3bd   : > { %v15362_v63 = vadd.f32 %v9270_v49, %v19349_v21  ;;  %v7546_v61 = vsub.f32 %v6950_v54, %v7530_v47  ;;  %vm4464_vm10 = vcmp.ge.f32.partialorder %v4400_v8, 1.0  ;;  %v4406_v40 = vadd.f32 %v19354_v56, %v19353_v3  ;;  %v19356_v34 = vld [vmem:[#allocation141_spill] sm:$0xff]  ;;  %v15376_v21 = vpop.f32.mrb[150].mxu0  ;;  %19358 = vst [vmem:[#allocation136_spill] sm:$0xff] %v15378_v15  ;;  %v19359_v32 = vld [vmem:[#allocation118_spill] sm:$0xff]  ;;  %v19365_v3 = vld [vmem:[#allocation119_spill] sm:$0xff] }
 0x3be   : > { %v4857_v62 = vadd.f32 %v19356_v34, %v19355_v58  ;;  %v15372_v31 = vadd.f32 %v7561_v45, %v7529_v4  ;;  %vm4468_vm11 = vcmp.ge.f32.partialorder %v4404_v48, 1.0  ;;  %v15374_v12 = vsel %vm4464_vm10, 0.0, %v4400_v8  ;;  %19357 = vst [vmem:[#allocation196_spill] sm:$0xff] %v15376_v21  ;;  %v6478_v56 = vpop.f32.mrb[151].mxu0  ;;  %v7023_v34 = vpop.f32.mrb[143].mxu1  ;;  %v19360_v58 = vld [vmem:[#allocation122_spill] sm:$0xff] }
 0x3bf   : > { %vm4466_vm14 = vcmp.ge.f32.partialorder %v4402_v43, 1.0  ;;  %v7562_v6 = vmul.f32 0.5, %v7546_v61  ;;  %v15380_v7 = vsel %vm4468_vm11, 0.0, %v4404_v48  ;;  %v4784_v54 = vsub.f32 %v19359_v32, %v15374_v12  ;;  %vm9567_vm0 = vmpackc.low %vm4468_vm11, %vm4464_vm10  ;;  %v19363_v8 = vld [vmem:[#allocation143_spill] sm:$0xff]  ;;  %v19394_v32 = vld [vmem:[#allocation50_spill] sm:$0xff] }
 0x3c0   : > { %vm4470_vm4 = vcmp.ge.f32.partialorder %v4406_v40, 1.0  ;;  %v4788_v35 = vsub.f32 %v19360_v58, %v15380_v7  ;;  %9568 = vmatmul.mubr.msk.bf16.gmra.mrb[220].mxu0 %vm9567_vm0, %v17855_v30  ;;  %v15387_v4 = vsel %vm4466_vm14, 0.0, %v4402_v43  ;;  %v19364_v48 = vld [vmem:[#allocation187_spill] sm:$0xff]  ;;  %vm4921_vm6 = vcmp.ge.f32.partialorder %v4857_v62, 1.0 }
 0x3c1   : > { %19361 = vst [vmem:[#allocation140_spill] sm:$0xff] %v15387_v4  ;;  %v15389_v49 = vsel %vm4470_vm4, 0.0, %v4406_v40  ;;  %vm9823_vm9 = vmpackc.low %vm4470_vm4, %vm4466_vm14  ;;  %v4861_v28 = vadd.f32 %v19364_v48, %v19363_v8  ;;  %v15393_v45 = vadd.f32 %v7562_v6, %v7530_v47  ;;  %v15395_v61 = vmul.f32 0.5, %v4784_v54  ;;  %v19366_v34 = vld [vmem:[#allocation123_spill] sm:$0xff]  ;;  %v15414_v48 = vpop.f32.mrb[152].mxu0 }
 0x3c2   : > { %19362 = vst [vmem:[#allocation133_spill] sm:$0xff] %v15389_v49  ;;  %v4786_v56 = vsub.f32 %v19365_v3, %v15387_v4  ;;  %v4790_v15 = vsub.f32 %v19366_v34, %v15389_v49  ;;  %9824 = vmatmul.mubr.msk.bf16.gmra.mrb[212].mxu1 %vm9823_vm9, %v17855_v30  ;;  %v15402_v43 = vmul.f32 0.5, %v4788_v35  ;;  %v19368_v40 = vld [vmem:[#allocation147_spill] sm:$0xff]  ;;  %v15410_v6 = vsel %vm4921_vm6, 0.0, %v4857_v62  ;;  %19373 = vst [vmem:[#allocation165_spill] sm:$0xff] %v15414_v48  ;;  %v15416_v34 = vpop.f32.mrb[144].mxu1 }
 0x3c3   : > { %vm4925_vm7 = vcmp.ge.f32.partialorder %v4861_v28, 1.0  ;;  %v4859_v21 = vadd.f32 %v14691_v27, %v19368_v40  ;;  %19371 = vst [vmem:[#allocation146_spill] sm:$0xff] %v15410_v6  ;;  %19374 = vst [vmem:[#allocation141_spill] sm:$0xff] %v15416_v34  ;;  %v19377_v27 = vld [vmem:[#allocation188_spill] sm:$0xff]  ;;  %v6483_v62 = vpop.f32.mrb[153].mxu0  ;;  %v19379_v40 = vld [vmem:[#allocation139_spill] sm:$0xff] }
 0x3c4   : > { %19367 = vst [vmem:[#allocation134_spill] sm:$0xff] %v15402_v43  ;;  %v15406_v8 = vmul.f32 0.5, %v4786_v56  ;;  %v15408_v47 = vmul.f32 0.5, %v4790_v15  ;;  %v15412_v54 = vsel %vm4925_vm7, 0.0, %v4861_v28  ;;  %vm9569_vm13 = vmpackc.low %vm4925_vm7, %vm4921_vm6  ;;  %v4863_v15 = vadd.f32 %v14693_v13, %v19377_v27  ;;  %v7028_v28 = vpop.f32.mrb[145].mxu1  ;;  %v19380_v34 = vld [vmem:[#allocation142_spill] sm:$0xff] }
 0x3c5   : > { %19372 = vst [vmem:[#allocation164_spill] sm:$0xff] %v15412_v54  ;;  %9570 = vmatprep.mubr.msk.bf16.mxu0 %vm9569_vm13, %v17855_v30  ;;  %vm4923_vm10 = vcmp.ge.f32.partialorder %v4859_v21, 1.0  ;;  %v6410_v48 = vadd.f32 %v15122_v57, %v19379_v40  ;;  %vm7467_vm11 = vcmp.ge.f32.partialorder %v14713_v25, 1.0  ;;  %v6413_v3 = vadd.f32 %v15122_v57, %v19380_v34  ;;  %v19384_v28 = vld [vmem:[#allocation149_spill] sm:$0xff]  ;;  %v19386_v6 = vld [vmem:[#allocation152_spill] sm:$0xff]  ;;  %v15445_v34 = vpop.f32.mrb[146].mxu1 }
 0x3c6   : > { %19369 = vst [vmem:[#allocation135_spill] sm:$0xff] %v15406_v8  ;;  %19370 = vst [vmem:[#allocation34_spill] sm:$0xff] %v15408_v47  ;;  %v15425_v56 = vsel %vm4923_vm10, 0.0, %v4859_v21  ;;  %vm4927_vm14 = vcmp.ge.f32.partialorder %v4863_v15, 1.0  ;;  %v9271_v58 = vsel %vm7467_vm11, 1.0, %v18723_v11  ;;  %v7531_v13 = vsel %vm7467_vm11, 0.0, %v14713_v25 }
 0x3c7   : > { %19378 = vst [vmem:[#allocation143_spill] sm:$0xff] %v15425_v56  ;;  %v15436_v27 = vsel %vm4927_vm14, 0.0, %v4863_v15  ;;  %vm9825_vm0 = vmpackc.low %vm4927_vm14, %vm4923_vm10  ;;  %v19383_v21 = vld [vmem:[#allocation144_spill] sm:$0xff]  ;;  %v15440_v40 = vadd.f32 %v9271_v58, %v19384_v28  ;;  %v6958_v35 = vadd.f32 %v19386_v6, %v6413_v3  ;;  %v15443_v47 = vpop.f32.mrb[154].mxu0  ;;  %vm7468_vm4 = vcmp.ge.f32.partialorder %v14716_v20, 1.0  ;;  %v19390_v25 = vld [vmem:[#allocation145_spill] sm:$0xff] }
 0x3c8   : > { %19382 = vst [vmem:[#allocation187_spill] sm:$0xff] %v15436_v27  ;;  %v6955_v62 = vadd.f32 %v19383_v21, %v6410_v48  ;;  %19387 = vst [vmem:[#allocation188_spill] sm:$0xff] %v15443_v47  ;;  %9826 = vmatprep.mubr.msk.bf16.mxu1 %vm9825_vm0, %v17855_v30  ;;  %v4856_v15 = vadd.f32 %v19390_v25, %v14701_v37  ;;  %v19391_v48 = vld [vmem:[#allocation148_spill] sm:$0xff]  ;;  %v19392_v21 = vld [vmem:[#allocation47_spill] sm:$0xff]  ;;  %v6486_v28 = vpop.f32.mrb[155].mxu0  ;;  %v9272_v6 = vsel %vm7468_vm4, 1.0, %v18723_v11 }
 0x3c9   : > { %19385 = vst [vmem:[#allocation147_spill] sm:$0xff] %v15440_v40  ;;  %19388 = vst [vmem:[#allocation139_spill] sm:$0xff] %v15445_v34  ;;  %v4860_v58 = vadd.f32 %v19392_v21, %v19391_v48  ;;  %v7031_v40 = vpop.f32.mrb[147].mxu1  ;;  %v7532_v34 = vsel %vm7468_vm4, 0.0, %v14716_v20  ;;  %v19393_v47 = vld [vmem:[#allocation150_spill] sm:$0xff]  ;;  %v19395_v27 = vld [vmem:[#allocation153_spill] sm:$0xff] }
 0x3ca   : > { %v7547_v3 = vsub.f32 %v6955_v62, %v7531_v13  ;;  %v4858_v56 = vadd.f32 %v19394_v32, %v19393_v47  ;;  %v15460_v54 = vadd.f32 %v9272_v6, %v19395_v27  ;;  %v7548_v49 = vsub.f32 %v6958_v35, %v7532_v34  ;;  %v19396_v48 = vld [vmem:[#allocation190_spill] sm:$0xff]  ;;  %v19397_v40 = vld [vmem:[#allocation192_spill] sm:$0xff]  ;;  %v19398_v28 = vld [vmem:[#allocation3_spill] sm:$0xff]  ;;  %v15467_v32 = vpop.f32.mrb[156].mxu0  ;;  %v15469_v47 = vpop.f32.mrb[148].mxu1 }
 0x3cb   : > { %vm4920_vm9 = vcmp.ge.f32.partialorder %v4856_v15, 1.0  ;;  %vm4924_vm6 = vcmp.ge.f32.partialorder %v4860_v58, 1.0  ;;  %v4862_v62 = vadd.f32 %v19397_v40, %v19396_v48  ;;  %v19399_v20 = vld [vmem:[#allocation7_spill] sm:$0xff]  ;;  %19400 = vst [vmem:[#allocation142_spill] sm:$0xff] %v15467_v32  ;;  %19401 = vst [vmem:[#allocation144_spill] sm:$0xff] %v15469_v47  ;;  %v19410_v47 = vld [vmem:[#allocation197_spill] sm:$0xff] }
 0x3cc   : > { %v7563_v37 = vmul.f32 0.5, %v7547_v3  ;;  %v5176_v25 = vsel %vm4920_vm9, 0.0, %v4856_v15  ;;  %v5180_v8 = vsel %vm4924_vm6, 0.0, %v4860_v58  ;;  %vm9571_vm7 = vmpackc.low %vm4924_vm6, %vm4920_vm9  ;;  %v7564_v21 = vmul.f32 0.5, %v7548_v49  ;;  %v19402_v15 = vld [vmem:[#allocation156_spill] sm:$0xff]  ;;  %v6491_v49 = vpop.f32.mrb[157].mxu0 }
 0x3cd   : > { %v5240_v4 = vsub.f32 %v19398_v28, %v5176_v25  ;;  %v5244_v43 = vsub.f32 %v19399_v20, %v5180_v8  ;;  %9572 = vmatmul.mubr.msk.bf16.gmra.mrb[224].mxu0 %vm9571_vm7, %v17855_v30  ;;  %vm4922_vm13 = vcmp.ge.f32.partialorder %v4858_v56, 1.0  ;;  %vm4926_vm10 = vcmp.ge.f32.partialorder %v4862_v62, 1.0  ;;  %v7036_v3 = vpop.f32.mrb[149].mxu1  ;;  %v19403_v20 = vld [vmem:[#allocation6_spill] sm:$0xff] }
 0x3ce   : > { %v15471_v35 = vadd.f32 %v7563_v37, %v7531_v13  ;;  %v15473_v27 = vsel %vm4922_vm13, 0.0, %v4858_v56  ;;  %v4865_v58 = vadd.f32 %v14777_v53, %v19402_v15  ;;  %v15477_v6 = vadd.f32 %v7564_v21, %v7532_v34  ;;  %vm9827_vm11 = vmpackc.low %vm4926_vm10, %vm4922_vm13  ;;  %v19404_v13 = vld [vmem:[#allocation11_spill] sm:$0xff]  ;;  %v19405_v56 = vld [vmem:[#allocation193_spill] sm:$0xff]  ;;  %v15493_v21 = vpop.f32.mrb[158].mxu0  ;;  %v15495_v49 = vpop.f32.mrb[150].mxu1 }
 0x3cf   : > { %v5304_v48 = vmul.f32 0.5, %v5240_v4  ;;  %v5308_v40 = vmul.f32 0.5, %v5244_v43  ;;  %v15479_v28 = vsel %vm4926_vm10, 0.0, %v4862_v62  ;;  %9828 = vmatmul.mubr.msk.bf16.gmra.mrb[216].mxu1 %vm9827_vm11, %v17855_v30  ;;  %v4869_v53 = vadd.f32 %v14779_v14, %v19405_v56  ;;  %v19406_v43 = vld [vmem:[#allocation33_spill] sm:$0xff]  ;;  %19407 = vst [vmem:[#allocation149_spill] sm:$0xff] %v15493_v21  ;;  %19408 = vst [vmem:[#allocation152_spill] sm:$0xff] %v15495_v49 }
 0x3d0   : > { %vm4929_vm14 = vcmp.ge.f32.partialorder %v4865_v58, 1.0  ;;  %v4867_v62 = vadd.f32 %v14781_v1, %v19406_v43  ;;  %v19409_v3 = vld [vmem:[#allocation16_spill] sm:$0xff]  ;;  %v4871_v14 = vadd.f32 %v14783_v16, %v19410_v47  ;;  %v19411_v56 = vld [vmem:[#allocation189_spill] sm:$0xff]  ;;  %v19417_v47 = vld [vmem:[#allocation154_spill] sm:$0xff] }
 0x3d1   : > { %v5368_v15 = vadd.f32 %v5304_v48, %v5176_v25  ;;  %v5372_v34 = vadd.f32 %v5308_v40, %v5180_v8  ;;  %v15489_v4 = vsel %vm4929_vm14, 0.0, %v4865_v58  ;;  %vm4933_vm0 = vcmp.ge.f32.partialorder %v4869_v53, 1.0  ;;  %v6494_v25 = vpop.f32.mrb[159].mxu0  ;;  %v7039_v48 = vpop.f32.mrb[151].mxu1  ;;  %v19424_v21 = vld [vmem:[#allocation155_spill] sm:$0xff] }
 0x3d2   : > { %v6418_v8 = vadd.f32 %v15122_v57, %v19411_v56  ;;  %v15503_v40 = vsel %vm4933_vm0, 0.0, %v4869_v53  ;;  %vm9573_vm6 = vmpackc.low %vm4933_vm0, %vm4929_vm14  ;;  %vm4931_vm7 = vcmp.ge.f32.partialorder %v4867_v62, 1.0  ;;  %vm4935_vm10 = vcmp.ge.f32.partialorder %v4871_v14, 1.0  ;;  %v19420_v56 = vld [vmem:[#allocation191_spill] sm:$0xff]  ;;  %v15523_v48 = vpop.f32.mrb[160].mxu0  ;;  %v15525_v37 = vpop.f32.mrb[152].mxu1 }
 0x3d3   : > { %vm5432_vm4 = vcmp.ge.f32.partialorder %v5368_v15, 1.0  ;;  %vm5436_vm9 = vcmp.ge.f32.partialorder %v5372_v34, 1.0  ;;  %19412 = vst [vmem:[#allocation145_spill] sm:$0xff] %v15503_v40  ;;  %9574 = vmatprep.mubr.msk.bf16.mxu0 %vm9573_vm6, %v17855_v30  ;;  %v15513_v16 = vsel %vm4931_vm7, 0.0, %v4867_v62  ;;  %v15516_v34 = vsel %vm4935_vm10, 0.0, %v4871_v14  ;;  %vm9829_vm11 = vmpackc.low %vm4935_vm10, %vm4931_vm7  ;;  %v7044_v53 = vpop.f32.mrb[153].mxu1 }
 0x3d4   : > { %vm15506_vm13 = vmpackc.low %vm5436_vm9, %vm5432_vm4  ;;  %19416 = vst [vmem:[#allocation148_spill] sm:$0xff] %v15513_v16  ;;  %v6963_v15 = vadd.f32 %v19417_v47, %v6418_v8  ;;  %vm7469_vm14 = vcmp.ge.f32.partialorder %v14809_v22, 1.0  ;;  %v6421_v25 = vadd.f32 %v15122_v57, %v19420_v56  ;;  %9830 = vmatprep.mubr.msk.bf16.mxu1 %vm9829_vm11, %v17855_v30  ;;  %vm7470_vm0 = vcmp.ge.f32.partialorder %v14812_v19, 1.0  ;;  %v6499_v47 = vpop.f32.mrb[161].mxu0  ;;  %v15540_v49 = vpop.f32.mrb[154].mxu1  ;;  %v19433_v40 = vld [vmem:[#allocation167_spill] sm:$0xff] }
 0x3d5   : > { %19418 = vst [vmem:[#allocation47_spill] sm:$0xff] %v15516_v34  ;;  %19421 = vst [vmem:[#allocation150_spill] sm:$0xff] %v15523_v48  ;;  %v9273_v14 = vsel %vm7469_vm14, 1.0, %v18723_v11  ;;  %v7533_v8 = vsel %vm7469_vm14, 0.0, %v14809_v22  ;;  %v19426_v48 = vld [vmem:[#allocation194_spill] sm:$0xff]  ;;  %v15538_v58 = vpop.f32.mrb[162].mxu0  ;;  %v4864_v53 = vadd.f32 %v14814_v55, %v14789_v24 }
 0x3d6   : > { %19422 = vst [vmem:[#allocation50_spill] sm:$0xff] %v15525_v37  ;;  %v15534_v32 = vadd.f32 %v9273_v14, %v19424_v21  ;;  %v7549_v56 = vsub.f32 %v6963_v15, %v7533_v8  ;;  %v6966_v16 = vadd.f32 %v19426_v48, %v6421_v25  ;;  %v9274_v37 = vsel %vm7470_vm0, 1.0, %v18723_v11  ;;  %19427 = vst [vmem:[#allocation190_spill] sm:$0xff] %v15538_v58  ;;  %v19429_v34 = vld [vmem:[#allocation168_spill] sm:$0xff]  ;;  %v6502_v15 = vpop.f32.mrb[163].mxu0  ;;  %v7047_v14 = vpop.f32.mrb[155].mxu1 }
 0x3d7   : > { %19428 = vst [vmem:[#allocation192_spill] sm:$0xff] %v15540_v49  ;;  %v15543_v62 = vadd.f32 %v9274_v37, %v19429_v34  ;;  %v7534_v22 = vsel %vm7470_vm0, 0.0, %v14812_v19  ;;  %v19431_v47 = vld [vmem:[#allocation40_spill] sm:$0xff]  ;;  %v4870_v49 = vadd.f32 %v14846_v36, %v19433_v40  ;;  %vm4928_vm4 = vcmp.ge.f32.partialorder %v4864_v53, 1.0  ;;  %v19434_v37 = vld [vmem:[#allocation53_spill] sm:$0xff]  ;;  %v19437_v24 = vld [vmem:[#allocation171_spill] sm:$0xff] }
 0x3d8   : > { %19425 = vst [vmem:[#allocation153_spill] sm:$0xff] %v15534_v32  ;;  %v4868_v21 = vadd.f32 %v14816_v23, %v19431_v47  ;;  %v7565_v25 = vmul.f32 0.5, %v7549_v56  ;;  %v7550_v48 = vsub.f32 %v6966_v16, %v7534_v22  ;;  %v19432_v32 = vld [vmem:[#allocation158_spill] sm:$0xff]  ;;  %v19435_v19 = vld [vmem:[#allocation157_spill] sm:$0xff]  ;;  %v5184_v47 = vsel %vm4928_vm4, 0.0, %v4864_v53 }
 0x3d9   : > { %19430 = vst [vmem:[#allocation3_spill] sm:$0xff] %v15543_v62  ;;  %v4866_v58 = vadd.f32 %v14844_v5, %v19432_v32  ;;  %v4873_v34 = vadd.f32 %v19435_v19, %v19434_v37  ;;  %v19436_v62 = vld [vmem:[#allocation170_spill] sm:$0xff]  ;;  %v19439_v5 = vld [vmem:[#allocation19_spill] sm:$0xff]  ;;  %vm4934_vm10 = vcmp.ge.f32.partialorder %v4870_v49, 1.0  ;;  %v19441_v53 = vld [vmem:[#allocation17_spill] sm:$0xff] }
 0x3da   : > { %vm4932_vm9 = vcmp.ge.f32.partialorder %v4868_v21, 1.0  ;;  %v4877_v55 = vadd.f32 %v19437_v24, %v19436_v62  ;;  %v15558_v43 = vadd.f32 %v7565_v25, %v7533_v8  ;;  %v7566_v23 = vmul.f32 0.5, %v7550_v48  ;;  %v19438_v16 = vld [vmem:[#allocation14_spill] sm:$0xff]  ;;  %v19442_v25 = vld [vmem:[#allocation20_spill] sm:$0xff]  ;;  %v15581_v24 = vpop.f32.mrb[164].mxu0 }
 0x3db   : > { %v5188_v56 = vsel %vm4932_vm9, 0.0, %v4868_v21  ;;  %vm9575_vm6 = vmpackc.low %vm4932_vm9, %vm4928_vm4  ;;  %v5248_v15 = vsub.f32 %v19438_v16, %v5184_v47  ;;  %vm4930_vm7 = vcmp.ge.f32.partialorder %v4866_v58, 1.0  ;;  %v15567_v14 = vsel %vm4934_vm10, 0.0, %v4870_v49  ;;  %v19444_v37 = vld [vmem:[#allocation56_spill] sm:$0xff]  ;;  %19445 = vst [vmem:[#allocation156_spill] sm:$0xff] %v15581_v24  ;;  %v6507_v48 = vpop.f32.mrb[165].mxu0 }
 0x3dc   : > { %v5252_v32 = vsub.f32 %v19439_v5, %v5188_v56  ;;  %9576 = vmatmul.mubr.msk.bf16.gmra.mrb[228].mxu0 %vm9575_vm6, %v17855_v30  ;;  %v15563_v36 = vadd.f32 %v7566_v23, %v7534_v22  ;;  %v15565_v40 = vsel %vm4930_vm7, 0.0, %v4866_v58  ;;  %19440 = vst [vmem:[#allocation7_spill] sm:$0xff] %v15567_v14  ;;  %vm9831_vm11 = vmpackc.low %vm4934_vm10, %vm4930_vm7  ;;  %vm4937_vm14 = vcmp.ge.f32.partialorder %v4873_v34, 1.0  ;;  %v19443_v58 = vld [vmem:[#allocation198_spill] sm:$0xff]  ;;  %v19447_v5 = vld [vmem:[#allocation28_spill] sm:$0xff] }
 0x3dd   : > { %v5312_v62 = vmul.f32 0.5, %v5248_v15  ;;  %9832 = vmatmul.mubr.msk.bf16.gmra.mrb[220].mxu1 %vm9831_vm11, %v17855_v30  ;;  %vm4941_vm0 = vcmp.ge.f32.partialorder %v4877_v55, 1.0  ;;  %v15575_v22 = vsel %vm4937_vm14, 0.0, %v4873_v34  ;;  %v4875_v49 = vadd.f32 %v14881_v59, %v19443_v58  ;;  %v15599_v34 = vpop.f32.mrb[156].mxu1  ;;  %v19459_v14 = vld [vmem:[#allocation169_spill] sm:$0xff]  ;;  %v19463_v24 = vld [vmem:[#allocation44_spill] sm:$0xff] }
 0x3de   : > { %v5316_v8 = vmul.f32 0.5, %v5252_v32  ;;  %v4879_v19 = vadd.f32 %v14883_v17, %v19444_v37  ;;  %v15583_v15 = vsel %vm4941_vm0, 0.0, %v4877_v55  ;;  %vm9577_vm4 = vmpackc.low %vm4941_vm0, %vm4937_vm14  ;;  %v19449_v17 = vld [vmem:[#allocation195_spill] sm:$0xff]  ;;  %19453 = vst [vmem:[#allocation16_spill] sm:$0xff] %v15599_v34  ;;  %vm7471_vm0 = vcmp.ge.f32.partialorder %v14897_v60, 1.0  ;;  %v19461_v34 = vld [vmem:[#allocation57_spill] sm:$0xff] }
 0x3df   : > { %v5376_v23 = vadd.f32 %v5312_v62, %v5184_v47  ;;  %19446 = vst [vmem:[#allocation6_spill] sm:$0xff] %v15583_v15  ;;  %9578 = vmatprep.mubr.msk.bf16.mxu0 %vm9577_vm4, %v17855_v30  ;;  %vm4939_vm9 = vcmp.ge.f32.partialorder %v4875_v49, 1.0  ;;  %v6426_v59 = vadd.f32 %v15122_v57, %v19449_v17  ;;  %v15593_v47 = vpop.f32.mrb[166].mxu0  ;;  %v6429_v32 = vadd.f32 %v15122_v57, %v19459_v14  ;;  %v19464_v37 = vld [vmem:[#allocation38_spill] sm:$0xff] }
 0x3e0   : > { %v5380_v16 = vadd.f32 %v5316_v8, %v5188_v56  ;;  %vm4943_vm6 = vcmp.ge.f32.partialorder %v4879_v19, 1.0  ;;  %19450 = vst [vmem:[#allocation11_spill] sm:$0xff] %v15593_v47  ;;  %v15595_v55 = vsel %vm4939_vm9, 0.0, %v4875_v49  ;;  %v6510_v62 = vpop.f32.mrb[167].mxu0  ;;  %v19458_v49 = vld [vmem:[#allocation54_spill] sm:$0xff]  ;;  %vm7472_vm4 = vcmp.ge.f32.partialorder %v14900_v29, 1.0 }
 0x3e1   : > { %vm5440_vm7 = vcmp.ge.f32.partialorder %v5376_v23, 1.0  ;;  %19451 = vst [vmem:[#allocation193_spill] sm:$0xff] %v15595_v55  ;;  %v15597_v56 = vsel %vm4943_vm6, 0.0, %v4879_v19  ;;  %vm9833_vm11 = vmpackc.low %vm4943_vm6, %vm4939_vm9  ;;  %v6971_v23 = vadd.f32 %v19458_v49, %v6426_v59  ;;  %v7052_v19 = vpop.f32.mrb[157].mxu1  ;;  %v7535_v62 = vsel %vm7471_vm0, 0.0, %v14897_v60  ;;  %v19466_v55 = vld [vmem:[#allocation58_spill] sm:$0xff] }
 0x3e2   : > { %vm5444_vm10 = vcmp.ge.f32.partialorder %v5380_v16, 1.0  ;;  %19452 = vst [vmem:[#allocation33_spill] sm:$0xff] %v15597_v56  ;;  %9834 = vmatprep.mubr.msk.bf16.mxu1 %vm9833_vm11, %v17855_v30  ;;  %v9275_v16 = vsel %vm7471_vm0, 1.0, %v18723_v11  ;;  %v15617_v58 = vpop.f32.mrb[158].mxu1  ;;  %v9276_v59 = vsel %vm7472_vm4, 1.0, %v18723_v11  ;;  %v7536_v49 = vsel %vm7472_vm4, 0.0, %v14900_v29 }
 0x3e3   : > { %vm15601_vm14 = vmpackc.low %vm5444_vm10, %vm5440_vm7  ;;  %19460 = vst [vmem:[#allocation197_spill] sm:$0xff] %v15617_v58  ;;  %v15620_v17 = vadd.f32 %v9275_v16, %v19461_v34  ;;  %v7551_v47 = vsub.f32 %v6971_v23, %v7535_v62  ;;  %v7055_v19 = vpop.f32.mrb[159].mxu1  ;;  %v6974_v56 = vadd.f32 %v19463_v24, %v6429_v32  ;;  %v15626_v60 = vadd.f32 %v9276_v59, %v19464_v37  ;;  %v19467_v23 = vld [vmem:[#allocation200_spill] sm:$0xff]  ;;  %v19468_v29 = vld [vmem:[#allocation37_spill] sm:$0xff] }
 0x3e4   : > { %v4872_v14 = vadd.f32 %v14908_v18, %v14885_v51  ;;  %v4876_v58 = vadd.f32 %v19466_v55, %v14887_v0  ;;  %v4874_v34 = vadd.f32 %v14925_v33, %v14902_v26  ;;  %v4878_v16 = vadd.f32 %v19467_v23, %v14904_v9  ;;  %v19469_v19 = vld [vmem:[#allocation172_spill] sm:$0xff]  ;;  %v19470_v32 = vld [vmem:[#allocation61_spill] sm:$0xff]  ;;  %v19474_v55 = vld [vmem:[#allocation30_spill] sm:$0xff]  ;;  %v15667_v21 = vpop.f32.mrb[160].mxu1 }
 0x3e5   : > { %19462 = vst [vmem:[#allocation189_spill] sm:$0xff] %v15620_v17  ;;  %19465 = vst [vmem:[#allocation154_spill] sm:$0xff] %v15626_v60  ;;  %v7567_v48 = vmul.f32 0.5, %v7551_v47  ;;  %v4881_v17 = vadd.f32 %v19469_v19, %v19468_v29  ;;  %v7552_v24 = vsub.f32 %v6974_v56, %v7536_v49  ;;  %v19471_v37 = vld [vmem:[#allocation64_spill] sm:$0xff]  ;;  %v19473_v26 = vld [vmem:[#allocation25_spill] sm:$0xff]  ;;  %v15649_v19 = vpop.f32.mrb[168].mxu0 }
 0x3e6   : > { %vm4936_vm9 = vcmp.ge.f32.partialorder %v4872_v14, 1.0  ;;  %vm4940_vm6 = vcmp.ge.f32.partialorder %v4876_v58, 1.0  ;;  %v4885_v59 = vadd.f32 %v19471_v37, %v19470_v32  ;;  %vm4938_vm10 = vcmp.ge.f32.partialorder %v4874_v34, 1.0  ;;  %19477 = vst [vmem:[#allocation194_spill] sm:$0xff] %v15649_v19  ;;  %19487 = vst [vmem:[#allocation158_spill] sm:$0xff] %v15667_v21 }
 0x3e7   : > { %v15640_v51 = vadd.f32 %v7567_v48, %v7535_v62  ;;  %v5192_v18 = vsel %vm4936_vm9, 0.0, %v4872_v14  ;;  %v5196_v0 = vsel %vm4940_vm6, 0.0, %v4876_v58  ;;  %vm9579_vm7 = vmpackc.low %vm4940_vm6, %vm4936_vm9  ;;  %v7568_v47 = vmul.f32 0.5, %v7552_v24  ;;  %v19476_v58 = vld [vmem:[#allocation26_spill] sm:$0xff]  ;;  %v19478_v24 = vld [vmem:[#allocation31_spill] sm:$0xff] }
 0x3e8   : > { %v5256_v33 = vsub.f32 %v19473_v26, %v5192_v18  ;;  %v5260_v9 = vsub.f32 %v19474_v55, %v5196_v0  ;;  %9580 = vmatmul.mubr.msk.bf16.gmra.mrb[232].mxu0 %vm9579_vm7, %v17855_v30  ;;  %vm4942_vm11 = vcmp.ge.f32.partialorder %v4878_v16, 1.0  ;;  %v5194_v56 = vsel %vm4938_vm10, 0.0, %v4874_v34  ;;  %v6515_v26 = vpop.f32.mrb[169].mxu0 }
 0x3e9   : > { %19472 = vst [vmem:[#allocation191_spill] sm:$0xff] %v15640_v51  ;;  %v5198_v23 = vsel %vm4942_vm11, 0.0, %v4878_v16  ;;  %vm9835_vm0 = vmpackc.low %vm4942_vm11, %vm4938_vm10  ;;  %vm4945_vm4 = vcmp.ge.f32.partialorder %v4881_v17, 1.0  ;;  %vm4949_vm8 = vcmp.ge.f32.partialorder %v4885_v59, 1.0  ;;  %v15645_v29 = vadd.f32 %v7568_v47, %v7536_v49  ;;  %v19480_v16 = vld [vmem:[#allocation70_spill] sm:$0xff]  ;;  %v19481_v49 = vld [vmem:[#allocation203_spill] sm:$0xff] }
 0x3ea   : > { %v5320_v48 = vmul.f32 0.5, %v5256_v33  ;;  %v5324_v62 = vmul.f32 0.5, %v5260_v9  ;;  %v5258_v14 = vsub.f32 %v19476_v58, %v5194_v56  ;;  %9836 = vmatmul.mubr.msk.bf16.gmra.mrb[224].mxu1 %vm9835_vm0, %v17855_v30  ;;  %vm9581_vm9 = vmpackc.low %vm4949_vm8, %vm4945_vm4  ;;  %v5262_v32 = vsub.f32 %v19478_v24, %v5198_v23  ;;  %v19482_v58 = vld [vmem:[#allocation45_spill] sm:$0xff]  ;;  %v19486_v51 = vld [vmem:[#allocation223_spill] sm:$0xff] }
 0x3eb   : > { %19475 = vst [vmem:[#allocation155_spill] sm:$0xff] %v15645_v29  ;;  %v15652_v37 = vsel %vm4945_vm4, 0.0, %v4881_v17  ;;  %v15654_v34 = vsel %vm4949_vm8, 0.0, %v4885_v59  ;;  %9582 = vmatprep.mubr.msk.bf16.mxu0 %vm9581_vm9, %v17855_v30  ;;  %v4883_v47 = vadd.f32 %v19481_v49, %v19480_v16  ;;  %v15661_v29 = vpop.f32.mrb[170].mxu0  ;;  %v19484_v17 = vld [vmem:[#allocation51_spill] sm:$0xff]  ;;  %v19485_v59 = vld [vmem:[#allocation202_spill] sm:$0xff] }
 0x3ec   : > { %19479 = vst [vmem:[#allocation168_spill] sm:$0xff] %v15654_v34  ;;  %v5384_v33 = vadd.f32 %v5320_v48, %v5192_v18  ;;  %v5388_v55 = vadd.f32 %v5324_v62, %v5196_v0  ;;  %v5322_v9 = vmul.f32 0.5, %v5258_v14  ;;  %19483 = vst [vmem:[#allocation40_spill] sm:$0xff] %v15661_v29  ;;  %v5326_v19 = vmul.f32 0.5, %v5262_v32  ;;  %v6518_v16 = vpop.f32.mrb[171].mxu0  ;;  %v7060_v48 = vpop.f32.mrb[161].mxu1 }
 0x3ed   : > { %v4887_v15 = vadd.f32 %v19486_v51, %v19485_v59  ;;  %vm4947_vm8 = vcmp.ge.f32.partialorder %v4883_v47, 1.0  ;;  %v19492_v49 = vld [vmem:[#allocation55_spill] sm:$0xff]  ;;  %v15680_v59 = vpop.f32.mrb[162].mxu1  ;;  %v19497_v16 = vld [vmem:[#allocation80_spill] sm:$0xff]  ;;  %v19503_v60 = vmov 0  ;;  %v19511_v51 = vld [vmem:[#allocation174_spill] sm:$0xff] }
 0x3ee   : > { %vm5448_vm6 = vcmp.ge.f32.partialorder %v5384_v33, 1.0  ;;  %vm5452_vm7 = vcmp.ge.f32.partialorder %v5388_v55, 1.0  ;;  %v5386_v18 = vadd.f32 %v5322_v9, %v5194_v56  ;;  %v15670_v0 = vsel %vm4947_vm8, 0.0, %v4883_v47  ;;  %19493 = vst [vmem:[#allocation53_spill] sm:$0xff] %v15680_v59  ;;  %v19495_v33 = vld [vmem:[#allocation43_spill] sm:$0xff]  ;;  %v19527_v34 = vld [vmem:[#allocation226_spill] sm:$0xff] }
 0x3ef   : > { %19488 = vst [vmem:[#allocation167_spill] sm:$0xff] %v15670_v0  ;;  %vm15672_vm10 = vmpackc.low %vm5452_vm7, %vm5448_vm6  ;;  %v5390_v14 = vadd.f32 %v5326_v19, %v5198_v23  ;;  %vm4951_vm11 = vcmp.ge.f32.partialorder %v4887_v15, 1.0  ;;  %v6434_v26 = vadd.f32 %v15122_v57, %v19492_v49  ;;  %v6437_v55 = vadd.f32 %v15122_v57, %v19495_v33  ;;  %v19496_v9 = vld [vmem:[#allocation71_spill] sm:$0xff]  ;;  %v7063_v19 = vpop.f32.mrb[163].mxu1  ;;  %v19545_v32 = vld [vmem:[#allocation177_spill] sm:$0xff] }
 0x3f0   : > { %vm5450_vm0 = vcmp.ge.f32.partialorder %v5386_v18, 1.0  ;;  %v15682_v56 = vsel %vm4951_vm11, 0.0, %v4887_v15  ;;  %vm9837_vm4 = vmpackc.low %vm4951_vm11, %vm4947_vm8  ;;  %v4880_v23 = vadd.f32 %v19497_v16, %v19496_v9  ;;  %v19499_v49 = vld [vmem:[#allocation159_spill] sm:$0xff]  ;;  %v19501_v15 = vld [vmem:[#allocation205_spill] sm:$0xff]  ;;  %v15729_v0 = vpop.f32.mrb[164].mxu1 }
 0x3f1   : > { %19494 = vst [vmem:[#allocation157_spill] sm:$0xff] %v15682_v56  ;;  %vm5454_vm9 = vcmp.ge.f32.partialorder %v5390_v14, 1.0  ;;  %9838 = vmatprep.mubr.msk.bf16.mxu1 %vm9837_vm4, %v17855_v30  ;;  %v15693_v24 = vadd.f32 %v19499_v49, %v6434_v26  ;;  %v19502_v18 = vld [vmem:[#allocation207_spill] sm:$0xff]  ;;  %v19508_v14 = vld [vmem:[#allocation206_spill] sm:$0xff]  ;;  %v19509_v9 = vld [vmem:[#allocation173_spill] sm:$0xff] }
 0x3f2   : > { %v4884_v47 = vadd.f32 %v19502_v18, %v19501_v15  ;;  %vm15697_vm8 = vmpackc.low %vm5454_vm9, %vm5450_vm0  ;;  %v19506_v57 = vld [vmem:[#allocation199_spill] sm:$0xff]  ;;  %vm4944_vm6 = vcmp.ge.f32.partialorder %v4880_v23, 1.0  ;;  %v4882_v16 = vadd.f32 %v19509_v9, %v19508_v14  ;;  %v19510_v19 = vld [vmem:[#allocation204_spill] sm:$0xff]  ;;  %19525 = vst [vmem:[#allocation198_spill] sm:$0xff] %v15729_v0 }
 0x3f3   : > { %19500 = vst [vmem:[#allocation170_spill] sm:$0xff] %v15693_v24  ;;  %v19504_v60 = vsel %vm15697_vm8, 4294967295, %v19503_v60  ;;  %v15702_v33 = vadd.f32 %v19506_v57, %v6437_v55  ;;  %v4886_v59 = vadd.f32 %v19511_v51, %v19510_v19  ;;  %v5200_v26 = vsel %vm4944_vm6, 0.0, %v4880_v23  ;;  %v19512_v49 = vld [vmem:[#allocation74_spill] sm:$0xff]  ;;  %v19513_v24 = vld [vmem:[#allocation176_spill] sm:$0xff]  ;;  %v19514_v15 = vld [vmem:[#allocation225_spill] sm:$0xff] }
 0x3f4   : > { %19505 = vst [vmem:[#allocation171_spill] sm:$0xff] %v19504_v60  ;;  %vm4948_vm7 = vcmp.ge.f32.partialorder %v4884_v47, 1.0  ;;  %v4889_v21 = vadd.f32 %v19513_v24, %v19512_v49  ;;  %v19515_v18 = vld [vmem:[#allocation181_spill] sm:$0xff]  ;;  %vm4946_vm0 = vcmp.ge.f32.partialorder %v4882_v16, 1.0  ;;  %v19517_v55 = vld [vmem:[#allocation48_spill] sm:$0xff]  ;;  %v19518_v9 = vld [vmem:[#allocation42_spill] sm:$0xff] }
 0x3f5   : > { %19507 = vst [vmem:[#allocation14_spill] sm:$0xff] %v15702_v33  ;;  %v4893_v29 = vadd.f32 %v19515_v18, %v19514_v15  ;;  %v5204_v56 = vsel %vm4948_vm7, 0.0, %v4884_v47  ;;  %v19516_v60 = vld [vmem:[#allocation41_spill] sm:$0xff]  ;;  %vm9583_vm11 = vmpackc.low %vm4948_vm7, %vm4944_vm6  ;;  %vm4950_vm4 = vcmp.ge.f32.partialorder %v4886_v59, 1.0  ;;  %v5202_v14 = vsel %vm4946_vm0, 0.0, %v4882_v16  ;;  %v19522_v18 = vld [vmem:[#allocation86_spill] sm:$0xff] }
 0x3f6   : > { %v5264_v48 = vsub.f32 %v19516_v60, %v5200_v26  ;;  %v5268_v57 = vsub.f32 %v19517_v55, %v5204_v56  ;;  %9584 = vmatmul.mubr.msk.bf16.gmra.mrb[236].mxu0 %vm9583_vm11, %v17855_v30  ;;  %v5206_v51 = vsel %vm4950_vm4, 0.0, %v4886_v59  ;;  %vm9839_vm9 = vmpackc.low %vm4950_vm4, %vm4946_vm0  ;;  %vm4953_vm1 = vcmp.ge.f32.partialorder %v4889_v21, 1.0  ;;  %v19519_v19 = vld [vmem:[#allocation49_spill] sm:$0xff]  ;;  %v15724_v59 = vpop.f32.mrb[172].mxu0 }
 0x3f7   : > { %v5266_v24 = vsub.f32 %v19518_v9, %v5202_v14  ;;  %v5270_v49 = vsub.f32 %v19519_v19, %v5206_v51  ;;  %9840 = vmatmul.mubr.msk.bf16.gmra.mrb[228].mxu1 %vm9839_vm9, %v17855_v30  ;;  %vm4957_vm3 = vcmp.ge.f32.partialorder %v4893_v29, 1.0  ;;  %v15718_v47 = vsel %vm4953_vm1, 0.0, %v4889_v21  ;;  %19523 = vst [vmem:[#allocation20_spill] sm:$0xff] %v15724_v59  ;;  %v19524_v9 = vld [vmem:[#allocation62_spill] sm:$0xff]  ;;  %v6523_v21 = vpop.f32.mrb[173].mxu0  ;;  %v19548_v0 = vld [vmem:[#allocation77_spill] sm:$0xff] }
 0x3f8   : > { %v5328_v23 = vmul.f32 0.5, %v5264_v48  ;;  %v5332_v60 = vmul.f32 0.5, %v5268_v57  ;;  %19520 = vst [vmem:[#allocation19_spill] sm:$0xff] %v15718_v47  ;;  %v15720_v15 = vsel %vm4957_vm3, 0.0, %v4893_v29  ;;  %vm9585_vm6 = vmpackc.low %vm4957_vm3, %vm4953_vm1  ;;  %v4891_v16 = vadd.f32 %v15061_v39, %v19522_v18  ;;  %v7068_v18 = vpop.f32.mrb[165].mxu1  ;;  %v19549_v59 = vld [vmem:[#allocation211_spill] sm:$0xff] }
 0x3f9   : > { %19521 = vst [vmem:[#allocation17_spill] sm:$0xff] %v15720_v15  ;;  %v5330_v48 = vmul.f32 0.5, %v5266_v24  ;;  %v5334_v33 = vmul.f32 0.5, %v5270_v49  ;;  %9586 = vmatprep.mubr.msk.bf16.mxu0 %vm9585_vm6, %v17855_v30  ;;  %v4895_v39 = vadd.f32 %v15063_v52, %v19527_v34  ;;  %v15740_v19 = vpop.f32.mrb[166].mxu1  ;;  %v15747_v52 = vld [vmem:[%s17269_s4] ss:$0 sm:$0xff] }
 0x3fa   : > { %v5392_v55 = vadd.f32 %v5328_v23, %v5200_v26  ;;  %v5396_v57 = vadd.f32 %v5332_v60, %v5204_v56  ;;  %vm4955_vm3 = vcmp.ge.f32.partialorder %v4891_v16, 1.0  ;;  %v15735_v26 = vpop.f32.mrb[174].mxu0  ;;  %19530 = vst [vmem:[#allocation195_spill] sm:$0xff] %v15740_v19  ;;  %v19532_v34 = vld [vmem:[#allocation160_spill] sm:$0xff]  ;;  %v19538_v18 = vmov 0  ;;  %v19760_v62 = vld [vmem:[#allocation157_spill] sm:$0xff] }
 0x3fb   : > { %19528 = vst [vmem:[#allocation56_spill] sm:$0xff] %v15735_v26  ;;  %v5394_v23 = vadd.f32 %v5330_v48, %v5202_v14  ;;  %v5398_v24 = vadd.f32 %v5334_v33, %v5206_v51  ;;  %v15738_v49 = vsel %vm4955_vm3, 0.0, %v4891_v16  ;;  %v6526_v21 = vpop.f32.mrb[175].mxu0  ;;  %vm4959_vm11 = vcmp.ge.f32.partialorder %v4895_v39, 1.0  ;;  %v7071_v33 = vpop.f32.mrb[167].mxu1  ;;  %v19537_v48 = vld [vmem:[#allocation68_spill] sm:$0xff] }
 0x3fc   : > { %vm5456_vm1 = vcmp.ge.f32.partialorder %v5392_v55, 1.0  ;;  %19529 = vst [vmem:[#allocation28_spill] sm:$0xff] %v15738_v49  ;;  %vm5460_vm7 = vcmp.ge.f32.partialorder %v5396_v57, 1.0  ;;  %v6442_v14 = vadd.f32 %v15747_v52, %v19532_v34  ;;  %v19533_v51 = vmov 0  ;;  %v19542_v33 = vld [vmem:[#allocation224_spill] sm:$0xff]  ;;  %v19551_v34 = vld [vmem:[#allocation178_spill] sm:$0xff] }
 0x3fd   : > { %vm15751_vm0 = vmpackc.low %vm5460_vm7, %vm5456_vm1  ;;  %vm5458_vm4 = vcmp.ge.f32.partialorder %v5394_v23, 1.0  ;;  %vm5462_vm9 = vcmp.ge.f32.partialorder %v5398_v24, 1.0  ;;  %v15756_v55 = vsel %vm4959_vm11, 0.0, %v4895_v39  ;;  %v6445_v57 = vadd.f32 %v15747_v52, %v19537_v48  ;;  %v19544_v24 = vld [vmem:[#allocation75_spill] sm:$0xff]  ;;  %v19546_v48 = vld [vmem:[#allocation76_spill] sm:$0xff]  ;;  %v15806_v15 = vpop.f32.mrb[168].mxu1 }
 0x3fe   : > { %v19534_v51 = vsel %vm15751_vm0, 4294967295, %v19533_v51  ;;  %19536 = vst [vmem:[#allocation169_spill] sm:$0xff] %v15756_v55  ;;  %vm15760_vm6 = vmpackc.low %vm5462_vm9, %vm5458_vm4  ;;  %v15767_v60 = vadd.f32 %v19542_v33, %v6442_v14  ;;  %v4888_v23 = vadd.f32 %v15093_v41, %v15071_v46  ;;  %v4892_v19 = vadd.f32 %v19545_v32, %v19544_v24  ;;  %v19552_v14 = vld [vmem:[#allocation182_spill] sm:$0xff]  ;;  %v19553_v33 = vld [vmem:[#allocation216_spill] sm:$0xff] }
 0x3ff   : > { %19535 = vst [vmem:[#allocation54_spill] sm:$0xff] %v19534_v51  ;;  %v19539_v18 = vsel %vm15760_vm6, 4294967295, %v19538_v18  ;;  %vm9841_vm1 = vmpackc.low %vm4959_vm11, %vm4955_vm3  ;;  %v15776_v26 = vadd.f32 %v19546_v48, %v6445_v57  ;;  %v19550_v51 = vld [vmem:[#allocation180_spill] sm:$0xff]  ;;  %v19554_v46 = vld [vmem:[#allocation179_spill] sm:$0xff] }
 0x400   : > { %19540 = vst [vmem:[#allocation57_spill] sm:$0xff] %v19539_v18  ;;  %19543 = vst [vmem:[#allocation44_spill] sm:$0xff] %v15767_v60  ;;  %v4890_v18 = vadd.f32 %v19549_v59, %v19548_v0  ;;  %v4894_v55 = vadd.f32 %v19551_v34, %v19550_v51  ;;  %v4897_v60 = vadd.f32 %v19553_v33, %v19552_v14  ;;  %9842 = vmatprep.mubr.msk.bf16.mxu1 %vm9841_vm1, %v17855_v30  ;;  %v19555_v41 = vld [vmem:[#allocation214_spill] sm:$0xff]  ;;  %v19556_v16 = vld [vmem:[#allocation183_spill] sm:$0xff] }
 0x401   : > { %19547 = vst [vmem:[#allocation38_spill] sm:$0xff] %v15776_v26  ;;  %vm4952_vm7 = vcmp.ge.f32.partialorder %v4888_v23, 1.0  ;;  %vm4956_vm4 = vcmp.ge.f32.partialorder %v4892_v19, 1.0  ;;  %v4901_v32 = vadd.f32 %v19555_v41, %v19554_v46  ;;  %v19557_v39 = vld [vmem:[#allocation229_spill] sm:$0xff]  ;;  %v19558_v0 = vld [vmem:[#allocation59_spill] sm:$0xff]  ;;  %v19560_v26 = vld [vmem:[#allocation60_spill] sm:$0xff] }
 0x402   : > { %v4899_v57 = vadd.f32 %v19557_v39, %v19556_v16  ;;  %v5208_v24 = vsel %vm4952_vm7, 0.0, %v4888_v23  ;;  %v5212_v48 = vsel %vm4956_vm4, 0.0, %v4892_v19  ;;  %vm9587_vm3 = vmpackc.low %vm4956_vm4, %vm4952_vm7  ;;  %vm4954_vm11 = vcmp.ge.f32.partialorder %v4890_v18, 1.0  ;;  %v19559_v51 = vld [vmem:[#allocation65_spill] sm:$0xff]  ;;  %v19561_v46 = vld [vmem:[#allocation66_spill] sm:$0xff]  ;;  %v15795_v19 = vpop.f32.mrb[176].mxu0 }
 0x403   : > { %vm4958_vm9 = vcmp.ge.f32.partialorder %v4894_v55, 1.0  ;;  %v5272_v59 = vsub.f32 %v19558_v0, %v5208_v24  ;;  %v5276_v34 = vsub.f32 %v19559_v51, %v5212_v48  ;;  %9588 = vmatmul.mubr.msk.bf16.gmra.mrb[240].mxu0 %vm9587_vm3, %v17855_v30  ;;  %v5210_v14 = vsel %vm4954_vm11, 0.0, %v4890_v18  ;;  %19562 = vst [vmem:[#allocation58_spill] sm:$0xff] %v15795_v19  ;;  %v6531_v18 = vpop.f32.mrb[177].mxu0  ;;  %19566 = vst [vmem:[#allocation37_spill] sm:$0xff] %v15806_v15  ;;  %v19569_v19 = vld [vmem:[#allocation230_spill] sm:$0xff] }
 0x404   : > { %v5214_v33 = vsel %vm4958_vm9, 0.0, %v4894_v55  ;;  %vm9843_vm1 = vmpackc.low %vm4958_vm9, %vm4954_vm11  ;;  %v5274_v21 = vsub.f32 %v19560_v26, %v5210_v14  ;;  %vm4961_vm15 = vcmp.ge.f32.partialorder %v4897_v60, 1.0  ;;  %vm4965_vm12 = vcmp.ge.f32.partialorder %v4901_v32, 1.0  ;;  %v19564_v26 = vld [vmem:[#allocation83_spill] sm:$0xff]  ;;  %v19571_v56 = vld [vmem:[#allocation208_spill] sm:$0xff] }
 0x405   : > { %v5278_v41 = vsub.f32 %v19561_v46, %v5214_v33  ;;  %9844 = vmatmul.mubr.msk.bf16.gmra.mrb[232].mxu1 %vm9843_vm1, %v17855_v30  ;;  %v5336_v23 = vmul.f32 0.5, %v5272_v59  ;;  %v5340_v16 = vmul.f32 0.5, %v5276_v34  ;;  %v15797_v39 = vsel %vm4961_vm15, 0.0, %v4897_v60  ;;  %vm9589_vm7 = vmpackc.low %vm4965_vm12, %vm4961_vm15  ;;  %v15808_v59 = vpop.f32.mrb[178].mxu0 }
 0x406   : > { %v15799_v0 = vsel %vm4965_vm12, 0.0, %v4901_v32  ;;  %v5338_v55 = vmul.f32 0.5, %v5274_v21  ;;  %9590 = vmatprep.mubr.msk.bf16.mxu0 %vm9589_vm7, %v17855_v30  ;;  %19567 = vst [vmem:[#allocation172_spill] sm:$0xff] %v15808_v59  ;;  %v19568_v32 = vld [vmem:[#allocation212_spill] sm:$0xff]  ;;  %vm4963_vm12 = vcmp.ge.f32.partialorder %v4899_v57, 1.0  ;;  %v7076_v21 = vpop.f32.mrb[169].mxu1 }
 0x407   : > { %19563 = vst [vmem:[#allocation200_spill] sm:$0xff] %v15799_v0  ;;  %v5342_v51 = vmul.f32 0.5, %v5278_v41  ;;  %v5400_v60 = vadd.f32 %v5336_v23, %v5208_v24  ;;  %v5404_v34 = vadd.f32 %v5340_v16, %v5212_v48  ;;  %v4903_v29 = vadd.f32 %v19569_v19, %v19568_v32  ;;  %v6534_v41 = vpop.f32.mrb[179].mxu0  ;;  %v15817_v46 = vpop.f32.mrb[170].mxu1  ;;  %v19573_v24 = vld [vmem:[#allocation84_spill] sm:$0xff]  ;;  %v19588_v59 = vld [vmem:[#allocation93_spill] sm:$0xff] }
 0x408   : > { %v5402_v18 = vadd.f32 %v5338_v55, %v5210_v14  ;;  %v15813_v49 = vsel %vm4963_vm12, 0.0, %v4899_v57  ;;  %v6450_v0 = vadd.f32 %v15747_v52, %v19571_v56  ;;  %19572 = vst [vmem:[#allocation64_spill] sm:$0xff] %v15817_v46  ;;  %v7079_v19 = vpop.f32.mrb[171].mxu1  ;;  %v19574_v23 = vmov 0  ;;  %v19586_v46 = vld [vmem:[#allocation95_spill] sm:$0xff] }
 0x409   : > { %v5406_v47 = vadd.f32 %v5342_v51, %v5214_v33  ;;  %19570 = vst [vmem:[#allocation61_spill] sm:$0xff] %v15813_v49  ;;  %vm5464_vm15 = vcmp.ge.f32.partialorder %v5400_v60, 1.0  ;;  %vm5468_vm4 = vcmp.ge.f32.partialorder %v5404_v34, 1.0  ;;  %vm4967_vm3 = vcmp.ge.f32.partialorder %v4903_v29, 1.0  ;;  %v19578_v33 = vld [vmem:[#allocation227_spill] sm:$0xff]  ;;  %v19583_v60 = vld [vmem:[#allocation228_spill] sm:$0xff] }
 0x40a   : > { %vm15821_vm11 = vmpackc.low %vm5468_vm4, %vm5464_vm15  ;;  %vm5466_vm9 = vcmp.ge.f32.partialorder %v5402_v18, 1.0  ;;  %v15826_v14 = vsel %vm4967_vm3, 0.0, %v4903_v29  ;;  %v6995_v56 = vadd.f32 %v19578_v33, %v6450_v0  ;;  %v19579_v16 = vmov 0  ;;  %v8294_v0 = vld [vmem:[%s17270_s5 + $0x28] sm:$0xff]  ;;  %v19584_v19 = vld [vmem:[#allocation215_spill] sm:$0xff] }
 0x40b   : > { %v19575_v23 = vsel %vm15821_vm11, 4294967295, %v19574_v23  ;;  %vm5470_vm1 = vcmp.ge.f32.partialorder %v5406_v47, 1.0  ;;  %19577 = vst [vmem:[#allocation30_spill] sm:$0xff] %v15826_v14  ;;  %v6453_v34 = vadd.f32 %v15747_v52, %v19583_v60  ;;  %vm7590_vm15 = vcmp.ge.f32.partialorder %v15199_v10, 1.0  ;;  %v8293_v47 = vld [vmem:[%s17270_s5 + $0x20] sm:$0xff]  ;;  %vm9845_vm4 = vmpackc.low %vm4967_vm3, %vm4963_vm12  ;;  %v19591_v14 = vld [vmem:[#allocation82_spill] sm:$0xff] }
 0x40c   : > { %19576 = vst [vmem:[#allocation25_spill] sm:$0xff] %v19575_v23  ;;  %vm15829_vm7 = vmpackc.low %vm5470_vm1, %vm5466_vm9  ;;  %v9281_v32 = vsel %vm7589_vm5, 1.0, %v18723_v11  ;;  %v7653_v21 = vsel %vm7589_vm5, 0.0, %v15181_v38  ;;  %v9282_v41 = vsel %vm7590_vm15, 1.0, %v18723_v11  ;;  %v7654_v18 = vsel %vm7590_vm15, 0.0, %v15199_v10  ;;  %9846 = vmatprep.mubr.msk.bf16.mxu1 %vm9845_vm4, %v17855_v30  ;;  %v19585_v51 = vld [vmem:[#allocation175_spill] sm:$0xff] }
 0x40d   : > { %v19580_v16 = vsel %vm15829_vm7, 4294967295, %v19579_v16  ;;  %v15853_v33 = vadd.f32 %v9281_v32, %v19584_v19  ;;  %v7669_v60 = vsub.f32 %v6995_v56, %v7653_v21  ;;  %v6998_v48 = vadd.f32 %v19585_v51, %v6453_v34  ;;  %v19589_v38 = vld [vmem:[#allocation184_spill] sm:$0xff]  ;;  %v19592_v32 = vld [vmem:[#allocation98_spill] sm:$0xff]  ;;  %v19593_v51 = vld [vmem:[#allocation107_spill] sm:$0xff]  ;;  %v15877_v19 = vpop.f32.mrb[180].mxu0 }
 0x40e   : > { %19581 = vst [vmem:[#allocation26_spill] sm:$0xff] %v19580_v16  ;;  %v15857_v57 = vadd.f32 %v9282_v41, %v19586_v46  ;;  %v9985_v29 = vpack.c.bf16 %v8294_v0, %v8293_v47  ;;  %v4896_v15 = vadd.f32 %v19588_v59, %v15166_v44  ;;  %v19590_v16 = vld [vmem:[#allocation96_spill] sm:$0xff]  ;;  %v4898_v10 = vadd.f32 %v15207_v50, %v19591_v14  ;;  %v19594_v46 = vld [vmem:[#allocation94_spill] sm:$0xff]  ;;  %v19595_v44 = vld [vmem:[#allocation163_spill] sm:$0xff] }
 0x40f   : > { %v4900_v23 = vadd.f32 %v19590_v16, %v19589_v38  ;;  %v7685_v55 = vmul.f32 0.5, %v7669_v60  ;;  %v7670_v49 = vsub.f32 %v6998_v48, %v7654_v18  ;;  %v4902_v56 = vadd.f32 %v15209_v2, %v19592_v32  ;;  %v19596_v48 = vld [vmem:[#allocation78_spill] sm:$0xff]  ;;  %v19597_v2 = vld [vmem:[#allocation85_spill] sm:$0xff]  ;;  %19598 = vst [vmem:[#allocation70_spill] sm:$0xff] %v15877_v19  ;;  %v19602_v32 = vld [vmem:[#allocation87_spill] sm:$0xff] }
 0x410   : > { %19587 = vst [vmem:[#allocation31_spill] sm:$0xff] %v15857_v57  ;;  %v4905_v34 = vadd.f32 %v19593_v51, %v15213_v42  ;;  %9986 = vmatprep.subr.bf16.mxu1 %v9985_v29  ;;  %vm4960_vm5 = vcmp.ge.f32.partialorder %v4896_v15, 1.0  ;;  %vm4962_vm3 = vcmp.ge.f32.partialorder %v4898_v10, 1.0  ;;  %v4909_v59 = vadd.f32 %v19595_v44, %v19594_v46  ;;  %v19611_v19 = vld [vmem:[#allocation185_spill] sm:$0xff]  ;;  %v19612_v57 = vld [vmem:[#allocation99_spill] sm:$0xff] }
 0x411   : > { %vm4964_vm12 = vcmp.ge.f32.partialorder %v4900_v23, 1.0  ;;  %v15871_v47 = vadd.f32 %v7685_v55, %v7653_v21  ;;  %v7686_v16 = vmul.f32 0.5, %v7670_v49  ;;  %9988 = vmatpush3.bf16.msra.mxu1 %v9985_v29  ;;  %v5216_v50 = vsel %vm4960_vm5, 0.0, %v4896_v15  ;;  %v19600_v21 = vld [vmem:[#allocation79_spill] sm:$0xff]  ;;  %v15883_v15 = vpop.f32.mrb[172].mxu1 }
 0x412   : > { %v5220_v14 = vsel %vm4964_vm12, 0.0, %v4900_v23  ;;  %vm9591_vm9 = vmpackc.low %vm4964_vm12, %vm4960_vm5  ;;  %v5280_v0 = vsub.f32 %v19596_v48, %v5216_v50  ;;  %vm4966_vm1 = vcmp.ge.f32.partialorder %v4902_v56, 1.0  ;;  %v5218_v42 = vsel %vm4962_vm3, 0.0, %v4898_v10  ;;  %19601 = vst [vmem:[#allocation45_spill] sm:$0xff] %v15883_v15  ;;  %v6539_v23 = vpop.f32.mrb[181].mxu0  ;;  %v7084_v46 = vpop.f32.mrb[173].mxu1 }
 0x413   : > { %v5284_v41 = vsub.f32 %v19597_v2, %v5220_v14  ;;  %9592 = vmatmul.mubr.msk.bf16.gmra.mrb[244].mxu0 %vm9591_vm9, %v17855_v30  ;;  %v15879_v60 = vadd.f32 %v7686_v16, %v7654_v18  ;;  %v5222_v55 = vsel %vm4966_vm1, 0.0, %v4902_v56  ;;  %v5282_v49 = vsub.f32 %v19600_v21, %v5218_v42  ;;  %vm9847_vm15 = vmpackc.low %vm4966_vm1, %vm4962_vm3  ;;  %v15887_v44 = vpop.f32.mrb[182].mxu0  ;;  %v19606_v10 = vld [vmem:[#allocation217_spill] sm:$0xff]  ;;  %v19607_v48 = vld [vmem:[#allocation218_spill] sm:$0xff]  ;;  %v15895_v21 = vpop.f32.mrb[174].mxu1 }
 0x414   : > { %vm4969_vm4 = vcmp.ge.f32.partialorder %v4905_v34, 1.0  ;;  %v5344_v29 = vmul.f32 0.5, %v5280_v0  ;;  %v5286_v51 = vsub.f32 %v19602_v32, %v5222_v55  ;;  %9848 = vmatmul.mubr.msk.bf16.gmra.mrb[236].mxu1 %vm9847_vm15, %v17855_v30  ;;  %vm4973_vm5 = vcmp.ge.f32.partialorder %v4909_v59, 1.0  ;;  %19603 = vst [vmem:[#allocation51_spill] sm:$0xff] %v15887_v44  ;;  %19608 = vst [vmem:[#allocation55_spill] sm:$0xff] %v15895_v21  ;;  %v6542_v0 = vpop.f32.mrb[183].mxu0 }
 0x415   : > { %19599 = vst [vmem:[#allocation203_spill] sm:$0xff] %v15879_v60  ;;  %v5348_v38 = vmul.f32 0.5, %v5284_v41  ;;  %v5346_v18 = vmul.f32 0.5, %v5282_v49  ;;  %v15889_v56 = vsel %vm4969_vm4, 0.0, %v4905_v34  ;;  %v15891_v16 = vsel %vm4973_vm5, 0.0, %v4909_v59  ;;  %vm9593_vm12 = vmpackc.low %vm4973_vm5, %vm4969_vm4  ;;  %v7087_v49 = vpop.f32.mrb[175].mxu1 }
 0x416   : > { %19604 = vst [vmem:[#allocation202_spill] sm:$0xff] %v15889_v56  ;;  %19605 = vst [vmem:[#allocation223_spill] sm:$0xff] %v15891_v16  ;;  %v4907_v2 = vadd.f32 %v19607_v48, %v19606_v10  ;;  %v5408_v41 = vadd.f32 %v5344_v29, %v5216_v50  ;;  %v5350_v32 = vmul.f32 0.5, %v5286_v51  ;;  %9594 = vmatprep.mubr.msk.bf16.mxu0 %vm9593_vm12, %v17855_v30  ;;  %v19622_v48 = vmov 0  ;;  %v19627_v49 = vld [vmem:[#allocation97_spill] sm:$0xff]  ;;  %v19631_v29 = vld [vmem:[#allocation103_spill] sm:$0xff] }
 0x417   : > { %v5412_v23 = vadd.f32 %v5348_v38, %v5220_v14  ;;  %v5410_v34 = vadd.f32 %v5346_v18, %v5218_v42  ;;  %v4911_v60 = vadd.f32 %v19612_v57, %v19611_v19  ;;  %v19614_v14 = vmov 0  ;;  %v19618_v38 = vld [vmem:[#allocation91_spill] sm:$0xff]  ;;  %v19620_v19 = vld [vmem:[#allocation117_spill] sm:$0xff]  ;;  %v19632_v44 = vld [vmem:[#allocation114_spill] sm:$0xff] }
 0x418   : > { %vm4971_vm3 = vcmp.ge.f32.partialorder %v4907_v2, 1.0  ;;  %vm5472_vm9 = vcmp.ge.f32.partialorder %v5408_v41, 1.0  ;;  %v5414_v10 = vadd.f32 %v5350_v32, %v5222_v55  ;;  %v6458_v51 = vadd.f32 %v15747_v52, %v19618_v38  ;;  %v19621_v55 = vld [vmem:[#allocation92_spill] sm:$0xff] }
 0x419   : > { %vm5476_vm1 = vcmp.ge.f32.partialorder %v5412_v23, 1.0  ;;  %v15904_v50 = vsel %vm4971_vm3, 0.0, %v4907_v2  ;;  %vm5474_vm4 = vcmp.ge.f32.partialorder %v5410_v34, 1.0  ;;  %vm4975_vm5 = vcmp.ge.f32.partialorder %v4911_v60, 1.0  ;;  %v19626_v41 = vld [vmem:[#allocation88_spill] sm:$0xff] }
 0x41a   : > { %19613 = vst [vmem:[#allocation43_spill] sm:$0xff] %v15904_v50  ;;  %vm15906_vm15 = vmpackc.low %vm5476_vm1, %vm5472_vm9  ;;  %vm5478_vm12 = vcmp.ge.f32.partialorder %v5414_v10, 1.0  ;;  %v15914_v57 = vsel %vm4975_vm5, 0.0, %v4911_v60  ;;  %vm7591_vm7 = vcmp.ge.f32.partialorder %v19620_v19, 1.0  ;;  %v6461_v18 = vadd.f32 %v15747_v52, %v19621_v55  ;;  %v19629_v10 = vld [vmem:[#allocation186_spill] sm:$0xff]  ;;  %v19630_v55 = vld [vmem:[#allocation108_spill] sm:$0xff] }
 0x41b   : > { %v19615_v14 = vsel %vm15906_vm15, 4294967295, %v19614_v14  ;;  %19619 = vst [vmem:[#allocation80_spill] sm:$0xff] %v15914_v57  ;;  %vm9849_vm2 = vmpackc.low %vm4975_vm5, %vm4971_vm3  ;;  %v7003_v23 = vadd.f32 %v19626_v41, %v6458_v51  ;;  %v9283_v60 = vsel %vm7591_vm7, 1.0, %v18723_v11  ;;  %v7655_v32 = vsel %vm7591_vm7, 0.0, %v19620_v19  ;;  %v19633_v51 = vld [vmem:[#allocation132_spill] sm:$0xff]  ;;  %v19634_v41 = vld [vmem:[#allocation138_spill] sm:$0xff] }
 0x41c   : > { %19616 = vst [vmem:[#allocation71_spill] sm:$0xff] %v19615_v14  ;;  %vm15919_vm9 = vmpackc.low %vm5478_vm12, %vm5474_vm4  ;;  %9850 = vmatprep.mubr.msk.bf16.mxu1 %vm9849_vm2, %v17855_v30  ;;  %v15930_v34 = vadd.f32 %v9283_v60, %v19627_v49  ;;  %v7006_v38 = vadd.f32 %v19629_v10, %v6461_v18  ;;  %vm7592_vm3 = vcmp.ge.f32.partialorder %v19630_v55, 1.0  ;;  %v4904_v46 = vadd.f32 %v19632_v44, %v19631_v29  ;;  %v19635_v57 = vld [vmem:[#allocation100_spill] sm:$0xff]  ;;  %v19637_v49 = vld [vmem:[#allocation111_spill] sm:$0xff] }
 0x41d   : > { %v19623_v48 = vsel %vm15919_vm9, 4294967295, %v19622_v48  ;;  %v7671_v21 = vsub.f32 %v7003_v23, %v7655_v32  ;;  %v9284_v0 = vsel %vm7592_vm3, 1.0, %v18723_v11  ;;  %v4908_v14 = vadd.f32 %v19634_v41, %v19633_v51  ;;  %v19638_v18 = vld [vmem:[#allocation115_spill] sm:$0xff]  ;;  %v19639_v44 = vld [vmem:[#allocation221_spill] sm:$0xff]  ;;  %v19640_v29 = vld [vmem:[#allocation126_spill] sm:$0xff]  ;;  %v15948_v51 = vpop.f32.mrb[184].mxu0 }
 0x41e   : > { %19624 = vst [vmem:[#allocation159_spill] sm:$0xff] %v19623_v48  ;;  %19628 = vst [vmem:[#allocation205_spill] sm:$0xff] %v15930_v34  ;;  %v7656_v48 = vsel %vm7592_vm3, 0.0, %v19630_v55  ;;  %v15941_v19 = vadd.f32 %v9284_v0, %v19635_v57  ;;  %vm4968_vm2 = vcmp.ge.f32.partialorder %v4904_v46, 1.0  ;;  %v4906_v10 = vadd.f32 %v19638_v18, %v19637_v49  ;;  %v19641_v55 = vld [vmem:[#allocation101_spill] sm:$0xff]  ;;  %v6547_v41 = vpop.f32.mrb[185].mxu0 }
 0x41f   : > { %v7672_v60 = vsub.f32 %v7006_v38, %v7656_v48  ;;  %v7687_v34 = vmul.f32 0.5, %v7671_v21  ;;  %vm4972_vm7 = vcmp.ge.f32.partialorder %v4908_v14, 1.0  ;;  %v5224_v2 = vsel %vm4968_vm2, 0.0, %v4904_v46  ;;  %19642 = vst [vmem:[#allocation199_spill] sm:$0xff] %v15948_v51  ;;  %v19644_v0 = vld [vmem:[#allocation109_spill] sm:$0xff]  ;;  %v15954_v46 = vpop.f32.mrb[176].mxu1 }
 0x420   : > { %19636 = vst [vmem:[#allocation207_spill] sm:$0xff] %v15941_v19  ;;  %v4910_v23 = vadd.f32 %v19640_v29, %v19639_v44  ;;  %v5228_v42 = vsel %vm4972_vm7, 0.0, %v4908_v14  ;;  %v5288_v16 = vsub.f32 %v19641_v55, %v5224_v2  ;;  %vm9595_vm1 = vmpackc.low %vm4972_vm7, %vm4968_vm2  ;;  %vm4970_vm4 = vcmp.ge.f32.partialorder %v4906_v10, 1.0  ;;  %v19647_v18 = vld [vmem:[#allocation104_spill] sm:$0xff]  ;;  %v7092_v29 = vpop.f32.mrb[177].mxu1  ;;  %v15959_v55 = vpop.f32.mrb[186].mxu0 }
 0x421   : > { %v7688_v50 = vmul.f32 0.5, %v7672_v60  ;;  %v15950_v57 = vadd.f32 %v7687_v34, %v7655_v32  ;;  %v5292_v38 = vsub.f32 %v19644_v0, %v5228_v42  ;;  %9596 = vmatmul.mubr.msk.bf16.gmra.mrb[248].mxu0 %vm9595_vm1, %v17855_v30  ;;  %v5226_v21 = vsel %vm4970_vm4, 0.0, %v4906_v10  ;;  %19645 = vst [vmem:[#allocation173_spill] sm:$0xff] %v15954_v46  ;;  %19648 = vst [vmem:[#allocation174_spill] sm:$0xff] %v15959_v55  ;;  %v19649_v34 = vld [vmem:[#allocation110_spill] sm:$0xff]  ;;  %v19650_v51 = vld [vmem:[#allocation116_spill] sm:$0xff] }
 0x422   : > { %vm4974_vm5 = vcmp.ge.f32.partialorder %v4910_v23, 1.0  ;;  %v5352_v14 = vmul.f32 0.5, %v5288_v16  ;;  %v5290_v44 = vsub.f32 %v19647_v18, %v5226_v21  ;;  %v19651_v10 = vld [vmem:[#allocation131_spill] sm:$0xff]  ;;  %v6550_v16 = vpop.f32.mrb[187].mxu0  ;;  %v19656_v29 = vld [vmem:[#allocation130_spill] sm:$0xff]  ;;  %v19657_v55 = vld [vmem:[#allocation161_spill] sm:$0xff] }
 0x423   : > { %19643 = vst [vmem:[#allocation206_spill] sm:$0xff] %v15950_v57  ;;  %v15956_v49 = vadd.f32 %v7688_v50, %v7656_v48  ;;  %v5230_v60 = vsel %vm4974_vm5, 0.0, %v4910_v23  ;;  %vm9851_vm12 = vmpackc.low %vm4974_vm5, %vm4970_vm4  ;;  %v5356_v32 = vmul.f32 0.5, %v5292_v38  ;;  %v4913_v19 = vadd.f32 %v19651_v10, %v19650_v51  ;;  %v19652_v46 = vld [vmem:[#allocation127_spill] sm:$0xff]  ;;  %v15967_v48 = vpop.f32.mrb[178].mxu1  ;;  %v19658_v38 = vld [vmem:[#allocation166_spill] sm:$0xff] }
 0x424   : > { %v5294_v0 = vsub.f32 %v19649_v34, %v5230_v60  ;;  %9852 = vmatmul.mubr.msk.bf16.gmra.mrb[240].mxu1 %vm9851_vm12, %v17855_v30  ;;  %v19653_v41 = vld [vmem:[#allocation23_spill] sm:$0xff]  ;;  %19654 = vst [vmem:[#allocation74_spill] sm:$0xff] %v15967_v48  ;;  %v5416_v23 = vadd.f32 %v5352_v14, %v5224_v2  ;;  %v5354_v18 = vmul.f32 0.5, %v5290_v44  ;;  %v4919_v59 = vadd.f32 %v19658_v38, %v19657_v55  ;;  %v7095_v34 = vpop.f32.mrb[179].mxu1  ;;  %v19660_v14 = vld [vmem:[#allocation120_spill] sm:$0xff]  ;;  %v19673_v16 = vld [vmem:[#allocation102_spill] sm:$0xff] }
 0x425   : > { %19646 = vst [vmem:[#allocation204_spill] sm:$0xff] %v15956_v49  ;;  %v4917_v50 = vadd.f32 %v19653_v41, %v19652_v46  ;;  %v19655_v49 = vld [vmem:[#allocation128_spill] sm:$0xff]  ;;  %v5420_v56 = vadd.f32 %v5356_v32, %v5228_v42  ;;  %vm4977_vm3 = vcmp.ge.f32.partialorder %v4913_v19, 1.0  ;;  %v19662_v42 = vmov 0  ;;  %v19682_v55 = vld [vmem:[#allocation135_spill] sm:$0xff]  ;;  %v19702_v32 = vld [vmem:[#allocation9_spill] sm:$0xff] }
 0x426   : > { %v4915_v57 = vadd.f32 %v19656_v29, %v19655_v49  ;;  %v5358_v15 = vmul.f32 0.5, %v5294_v0  ;;  %vm5480_vm7 = vcmp.ge.f32.partialorder %v5416_v23, 1.0  ;;  %v5418_v51 = vadd.f32 %v5354_v18, %v5226_v21  ;;  %v19661_v44 = vld [vmem:[#allocation124_spill] sm:$0xff]  ;;  %v19674_v23 = vld [vmem:[#allocation39_spill] sm:$0xff] }
 0x427   : > { %vm4981_vm2 = vcmp.ge.f32.partialorder %v4917_v50, 1.0  ;;  %v15973_v10 = vsel %vm4977_vm3, 0.0, %v4913_v19  ;;  %vm5484_vm4 = vcmp.ge.f32.partialorder %v5420_v56, 1.0  ;;  %vm4983_vm15 = vcmp.ge.f32.partialorder %v4919_v59, 1.0  ;;  %v19665_v19 = vld [vmem:[#allocation129_spill] sm:$0xff]  ;;  %v19676_v38 = vld [vmem:[#allocation220_spill] sm:$0xff] }
 0x428   : > { %v15975_v46 = vsel %vm4981_vm2, 0.0, %v4917_v50  ;;  %vm9597_vm1 = vmpackc.low %vm4981_vm2, %vm4977_vm3  ;;  %v5422_v2 = vadd.f32 %v5358_v15, %v5230_v60  ;;  %vm5482_vm12 = vcmp.ge.f32.partialorder %v5418_v51, 1.0  ;;  %vm4979_vm9 = vcmp.ge.f32.partialorder %v4915_v57, 1.0  ;;  %v19678_v50 = vld [vmem:[#allocation219_spill] sm:$0xff]  ;;  %v19681_v0 = vld [vmem:[#allocation140_spill] sm:$0xff] }
 0x429   : > { %19659 = vst [vmem:[#allocation176_spill] sm:$0xff] %v15975_v46  ;;  %9598 = vmatprep.mubr.msk.bf16.mxu0 %vm9597_vm1, %v17855_v30  ;;  %vm15982_vm5 = vmpackc.low %vm5484_vm4, %vm5480_vm7  ;;  %v6466_v21 = vadd.f32 %v15747_v52, %v19665_v19  ;;  %v15988_v15 = vsel %vm4979_vm9, 0.0, %v4915_v57  ;;  %v15990_v56 = vsel %vm4983_vm15, 0.0, %v4919_v59  ;;  %vm7593_vm11 = vcmp.ge.f32.partialorder %v15372_v31, 1.0  ;;  %v19703_v46 = vld [vmem:[#allocation187_spill] sm:$0xff] }
 0x42a   : > { %v19663_v42 = vsel %vm15982_vm5, 4294967295, %v19662_v42  ;;  %vm5486_vm3 = vcmp.ge.f32.partialorder %v5422_v2, 1.0  ;;  %19666 = vst [vmem:[#allocation181_spill] sm:$0xff] %v15988_v15  ;;  %19667 = vst [vmem:[#allocation41_spill] sm:$0xff] %v15990_v56  ;;  %v19668_v60 = vmov 0  ;;  %v9285_v59 = vsel %vm7593_vm11, 1.0, %v18723_v11 }
 0x42b   : > { %19664 = vst [vmem:[#allocation225_spill] sm:$0xff] %v19663_v42  ;;  %vm9853_vm2 = vmpackc.low %vm4983_vm15, %vm4979_vm9  ;;  %v7011_v57 = vadd.f32 %v19673_v16, %v6466_v21  ;;  %v16005_v18 = vadd.f32 %v9285_v59, %v19674_v23  ;;  %v7657_v29 = vsel %vm7593_vm11, 0.0, %v15372_v31  ;;  %v6469_v34 = vadd.f32 %v15747_v52, %v19676_v38  ;;  %v16015_v16 = vpop.f32.mrb[188].mxu0  ;;  %v19680_v31 = vld [vmem:[#allocation134_spill] sm:$0xff] }
 0x42c   : > { %vm15993_vm6 = vmpackc.low %vm5486_vm3, %vm5482_vm12  ;;  %9854 = vmatprep.mubr.msk.bf16.mxu1 %vm9853_vm2, %v17855_v30  ;;  %vm7594_vm15 = vcmp.ge.f32.partialorder %v15393_v45, 1.0  ;;  %v4912_v21 = vadd.f32 %v15395_v61, %v15374_v12  ;;  %19677 = vst [vmem:[#allocation49_spill] sm:$0xff] %v16015_v16  ;;  %v4916_v38 = vadd.f32 %v19680_v31, %v15380_v7  ;;  %v6555_v49 = vpop.f32.mrb[189].mxu0  ;;  %v19685_v12 = vld [vmem:[#allocation4_spill] sm:$0xff]  ;;  %v19686_v61 = vld [vmem:[#allocation146_spill] sm:$0xff] }
 0x42d   : > { %v19669_v60 = vsel %vm15993_vm6, 4294967295, %v19668_v60  ;;  %19675 = vst [vmem:[#allocation42_spill] sm:$0xff] %v16005_v18  ;;  %v7673_v51 = vsub.f32 %v7011_v57, %v7657_v29  ;;  %v9286_v2 = vsel %vm7594_vm15, 1.0, %v18723_v11  ;;  %v7658_v19 = vsel %vm7594_vm15, 0.0, %v15393_v45  ;;  %v19683_v45 = vld [vmem:[#allocation133_spill] sm:$0xff] }
 0x42e   : > { %19670 = vst [vmem:[#allocation48_spill] sm:$0xff] %v19669_v60  ;;  %v7014_v59 = vadd.f32 %v19678_v50, %v6469_v34  ;;  %v16019_v23 = vadd.f32 %v9286_v2, %v15362_v63  ;;  %v4914_v57 = vadd.f32 %v19682_v55, %v19681_v0  ;;  %vm4976_vm11 = vcmp.ge.f32.partialorder %v4912_v21, 1.0  ;;  %v19684_v60 = vld [vmem:[#allocation34_spill] sm:$0xff]  ;;  %v16030_v50 = vpop.f32.mrb[180].mxu1  ;;  %v16032_v63 = vpop.f32.mrb[190].mxu0 }
 0x42f   : > { %v7689_v48 = vmul.f32 0.5, %v7673_v51  ;;  %v4918_v42 = vadd.f32 %v19684_v60, %v19683_v45  ;;  %v19687_v16 = vsub.f32 %v19685_v12, %v19686_v61  ;;  %19688 = vst [vmem:[#allocation62_spill] sm:$0xff] %v16030_v50  ;;  %19689 = vst [vmem:[#allocation226_spill] sm:$0xff] %v16032_v63  ;;  %vm4980_vm9 = vcmp.ge.f32.partialorder %v4916_v38, 1.0  ;;  %v7100_v2 = vpop.f32.mrb[181].mxu1  ;;  %v6558_v55 = vpop.f32.mrb[191].mxu0 }
 0x430   : > { %19679 = vst [vmem:[#allocation86_spill] sm:$0xff] %v16019_v23  ;;  %v7674_v34 = vsub.f32 %v7014_v59, %v7658_v19  ;;  %v5232_v7 = vsel %vm4976_vm11, 0.0, %v4912_v21  ;;  %vm4978_vm7 = vcmp.ge.f32.partialorder %v4914_v57, 1.0  ;;  %v5236_v0 = vsel %vm4980_vm9, 0.0, %v4916_v38  ;;  %v19691_v51 = vld [vmem:[#allocation118_spill] sm:$0xff]  ;;  %vm9599_vm1 = vmpackc.low %vm4980_vm9, %vm4976_vm11  ;;  %v16037_v60 = vpop.f32.mrb[182].mxu1 }
 0x431   : > { %v5305_v18 = vmul.f32 0.5, %v19687_v16  ;;  %v16034_v49 = vadd.f32 %v7689_v48, %v7657_v29  ;;  %v5296_v31 = vsub.f32 %v19691_v51, %v5232_v7  ;;  %vm4982_vm4 = vcmp.ge.f32.partialorder %v4918_v42, 1.0  ;;  %19692 = vst [vmem:[#allocation68_spill] sm:$0xff] %v16037_v60  ;;  %v19693_v45 = vld [vmem:[#allocation122_spill] sm:$0xff]  ;;  %9600 = vmatmul.mubr.msk.bf16.gmra.mrb[252].mxu0 %vm9599_vm1, %v17855_v30  ;;  %v7103_v21 = vpop.f32.mrb[183].mxu1  ;;  %v19694_v55 = vld [vmem:[#allocation119_spill] sm:$0xff] }
 0x432   : > { %v7690_v16 = vmul.f32 0.5, %v7674_v34  ;;  %v5300_v12 = vsub.f32 %v19693_v45, %v5236_v0  ;;  %v5234_v59 = vsel %vm4978_vm7, 0.0, %v4914_v57  ;;  %v5238_v63 = vsel %vm4982_vm4, 0.0, %v4918_v42  ;;  %vm9855_vm12 = vmpackc.low %vm4982_vm4, %vm4978_vm7  ;;  %v19695_v29 = vld [vmem:[#allocation123_spill] sm:$0xff]  ;;  %v19696_v51 = vld [vmem:[#allocation8_spill] sm:$0xff] }
 0x433   : > { %19690 = vst [vmem:[#allocation160_spill] sm:$0xff] %v16034_v49  ;;  %v5360_v2 = vmul.f32 0.5, %v5296_v31  ;;  %v5298_v48 = vsub.f32 %v19694_v55, %v5234_v59  ;;  %v5302_v38 = vsub.f32 %v19695_v29, %v5238_v63  ;;  %9856 = vmatmul.mubr.msk.bf16.gmra.mrb[244].mxu1 %vm9855_vm12, %v17855_v30  ;;  %v19697_v50 = vld [vmem:[#allocation164_spill] sm:$0xff]  ;;  %v5369_v49 = vadd.f32 %v5305_v18, %v19686_v61  ;;  %v19699_v57 = vld [vmem:[#allocation5_spill] sm:$0xff]  ;;  %v19700_v42 = vld [vmem:[#allocation143_spill] sm:$0xff] }
 0x434   : > { %v19698_v23 = vsub.f32 %v19696_v51, %v19697_v50  ;;  %v16047_v34 = vadd.f32 %v7690_v16, %v7658_v19  ;;  %v5364_v45 = vmul.f32 0.5, %v5300_v12  ;;  %v19701_v56 = vsub.f32 %v19699_v57, %v19700_v42  ;;  %v19705_v61 = vld [vmem:[#allocation162_spill] sm:$0xff] }
 0x435   : > { %v5424_v31 = vadd.f32 %v5360_v2, %v5232_v7  ;;  %v5362_v41 = vmul.f32 0.5, %v5298_v48  ;;  %v5366_v55 = vmul.f32 0.5, %v5302_v38  ;;  %vm5433_vm3 = vcmp.ge.f32.partialorder %v5369_v49, 1.0  ;;  %v19713_v48 = vld [vmem:[#allocation136_spill] sm:$0xff] }
 0x436   : > { %v5309_v60 = vmul.f32 0.5, %v19698_v23  ;;  %v5307_v21 = vmul.f32 0.5, %v19701_v56  ;;  %v5428_v15 = vadd.f32 %v5364_v45, %v5236_v0  ;;  %v19704_v51 = vsub.f32 %v19702_v32, %v19703_v46  ;;  %v19708_v32 = vld [vmem:[#allocation196_spill] sm:$0xff]  ;;  %v19878_v7 = vld [vmem:[#allocation62_spill] sm:$0xff] }
 0x437   : > { %vm5488_vm2 = vcmp.ge.f32.partialorder %v5424_v31, 1.0  ;;  %v5426_v16 = vadd.f32 %v5362_v41, %v5234_v59  ;;  %v5430_v18 = vadd.f32 %v5366_v55, %v5238_v63  ;;  %vm7595_vm6 = vcmp.ge.f32.partialorder %v15471_v35, 1.0  ;;  %v16069_v41 = vpop.f32.mrb[192].mxu0  ;;  %v19711_v63 = vld [vmem:[#allocation137_spill] sm:$0xff]  ;;  %v19712_v59 = vld [vmem:[#allocation147_spill] sm:$0xff] }
 0x438   : > { %v5373_v29 = vadd.f32 %v5309_v60, %v19697_v50  ;;  %v5311_v23 = vmul.f32 0.5, %v19704_v51  ;;  %v5371_v19 = vadd.f32 %v5307_v21, %v19700_v42  ;;  %vm5492_vm11 = vcmp.ge.f32.partialorder %v5428_v15, 1.0  ;;  %v6563_v12 = vpop.f32.mrb[193].mxu0  ;;  %v16090_v42 = vpop.f32.mrb[184].mxu1 }
 0x439   : > { %v6474_v50 = vadd.f32 %v15747_v52, %v19705_v61  ;;  %vm16061_vm1 = vmpackc.low %vm5492_vm11, %vm5488_vm2  ;;  %vm5490_vm4 = vcmp.ge.f32.partialorder %v5426_v16, 1.0  ;;  %vm5494_vm12 = vcmp.ge.f32.partialorder %v5430_v18, 1.0  ;;  %v6477_v15 = vadd.f32 %v15747_v52, %v19708_v32  ;;  %v7108_v51 = vpop.f32.mrb[185].mxu1  ;;  %v19717_v32 = vld [vmem:[#allocation21_spill] sm:$0xff] }
 0x43a   : > { %vm5437_vm15 = vcmp.ge.f32.partialorder %v5373_v29, 1.0  ;;  %v5375_v56 = vadd.f32 %v5311_v23, %v19703_v46  ;;  %vm5435_vm7 = vcmp.ge.f32.partialorder %v5371_v19, 1.0  ;;  %v9287_v0 = vsel %vm7595_vm6, 1.0, %v18723_v11  ;;  %v16107_v61 = vpop.f32.mrb[186].mxu1  ;;  %v19726_v51 = vld [vmem:[#allocation165_spill] sm:$0xff] }
 0x43b   : > { %vm9601_vm9 = vmpackc.low %vm5437_vm15, %vm5433_vm3  ;;  %v7019_v49 = vadd.f32 %v19711_v63, %v6474_v50  ;;  %v7659_v60 = vsel %vm7595_vm6, 0.0, %v15471_v35  ;;  %v16083_v2 = vadd.f32 %v9287_v0, %v19712_v59  ;;  %v7022_v38 = vadd.f32 %v19713_v48, %v6477_v15  ;;  %v16092_v35 = vpop.f32.mrb[194].mxu0  ;;  %v19721_v0 = vld [vmem:[#allocation148_spill] sm:$0xff]  ;;  %v7111_v59 = vpop.f32.mrb[187].mxu1 }
 0x43c   : > { %9602 = vmatprep.mubr.msk.bf16.mxu0 %vm9601_vm9, %v17855_v30  ;;  %vm16071_vm3 = vmpackc.low %vm5494_vm12, %vm5490_vm4  ;;  %vm5439_vm15 = vcmp.ge.f32.partialorder %v5375_v56, 1.0  ;;  %vm7596_vm11 = vcmp.ge.f32.partialorder %v15477_v6, 1.0  ;;  %v19714_v45 = vsub.f32 %v19403_v20, %v15473_v27  ;;  %v19715_v55 = vsub.f32 %v19404_v13, %v15479_v28  ;;  %v6566_v23 = vpop.f32.mrb[195].mxu0  ;;  %v19718_v13 = vld [vmem:[#allocation145_spill] sm:$0xff] }
 0x43d   : > { %9604 = vmatmul.mubr.msk.bf16.gmra.mrb[0].mxu0 %vm15506_vm13, %v17855_v30  ;;  %vm9857_vm2 = vmpackc.low %vm5439_vm15, %vm5435_vm7  ;;  %v7675_v1 = vsub.f32 %v7019_v49, %v7659_v60  ;;  %v9288_v21 = vsel %vm7596_vm11, 1.0, %v18723_v11  ;;  %v7660_v31 = vsel %vm7596_vm11, 0.0, %v15477_v6  ;;  %v19716_v18 = vsub.f32 %v19409_v3, %v15489_v4  ;;  %v19720_v49 = vld [vmem:[#allocation18_spill] sm:$0xff]  ;;  %v16154_v59 = vpop.f32.mrb[196].mxu0 }
 0x43e   : > { %v5306_v57 = vmul.f32 0.5, %v19714_v45  ;;  %9858 = vmatprep.mubr.msk.bf16.mxu1 %vm9857_vm2, %v17855_v30  ;;  %v5310_v29 = vmul.f32 0.5, %v19715_v55  ;;  %v16101_v20 = vadd.f32 %v9288_v21, %v15460_v54  ;;  %v7676_v19 = vsub.f32 %v7022_v38, %v7660_v31  ;;  %v19723_v3 = vld [vmem:[#allocation22_spill] sm:$0xff]  ;;  %v19724_v38 = vld [vmem:[#allocation47_spill] sm:$0xff] }
 0x43f   : > { %v5313_v56 = vmul.f32 0.5, %v19716_v18  ;;  %v7691_v50 = vmul.f32 0.5, %v7675_v1  ;;  %v19719_v15 = vsub.f32 %v19717_v32, %v19718_v13  ;;  %v19722_v54 = vsub.f32 %v19720_v49, %v19721_v0 }
 0x440   : > { %v5370_v16 = vadd.f32 %v5306_v57, %v15473_v27  ;;  %v5374_v6 = vadd.f32 %v5310_v29, %v15479_v28  ;;  %v7692_v48 = vmul.f32 0.5, %v7676_v19  ;;  %v19725_v45 = vsub.f32 %v19723_v3, %v19724_v38 }
 0x441   : > { %v5317_v63 = vmul.f32 0.5, %v19719_v15  ;;  %v5315_v12 = vmul.f32 0.5, %v19722_v54  ;;  %v5377_v27 = vadd.f32 %v5313_v56, %v15489_v4  ;;  %v16120_v1 = vadd.f32 %v7691_v50, %v7659_v60  ;;  %v19727_v60 = vld [vmem:[#allocation188_spill] sm:$0xff]  ;;  %v19729_v56 = vld [vmem:[#allocation153_spill] sm:$0xff] }
 0x442   : > { %vm5434_vm13 = vcmp.ge.f32.partialorder %v5370_v16, 1.0  ;;  %v5319_v57 = vmul.f32 0.5, %v19725_v45  ;;  %vm5438_vm6 = vcmp.ge.f32.partialorder %v5374_v6, 1.0  ;;  %v16124_v55 = vadd.f32 %v7692_v48, %v7660_v31  ;;  %v19728_v31 = vld [vmem:[#allocation141_spill] sm:$0xff]  ;;  %v19730_v6 = vld [vmem:[#allocation139_spill] sm:$0xff]  ;;  %v6571_v45 = vpop.f32.mrb[197].mxu0 }
 0x443   : > { %v5381_v28 = vadd.f32 %v5317_v63, %v19718_v13  ;;  %v5379_v21 = vadd.f32 %v5315_v12, %v19721_v0  ;;  %vm9859_vm9 = vmpackc.low %vm5438_vm6, %vm5434_vm13  ;;  %vm5441_vm7 = vcmp.ge.f32.partialorder %v5377_v27, 1.0  ;;  %v6482_v4 = vadd.f32 %v15747_v52, %v19726_v51  ;;  %v19732_v0 = vld [vmem:[#allocation7_spill] sm:$0xff]  ;;  %v19739_v51 = vld [vmem:[#allocation29_spill] sm:$0xff] }
 0x444   : > { %v5383_v29 = vadd.f32 %v5319_v57, %v19724_v38  ;;  %9860 = vmatmul.mubr.msk.bf16.gmra.mrb[248].mxu1 %vm9859_vm9, %v17855_v30  ;;  %vm7597_vm15 = vcmp.ge.f32.partialorder %v15558_v43, 1.0  ;;  %v6485_v23 = vadd.f32 %v15747_v52, %v19727_v60  ;;  %vm7598_vm6 = vcmp.ge.f32.partialorder %v15563_v36, 1.0  ;;  %v19734_v48 = vld [vmem:[#allocation3_spill] sm:$0xff] }
 0x445   : > { %vm5445_vm4 = vcmp.ge.f32.partialorder %v5381_v28, 1.0  ;;  %vm5443_vm12 = vcmp.ge.f32.partialorder %v5379_v21, 1.0  ;;  %v7027_v19 = vadd.f32 %v19728_v31, %v6482_v4  ;;  %v9289_v16 = vsel %vm7597_vm15, 1.0, %v18723_v11  ;;  %v19736_v28 = vld [vmem:[#allocation35_spill] sm:$0xff]  ;;  %v19737_v21 = vld [vmem:[#allocation6_spill] sm:$0xff]  ;;  %v19740_v4 = vld [vmem:[#allocation193_spill] sm:$0xff] }
 0x446   : > { %vm9605_vm2 = vmpackc.low %vm5445_vm4, %vm5441_vm7  ;;  %vm5447_vm11 = vcmp.ge.f32.partialorder %v5383_v29, 1.0  ;;  %v7661_v18 = vsel %vm7597_vm15, 0.0, %v15558_v43  ;;  %v16138_v50 = vadd.f32 %v9289_v16, %v19729_v56  ;;  %v7030_v32 = vadd.f32 %v19730_v6, %v6485_v23  ;;  %v16170_v31 = vpop.f32.mrb[198].mxu0  ;;  %v19743_v16 = vld [vmem:[#allocation33_spill] sm:$0xff] }
 0x447   : > { %9606 = vmatprep.mubr.msk.bf16.mxu0 %vm9605_vm2, %v17855_v30  ;;  %vm9861_vm13 = vmpackc.low %vm5447_vm11, %vm5443_vm12  ;;  %v19731_v13 = vsub.f32 %v19441_v53, %v15565_v40  ;;  %v7677_v63 = vsub.f32 %v7027_v19, %v7661_v18  ;;  %v9290_v49 = vsel %vm7598_vm6, 1.0, %v18723_v11  ;;  %v7662_v43 = vsel %vm7598_vm6, 0.0, %v15563_v36 }
 0x448   : > { %9862 = vmatprep.mubr.msk.bf16.mxu1 %vm9861_vm13, %v17855_v30  ;;  %9608 = vmatmul.mubr.msk.bf16.gmra.mrb[4].mxu0 %vm15601_vm14, %v17855_v30  ;;  %v19733_v54 = vsub.f32 %v19442_v25, %v19732_v0  ;;  %v16157_v53 = vadd.f32 %v9290_v49, %v19734_v48  ;;  %v7678_v27 = vsub.f32 %v7030_v32, %v7662_v43  ;;  %v16176_v32 = vpop.f32.mrb[188].mxu1 }
 0x449   : > { %v5314_v15 = vmul.f32 0.5, %v19731_v13  ;;  %v19735_v38 = vsub.f32 %v19447_v5, %v15575_v22  ;;  %v7693_v57 = vmul.f32 0.5, %v7677_v63  ;;  %v19738_v25 = vsub.f32 %v19736_v28, %v19737_v21  ;;  %v19742_v5 = vld [vmem:[#allocation36_spill] sm:$0xff]  ;;  %v6574_v13 = vpop.f32.mrb[199].mxu0  ;;  %v19749_v28 = vld [vmem:[#allocation189_spill] sm:$0xff] }
 0x44a   : > { %v5318_v12 = vmul.f32 0.5, %v19733_v54  ;;  %v19741_v60 = vsub.f32 %v19739_v51, %v19740_v4  ;;  %v7694_v19 = vmul.f32 0.5, %v7678_v27  ;;  %v19744_v56 = vsub.f32 %v19742_v5, %v19743_v16  ;;  %v19751_v51 = vld [vmem:[#allocation155_spill] sm:$0xff]  ;;  %v19753_v5 = vld [vmem:[#allocation168_spill] sm:$0xff] }
 0x44b   : > { %v5378_v3 = vadd.f32 %v5314_v15, %v15565_v40  ;;  %v5321_v36 = vmul.f32 0.5, %v19735_v38  ;;  %v5325_v29 = vmul.f32 0.5, %v19738_v25  ;;  %v16178_v15 = vadd.f32 %v7693_v57, %v7661_v18  ;;  %v19746_v18 = vld [vmem:[#allocation191_spill] sm:$0xff]  ;;  %v19750_v25 = vld [vmem:[#allocation152_spill] sm:$0xff] }
 0x44c   : > { %v5382_v8 = vadd.f32 %v5318_v12, %v19732_v0  ;;  %v5323_v23 = vmul.f32 0.5, %v19741_v60  ;;  %v5327_v6 = vmul.f32 0.5, %v19744_v56  ;;  %v7116_v0 = vpop.f32.mrb[189].mxu1  ;;  %v16182_v54 = vadd.f32 %v7694_v19, %v7662_v43  ;;  %v19745_v12 = vld [vmem:[#allocation142_spill] sm:$0xff] }
 0x44d   : > { %vm5442_vm14 = vcmp.ge.f32.partialorder %v5378_v3, 1.0  ;;  %v5385_v40 = vadd.f32 %v5321_v36, %v15575_v22  ;;  %v5389_v63 = vadd.f32 %v5325_v29, %v19737_v21  ;;  %v6490_v48 = vadd.f32 %v15747_v52, %v19745_v12  ;;  %v16187_v27 = vpop.f32.mrb[190].mxu1  ;;  %v19747_v3 = vld [vmem:[#allocation149_spill] sm:$0xff]  ;;  %v19748_v36 = vld [vmem:[#allocation144_spill] sm:$0xff]  ;;  %v19757_v0 = vld [vmem:[#allocation167_spill] sm:$0xff] }
 0x44e   : > { %vm5446_vm9 = vcmp.ge.f32.partialorder %v5382_v8, 1.0  ;;  %v5387_v49 = vadd.f32 %v5323_v23, %v19740_v4  ;;  %v5391_v22 = vadd.f32 %v5327_v6, %v19743_v16  ;;  %vm7599_vm2 = vcmp.ge.f32.partialorder %v19746_v18, 1.0  ;;  %v7119_v43 = vpop.f32.mrb[191].mxu1  ;;  %v19755_v6 = vld [vmem:[#allocation154_spill] sm:$0xff] }
 0x44f   : > { %vm9863_vm7 = vmpackc.low %vm5446_vm9, %vm5442_vm14  ;;  %vm5449_vm4 = vcmp.ge.f32.partialorder %v5385_v40, 1.0  ;;  %vm5453_vm12 = vcmp.ge.f32.partialorder %v5389_v63, 1.0  ;;  %v6493_v38 = vadd.f32 %v15747_v52, %v19747_v3  ;;  %v7035_v45 = vadd.f32 %v19748_v36, %v6490_v48  ;;  %v19759_v3 = vld [vmem:[#allocation52_spill] sm:$0xff]  ;;  %v19762_v36 = vld [vmem:[#allocation150_spill] sm:$0xff] }
 0x450   : > { %9864 = vmatmul.mubr.msk.bf16.gmra.mrb[252].mxu1 %vm9863_vm7, %v17855_v30  ;;  %vm5451_vm15 = vcmp.ge.f32.partialorder %v5387_v49, 1.0  ;;  %vm9609_vm11 = vmpackc.low %vm5453_vm12, %vm5449_vm4  ;;  %vm5455_vm13 = vcmp.ge.f32.partialorder %v5391_v22, 1.0  ;;  %v9291_v57 = vsel %vm7599_vm2, 1.0, %v18723_v11  ;;  %v7663_v8 = vsel %vm7599_vm2, 0.0, %v19746_v18  ;;  %v19756_v49 = vld [vmem:[#allocation46_spill] sm:$0xff] }
 0x451   : > { %9610 = vmatprep.mubr.msk.bf16.mxu0 %vm9609_vm11, %v17855_v30  ;;  %vm9865_vm6 = vmpackc.low %vm5455_vm13, %vm5451_vm15  ;;  %v16198_v21 = vadd.f32 %v9291_v57, %v19749_v28  ;;  %v7038_v29 = vadd.f32 %v19750_v25, %v6493_v38  ;;  %vm7600_vm14 = vcmp.ge.f32.partialorder %v19751_v51, 1.0  ;;  %v19752_v4 = vsub.f32 %v19482_v58, %v15652_v37  ;;  %v19763_v28 = vld [vmem:[#allocation190_spill] sm:$0xff] }
 0x452   : > { %9866 = vmatprep.mubr.msk.bf16.mxu1 %vm9865_vm6, %v17855_v30  ;;  %v7679_v23 = vsub.f32 %v7035_v45, %v7663_v8  ;;  %v9292_v19 = vsel %vm7600_vm14, 1.0, %v18723_v11  ;;  %v7664_v40 = vsel %vm7600_vm14, 0.0, %v19751_v51  ;;  %9612 = vmatmul.mubr.msk.bf16.gmra.mrb[8].mxu0 %vm15672_vm10, %v17855_v30  ;;  %v19754_v16 = vsub.f32 %v19484_v17, %v19753_v5  ;;  %v19764_v51 = vld [vmem:[#allocation50_spill] sm:$0xff] }
 0x453   : > { %v5329_v60 = vmul.f32 0.5, %v19752_v4  ;;  %v16215_v13 = vadd.f32 %v9292_v19, %v19755_v6  ;;  %v7680_v58 = vsub.f32 %v7038_v29, %v7664_v40  ;;  %v19758_v22 = vsub.f32 %v19756_v49, %v19757_v0 }
 0x454   : > { %v5333_v56 = vmul.f32 0.5, %v19754_v16  ;;  %v7695_v48 = vmul.f32 0.5, %v7679_v23  ;;  %v19761_v38 = vsub.f32 %v19759_v3, %v19760_v62  ;;  %v6498_v17 = vadd.f32 %v15747_v52, %v19762_v36  ;;  %v19777_v3 = vld [vmem:[#allocation72_spill] sm:$0xff]  ;;  %v16259_v36 = vpop.f32.mrb[192].mxu1 }
 0x455   : > { %v5393_v63 = vadd.f32 %v5329_v60, %v15652_v37  ;;  %v5331_v12 = vmul.f32 0.5, %v19758_v22  ;;  %v7696_v45 = vmul.f32 0.5, %v7680_v58  ;;  %v6501_v37 = vadd.f32 %v15747_v52, %v19763_v28  ;;  %v16236_v60 = vpop.f32.mrb[200].mxu0  ;;  %v19774_v22 = vld [vmem:[#allocation63_spill] sm:$0xff]  ;;  %v7124_v19 = vpop.f32.mrb[193].mxu1 }
 0x456   : > { %v5397_v18 = vadd.f32 %v5333_v56, %v19753_v5  ;;  %v5335_v43 = vmul.f32 0.5, %v19761_v38  ;;  %v16230_v25 = vadd.f32 %v7695_v48, %v7663_v8  ;;  %v16234_v4 = vadd.f32 %v19764_v51, %v6498_v17  ;;  %v19767_v5 = vld [vmem:[#allocation192_spill] sm:$0xff]  ;;  %v19769_v8 = vld [vmem:[#allocation19_spill] sm:$0xff]  ;;  %v6579_v58 = vpop.f32.mrb[201].mxu0  ;;  %v19796_v19 = vld [vmem:[#allocation194_spill] sm:$0xff] }
 0x457   : > { %vm5457_vm10 = vcmp.ge.f32.partialorder %v5393_v63, 1.0  ;;  %v5395_v57 = vadd.f32 %v5331_v12, %v19757_v0  ;;  %v16238_v23 = vadd.f32 %v7696_v45, %v7664_v40  ;;  %v16244_v16 = vadd.f32 %v19767_v5, %v6501_v37  ;;  %v19771_v63 = vld [vmem:[#allocation69_spill] sm:$0xff]  ;;  %v19775_v12 = vld [vmem:[#allocation28_spill] sm:$0xff]  ;;  %v19781_v28 = vld [vmem:[#allocation11_spill] sm:$0xff] }
 0x458   : > { %vm5461_vm9 = vcmp.ge.f32.partialorder %v5397_v18, 1.0  ;;  %v5399_v29 = vadd.f32 %v5335_v43, %v19760_v62  ;;  %19765 = vst [vmem:[#allocation224_spill] sm:$0xff] %v16234_v4  ;;  %9868 = vmatmul.mubr.msk.bf16.gmra.mrb[0].mxu1 %vm15697_vm8, %v17855_v30  ;;  %v19770_v56 = vsub.f32 %v19524_v9, %v19769_v8  ;;  %v19772_v40 = vld [vmem:[#allocation17_spill] sm:$0xff]  ;;  %v19776_v48 = vsub.f32 %v19774_v22, %v19775_v12  ;;  %v16261_v9 = vpop.f32.mrb[202].mxu0  ;;  %v19780_v45 = vld [vmem:[#allocation156_spill] sm:$0xff] }
 0x459   : > { %vm9613_vm7 = vmpackc.low %vm5461_vm9, %vm5457_vm10  ;;  %vm5459_vm4 = vcmp.ge.f32.partialorder %v5395_v57, 1.0  ;;  %19768 = vst [vmem:[#allocation75_spill] sm:$0xff] %v16244_v16  ;;  %v19773_v49 = vsub.f32 %v19771_v63, %v19772_v40  ;;  %v19778_v62 = vld [vmem:[#allocation169_spill] sm:$0xff]  ;;  %v6506_v57 = vadd.f32 %v15747_v52, %v19780_v45  ;;  %v6509_v37 = vadd.f32 %v15747_v52, %v19781_v28  ;;  %v6582_v5 = vpop.f32.mrb[203].mxu0 }
 0x45a   : > { %v5337_v6 = vmul.f32 0.5, %v19770_v56  ;;  %9614 = vmatprep.mubr.msk.bf16.mxu0 %vm9613_vm7, %v17855_v30  ;;  %vm5463_vm12 = vcmp.ge.f32.partialorder %v5399_v29, 1.0  ;;  %v5339_v18 = vmul.f32 0.5, %v19776_v48  ;;  %v19779_v38 = vsub.f32 %v19777_v3, %v19778_v62  ;;  %v19784_v63 = vld [vmem:[#allocation89_spill] sm:$0xff]  ;;  %v19787_v3 = vld [vmem:[#allocation16_spill] sm:$0xff] }
 0x45b   : > { %v5341_v0 = vmul.f32 0.5, %v19773_v49  ;;  %vm9869_vm8 = vmpackc.low %vm5463_vm12, %vm5459_vm4  ;;  %v19782_v29 = vsub.f32 %v19564_v26, %v15797_v39  ;;  %9616 = vmatmul.mubr.msk.bf16.gmra.mrb[12].mxu0 %vm15751_vm0, %v17855_v30  ;;  %v19785_v49 = vld [vmem:[#allocation200_spill] sm:$0xff]  ;;  %v16281_v26 = vpop.f32.mrb[194].mxu1  ;;  %v19789_v45 = vld [vmem:[#allocation197_spill] sm:$0xff]  ;;  %v6514_v5 = vadd.f32 %v15747_v52, %v19796_v19  ;;  %vm7717_vm9 = vcmp.ge.f32.partialorder %v15871_v47, 1.0 }
 0x45c   : > { %v5343_v43 = vmul.f32 0.5, %v19779_v38  ;;  %v5401_v17 = vadd.f32 %v5337_v6, %v19769_v8  ;;  %9870 = vmatprep.mubr.msk.bf16.mxu1 %vm9869_vm8, %v17855_v30  ;;  %v5403_v6 = vadd.f32 %v5339_v18, %v19775_v12  ;;  %v19786_v22 = vsub.f32 %v19784_v63, %v19785_v49  ;;  %v7127_v12 = vpop.f32.mrb[195].mxu1  ;;  %v19813_v19 = vld [vmem:[#allocation112_spill] sm:$0xff] }
 0x45d   : > { %v5345_v51 = vmul.f32 0.5, %v19782_v29  ;;  %v5405_v8 = vadd.f32 %v5341_v0, %v19772_v40  ;;  %v16284_v38 = vadd.f32 %v19787_v3, %v6506_v57  ;;  %v16287_v28 = vadd.f32 %v19789_v45, %v6509_v37  ;;  %v8295_v40 = vld [vmem:[%s17270_s5 + $0x30] sm:$0xff]  ;;  %v8296_v0 = vld [vmem:[%s17270_s5 + $0x38] sm:$0xff] }
 0x45e   : > { %v5407_v58 = vadd.f32 %v5343_v43, %v19778_v62  ;;  %v5349_v48 = vmul.f32 0.5, %v19786_v22  ;;  %vm5465_vm15 = vcmp.ge.f32.partialorder %v5401_v17, 1.0  ;;  %vm5467_vm2 = vcmp.ge.f32.partialorder %v5403_v6, 1.0  ;;  %v19791_v62 = vld [vmem:[#allocation61_spill] sm:$0xff]  ;;  %v19793_v17 = vld [vmem:[#allocation90_spill] sm:$0xff] }
 0x45f   : > { %19788 = vst [vmem:[#allocation177_spill] sm:$0xff] %v16284_v38  ;;  %19790 = vst [vmem:[#allocation76_spill] sm:$0xff] %v16287_v28  ;;  %v5409_v29 = vadd.f32 %v5345_v51, %v15797_v39  ;;  %vm5469_vm0 = vcmp.ge.f32.partialorder %v5405_v8, 1.0  ;;  %v19792_v43 = vsub.f32 %v19573_v24, %v19791_v62  ;;  %v19794_v57 = vld [vmem:[#allocation30_spill] sm:$0xff]  ;;  %v9989_v56 = vpack.c.bf16 %v8296_v0, %v8295_v40  ;;  %v19797_v8 = vld [vmem:[#allocation40_spill] sm:$0xff] }
 0x460   : > { %vm5471_vm11 = vcmp.ge.f32.partialorder %v5407_v58, 1.0  ;;  %v5413_v18 = vadd.f32 %v5349_v48, %v19785_v49  ;;  %vm9617_vm13 = vmpackc.low %vm5469_vm0, %vm5465_vm15  ;;  %v19795_v37 = vsub.f32 %v19793_v17, %v19794_v57  ;;  %v6517_v6 = vadd.f32 %v15747_v52, %v19797_v8  ;;  %v19798_v24 = vld [vmem:[#allocation57_spill] sm:$0xff]  ;;  %v19802_v22 = vld [vmem:[#allocation158_spill] sm:$0xff] }
 0x461   : > { %vm5473_vm6 = vcmp.ge.f32.partialorder %v5409_v29, 1.0  ;;  %v5347_v39 = vmul.f32 0.5, %v19792_v43  ;;  %9618 = vmatprep.mubr.msk.bf16.mxu0 %vm9617_vm13, %v17855_v30  ;;  %vm9873_vm14 = vmpackc.low %vm5471_vm11, %vm5467_vm2  ;;  %vm19799_vm7 = vnez %v19798_v24  ;;  %v7059_v48 = vadd.f32 %v19802_v22, %v6514_v5  ;;  %9990 = vmatprep.subr.bf16.mxu1 %v9989_v56  ;;  %v19803_v29 = vld [vmem:[#allocation53_spill] sm:$0xff]  ;;  %v19804_v0 = vld [vmem:[#allocation203_spill] sm:$0xff] }
 0x462   : > { %v5351_v51 = vmul.f32 0.5, %v19795_v37  ;;  %vm5477_vm10 = vcmp.ge.f32.partialorder %v5413_v18, 1.0  ;;  %9872 = vmatmul.mubr.msk.bf16.gmra.mrb[4].mxu1 %vm19799_vm7, %v17855_v30  ;;  %v9297_v3 = vsel %vm7717_vm9, 1.0, %v18723_v11  ;;  %v7781_v45 = vsel %vm7717_vm9, 0.0, %v15871_v47  ;;  %v19809_v47 = vld [vmem:[#allocation31_spill] sm:$0xff]  ;;  %v19810_v17 = vld [vmem:[#allocation105_spill] sm:$0xff] }
 0x463   : > { %vm16312_vm4 = vmpackc.low %vm5477_vm10, %vm5473_vm6  ;;  %v5411_v63 = vadd.f32 %v5347_v39, %v19791_v62  ;;  %9874 = vmatprep.mubr.msk.bf16.mxu1 %vm9873_vm14, %v17855_v30  ;;  %v16322_v52 = vadd.f32 %v9297_v3, %v15853_v33  ;;  %v7062_v40 = vadd.f32 %v19803_v29, %v6517_v6  ;;  %vm7718_vm12 = vcmp.ge.f32.partialorder %v19804_v0, 1.0  ;;  %9992 = vmatpush3.bf16.msra.mxu1 %v9989_v56  ;;  %v19805_v62 = vld [vmem:[#allocation25_spill] sm:$0xff]  ;;  %v19814_v5 = vld [vmem:[#allocation223_spill] sm:$0xff]  ;;  %v16345_v6 = vpop.f32.mrb[204].mxu0 }
 0x464   : > { %v5415_v49 = vadd.f32 %v5351_v51, %v19794_v57  ;;  %v7797_v12 = vsub.f32 %v7059_v48, %v7781_v45  ;;  %v9298_v18 = vsel %vm7718_vm12, 1.0, %v18723_v11  ;;  %vm19806_vm0 = vnez %v19805_v62  ;;  %v19811_v57 = vld [vmem:[#allocation202_spill] sm:$0xff]  ;;  %v19817_v22 = vld [vmem:[#allocation43_spill] sm:$0xff]  ;;  %v19819_v29 = vld [vmem:[#allocation113_spill] sm:$0xff] }
 0x465   : > { %vm5475_vm8 = vcmp.ge.f32.partialorder %v5411_v63, 1.0  ;;  %9620 = vmatmul.mubr.msk.bf16.gmra.mrb[16].mxu0 %vm19806_vm0, %v17855_v30  ;;  %v16336_v43 = vadd.f32 %v9298_v18, %v19809_v47  ;;  %v7782_v39 = vsel %vm7718_vm12, 0.0, %v19804_v0  ;;  %v19812_v37 = vsub.f32 %v19810_v17, %v19811_v57  ;;  %v19820_v0 = vld [vmem:[#allocation80_spill] sm:$0xff]  ;;  %v6587_v47 = vpop.f32.mrb[205].mxu0  ;;  %v16361_v58 = vld [vmem:[%s17269_s4] ss:$0 sm:$0xff] }
 0x466   : > { %vm5479_vm15 = vcmp.ge.f32.partialorder %v5415_v49, 1.0  ;;  %v19815_v56 = vsub.f32 %v19813_v19, %v19814_v5  ;;  %9622 = vmatprep.mubr.msk.bf16.mxu0 %vm16312_vm4, %v17855_v30  ;;  %v7813_v24 = vmul.f32 0.5, %v7797_v12  ;;  %v7798_v63 = vsub.f32 %v7062_v40, %v7782_v39  ;;  %v19816_v49 = vld [vmem:[#allocation106_spill] sm:$0xff]  ;;  %v19822_v12 = vld [vmem:[#allocation20_spill] sm:$0xff] }
 0x467   : > { %vm16331_vm2 = vmpackc.low %vm5479_vm15, %vm5475_vm8  ;;  %v5353_v51 = vmul.f32 0.5, %v19812_v37  ;;  %v19818_v48 = vsub.f32 %v19816_v49, %v19817_v22  ;;  %v19821_v18 = vsub.f32 %v19819_v29, %v19820_v0  ;;  %v6522_v40 = vadd.f32 %v16361_v58, %v19822_v12  ;;  %v19823_v19 = vld [vmem:[#allocation206_spill] sm:$0xff]  ;;  %v16368_v49 = vpop.f32.mrb[206].mxu0 }
 0x468   : > { %v5357_v8 = vmul.f32 0.5, %v19815_v56  ;;  %vm7719_vm11 = vcmp.ge.f32.partialorder %v19823_v19, 1.0  ;;  %v16366_v56 = vpop.f32.mrb[196].mxu1  ;;  %v7814_v29 = vmul.f32 0.5, %v7798_v63  ;;  %v6573_v46 = vadd.f32 %v16361_v58, %v16170_v31 }
 0x469   : > { %v5355_v3 = vmul.f32 0.5, %v19818_v48  ;;  %v5359_v62 = vmul.f32 0.5, %v19821_v18  ;;  %v5417_v17 = vadd.f32 %v5353_v51, %v19811_v57  ;;  %v16370_v48 = vadd.f32 %v7813_v24, %v7781_v45  ;;  %v19824_v18 = vld [vmem:[#allocation198_spill] sm:$0xff] }
 0x46a   : > { %v5421_v37 = vadd.f32 %v5357_v8, %v19814_v5  ;;  %v7132_v5 = vpop.f32.mrb[197].mxu1  ;;  %v6590_v8 = vpop.f32.mrb[207].mxu0  ;;  %v7067_v47 = vadd.f32 %v19824_v18, %v6522_v40  ;;  %v9299_v12 = vsel %vm7719_vm11, 1.0, %v18723_v11  ;;  %v19825_v45 = vld [vmem:[#allocation26_spill] sm:$0xff]  ;;  %v16383_v24 = vadd.f32 %v7814_v29, %v7782_v39  ;;  %v19833_v40 = vld [vmem:[#allocation204_spill] sm:$0xff] }
 0x46b   : > { %v5419_v57 = vadd.f32 %v5355_v3, %v19817_v22  ;;  %v5423_v51 = vadd.f32 %v5359_v62, %v19820_v0  ;;  %vm5481_vm13 = vcmp.ge.f32.partialorder %v5417_v17, 1.0  ;;  %v16378_v28 = vpop.f32.mrb[198].mxu1  ;;  %vm19826_vm14 = vnez %v19825_v45  ;;  %v19829_v22 = vld [vmem:[#allocation205_spill] sm:$0xff]  ;;  %v19832_v17 = vld [vmem:[#allocation56_spill] sm:$0xff]  ;;  %v19839_v45 = vld [vmem:[#allocation195_spill] sm:$0xff] }
 0x46c   : > { %vm5485_vm6 = vcmp.ge.f32.partialorder %v5421_v37, 1.0  ;;  %9876 = vmatmul.mubr.msk.bf16.gmra.mrb[8].mxu1 %vm19826_vm14, %v17855_v30  ;;  %v16390_v3 = vadd.f32 %v9299_v12, %v19829_v22  ;;  %v7135_v0 = vpop.f32.mrb[199].mxu1  ;;  %v7783_v39 = vsel %vm7719_vm11, 0.0, %v19823_v19  ;;  %v6525_v37 = vadd.f32 %v16361_v58, %v19832_v17  ;;  %v19835_v8 = vld [vmem:[#allocation176_spill] sm:$0xff]  ;;  %v19837_v19 = vld [vmem:[#allocation71_spill] sm:$0xff] }
 0x46d   : > { %vm16385_vm10 = vmpackc.low %vm5485_vm6, %vm5481_vm13  ;;  %vm5483_vm9 = vcmp.ge.f32.partialorder %v5419_v57, 1.0  ;;  %vm5487_vm7 = vcmp.ge.f32.partialorder %v5423_v51, 1.0  ;;  %9878 = vmatprep.mubr.msk.bf16.mxu1 %vm16331_vm2, %v17855_v30  ;;  %vm7720_vm12 = vcmp.ge.f32.partialorder %v19833_v40, 1.0  ;;  %v19834_v29 = vsub.f32 %v19660_v14, %v15973_v10  ;;  %v19840_v0 = vld [vmem:[#allocation207_spill] sm:$0xff] }
 0x46e   : > { %vm16395_vm4 = vmpackc.low %vm5487_vm7, %vm5483_vm9  ;;  %v7799_v51 = vsub.f32 %v7067_v47, %v7783_v39  ;;  %v9300_v33 = vsel %vm7720_vm12, 1.0, %v18723_v11  ;;  %v7784_v5 = vsel %vm7720_vm12, 0.0, %v19833_v40  ;;  %v19836_v18 = vsub.f32 %v19661_v44, %v19835_v8  ;;  %v19841_v47 = vld [vmem:[#allocation121_spill] sm:$0xff] }
 0x46f   : > { %v5361_v57 = vmul.f32 0.5, %v19834_v29  ;;  %vm19838_vm8 = vnez %v19837_v19  ;;  %v7070_v22 = vadd.f32 %v19839_v45, %v6525_v37  ;;  %v16418_v17 = vadd.f32 %v9300_v33, %v19840_v0  ;;  %v19842_v29 = vld [vmem:[#allocation181_spill] sm:$0xff]  ;;  %v19847_v45 = vld [vmem:[#allocation58_spill] sm:$0xff] }
 0x470   : > { %v5365_v12 = vmul.f32 0.5, %v19836_v18  ;;  %9624 = vmatmul.mubr.msk.bf16.gmra.mrb[20].mxu0 %vm19838_vm8, %v17855_v30  ;;  %v19843_v38 = vsub.f32 %v19841_v47, %v19842_v29  ;;  %v7815_v44 = vmul.f32 0.5, %v7799_v51  ;;  %v19844_v18 = vld [vmem:[#allocation125_spill] sm:$0xff]  ;;  %v6530_v33 = vadd.f32 %v16361_v58, %v19847_v45  ;;  %v19867_v47 = vld [vmem:[#allocation55_spill] sm:$0xff] }
 0x471   : > { %v5425_v14 = vadd.f32 %v5361_v57, %v15973_v10  ;;  %9626 = vmatprep.mubr.msk.bf16.mxu0 %vm16385_vm10, %v17855_v30  ;;  %v19845_v19 = vld [vmem:[#allocation41_spill] sm:$0xff]  ;;  %v7800_v0 = vsub.f32 %v7070_v22, %v7784_v5  ;;  %v19848_v57 = vld [vmem:[#allocation160_spill] sm:$0xff]  ;;  %vm7722_vm9 = vcmp.ge.f32.partialorder %v16047_v34, 1.0  ;;  %vm7723_vm7 = vcmp.ge.f32.partialorder %v16120_v1, 1.0 }
 0x472   : > { %v5363_v16 = vmul.f32 0.5, %v19843_v38  ;;  %v5429_v40 = vadd.f32 %v5365_v12, %v19835_v8  ;;  %v19846_v4 = vsub.f32 %v19844_v18, %v19845_v19  ;;  %vm7721_vm0 = vcmp.ge.f32.partialorder %v19848_v57, 1.0  ;;  %v19849_v51 = vld [vmem:[#allocation37_spill] sm:$0xff] }
 0x473   : > { %vm5489_vm15 = vcmp.ge.f32.partialorder %v5425_v14, 1.0  ;;  %v16435_v38 = vadd.f32 %v7815_v44, %v7783_v39  ;;  %v7075_v8 = vadd.f32 %v19849_v51, %v6530_v33  ;;  %v7816_v12 = vmul.f32 0.5, %v7800_v0  ;;  %v19852_v39 = vld [vmem:[#allocation159_spill] sm:$0xff]  ;;  %v19854_v14 = vld [vmem:[#allocation42_spill] sm:$0xff] }
 0x474   : > { %v5367_v37 = vmul.f32 0.5, %v19846_v4  ;;  %v5427_v10 = vadd.f32 %v5363_v16, %v19842_v29  ;;  %vm5493_vm2 = vcmp.ge.f32.partialorder %v5429_v40, 1.0  ;;  %v9301_v4 = vsel %vm7721_vm0, 1.0, %v18723_v11  ;;  %v16445_v16 = vpop.f32.mrb[208].mxu0  ;;  %v19855_v40 = vld [vmem:[#allocation172_spill] sm:$0xff]  ;;  %v19858_v0 = vld [vmem:[#allocation70_spill] sm:$0xff] }
 0x475   : > { %vm16439_vm11 = vmpackc.low %vm5493_vm2, %vm5489_vm15  ;;  %v7785_v22 = vsel %vm7721_vm0, 0.0, %v19848_v57  ;;  %vm19853_vm6 = vnez %v19852_v39  ;;  %v16451_v29 = vadd.f32 %v9301_v4, %v19854_v14  ;;  %v6533_v18 = vadd.f32 %v16361_v58, %v19855_v40  ;;  %v19862_v40 = vld [vmem:[#allocation86_spill] sm:$0xff] }
 0x476   : > { %v5431_v63 = vadd.f32 %v5367_v37, %v19845_v19  ;;  %vm5491_vm13 = vcmp.ge.f32.partialorder %v5427_v10, 1.0  ;;  %9880 = vmatmul.mubr.msk.bf16.gmra.mrb[12].mxu1 %vm19853_vm6, %v17855_v30  ;;  %v7801_v44 = vsub.f32 %v7075_v8, %v7785_v22  ;;  %v16455_v19 = vpop.f32.mrb[200].mxu1  ;;  %v6595_v37 = vpop.f32.mrb[209].mxu0  ;;  %v16460_v45 = vadd.f32 %v7816_v12, %v7784_v5  ;;  %v19859_v8 = vld [vmem:[#allocation64_spill] sm:$0xff]  ;;  %v19873_v33 = vld [vmem:[#allocation10_spill] sm:$0xff] }
 0x477   : > { %9882 = vmatprep.mubr.msk.bf16.mxu1 %vm16395_vm4, %v17855_v30  ;;  %v6538_v10 = vadd.f32 %v16361_v58, %v19858_v0  ;;  %v7140_v57 = vpop.f32.mrb[201].mxu1  ;;  %v7078_v62 = vadd.f32 %v19859_v8, %v6533_v18  ;;  %v9302_v5 = vsel %vm7722_vm9, 1.0, %v18723_v11  ;;  %v7786_v12 = vsel %vm7722_vm9, 0.0, %v16047_v34  ;;  %v19863_v0 = vld [vmem:[#allocation45_spill] sm:$0xff] }
 0x478   : > { %vm5495_vm14 = vcmp.ge.f32.partialorder %v5431_v63, 1.0  ;;  %v16470_v63 = vpop.f32.mrb[210].mxu0  ;;  %v7817_v51 = vmul.f32 0.5, %v7801_v44  ;;  %v16475_v4 = vpop.f32.mrb[202].mxu1  ;;  %9628 = vmatmul.mubr.msk.bf16.gmra.mrb[24].mxu0 %vm15982_vm5, %v17855_v30  ;;  %v16481_v37 = vadd.f32 %v9302_v5, %v19862_v40  ;;  %v9303_v44 = vsel %vm7723_vm7, 1.0, %v18723_v11 }
 0x479   : > { %vm16462_vm10 = vmpackc.low %vm5495_vm14, %vm5491_vm13  ;;  %19860 = vst [vmem:[#allocation77_spill] sm:$0xff] %v16475_v4  ;;  %v6598_v39 = vpop.f32.mrb[211].mxu0  ;;  %v7083_v57 = vadd.f32 %v19863_v0, %v6538_v10  ;;  %v7787_v18 = vsel %vm7723_vm7, 0.0, %v16120_v1  ;;  %v7143_v8 = vpop.f32.mrb[203].mxu1  ;;  %9630 = vmatprep.mubr.msk.bf16.mxu0 %vm16439_vm11, %v17855_v30  ;;  %v16492_v14 = vadd.f32 %v9303_v44, %v16083_v2  ;;  %v19865_v4 = vld [vmem:[#allocation51_spill] sm:$0xff]  ;;  %vm7724_vm5 = vcmp.ge.f32.partialorder %v16124_v55, 1.0 }
 0x47a   : > { %v16489_v34 = vadd.f32 %v7817_v51, %v7785_v22  ;;  %v7802_v39 = vsub.f32 %v7078_v62, %v7786_v12  ;;  %v6541_v5 = vadd.f32 %v16361_v58, %v19865_v4  ;;  %v19866_v10 = vld [vmem:[#allocation199_spill] sm:$0xff]  ;;  %vm7725_vm4 = vcmp.ge.f32.partialorder %v16178_v15, 1.0  ;;  %v19868_v4 = vld [vmem:[#allocation173_spill] sm:$0xff] }
 0x47b   : > { %19864 = vst [vmem:[#allocation211_spill] sm:$0xff] %v16492_v14  ;;  %v7803_v40 = vsub.f32 %v7083_v57, %v7787_v18  ;;  %v6546_v1 = vadd.f32 %v16361_v58, %v19866_v10  ;;  %v9304_v22 = vsel %vm7724_vm5, 1.0, %v18723_v11  ;;  %v7788_v51 = vsel %vm7724_vm5, 0.0, %v16124_v55  ;;  %v19869_v14 = vld [vmem:[#allocation48_spill] sm:$0xff] }
 0x47c   : > { %v7818_v0 = vmul.f32 0.5, %v7802_v39  ;;  %v7086_v8 = vadd.f32 %v19867_v47, %v6541_v5  ;;  %v16504_v62 = vadd.f32 %v9304_v22, %v16101_v20  ;;  %v9305_v44 = vsel %vm7725_vm4, 1.0, %v18723_v11  ;;  %v19877_v22 = vld [vmem:[#allocation74_spill] sm:$0xff] }
 0x47d   : > { %v7819_v2 = vmul.f32 0.5, %v7803_v40  ;;  %v7091_v57 = vadd.f32 %v19868_v4, %v6546_v1  ;;  %vm19870_vm12 = vnez %v19869_v14  ;;  %v16514_v5 = vadd.f32 %v9305_v44, %v16138_v50  ;;  %v19871_v1 = vld [vmem:[#allocation174_spill] sm:$0xff] }
 0x47e   : > { %9884 = vmatmul.mubr.msk.bf16.gmra.mrb[16].mxu1 %vm19870_vm12, %v17855_v30  ;;  %v16511_v10 = vadd.f32 %v7818_v0, %v7786_v12  ;;  %v7804_v39 = vsub.f32 %v7086_v8, %v7788_v51  ;;  %v7789_v55 = vsel %vm7725_vm4, 0.0, %v16178_v15  ;;  %v6549_v47 = vadd.f32 %v16361_v58, %v19871_v1  ;;  %v19872_v0 = vld [vmem:[#allocation49_spill] sm:$0xff] }
 0x47f   : > { %9886 = vmatprep.mubr.msk.bf16.mxu1 %vm16462_vm10, %v17855_v30  ;;  %v16520_v20 = vadd.f32 %v7819_v2, %v7787_v18  ;;  %v7805_v40 = vsub.f32 %v7091_v57, %v7789_v55  ;;  %vm7726_vm8 = vcmp.ge.f32.partialorder %v16182_v54, 1.0  ;;  %v6554_v15 = vadd.f32 %v16361_v58, %v19872_v0  ;;  %v19875_v18 = vld [vmem:[#allocation12_spill] sm:$0xff] }
 0x480   : > { %v7820_v12 = vmul.f32 0.5, %v7804_v39  ;;  %v9306_v14 = vsel %vm7726_vm8, 1.0, %v18723_v11  ;;  %v7790_v50 = vsel %vm7726_vm8, 0.0, %v16182_v54  ;;  %9632 = vmatmul.mubr.msk.bf16.gmra.mrb[28].mxu0 %vm16061_vm1, %v17855_v30  ;;  %vm19874_vm15 = vcmp.ge.f32.partialorder %v19873_v33, 1.0  ;;  %v16541_v54 = vpop.f32.mrb[212].mxu0 }
 0x481   : > { %vm19876_vm0 = vcmp.ge.f32.partialorder %v19875_v18, 1.0  ;;  %v7821_v8 = vmul.f32 0.5, %v7805_v40  ;;  %v7094_v2 = vadd.f32 %v19877_v22, %v6549_v47  ;;  %v16538_v4 = vadd.f32 %v9306_v14, %v16157_v53  ;;  %v6603_v40 = vpop.f32.mrb[213].mxu0  ;;  %v19879_v14 = vld [vmem:[#allocation226_spill] sm:$0xff] }
 0x482   : > { %vm9633_vm2 = vmpackc.low %vm19876_vm0, %vm19874_vm15  ;;  %vm7727_vm11 = vcmp.ge.f32.partialorder %v16230_v25, 1.0  ;;  %v16544_v57 = vadd.f32 %v7820_v12, %v7788_v51  ;;  %v7099_v44 = vadd.f32 %v19878_v7, %v6554_v15  ;;  %v6557_v33 = vadd.f32 %v16361_v58, %v19879_v14  ;;  %v16556_v18 = vpop.f32.mrb[214].mxu0 }
 0x483   : > { %9634 = vmatprep.mubr.msk.bf16.mxu0 %vm9633_vm2, %v17855_v30  ;;  %v9307_v39 = vsel %vm7727_vm11, 1.0, %v18723_v11  ;;  %v7791_v1 = vsel %vm7727_vm11, 0.0, %v16230_v25  ;;  %v16549_v0 = vadd.f32 %v7821_v8, %v7789_v55  ;;  %v7806_v47 = vsub.f32 %v7094_v2, %v7790_v50  ;;  %v16563_v55 = vpop.f32.mrb[204].mxu1  ;;  %v6606_v15 = vpop.f32.mrb[215].mxu0 }
 0x484   : > { %v16552_v53 = vadd.f32 %v9307_v39, %v16198_v21  ;;  %v7807_v51 = vsub.f32 %v7099_v44, %v7791_v1  ;;  %vm7728_vm1 = vcmp.ge.f32.partialorder %v16238_v23, 1.0  ;;  %v6562_v12 = vadd.f32 %v16361_v58, %v16069_v41  ;;  %v19880_v21 = vld [vmem:[#allocation68_spill] sm:$0xff]  ;;  %v8297_v44 = vld [vmem:[%s17270_s5 + $0x40] sm:$0xff]  ;;  %v7148_v39 = vpop.f32.mrb[205].mxu1 }
 0x485   : > { %v6565_v25 = vadd.f32 %v16361_v58, %v16092_v35  ;;  %v7822_v8 = vmul.f32 0.5, %v7806_v47  ;;  %v7102_v22 = vadd.f32 %v19880_v21, %v6557_v33  ;;  %v9308_v2 = vsel %vm7728_vm1, 1.0, %v18723_v11  ;;  %v8298_v41 = vld [vmem:[%s17270_s5 + $0x48] sm:$0xff]  ;;  %v16586_v14 = vpop.f32.mrb[206].mxu1 }
 0x486   : > { %v7792_v7 = vsel %vm7728_vm1, 0.0, %v16238_v23  ;;  %9888 = vmatmul.mubr.msk.bf16.gmra.mrb[20].mxu1 %vm16071_vm3, %v17855_v30  ;;  %v7823_v35 = vmul.f32 0.5, %v7807_v51  ;;  %v16578_v40 = vadd.f32 %v9308_v2, %v16215_v13  ;;  %v16581_v47 = vadd.f32 %v16090_v42, %v6562_v12  ;;  %v7151_v51 = vpop.f32.mrb[207].mxu1  ;;  %v19881_v13 = vld [vmem:[#allocation13_spill] sm:$0xff]  ;;  %v19883_v2 = vld [vmem:[#allocation15_spill] sm:$0xff] }
 0x487   : > { %v16584_v23 = vadd.f32 %v16107_v61, %v6565_v25  ;;  %v16588_v33 = vadd.f32 %v7822_v8, %v7790_v50  ;;  %v7808_v15 = vsub.f32 %v7102_v22, %v7792_v7  ;;  %v6570_v21 = vadd.f32 %v16361_v58, %v16154_v59  ;;  %v19885_v59 = vld [vmem:[#allocation27_spill] sm:$0xff] }
 0x488   : > { %vm19882_vm3 = vcmp.ge.f32.partialorder %v19881_v13, 1.0  ;;  %vm19884_vm13 = vcmp.ge.f32.partialorder %v19883_v2, 1.0  ;;  %v16598_v42 = vadd.f32 %v7823_v35, %v7791_v1  ;;  %v9993_v61 = vpack.c.bf16 %v8298_v41, %v8297_v44  ;;  %v19887_v12 = vld [vmem:[#allocation151_spill] sm:$0xff] }
 0x489   : > { %vm9635_vm6 = vmpackc.low %vm19884_vm13, %vm19882_vm3  ;;  %v6578_v50 = vadd.f32 %v16361_v58, %v16236_v60  ;;  %vm7845_vm14 = vcmp.ge.f32.partialorder %v16370_v48, 1.0  ;;  %vm19886_vm10 = vcmp.ge.f32.partialorder %v19885_v59, 1.0  ;;  %vm19888_vm9 = vcmp.ge.f32.partialorder %v19887_v12, 1.0  ;;  %v6609_v59 = vpop.f32.mrb[216].mxu0 }
 0x48a   : > { %9636 = vmatmul.mubr.msk.bf16.vlgmr.msra.gmra.mrb[32].mxu0 %vm9635_vm6, %v17855_v30  ;;  %vm9637_vm7 = vmpackc.low %vm19888_vm9, %vm19886_vm10  ;;  %v7824_v31 = vmul.f32 0.5, %v7808_v15  ;;  %v16609_v25 = vadd.f32 %v16176_v32, %v6570_v21  ;;  %v16612_v1 = vadd.f32 %v16187_v27, %v6573_v46  ;;  %v9313_v8 = vsel %vm7845_vm14, 1.0, %v18723_v11  ;;  %9994 = vmatprep.subr.bf16.mxu1 %v9993_v61 }
 0x48b   : > { %9638 = vmatprep.mubr.msk.bf16.mxu0 %vm9637_vm7, %v17855_v30  ;;  %v7123_v60 = vadd.f32 %v16259_v36, %v6578_v50  ;;  %v16618_v22 = vadd.f32 %v9313_v8, %v16322_v52  ;;  %v7909_v44 = vsel %vm7845_vm14, 0.0, %v16370_v48  ;;  %v6581_v41 = vadd.f32 %v16361_v58, %v16261_v9  ;;  %9996 = vmatpush3.bf16.msra.mxu1 %v9993_v61 }
 0x48c   : > { %v16623_v32 = vadd.f32 %v7824_v31, %v7792_v7  ;;  %vm7846_vm5 = vcmp.ge.f32.partialorder %v16383_v24, 1.0  ;;  %v6586_v27 = vadd.f32 %v16361_v58, %v16345_v6  ;;  %vm7847_vm4 = vcmp.ge.f32.partialorder %v16435_v38, 1.0 }
 0x48d   : > { %v7925_v39 = vsub.f32 %v7123_v60, %v7909_v44  ;;  %v7126_v36 = vadd.f32 %v16281_v26, %v6581_v41  ;;  %v9314_v52 = vsel %vm7846_vm5, 1.0, %v18723_v11  ;;  %v7910_v48 = vsel %vm7846_vm5, 0.0, %v16383_v24  ;;  %v19891_v24 = vld [vmem:[#allocation24_spill] sm:$0xff]  ;;  %v6611_v60 = vpop.f32.mrb[217].mxu0  ;;  %v7154_v41 = vpop.f32.mrb[208].mxu1 }
 0x48e   : > { %v16633_v35 = vadd.f32 %v9314_v52, %v16336_v43  ;;  %v7131_v9 = vadd.f32 %v16366_v56, %v6586_v27  ;;  %v9315_v7 = vsel %vm7847_vm4, 1.0, %v18723_v11  ;;  %v7911_v15 = vsel %vm7847_vm4, 0.0, %v16435_v38  ;;  %v19889_v56 = vld [vmem:[#allocation32_spill] sm:$0xff] }
 0x48f   : > { %v7941_v21 = vmul.f32 0.5, %v7925_v39  ;;  %v7926_v6 = vsub.f32 %v7126_v36, %v7910_v48  ;;  %v16639_v46 = vadd.f32 %v9315_v7, %v16390_v3  ;;  %v6589_v26 = vadd.f32 %v16361_v58, %v16368_v49 }
 0x490   : > { %v7927_v51 = vsub.f32 %v7131_v9, %v7911_v15  ;;  %vm7848_vm12 = vcmp.ge.f32.partialorder %v16460_v45, 1.0  ;;  %v6594_v43 = vadd.f32 %v16361_v58, %v16445_v16  ;;  %vm7849_vm8 = vcmp.ge.f32.partialorder %v16489_v34, 1.0 }
 0x491   : > { %vm19890_vm15 = vcmp.ge.f32.partialorder %v19889_v56, 1.0  ;;  %vm19892_vm0 = vcmp.ge.f32.partialorder %v19891_v24, 1.0  ;;  %v16651_v38 = vadd.f32 %v7941_v21, %v7909_v44  ;;  %v7942_v3 = vmul.f32 0.5, %v7926_v6  ;;  %v19894_v56 = vld [vmem:[#allocation211_spill] sm:$0xff] }
 0x492   : > { %vm9639_vm2 = vmpackc.low %vm19892_vm0, %vm19890_vm15  ;;  %v7134_v13 = vadd.f32 %v16378_v28, %v6589_v26  ;;  %v9316_v49 = vsel %vm7848_vm12, 1.0, %v18723_v11  ;;  %v7943_v2 = vmul.f32 0.5, %v7927_v51  ;;  %v7912_v16 = vsel %vm7848_vm12, 0.0, %v16460_v45 }
 0x493   : > { %9640 = vmatmul.mubr.msk.bf16.gmra.mrb[36].mxu0 %vm9639_vm2, %v17855_v30  ;;  %v16657_v61 = vadd.f32 %v9316_v49, %v16418_v17  ;;  %v7139_v50 = vadd.f32 %v16455_v19, %v6594_v43  ;;  %v16661_v12 = vadd.f32 %v7942_v3, %v7910_v48  ;;  %v9317_v8 = vsel %vm7849_vm8, 1.0, %v18723_v11  ;;  %v6612_v19 = vpop.f32.mrb[218].mxu0  ;;  %v19893_v48 = vld [vmem:[#allocation77_spill] sm:$0xff] }
 0x494   : > { %v7928_v31 = vsub.f32 %v7134_v13, %v7912_v16  ;;  %v7913_v28 = vsel %vm7849_vm8, 0.0, %v16489_v34  ;;  %v16665_v44 = vadd.f32 %v7943_v2, %v7911_v15  ;;  %v16668_v30 = vadd.f32 %v9317_v8, %v16451_v29  ;;  %v7156_v34 = vpop.f32.mrb[209].mxu1  ;;  %v6614_v36 = vpop.f32.mrb[219].mxu0 }
 0x495   : > { %v7929_v17 = vsub.f32 %v7139_v50, %v7913_v28  ;;  %v6597_v45 = vadd.f32 %v16361_v58, %v16470_v63  ;;  %vm7850_vm11 = vcmp.ge.f32.partialorder %v16511_v10, 1.0  ;;  %v6602_v39 = vadd.f32 %v16361_v58, %v16541_v54  ;;  %v7157_v63 = vpop.f32.mrb[210].mxu1  ;;  %v8299_v34 = vld [vmem:[%s17270_s5 + $0x50] sm:$0xff]  ;;  %v8300_v36 = vld [vmem:[%s17270_s5 + $0x58] sm:$0xff] }
 0x496   : > { %v7944_v27 = vmul.f32 0.5, %v7928_v31  ;;  %vm7851_vm1 = vcmp.ge.f32.partialorder %v16520_v20, 1.0  ;;  %v9318_v9 = vsel %vm7850_vm11, 1.0, %v18723_v11  ;;  %v7914_v7 = vsel %vm7850_vm11, 0.0, %v16511_v10  ;;  %v7159_v26 = vpop.f32.mrb[211].mxu1 }
 0x497   : > { %v7945_v52 = vmul.f32 0.5, %v7929_v17  ;;  %v7142_v29 = vadd.f32 %v19893_v48, %v6597_v45  ;;  %v16682_v21 = vadd.f32 %v9318_v9, %v16481_v37  ;;  %v7147_v6 = vadd.f32 %v16563_v55, %v6602_v39 }
 0x498   : > { %v16679_v15 = vadd.f32 %v7944_v27, %v7912_v16  ;;  %v9319_v54 = vsel %vm7851_vm1, 1.0, %v18723_v11  ;;  %v7915_v10 = vsel %vm7851_vm1, 0.0, %v16520_v20  ;;  %v6605_v37 = vadd.f32 %v16361_v58, %v16556_v18 }
 0x499   : > { %v16688_v51 = vadd.f32 %v7945_v52, %v7913_v28  ;;  %v7930_v43 = vsub.f32 %v7142_v29, %v7914_v7  ;;  %v16691_v24 = vadd.f32 %v9319_v54, %v19894_v56  ;;  %v7931_v3 = vsub.f32 %v7147_v6, %v7915_v10 }
 0x49a   : > { %vm7852_vm3 = vcmp.ge.f32.partialorder %v16544_v57, 1.0  ;;  %v6610_v55 = vadd.f32 %v16361_v58, %v6609_v59  ;;  %vm7853_vm13 = vcmp.ge.f32.partialorder %v16549_v0, 1.0  ;;  %v7150_v50 = vadd.f32 %v16586_v14, %v6605_v37 }
 0x49b   : > { %v7946_v13 = vmul.f32 0.5, %v7930_v43  ;;  %v9320_v49 = vsel %vm7852_vm3, 1.0, %v18723_v11  ;;  %v7916_v2 = vsel %vm7852_vm3, 0.0, %v16544_v57  ;;  %v7947_v16 = vmul.f32 0.5, %v7931_v3 }
 0x49c   : > { %v16705_v20 = vadd.f32 %v9320_v49, %v16504_v62  ;;  %v7155_v31 = vadd.f32 %v7154_v41, %v6610_v55  ;;  %v9321_v18 = vsel %vm7853_vm13, 1.0, %v18723_v11  ;;  %v7917_v59 = vsel %vm7853_vm13, 0.0, %v16549_v0 }
 0x49d   : > { %v16707_v8 = vadd.f32 %v7946_v13, %v7914_v7  ;;  %v6613_v28 = vadd.f32 %v16361_v58, %v6612_v19  ;;  %v16712_v60 = vadd.f32 %v7947_v16, %v7915_v10  ;;  %v7932_v57 = vsub.f32 %v7150_v50, %v7916_v2 }
 0x49e   : > { %v16715_v17 = vadd.f32 %v9321_v18, %v16514_v5  ;;  %v7933_v45 = vsub.f32 %v7155_v31, %v7917_v59  ;;  %vm7854_vm6 = vcmp.ge.f32.partialorder %v16588_v33, 1.0  ;;  %vm7855_vm14 = vcmp.ge.f32.partialorder %v16598_v42, 1.0 }
 0x49f   : > { %v7158_v14 = vadd.f32 %v7157_v63, %v6613_v28  ;;  %vm7856_vm10 = vcmp.ge.f32.partialorder %v16623_v32, 1.0  ;;  %v7948_v62 = vmul.f32 0.5, %v7932_v57  ;;  %v9322_v0 = vsel %vm7854_vm6, 1.0, %v18723_v11  ;;  %v7162_v63 = vpop.f32.mrb[212].mxu1 }
 0x4a0   : > { %v7949_v41 = vmul.f32 0.5, %v7933_v45  ;;  %v7918_v19 = vsel %vm7854_vm6, 0.0, %v16588_v33  ;;  %v16723_v27 = vadd.f32 %v9322_v0, %v16538_v4  ;;  %v9323_v5 = vsel %vm7855_vm14, 1.0, %v18723_v11  ;;  %v6617_v33 = vpop.f32.mrb[220].mxu0  ;;  %v7164_v26 = vpop.f32.mrb[213].mxu1 }
 0x4a1   : > { %v7934_v39 = vsub.f32 %v7158_v14, %v7918_v19  ;;  %v16734_v52 = vadd.f32 %v7948_v62, %v7916_v2  ;;  %v16739_v4 = vadd.f32 %v9323_v5, %v16552_v53  ;;  %v9324_v29 = vsel %vm7856_vm10, 1.0, %v18723_v11  ;;  %v6619_v6 = vpop.f32.mrb[221].mxu0  ;;  %v7165_v37 = vpop.f32.mrb[214].mxu1 }
 0x4a2   : > { %v16736_v48 = vadd.f32 %v7949_v41, %v7917_v59  ;;  %v6618_v7 = vadd.f32 %v16361_v58, %v6617_v33  ;;  %v16746_v54 = vadd.f32 %v9324_v29, %v16578_v40  ;;  %v6620_v43 = vpop.f32.mrb[222].mxu0  ;;  %v9997_v56 = vpack.c.bf16 %v8300_v36, %v8299_v34  ;;  %v7167_v49 = vpop.f32.mrb[215].mxu1  ;;  %v8301_v29 = vld [vmem:[%s17270_s5 + $0x60] sm:$0xff] }
 0x4a3   : > { %v7950_v9 = vmul.f32 0.5, %v7934_v39  ;;  %vm7973_vm9 = vcmp.ge.f32.partialorder %v16651_v38, 1.0  ;;  %vm7974_vm7 = vcmp.ge.f32.partialorder %v16661_v12, 1.0  ;;  %vm7975_vm5 = vcmp.ge.f32.partialorder %v16665_v44, 1.0  ;;  %v6622_v55 = vpop.f32.mrb[223].mxu0 }
 0x4a4   : > { %v7163_v10 = vadd.f32 %v7162_v63, %v6618_v7  ;;  %v6621_v3 = vadd.f32 %v16361_v58, %v6620_v43  ;;  %v9329_v40 = vsel %vm7973_vm9, 1.0, %v18723_v11  ;;  %v7919_v13 = vsel %vm7855_vm14, 0.0, %v16598_v42  ;;  %9998 = vmatprep.subr.bf16.mxu1 %v9997_v56  ;;  %v6625_v39 = vpop.f32.mrb[224].mxu0  ;;  %v7170_v63 = vpop.f32.mrb[216].mxu1 }
 0x4a5   : > { %v16751_v53 = vadd.f32 %v7950_v9, %v7918_v19  ;;  %v16761_v2 = vadd.f32 %v9329_v40, %v16618_v22  ;;  %v9330_v16 = vsel %vm7974_vm7, 1.0, %v18723_v11  ;;  %10000 = vmatpush3.bf16.msra.mxu1 %v9997_v56  ;;  %v9331_v59 = vsel %vm7975_vm5, 1.0, %v18723_v11  ;;  %v6627_v36 = vpop.f32.mrb[225].mxu0 }
 0x4a6   : > { %v7935_v50 = vsub.f32 %v7163_v10, %v7919_v13  ;;  %v7166_v31 = vadd.f32 %v7165_v37, %v6621_v3  ;;  %v16767_v18 = vadd.f32 %v9330_v16, %v16633_v35  ;;  %v7920_v42 = vsel %vm7856_vm10, 0.0, %v16623_v32 }
 0x4a7   : > { %v16776_v22 = vadd.f32 %v9331_v59, %v16639_v46  ;;  %vm7976_vm4 = vcmp.ge.f32.partialorder %v16679_v15, 1.0  ;;  %vm7977_vm12 = vcmp.ge.f32.partialorder %v16688_v51, 1.0  ;;  %vm7978_vm8 = vcmp.ge.f32.partialorder %v16707_v8, 1.0 }
 0x4a8   : > { %v7951_v28 = vmul.f32 0.5, %v7935_v50  ;;  %v7936_v57 = vsub.f32 %v7166_v31, %v7920_v42  ;;  %v9332_v35 = vsel %vm7976_vm4, 1.0, %v18723_v11  ;;  %v9333_v32 = vsel %vm7977_vm12, 1.0, %v18723_v11 }
 0x4a9   : > { %v16784_v45 = vadd.f32 %v9332_v35, %v16657_v61  ;;  %v16793_v62 = vadd.f32 %v9333_v32, %v16668_v30  ;;  %v9334_v41 = vsel %vm7978_vm8, 1.0, %v18723_v11  ;;  %vm7979_vm15 = vcmp.ge.f32.partialorder %v16712_v60, 1.0 }
 0x4aa   : > { %v16790_v46 = vadd.f32 %v7951_v28, %v7919_v13  ;;  %v7952_v14 = vmul.f32 0.5, %v7936_v57  ;;  %v16799_v0 = vadd.f32 %v9334_v41, %v16682_v21  ;;  %vm7980_vm0 = vcmp.ge.f32.partialorder %v16734_v52, 1.0 }
 0x4ab   : > { %v9335_v19 = vsel %vm7979_vm15, 1.0, %v18723_v11  ;;  %v9336_v30 = vsel %vm7980_vm0, 1.0, %v18723_v11  ;;  %vm7981_vm2 = vcmp.ge.f32.partialorder %v16736_v48, 1.0  ;;  %v6626_v34 = vadd.f32 %v16361_v58, %v6625_v39 }
 0x4ac   : > { %v16803_v61 = vadd.f32 %v7952_v14, %v7920_v42  ;;  %v16812_v5 = vadd.f32 %v9335_v19, %v16691_v24  ;;  %v16815_v21 = vadd.f32 %v9336_v30, %v16705_v20  ;;  %v9337_v33 = vsel %vm7981_vm2, 1.0, %v18723_v11  ;;  %v8302_v24 = vld [vmem:[%s17270_s5 + $0x68] sm:$0xff]  ;;  %v6628_v20 = vpop.f32.mrb[226].mxu0 }
 0x4ad   : > { %vm7982_vm11 = vcmp.ge.f32.partialorder %v16751_v53, 1.0  ;;  %v16830_v9 = vadd.f32 %v9337_v33, %v16715_v17  ;;  %vm7983_vm1 = vcmp.ge.f32.partialorder %v16790_v46, 1.0  ;;  %v6629_v6 = vadd.f32 %v16361_v58, %v6628_v20  ;;  %v6630_v26 = vpop.f32.mrb[227].mxu0  ;;  %v7172_v17 = vpop.f32.mrb[217].mxu1 }
 0x4ae   : > { %v9338_v7 = vsel %vm7982_vm11, 1.0, %v18723_v11  ;;  %v9339_v56 = vsel %vm7983_vm1, 1.0, %v18723_v11  ;;  %v16843_v10 = vadd.f32 %v7170_v63, %v6626_v34  ;;  %vm7984_vm3 = vcmp.ge.f32.partialorder %v16803_v61, 1.0  ;;  %v7173_v55 = vpop.f32.mrb[218].mxu1 }
 0x4af   : > { %v16838_v43 = vadd.f32 %v9338_v7, %v16723_v27  ;;  %v16846_v3 = vadd.f32 %v9339_v56, %v16739_v4  ;;  %v10001_v37 = vpack.c.bf16 %v8302_v24, %v8301_v29  ;;  %v9340_v40 = vsel %vm7984_vm3, 1.0, %v18723_v11  ;;  %v7175_v13 = vpop.f32.mrb[219].mxu1  ;;  %v6633_v16 = vpop.f32.mrb[228].mxu0 }
 0x4b0   : > { %v16852_v27 = vadd.f32 %v7173_v55, %v6629_v6  ;;  %v16855_v49 = vadd.f32 %v9340_v40, %v16746_v54  ;;  %v6634_v4 = vadd.f32 %v16361_v58, %v6633_v16  ;;  %v6635_v50 = vpop.f32.mrb[229].mxu0  ;;  %v7178_v31 = vpop.f32.mrb[220].mxu1  ;;  %v8037_v20 = vsel %vm7973_vm9, 0.0, %v16651_v38 }
 0x4b1   : > { %10002 = vmatprep.subr.bf16.mxu1 %v10001_v37  ;;  %v6636_v59 = vpop.f32.mrb[230].mxu0  ;;  %v7180_v28 = vpop.f32.mrb[221].mxu1  ;;  %v8038_v56 = vsel %vm7974_vm7, 0.0, %v16661_v12 }
 0x4b2   : > { %10004 = vmatpush3.bf16.msra.mxu1 %v10001_v37  ;;  %v16858_v42 = vadd.f32 %v7178_v31, %v6634_v4  ;;  %v6637_v57 = vadd.f32 %v16361_v58, %v6636_v59  ;;  %v6638_v35 = vpop.f32.mrb[231].mxu0  ;;  %v7181_v32 = vpop.f32.mrb[222].mxu1 }
 0x4b3   : > { %v7183_v41 = vpop.f32.mrb[223].mxu1 }
 0x4b4   : > { %v16861_v14 = vadd.f32 %v7181_v32, %v6637_v57 }
 0x4bb   : > { %v6641_v54 = vpop.f32.mrb[232].mxu0 }
 0x4bc   : > { %v6642_v19 = vadd.f32 %v16361_v58, %v6641_v54  ;;  %v6643_v30 = vpop.f32.mrb[233].mxu0  ;;  %v8039_v54 = vsel %vm7975_vm5, 0.0, %v16665_v44 }
 0x4bd   : > { %v7186_v39 = vpop.f32.mrb[224].mxu1  ;;  %v6644_v34 = vpop.f32.mrb[234].mxu0 }
 0x4be   : > { %v7187_v36 = vadd.f32 %v7186_v39, %v6642_v19  ;;  %v7188_v33 = vpop.f32.mrb[225].mxu1  ;;  %v6645_v29 = vadd.f32 %v16361_v58, %v6644_v34  ;;  %v6646_v24 = vpop.f32.mrb[235].mxu0  ;;  %v8040_v34 = vsel %vm7976_vm4, 0.0, %v16679_v15 }
 0x4bf   : > { %v7189_v7 = vpop.f32.mrb[226].mxu1 }
 0x4c0   : > { %v8053_v63 = vsub.f32 %v7187_v36, %v8037_v20  ;;  %v7190_v6 = vadd.f32 %v7189_v7, %v6645_v29  ;;  %v7191_v26 = vpop.f32.mrb[227].mxu1 }
 0x4c2   : > { %v8069_v17 = vmul.f32 0.5, %v8053_v63  ;;  %v8054_v37 = vsub.f32 %v7190_v6, %v8038_v56 }
 0x4c4   : > { %v16871_v55 = vadd.f32 %v8069_v17, %v8037_v20  ;;  %v8070_v40 = vmul.f32 0.5, %v8054_v37 }
 0x4c6   : > { %v16873_v13 = vadd.f32 %v8070_v40, %v8038_v56  ;;  %vm8101_vm5 = vcmp.ge.f32.partialorder %v16871_v55, 1.0 }
 0x4c8   : > { %vm8102_vm13 = vcmp.ge.f32.partialorder %v16873_v13, 1.0 }
 0x4c9   : > { %v6649_v16 = vpop.f32.mrb[236].mxu0  ;;  %v9346_v31 = vsel %vm8102_vm13, 1.0, %v18723_v11 }
 0x4ca   : > { %v6650_v38 = vadd.f32 %v16361_v58, %v6649_v16  ;;  %v7194_v4 = vpop.f32.mrb[228].mxu1  ;;  %v6651_v50 = vpop.f32.mrb[237].mxu0  ;;  %v16881_v28 = vadd.f32 %v9346_v31, %v16767_v18 }
 0x4cb   : > { %v7196_v59 = vpop.f32.mrb[229].mxu1  ;;  %v6652_v12 = vpop.f32.mrb[238].mxu0 }
 0x4cc   : > { %v7195_v57 = vadd.f32 %v7194_v4, %v6650_v38  ;;  %v6653_v35 = vadd.f32 %v16361_v58, %v6652_v12  ;;  %v7197_v32 = vpop.f32.mrb[230].mxu1  ;;  %v6654_v41 = vpop.f32.mrb[239].mxu0  ;;  %v8041_v38 = vsel %vm7977_vm12, 0.0, %v16688_v51  ;;  %v8042_v59 = vsel %vm7978_vm8, 0.0, %v16707_v8 }
 0x4cd   : > { %v7199_v19 = vpop.f32.mrb[231].mxu1 }
 0x4ce   : > { %v8055_v30 = vsub.f32 %v7195_v57, %v8039_v54  ;;  %v7198_v39 = vadd.f32 %v7197_v32, %v6653_v35 }
 0x4d0   : > { %v8071_v36 = vmul.f32 0.5, %v8055_v30  ;;  %v8056_v33 = vsub.f32 %v7198_v39, %v8040_v34 }
 0x4d2   : > { %v16890_v18 = vadd.f32 %v8071_v36, %v8039_v54  ;;  %v8072_v29 = vmul.f32 0.5, %v8056_v33 }
 0x4d4   : > { %v16892_v24 = vadd.f32 %v8072_v29, %v8040_v34  ;;  %vm8103_vm4 = vcmp.ge.f32.partialorder %v16890_v18, 1.0 }
 0x4d6   : > { %v6657_v20 = vpop.f32.mrb[240].mxu0  ;;  %vm8104_vm6 = vcmp.ge.f32.partialorder %v16892_v24, 1.0 }
 0x4d7   : > { %v6658_v7 = vadd.f32 %v16361_v58, %v6657_v20  ;;  %v6659_v6 = vpop.f32.mrb[241].mxu0  ;;  %v9348_v15 = vsel %vm8104_vm6, 1.0, %v18723_v11  ;;  %v8043_v20 = vsel %vm7979_vm15, 0.0, %v16712_v60 }
 0x4d8   : > { %v7202_v63 = vpop.f32.mrb[232].mxu1  ;;  %v6660_v26 = vpop.f32.mrb[242].mxu0  ;;  %v16901_v16 = vadd.f32 %v9348_v15, %v16784_v45 }
 0x4d9   : > { %v7204_v44 = vpop.f32.mrb[233].mxu1  ;;  %v7203_v56 = vadd.f32 %v7202_v63, %v6658_v7  ;;  %v6661_v17 = vadd.f32 %v16361_v58, %v6660_v26  ;;  %v6662_v40 = vpop.f32.mrb[243].mxu0 }
 0x4da   : > { %v7205_v37 = vpop.f32.mrb[234].mxu1 }
 0x4db   : > { %v7207_v4 = vpop.f32.mrb[235].mxu1  ;;  %v8057_v50 = vsub.f32 %v7203_v56, %v8041_v38  ;;  %v7206_v31 = vadd.f32 %v7205_v37, %v6661_v17 }
 0x4dd   : > { %v8073_v12 = vmul.f32 0.5, %v8057_v50  ;;  %v8058_v57 = vsub.f32 %v7206_v31, %v8042_v59 }
 0x4df   : > { %v16909_v35 = vadd.f32 %v8073_v12, %v8041_v38  ;;  %v8074_v32 = vmul.f32 0.5, %v8058_v57 }
 0x4e1   : > { %v16911_v41 = vadd.f32 %v8074_v32, %v8042_v59  ;;  %vm8105_vm12 = vcmp.ge.f32.partialorder %v16909_v35, 1.0 }
 0x4e3   : > { %vm8106_vm14 = vcmp.ge.f32.partialorder %v16911_v41, 1.0 }
 0x4e4   : > { %v9350_v51 = vsel %vm8106_vm14, 1.0, %v18723_v11 }
 0x4e5   : > { %v16918_v54 = vadd.f32 %v9350_v51, %v16799_v0  ;;  %v8044_v0 = vsel %vm7980_vm0, 0.0, %v16734_v52  ;;  %v8045_v51 = vsel %vm7981_vm2, 0.0, %v16736_v48 }
 0x4e6   : > { %v6665_v45 = vpop.f32.mrb[244].mxu0 }
 0x4e7   : > { %v6666_v19 = vadd.f32 %v16361_v58, %v6665_v45  ;;  %v6667_v8 = vpop.f32.mrb[245].mxu0  ;;  %v7210_v30 = vpop.f32.mrb[236].mxu1 }
 0x4e8   : > { %v6668_v39 = vpop.f32.mrb[246].mxu0  ;;  %v7212_v36 = vpop.f32.mrb[237].mxu1 }
 0x4e9   : > { %v7211_v34 = vadd.f32 %v7210_v30, %v6666_v19  ;;  %v6669_v33 = vadd.f32 %v16361_v58, %v6668_v39  ;;  %v6670_v29 = vpop.f32.mrb[247].mxu0  ;;  %v7213_v7 = vpop.f32.mrb[238].mxu1 }
 0x4ea   : > { %v7215_v44 = vpop.f32.mrb[239].mxu1 }
 0x4eb   : > { %v8059_v63 = vsub.f32 %v7211_v34, %v8043_v20  ;;  %v7214_v6 = vadd.f32 %v7213_v7, %v6669_v33 }
 0x4ed   : > { %v8075_v26 = vmul.f32 0.5, %v8059_v63  ;;  %v8060_v15 = vsub.f32 %v7214_v6, %v8044_v0 }
 0x4ef   : > { %v16928_v56 = vadd.f32 %v8075_v26, %v8043_v20  ;;  %v8076_v17 = vmul.f32 0.5, %v8060_v15 }
 0x4f1   : > { %v16930_v37 = vadd.f32 %v8076_v17, %v8044_v0  ;;  %vm8107_vm8 = vcmp.ge.f32.partialorder %v16928_v56, 1.0 }
 0x4f3   : > { %vm8108_vm10 = vcmp.ge.f32.partialorder %v16930_v37, 1.0 }
 0x4f4   : > { %v9352_v60 = vsel %vm8108_vm10, 1.0, %v18723_v11  ;;  %v6673_v40 = vpop.f32.mrb[248].mxu0 }
 0x4f5   : > { %v16937_v38 = vadd.f32 %v9352_v60, %v16815_v21  ;;  %v6674_v4 = vadd.f32 %v16361_v58, %v6673_v40  ;;  %v6675_v52 = vpop.f32.mrb[249].mxu0  ;;  %v8046_v21 = vsel %vm7982_vm11, 0.0, %v16751_v53  ;;  %v8047_v40 = vsel %vm7983_vm1, 0.0, %v16790_v46 }
 0x4f6   : > { %v6676_v31 = vpop.f32.mrb[250].mxu0 }
 0x4f7   : > { %v7218_v50 = vpop.f32.mrb[240].mxu1  ;;  %v6677_v57 = vadd.f32 %v16361_v58, %v6676_v31  ;;  %v6678_v32 = vpop.f32.mrb[251].mxu0 }
 0x4f8   : > { %v7219_v59 = vadd.f32 %v7218_v50, %v6674_v4  ;;  %v7220_v12 = vpop.f32.mrb[241].mxu1  ;;  %v8048_v50 = vsel %vm7984_vm3, 0.0, %v16803_v61  ;;  %v8304_v61 = vld [vmem:[%s17270_s5 + $0x78] sm:$0xff] }
 0x4f9   : > { %v7221_v45 = vpop.f32.mrb[242].mxu1 }
 0x4fa   : > { %v8061_v19 = vsub.f32 %v7219_v59, %v8045_v51  ;;  %v7222_v8 = vadd.f32 %v7221_v45, %v6677_v57  ;;  %v7223_v30 = vpop.f32.mrb[243].mxu1 }
 0x4fb   : > { %v8303_v30 = vld [vmem:[%s17270_s5 + $0x70] sm:$0xff] }
 0x4fc   : > { %v8077_v39 = vmul.f32 0.5, %v8061_v19  ;;  %v8062_v34 = vsub.f32 %v7222_v8, %v8046_v21 }
 0x4fe   : > { %v16947_v36 = vadd.f32 %v8077_v39, %v8045_v51  ;;  %v8078_v33 = vmul.f32 0.5, %v8062_v34  ;;  %v10005_v39 = vpack.c.bf16 %v8304_v61, %v8303_v30  ;;  %v9347_v30 = vsel %vm8103_vm4, 1.0, %v18723_v11 }
 0x500   : > { %v16949_v29 = vadd.f32 %v8078_v33, %v8046_v21  ;;  %10006 = vmatprep.subr.bf16.mxu1 %v10005_v39  ;;  %vm8109_vm15 = vcmp.ge.f32.partialorder %v16947_v36, 1.0 }
 0x501   : > { %10008 = vmatpush3.bf16.msra.mxu1 %v10005_v39 }
 0x502   : > { %vm8110_vm9 = vcmp.ge.f32.partialorder %v16949_v29, 1.0 }
 0x503   : > { %v9354_v48 = vsel %vm8110_vm9, 1.0, %v18723_v11 }
 0x504   : > { %v16956_v20 = vadd.f32 %v9354_v48, %v16838_v43  ;;  %v6681_v7 = vpop.f32.mrb[252].mxu0 }
 0x505   : > { %v6682_v63 = vadd.f32 %v16361_v58, %v6681_v7  ;;  %v6683_v6 = vpop.f32.mrb[253].mxu0 }
 0x506   : > { %v7226_v53 = vpop.f32.mrb[244].mxu1  ;;  %v6684_v0 = vpop.f32.mrb[254].mxu0 }
 0x507   : > { %v7228_v44 = vpop.f32.mrb[245].mxu1  ;;  %v7227_v26 = vadd.f32 %v7226_v53, %v6682_v63  ;;  %v6685_v15 = vadd.f32 %v16361_v58, %v6684_v0  ;;  %v6686_v60 = vpop.f32.mrb[255].mxu0 }
 0x508   : > { %v7229_v17 = vpop.f32.mrb[246].mxu1 }
 0x509   : > { %v7231_v4 = vpop.f32.mrb[247].mxu1  ;;  %v8063_v52 = vsub.f32 %v7227_v26, %v8047_v40  ;;  %v7230_v43 = vadd.f32 %v7229_v17, %v6685_v15 }
 0x50b   : > { %v8079_v31 = vmul.f32 0.5, %v8063_v52  ;;  %v8064_v59 = vsub.f32 %v7230_v43, %v8048_v50 }
 0x50d   : > { %v16966_v57 = vadd.f32 %v8079_v31, %v8047_v40  ;;  %v8080_v32 = vmul.f32 0.5, %v8064_v59 }
 0x50f   : > { %v16968_v19 = vadd.f32 %v8080_v32, %v8048_v50  ;;  %v9345_v50 = vsel %vm8101_vm5, 1.0, %v18723_v11  ;;  %vm8111_vm2 = vcmp.ge.f32.partialorder %v16966_v57, 1.0 }
 0x510   : > { %v6689_v12 = vpop.f32.mrb[0].mxu0 }
 0x511   : > { %v6691_v51 = vpop.f32.mrb[1].mxu0  ;;  %v6690_v46 = vadd.f32 %v16361_v58, %v6689_v12  ;;  %vm8112_vm7 = vcmp.ge.f32.partialorder %v16968_v19, 1.0 }
 0x512   : > { %v6692_v45 = vpop.f32.mrb[2].mxu0  ;;  %v9356_v21 = vsel %vm8112_vm7, 1.0, %v18723_v11 }
 0x513   : > { %v6694_v8 = vpop.f32.mrb[3].mxu0  ;;  %v6693_v34 = vadd.f32 %v16361_v58, %v6692_v45  ;;  %v16983_v33 = vadd.f32 %v9356_v21, %v16855_v49  ;;  %v16992_v58 = vld [vmem:[%s17269_s4] ss:$0 sm:$0xff] }
 0x514   : > { %v8149_v8 = vadd.f32 %v9345_v50, %v16761_v2  ;;  %v9351_v50 = vsel %vm8107_vm8, 1.0, %v18723_v11 }
 0x517   : > { %v7234_v48 = vpop.f32.mrb[248].mxu1 }
 0x518   : > { %v16985_v7 = vadd.f32 %v7234_v48, %v6690_v46  ;;  %v7236_v63 = vpop.f32.mrb[249].mxu1  ;;  %v17013_v48 = vadd.f32 %v9347_v30, %v16776_v22  ;;  %v8166_v22 = vsel %vm8102_vm13, 0.0, %v16873_v13  ;;  %v17035_v30 = vadd.f32 %v9351_v50, %v16812_v5 }
 0x519   : > { %v7237_v53 = vpop.f32.mrb[250].mxu1  ;;  %v8165_v63 = vsel %vm8101_vm5, 0.0, %v16871_v55 }
 0x51a   : > { %v16987_v6 = vadd.f32 %v7237_v53, %v6693_v34  ;;  %v7239_v44 = vpop.f32.mrb[251].mxu1  ;;  %v9349_v53 = vsel %vm8105_vm12, 1.0, %v18723_v11 }
 0x51b   : > { %v6697_v0 = vpop.f32.mrb[4].mxu0 }
 0x51c   : > { %v6699_v26 = vpop.f32.mrb[5].mxu0  ;;  %v6698_v49 = vadd.f32 %v16992_v58, %v6697_v0 }
 0x51d   : > { %v6700_v15 = vpop.f32.mrb[6].mxu0 }
 0x51e   : > { %v6702_v17 = vpop.f32.mrb[7].mxu0  ;;  %v6701_v60 = vadd.f32 %v16992_v58, %v6700_v15 }
 0x523   : > { %v7242_v40 = vpop.f32.mrb[252].mxu1 }
 0x524   : > { %v16997_v4 = vadd.f32 %v7242_v40, %v6698_v49  ;;  %v7244_v52 = vpop.f32.mrb[253].mxu1 }
 0x525   : > { %v7245_v43 = vpop.f32.mrb[254].mxu1  ;;  %v6705_v12 = vpop.f32.mrb[8].mxu0  ;;  %v17027_v52 = vadd.f32 %v9349_v53, %v16793_v62  ;;  %v8167_v62 = vsel %vm8103_vm4, 0.0, %v16890_v18  ;;  %v8168_v18 = vsel %vm8104_vm6, 0.0, %v16892_v24 }
 0x526   : > { %v17002_v31 = vadd.f32 %v7245_v43, %v6701_v60  ;;  %v7247_v59 = vpop.f32.mrb[255].mxu1  ;;  %v6707_v32 = vpop.f32.mrb[9].mxu0  ;;  %v6706_v51 = vadd.f32 %v16992_v58, %v6705_v12 }
 0x527   : > { %v6708_v45 = vpop.f32.mrb[10].mxu0 }
 0x528   : > { %v6710_v46 = vpop.f32.mrb[11].mxu0  ;;  %v6709_v61 = vadd.f32 %v16992_v58, %v6708_v45 }
 0x52b   : > { %v7250_v21 = vpop.f32.mrb[0].mxu1 }
 0x52c   : > { %v7251_v39 = vadd.f32 %v7250_v21, %v6706_v51  ;;  %v7252_v34 = vpop.f32.mrb[1].mxu1  ;;  %v9353_v21 = vsel %vm8109_vm15, 1.0, %v18723_v11 }
 0x52d   : > { %v7253_v2 = vpop.f32.mrb[2].mxu1 }
 0x52e   : > { %v8181_v44 = vsub.f32 %v7251_v39, %v8165_v63  ;;  %v7254_v0 = vadd.f32 %v7253_v2, %v6709_v61  ;;  %v7255_v26 = vpop.f32.mrb[3].mxu1  ;;  %v6713_v15 = vpop.f32.mrb[12].mxu0 }
 0x52f   : > { %v6715_v49 = vpop.f32.mrb[13].mxu0  ;;  %v6714_v55 = vadd.f32 %v16992_v58, %v6713_v15 }
 0x530   : > { %v8197_v17 = vmul.f32 0.5, %v8181_v44  ;;  %v8182_v60 = vsub.f32 %v7254_v0, %v8166_v22  ;;  %v6716_v40 = vpop.f32.mrb[14].mxu0 }
 0x531   : > { %v6718_v43 = vpop.f32.mrb[15].mxu0  ;;  %v6717_v32 = vadd.f32 %v16992_v58, %v6716_v40 }
 0x532   : > { %v8213_v59 = vadd.f32 %v8197_v17, %v8165_v63  ;;  %v8198_v12 = vmul.f32 0.5, %v8182_v60  ;;  %v17056_v60 = vadd.f32 %v9353_v21, %v16830_v9  ;;  %v8169_v9 = vsel %vm8105_vm12, 0.0, %v16909_v35 }
 0x534   : > { %vm8229_vm0 = vcmp.ge.f32.partialorder %v8213_v59, 1.0  ;;  %v8214_v51 = vadd.f32 %v8198_v12, %v8166_v22 }
 0x535   : > { %v7258_v13 = vpop.f32.mrb[4].mxu1  ;;  %v9361_v39 = vsel %vm8229_vm0, 1.0, %v18723_v11 }
 0x536   : > { %v7259_v45 = vadd.f32 %v7258_v13, %v6714_v55  ;;  %v7260_v46 = vpop.f32.mrb[5].mxu1  ;;  %vm8230_vm11 = vcmp.ge.f32.partialorder %v8214_v51, 1.0  ;;  %v17045_v5 = vadd.f32 %v9361_v39, %v8149_v8  ;;  %v9355_v55 = vsel %vm8111_vm2, 1.0, %v18723_v11 }
 0x537   : > { %v7261_v61 = vpop.f32.mrb[6].mxu1  ;;  %v9362_v44 = vsel %vm8230_vm11, 1.0, %v18723_v11 }
 0x538   : > { %v8183_v34 = vsub.f32 %v7259_v45, %v8167_v62  ;;  %v7262_v63 = vadd.f32 %v7261_v61, %v6717_v32  ;;  %v7263_v2 = vpop.f32.mrb[7].mxu1  ;;  %v6721_v53 = vpop.f32.mrb[16].mxu0  ;;  %v17053_v15 = vadd.f32 %v9362_v44, %v16881_v28  ;;  %v17063_v32 = vadd.f32 %v9355_v55, %v16846_v3 }
 0x539   : > { %v6722_v0 = vadd.f32 %v16992_v58, %v6721_v53  ;;  %v6723_v26 = vpop.f32.mrb[17].mxu0  ;;  %v8170_v3 = vsel %vm8106_vm14, 0.0, %v16911_v41 }
 0x53a   : > { %v8199_v22 = vmul.f32 0.5, %v8183_v34  ;;  %v8184_v49 = vsub.f32 %v7262_v63, %v8168_v18  ;;  %v6724_v17 = vpop.f32.mrb[18].mxu0 }
 0x53b   : > { %v6726_v8 = vpop.f32.mrb[19].mxu0  ;;  %v6725_v24 = vadd.f32 %v16992_v58, %v6724_v17 }
 0x53c   : > { %v8215_v40 = vadd.f32 %v8199_v22, %v8167_v62  ;;  %v8200_v43 = vmul.f32 0.5, %v8184_v49 }
 0x53e   : > { %vm8231_vm1 = vcmp.ge.f32.partialorder %v8215_v40, 1.0  ;;  %v8216_v59 = vadd.f32 %v8200_v43, %v8168_v18 }
 0x53f   : > { %v7266_v50 = vpop.f32.mrb[8].mxu1  ;;  %v9363_v51 = vsel %vm8231_vm1, 1.0, %v18723_v11 }
 0x540   : > { %v7267_v28 = vadd.f32 %v7266_v50, %v6722_v0  ;;  %v7268_v12 = vpop.f32.mrb[9].mxu1  ;;  %vm8232_vm3 = vcmp.ge.f32.partialorder %v8216_v59, 1.0  ;;  %v17070_v21 = vadd.f32 %v9363_v51, %v17013_v48 }
 0x541   : > { %v7269_v13 = vpop.f32.mrb[10].mxu1  ;;  %v9364_v39 = vsel %vm8232_vm3, 1.0, %v18723_v11  ;;  %v8172_v12 = vsel %vm8108_vm10, 0.0, %v16930_v37 }
 0x542   : > { %v8185_v45 = vsub.f32 %v7267_v28, %v8169_v9  ;;  %v7270_v46 = vadd.f32 %v7269_v13, %v6725_v24  ;;  %v7271_v62 = vpop.f32.mrb[11].mxu1  ;;  %v17077_v35 = vadd.f32 %v9364_v39, %v16901_v16  ;;  %v8171_v16 = vsel %vm8107_vm8, 0.0, %v16928_v56 }
 0x543   : > { %v6729_v61 = vpop.f32.mrb[20].mxu0 }
 0x544   : > { %v6731_v34 = vpop.f32.mrb[21].mxu0  ;;  %v8201_v63 = vmul.f32 0.5, %v8185_v45  ;;  %v8186_v2 = vsub.f32 %v7270_v46, %v8170_v3  ;;  %v6730_v53 = vadd.f32 %v16992_v58, %v6729_v61 }
 0x545   : > { %v6732_v44 = vpop.f32.mrb[22].mxu0 }
 0x546   : > { %v6734_v18 = vpop.f32.mrb[23].mxu0  ;;  %v8217_v0 = vadd.f32 %v8201_v63, %v8169_v9  ;;  %v8202_v26 = vmul.f32 0.5, %v8186_v2  ;;  %v6733_v48 = vadd.f32 %v16992_v58, %v6732_v44 }
 0x548   : > { %vm8233_vm13 = vcmp.ge.f32.partialorder %v8217_v0, 1.0  ;;  %v8218_v49 = vadd.f32 %v8202_v26, %v8170_v3 }
 0x549   : > { %v7274_v22 = vpop.f32.mrb[12].mxu1  ;;  %v9365_v55 = vsel %vm8233_vm13, 1.0, %v18723_v11 }
 0x54a   : > { %v7275_v17 = vadd.f32 %v7274_v22, %v6730_v53  ;;  %v7276_v8 = vpop.f32.mrb[13].mxu1  ;;  %vm8234_vm6 = vcmp.ge.f32.partialorder %v8218_v49, 1.0  ;;  %v17086_v59 = vadd.f32 %v9365_v55, %v17027_v52  ;;  %v8174_v49 = vsel %vm8110_vm9, 0.0, %v16949_v29 }
 0x54b   : > { %v7277_v41 = vpop.f32.mrb[14].mxu1  ;;  %v6737_v50 = vpop.f32.mrb[24].mxu0  ;;  %v9366_v28 = vsel %vm8234_vm6, 1.0, %v18723_v11 }
 0x54c   : > { %v8187_v40 = vsub.f32 %v7275_v17, %v8171_v16  ;;  %v7278_v43 = vadd.f32 %v7277_v41, %v6733_v48  ;;  %v7279_v24 = vpop.f32.mrb[15].mxu1  ;;  %v6739_v9 = vpop.f32.mrb[25].mxu0  ;;  %v17093_v56 = vadd.f32 %v9366_v28, %v16918_v54  ;;  %v6738_v45 = vadd.f32 %v16992_v58, %v6737_v50 }
 0x54d   : > { %v6740_v46 = vpop.f32.mrb[26].mxu0  ;;  %v8173_v54 = vsel %vm8109_vm15, 0.0, %v16947_v36 }
 0x54e   : > { %v8203_v13 = vmul.f32 0.5, %v8187_v40  ;;  %v8188_v51 = vsub.f32 %v7278_v43, %v8172_v12  ;;  %v6742_v62 = vpop.f32.mrb[27].mxu0  ;;  %v6741_v52 = vadd.f32 %v16992_v58, %v6740_v46 }
 0x550   : > { %v8219_v61 = vadd.f32 %v8203_v13, %v8171_v16  ;;  %v8204_v39 = vmul.f32 0.5, %v8188_v51 }
 0x551   : > { %v7282_v3 = vpop.f32.mrb[16].mxu1 }
 0x552   : > { %vm8235_vm14 = vcmp.ge.f32.partialorder %v8219_v61, 1.0  ;;  %v8220_v34 = vadd.f32 %v8204_v39, %v8172_v12  ;;  %v7283_v63 = vadd.f32 %v7282_v3, %v6738_v45  ;;  %v7284_v2 = vpop.f32.mrb[17].mxu1 }
 0x553   : > { %v7285_v37 = vpop.f32.mrb[18].mxu1  ;;  %v9367_v53 = vsel %vm8235_vm14, 1.0, %v18723_v11  ;;  %v6745_v26 = vpop.f32.mrb[28].mxu0 }
 0x554   : > { %vm8236_vm10 = vcmp.ge.f32.partialorder %v8220_v34, 1.0  ;;  %v8189_v44 = vsub.f32 %v7283_v63, %v8173_v54  ;;  %v7286_v18 = vadd.f32 %v7285_v37, %v6741_v52  ;;  %v7287_v0 = vpop.f32.mrb[19].mxu1  ;;  %v17102_v48 = vadd.f32 %v9367_v53, %v17035_v30  ;;  %v6747_v17 = vpop.f32.mrb[29].mxu0 }
 0x555   : > { %v9368_v22 = vsel %vm8236_vm10, 1.0, %v18723_v11  ;;  %v6746_v41 = vadd.f32 %v16992_v58, %v6745_v26  ;;  %v6748_v55 = vpop.f32.mrb[30].mxu0  ;;  %v8176_v52 = vsel %vm8112_vm7, 0.0, %v16968_v19 }
 0x556   : > { %v17109_v36 = vadd.f32 %v9368_v22, %v16937_v38  ;;  %v8205_v8 = vmul.f32 0.5, %v8189_v44  ;;  %v8190_v16 = vsub.f32 %v7286_v18, %v8174_v49  ;;  %v6750_v40 = vpop.f32.mrb[31].mxu0  ;;  %v6749_v30 = vadd.f32 %v16992_v58, %v6748_v55  ;;  %v19895_v22 = vld [vmem:[#allocation201_spill] sm:$0xff] }
 0x557   : > { %v8175_v38 = vsel %vm8111_vm2, 0.0, %v16966_v57  ;;  %v19896_v40 = vld [vmem:[#allocation73_spill] sm:$0xff] }
 0x558   : > { %v8221_v43 = vadd.f32 %v8205_v8, %v8173_v54  ;;  %v8206_v24 = vmul.f32 0.5, %v8190_v16 }
 0x559   : > { %v7290_v50 = vpop.f32.mrb[20].mxu1 }
 0x55a   : > { %vm8237_vm5 = vcmp.ge.f32.partialorder %v8221_v43, 1.0  ;;  %v8222_v28 = vadd.f32 %v8206_v24, %v8174_v49  ;;  %v7291_v12 = vadd.f32 %v7290_v50, %v6746_v41  ;;  %v7292_v9 = vpop.f32.mrb[21].mxu1 }
 0x55b   : > { %v7293_v29 = vpop.f32.mrb[22].mxu1  ;;  %v9369_v13 = vsel %vm8237_vm5, 1.0, %v18723_v11 }
 0x55c   : > { %vm8238_vm9 = vcmp.ge.f32.partialorder %v8222_v28, 1.0  ;;  %v8191_v51 = vsub.f32 %v7291_v12, %v8175_v38  ;;  %v7294_v45 = vadd.f32 %v7293_v29, %v6749_v30  ;;  %v7295_v46 = vpop.f32.mrb[23].mxu1  ;;  %v17118_v61 = vadd.f32 %v9369_v13, %v17056_v60 }
 0x55d   : > { %v6786_v62 = vpop.f32.mrb[32].mxu0  ;;  %v9370_v39 = vsel %vm8238_vm9, 1.0, %v18723_v11 }
 0x55e   : > { %v10105_v3 = vadd.f32 %v16992_v58, %v6786_v62  ;;  %v6788_v57 = vpop.f32.mrb[33].mxu0  ;;  %v17126_v34 = vadd.f32 %v9370_v39, %v16956_v20  ;;  %v8207_v63 = vmul.f32 0.5, %v8191_v51  ;;  %v8192_v2 = vsub.f32 %v7294_v45, %v8176_v52 }
 0x55f   : > { %v6789_v54 = vpop.f32.mrb[34].mxu0  ;;  %v19898_v57 = vld [vmem:[#allocation209_spill] sm:$0xff] }
 0x560   : > { %v7297_v37 = vmul.f32 0.5, %v10105_v3  ;;  %v10106_v53 = vadd.f32 %v16992_v58, %v6789_v54  ;;  %v6791_v60 = vpop.f32.mrb[35].mxu0  ;;  %v8223_v44 = vadd.f32 %v8207_v63, %v8175_v38  ;;  %v8208_v18 = vmul.f32 0.5, %v8192_v2 }
 0x561   : > { %v19899_v60 = vld [vmem:[#allocation222_spill] sm:$0xff] }
 0x562   : > { %vm7329_vm4 = vcmp.ge.f32.partialorder %v7297_v37, 1.0  ;;  %v7298_v0 = vmul.f32 0.5, %v10106_v53  ;;  %vm8239_vm12 = vcmp.ge.f32.partialorder %v8223_v44, 1.0  ;;  %v8224_v26 = vadd.f32 %v8208_v18, %v8176_v52  ;;  %v19897_v52 = vld [vmem:[#allocation67_spill] sm:$0xff] }
 0x563   : > { %v7393_v19 = vsel %vm7329_vm4, 0.0, %v7297_v37  ;;  %v9371_v20 = vsel %vm8239_vm12, 1.0, %v18723_v11  ;;  %v9245_v45 = vsel %vm7329_vm4, 1.0, %v18723_v11 }
 0x564   : > { %v7409_v49 = vsub.f32 %v19895_v22, %v7393_v19  ;;  %vm7330_vm7 = vcmp.ge.f32.partialorder %v7298_v0, 1.0  ;;  %vm8240_vm8 = vcmp.ge.f32.partialorder %v8224_v26, 1.0  ;;  %v17134_v16 = vadd.f32 %v9371_v20, %v17063_v32  ;;  %v19900_v20 = vld [vmem:[#allocation210_spill] sm:$0xff] }
 0x565   : > { %v7394_v17 = vsel %vm7330_vm7, 0.0, %v7298_v0  ;;  %v9372_v41 = vsel %vm8240_vm8, 1.0, %v18723_v11 }
 0x566   : > { %v6794_v8 = vpop.f32.mrb[36].mxu0  ;;  %v7425_v55 = vmul.f32 0.5, %v7409_v49  ;;  %v7410_v43 = vsub.f32 %v19896_v40, %v7394_v17  ;;  %v17140_v50 = vadd.f32 %v9372_v41, %v16983_v33 }
 0x567   : > { %v10107_v24 = vadd.f32 %v16992_v58, %v6794_v8  ;;  %v6796_v30 = vpop.f32.mrb[37].mxu0 }
 0x568   : > { %v6797_v28 = vpop.f32.mrb[38].mxu0  ;;  %v7441_v12 = vadd.f32 %v7425_v55, %v7393_v19  ;;  %v7426_v9 = vmul.f32 0.5, %v7410_v43 }
 0x569   : > { %v7299_v38 = vmul.f32 0.5, %v10107_v24  ;;  %v10108_v29 = vadd.f32 %v16992_v58, %v6797_v28  ;;  %v6799_v13 = vpop.f32.mrb[39].mxu0  ;;  %v9246_v58 = vsel %vm7330_vm7, 1.0, %v18723_v11  ;;  %v19901_v28 = vld [vmem:[#allocation170_spill] sm:$0xff] }
 0x56a   : > { %vm7457_vm15 = vcmp.ge.f32.partialorder %v7441_v12, 1.0  ;;  %v7442_v32 = vadd.f32 %v7426_v9, %v7394_v17 }
 0x56b   : > { %vm7331_vm0 = vcmp.ge.f32.partialorder %v7299_v38, 1.0  ;;  %v7300_v51 = vmul.f32 0.5, %v10108_v29  ;;  %v9261_v46 = vsel %vm7457_vm15, 1.0, %v18723_v11  ;;  %v7521_v62 = vsel %vm7457_vm15, 0.0, %v7441_v12 }
 0x56c   : > { %v7395_v33 = vsel %vm7331_vm0, 0.0, %v7299_v38  ;;  %v7505_v39 = vadd.f32 %v9261_v46, %v9245_v45  ;;  %v7537_v3 = vsub.f32 %v19897_v52, %v7521_v62  ;;  %vm7458_vm2 = vcmp.ge.f32.partialorder %v7442_v32, 1.0  ;;  %v19902_v38 = vld [vmem:[#allocation213_spill] sm:$0xff] }
 0x56d   : > { %v7411_v63 = vsub.f32 %v19898_v57, %v7395_v33  ;;  %v9262_v2 = vsel %vm7458_vm2, 1.0, %v18723_v11  ;;  %v7522_v54 = vsel %vm7458_vm2, 0.0, %v7442_v32  ;;  %vm7332_vm11 = vcmp.ge.f32.partialorder %v7300_v51, 1.0 }
 0x56e   : > { %v7553_v37 = vmul.f32 0.5, %v7537_v3  ;;  %v7506_v53 = vadd.f32 %v9262_v2, %v9246_v58  ;;  %v7538_v44 = vsub.f32 %v19899_v60, %v7522_v54  ;;  %v7396_v26 = vsel %vm7332_vm11, 0.0, %v7300_v51  ;;  %v19904_v60 = vld [vmem:[#allocation81_spill] sm:$0xff]  ;;  %v19905_v51 = vld [vmem:[#allocation224_spill] sm:$0xff] }
 0x56f   : > { %v7427_v18 = vmul.f32 0.5, %v7411_v63  ;;  %v7412_v17 = vsub.f32 %v19900_v20, %v7396_v26  ;;  %v9247_v0 = vsel %vm7331_vm0, 1.0, %v18723_v11  ;;  %v9248_v57 = vsel %vm7332_vm11, 1.0, %v18723_v11 }
 0x570   : > { %v7569_v19 = vadd.f32 %v7553_v37, %v7521_v62  ;;  %v7554_v22 = vmul.f32 0.5, %v7538_v44 }
 0x571   : > { %v7443_v49 = vadd.f32 %v7427_v18, %v7395_v33  ;;  %v7428_v41 = vmul.f32 0.5, %v7412_v17  ;;  %v19903_v33 = vld [vmem:[#allocation14_spill] sm:$0xff] }
 0x572   : > { %vm7585_vm1 = vcmp.ge.f32.partialorder %v7569_v19, 1.0  ;;  %v7570_v8 = vadd.f32 %v7554_v22, %v7522_v54 }
 0x573   : > { %vm7459_vm3 = vcmp.ge.f32.partialorder %v7443_v49, 1.0  ;;  %v9277_v55 = vsel %vm7585_vm1, 1.0, %v18723_v11  ;;  %v7649_v40 = vsel %vm7585_vm1, 0.0, %v7569_v19  ;;  %v7444_v45 = vadd.f32 %v7428_v41, %v7396_v26 }
 0x574   : > { %v9263_v43 = vsel %vm7459_vm3, 1.0, %v18723_v11  ;;  %v7523_v24 = vsel %vm7459_vm3, 0.0, %v7443_v49  ;;  %v7633_v30 = vadd.f32 %v9277_v55, %v7505_v39  ;;  %v7665_v12 = vsub.f32 %v19901_v28, %v7649_v40  ;;  %v19907_v28 = vld [vmem:[#allocation44_spill] sm:$0xff] }
 0x575   : > { %vm7586_vm13 = vcmp.ge.f32.partialorder %v7570_v8, 1.0  ;;  %v7507_v9 = vadd.f32 %v9263_v43, %v9247_v0  ;;  %v7539_v32 = vsub.f32 %v19902_v38, %v7523_v24  ;;  %vm7460_vm6 = vcmp.ge.f32.partialorder %v7444_v45, 1.0  ;;  %v19906_v43 = vld [vmem:[#allocation75_spill] sm:$0xff] }
 0x576   : > { %v9278_v29 = vsel %vm7586_vm13, 1.0, %v18723_v11  ;;  %v7650_v13 = vsel %vm7586_vm13, 0.0, %v7570_v8  ;;  %v7681_v46 = vmul.f32 0.5, %v7665_v12  ;;  %v9264_v58 = vsel %vm7460_vm6, 1.0, %v18723_v11 }
 0x577   : > { %v7634_v62 = vadd.f32 %v9278_v29, %v7506_v53  ;;  %v7666_v52 = vsub.f32 %v19903_v33, %v7650_v13  ;;  %v7555_v3 = vmul.f32 0.5, %v7539_v32  ;;  %v7524_v2 = vsel %vm7460_vm6, 0.0, %v7444_v45 }
 0x578   : > { %v7697_v39 = vadd.f32 %v7681_v46, %v7649_v40  ;;  %v7508_v37 = vadd.f32 %v9264_v58, %v9248_v57  ;;  %v7540_v44 = vsub.f32 %v19904_v60, %v7524_v2 }
 0x579   : > { %v7682_v63 = vmul.f32 0.5, %v7666_v52  ;;  %v7571_v54 = vadd.f32 %v7555_v3, %v7523_v24  ;;  %v19908_v3 = vld [vmem:[#allocation38_spill] sm:$0xff] }
 0x57a   : > { %vm7713_vm14 = vcmp.ge.f32.partialorder %v7697_v39, 1.0  ;;  %v7556_v19 = vmul.f32 0.5, %v7540_v44 }
 0x57b   : > { %v7698_v18 = vadd.f32 %v7682_v63, %v7650_v13  ;;  %v9293_v53 = vsel %vm7713_vm14, 1.0, %v18723_v11  ;;  %v7777_v26 = vsel %vm7713_vm14, 0.0, %v7697_v39  ;;  %vm7587_vm10 = vcmp.ge.f32.partialorder %v7571_v54, 1.0 }
 0x57c   : > { %v7761_v22 = vadd.f32 %v9293_v53, %v7633_v30  ;;  %v7793_v49 = vsub.f32 %v19905_v51, %v7777_v26  ;;  %v9279_v20 = vsel %vm7587_vm10, 1.0, %v18723_v11  ;;  %v7651_v41 = vsel %vm7587_vm10, 0.0, %v7571_v54 }
 0x57d   : > { %vm7714_vm5 = vcmp.ge.f32.partialorder %v7698_v18, 1.0  ;;  %v7635_v8 = vadd.f32 %v9279_v20, %v7507_v9  ;;  %v7667_v12 = vsub.f32 %v19907_v28, %v7651_v41  ;;  %v7572_v29 = vadd.f32 %v7556_v19, %v7524_v2 }
 0x57e   : > { %v9294_v17 = vsel %vm7714_vm5, 1.0, %v18723_v11  ;;  %v7778_v0 = vsel %vm7714_vm5, 0.0, %v7698_v18  ;;  %v7809_v55 = vmul.f32 0.5, %v7793_v49  ;;  %v19909_v18 = vld [vmem:[#allocation177_spill] sm:$0xff] }
 0x57f   : > { %v7762_v40 = vadd.f32 %v9294_v17, %v7634_v62  ;;  %v7794_v24 = vsub.f32 %v19906_v43, %v7778_v0  ;;  %v7683_v30 = vmul.f32 0.5, %v7667_v12  ;;  %vm7588_vm9 = vcmp.ge.f32.partialorder %v7572_v29, 1.0 }
 0x580   : > { %v7825_v13 = vadd.f32 %v7809_v55, %v7777_v26  ;;  %v9280_v46 = vsel %vm7588_vm9, 1.0, %v18723_v11  ;;  %v7652_v33 = vsel %vm7588_vm9, 0.0, %v7572_v29 }
 0x581   : > { %v7810_v38 = vmul.f32 0.5, %v7794_v24  ;;  %v7699_v45 = vadd.f32 %v7683_v30, %v7651_v41  ;;  %v7636_v52 = vadd.f32 %v9280_v46, %v7508_v37  ;;  %v7668_v9 = vsub.f32 %v19908_v3, %v7652_v33 }
 0x582   : > { %vm7841_vm4 = vcmp.ge.f32.partialorder %v7825_v13, 1.0 }
 0x583   : > { %v7826_v32 = vadd.f32 %v7810_v38, %v7778_v0  ;;  %vm7715_vm7 = vcmp.ge.f32.partialorder %v7699_v45, 1.0  ;;  %v9309_v62 = vsel %vm7841_vm4, 1.0, %v18723_v11  ;;  %v7905_v57 = vsel %vm7841_vm4, 0.0, %v7825_v13 }
 0x584   : > { %v9295_v58 = vsel %vm7715_vm7, 1.0, %v18723_v11  ;;  %v7779_v2 = vsel %vm7715_vm7, 0.0, %v7699_v45  ;;  %v7684_v53 = vmul.f32 0.5, %v7668_v9  ;;  %v7889_v26 = vadd.f32 %v9309_v62, %v7761_v22  ;;  %v19910_v22 = vld [vmem:[#allocation76_spill] sm:$0xff] }
 0x585   : > { %vm7842_vm12 = vcmp.ge.f32.partialorder %v7826_v32, 1.0  ;;  %v7763_v44 = vadd.f32 %v9295_v58, %v7635_v8  ;;  %v7795_v37 = vsub.f32 %v19909_v18, %v7779_v2  ;;  %v7921_v19 = vsub.f32 %v16581_v47, %v7905_v57 }
 0x586   : > { %v9310_v39 = vsel %vm7842_vm12, 1.0, %v18723_v11  ;;  %v7906_v63 = vsel %vm7842_vm12, 0.0, %v7826_v32  ;;  %v7700_v20 = vadd.f32 %v7684_v53, %v7652_v33  ;;  %vm8457_vm7 = vcmask 130048  }
 0x587   : > { %v7890_v54 = vadd.f32 %v9310_v39, %v7762_v40  ;;  %v7922_v60 = vsub.f32 %v16584_v23, %v7906_v63  ;;  %v7811_v49 = vmul.f32 0.5, %v7795_v37  ;;  %v7937_v17 = vmul.f32 0.5, %v7921_v19 }
 0x588   : > { %vm7716_vm8 = vcmp.ge.f32.partialorder %v7700_v20, 1.0 }
 0x589   : > { %v7938_v51 = vmul.f32 0.5, %v7922_v60  ;;  %v7827_v41 = vadd.f32 %v7811_v49, %v7779_v2  ;;  %v7953_v55 = vadd.f32 %v7937_v17, %v7905_v57  ;;  %v9296_v40 = vsel %vm7716_vm8, 1.0, %v18723_v11 }
 0x58a   : > { %v7780_v43 = vsel %vm7716_vm8, 0.0, %v7700_v20  ;;  %v7764_v24 = vadd.f32 %v9296_v40, %v7636_v52 }
 0x58b   : > { %v7954_v0 = vadd.f32 %v7938_v51, %v7906_v63  ;;  %vm7843_vm0 = vcmp.ge.f32.partialorder %v7827_v41, 1.0  ;;  %v7796_v28 = vsub.f32 %v19910_v22, %v7780_v43  ;;  %vm7969_vm2 = vcmp.ge.f32.partialorder %v7953_v55, 1.0 }
 0x58c   : > { %v9311_v29 = vsel %vm7843_vm0, 1.0, %v18723_v11  ;;  %v9325_v38 = vsel %vm7969_vm2, 1.0, %v18723_v11  ;;  %v8033_v30 = vsel %vm7969_vm2, 0.0, %v7953_v55  ;;  %v7907_v52 = vsel %vm7843_vm0, 0.0, %v7827_v41 }
 0x58d   : > { %vm7970_vm15 = vcmp.ge.f32.partialorder %v7954_v0, 1.0  ;;  %v7812_v13 = vmul.f32 0.5, %v7796_v28  ;;  %v7891_v32 = vadd.f32 %v9311_v29, %v7763_v44  ;;  %v8017_v46 = vadd.f32 %v9325_v38, %v7889_v26 }
 0x58e   : > { %v9326_v23 = vsel %vm7970_vm15, 1.0, %v18723_v11  ;;  %v8034_v8 = vsel %vm7970_vm15, 0.0, %v7954_v0  ;;  %v8049_v33 = vsub.f32 %v16843_v10, %v8033_v30  ;;  %v7923_v9 = vsub.f32 %v16609_v25, %v7907_v52 }
 0x58f   : > { %v8018_v47 = vadd.f32 %v9326_v23, %v7890_v54  ;;  %v8050_v12 = vsub.f32 %v16852_v27, %v8034_v8  ;;  %v7828_v3 = vadd.f32 %v7812_v13, %v7780_v43 }
 0x590   : > { %v8065_v27 = vmul.f32 0.5, %v8049_v33  ;;  %v7939_v57 = vmul.f32 0.5, %v7923_v9 }
 0x591   : > { %v8066_v45 = vmul.f32 0.5, %v8050_v12  ;;  %vm7844_vm11 = vcmp.ge.f32.partialorder %v7828_v3, 1.0 }
 0x592   : > { %v9312_v39 = vsel %vm7844_vm11, 1.0, %v18723_v11  ;;  %v7908_v63 = vsel %vm7844_vm11, 0.0, %v7828_v3  ;;  %v8081_v58 = vadd.f32 %v8065_v27, %v8033_v30  ;;  %v7955_v25 = vadd.f32 %v7939_v57, %v7907_v52 }
 0x593   : > { %v8082_v62 = vadd.f32 %v8066_v45, %v8034_v8  ;;  %v7892_v60 = vadd.f32 %v9312_v39, %v7764_v24  ;;  %v7924_v10 = vsub.f32 %v16612_v1, %v7908_v63 }
 0x594   : > { %vm8097_vm3 = vcmp.ge.f32.partialorder %v8081_v58, 1.0  ;;  %vm7971_vm13 = vcmp.ge.f32.partialorder %v7955_v25, 1.0 }
 0x595   : > { %vm8098_vm1 = vcmp.ge.f32.partialorder %v8082_v62, 1.0  ;;  %v7940_v37 = vmul.f32 0.5, %v7924_v10  ;;  %v9341_v53 = vsel %vm8097_vm3, 1.0, %v18723_v11  ;;  %v8161_v26 = vsel %vm8097_vm3, 0.0, %v8081_v58 }
 0x596   : > { %v9342_v2 = vsel %vm8098_vm1, 1.0, %v18723_v11  ;;  %v8162_v54 = vsel %vm8098_vm1, 0.0, %v8082_v62  ;;  %v8145_v51 = vadd.f32 %v9341_v53, %v8017_v46  ;;  %v8177_v49 = vsub.f32 %v16985_v7, %v8161_v26 }
 0x597   : > { %v8146_v44 = vadd.f32 %v9342_v2, %v8018_v47  ;;  %v8178_v18 = vsub.f32 %v16987_v6, %v8162_v54  ;;  %v7956_v20 = vadd.f32 %v7940_v37, %v7908_v63  ;;  %v9327_v17 = vsel %vm7971_vm13, 1.0, %v18723_v11 }
 0x598   : > { %v8035_v0 = vsel %vm7971_vm13, 0.0, %v7955_v25  ;;  %v8193_v1 = vmul.f32 0.5, %v8177_v49  ;;  %v8019_v55 = vadd.f32 %v9327_v17, %v7891_v32 }
 0x599   : > { %v8194_v19 = vmul.f32 0.5, %v8178_v18  ;;  %v8051_v6 = vsub.f32 %v16858_v42, %v8035_v0  ;;  %vm7972_vm6 = vcmp.ge.f32.partialorder %v7956_v20, 1.0 }
 0x59a   : > { %v9328_v40 = vsel %vm7972_vm6, 1.0, %v18723_v11  ;;  %v8036_v43 = vsel %vm7972_vm6, 0.0, %v7956_v20  ;;  %v8209_v23 = vadd.f32 %v8193_v1, %v8161_v26 }
 0x59b   : > { %v8210_v41 = vadd.f32 %v8194_v19, %v8162_v54  ;;  %v8020_v24 = vadd.f32 %v9328_v40, %v7892_v60  ;;  %v8052_v7 = vsub.f32 %v16861_v14, %v8036_v43  ;;  %v8067_v22 = vmul.f32 0.5, %v8051_v6 }
 0x59c   : > { %vm8225_vm10 = vcmp.ge.f32.partialorder %v8209_v23, 1.0 }
 0x59d   : > { %vm8226_vm14 = vcmp.ge.f32.partialorder %v8210_v41, 1.0  ;;  %v8068_v47 = vmul.f32 0.5, %v8052_v7  ;;  %v9357_v12 = vsel %vm8225_vm10, 1.0, %v18723_v11  ;;  %v8083_v29 = vadd.f32 %v8067_v22, %v8035_v0 }
 0x59e   : > { %v9358_v8 = vsel %vm8226_vm14, 1.0, %v18723_v11  ;;  %v8273_v13 = vadd.f32 %v9357_v12, %v8145_v51 }
 0x59f   : > { %v8274_v28 = vadd.f32 %v9358_v8, %v8146_v44  ;;  %v8084_v42 = vadd.f32 %v8068_v47, %v8036_v43  ;;  %vm8099_vm5 = vcmp.ge.f32.partialorder %v8083_v29, 1.0 }
 0x5a0   : > { %9953 = vmatprep.mubr.f32.mxu1 %v8273_v13  ;;  %v9343_v38 = vsel %vm8099_vm5, 1.0, %v18723_v11  ;;  %v8163_v30 = vsel %vm8099_vm5, 0.0, %v8083_v29 }
 0x5a1   : > { %9954 = vmatmul.mubr.f32.vlgmr.msra.gmra.mrb[24].mxu1 %v8274_v28  ;;  %v8147_v32 = vadd.f32 %v9343_v38, %v8019_v55  ;;  %v8179_v45 = vsub.f32 %v16997_v4, %v8163_v30  ;;  %vm8100_vm9 = vcmp.ge.f32.partialorder %v8084_v42, 1.0 }
 0x5a2   : > { %v9344_v14 = vsel %vm8100_vm9, 1.0, %v18723_v11  ;;  %v8164_v46 = vsel %vm8100_vm9, 0.0, %v8084_v42 }
 0x5a3   : > { %v8195_v33 = vmul.f32 0.5, %v8179_v45  ;;  %v8148_v52 = vadd.f32 %v9344_v14, %v8020_v24  ;;  %v8180_v3 = vsub.f32 %v17002_v31, %v8164_v46 }
 0x5a5   : > { %v8211_v9 = vadd.f32 %v8195_v33, %v8163_v30  ;;  %v8196_v62 = vmul.f32 0.5, %v8180_v3 }
 0x5a7   : > { %vm8227_vm4 = vcmp.ge.f32.partialorder %v8211_v9, 1.0  ;;  %v8212_v27 = vadd.f32 %v8196_v62, %v8164_v46 }
 0x5a8   : > { %v9359_v57 = vsel %vm8227_vm4, 1.0, %v18723_v11 }
 0x5a9   : > { %v8275_v39 = vadd.f32 %v9359_v57, %v8147_v32  ;;  %vm8228_vm12 = vcmp.ge.f32.partialorder %v8212_v27, 1.0 }
 0x5aa   : > { %v9360_v63 = vsel %vm8228_vm12, 1.0, %v18723_v11  ;;  %v9373_v11 = vld [vmem:[%s17271_s6] ss:$0 sm:$0xff] }
 0x5ab   : > { %9956 = vmatprep.mubr.f32.mxu1 %v8275_v39  ;;  %v8276_v4 = vadd.f32 %v9360_v63, %v8148_v52 }
 0x5ad   : > { %9957 = vmatmul.mubr.f32.gmra.mrb[26].mxu1 %v8276_v4 }
 0x5ae   : > { %9959 = vmatprep.mubr.f32.mxu1 %v17045_v5 }
 0x5b1   : > { %9960 = vmatmul.mubr.f32.gmra.mrb[28].mxu1 %v17053_v15 }
 0x5b2   : > { %9962 = vmatprep.mubr.f32.mxu1 %v17070_v21 }
 0x5b5   : > { %9963 = vmatmul.mubr.f32.gmra.mrb[30].mxu1 %v17077_v35 }
 0x5b6   : > { %9965 = vmatprep.mubr.f32.mxu1 %v17086_v59 }
 0x5b9   : > { %9966 = vmatmul.mubr.f32.gmra.mrb[32].mxu1 %v17093_v56 }
 0x5ba   : > { %9968 = vmatprep.mubr.f32.mxu1 %v17102_v48 }
 0x5bd   : > { %9969 = vmatmul.mubr.f32.gmra.mrb[34].mxu1 %v17109_v36 }
 0x5be   : > { %9971 = vmatprep.mubr.f32.mxu1 %v17118_v61 }
 0x5c1   : > { %9972 = vmatmul.mubr.f32.gmra.mrb[36].mxu1 %v17126_v34 }
 0x5c2   : > { %9974 = vmatprep.mubr.f32.mxu1 %v17134_v16 }
 0x5c5   : > { %9975 = vmatmul.mubr.f32.gmra.mrb[38].mxu1 %v17140_v50 }
 0x674   : > { %v9955_v31 = vpop.f32.mrb[24].mxu1 }
 0x675   : > { %v8384_v5 = vadd.f32 %v9955_v31, %v9373_v11  ;;  %v8378_v15 = vpop.f32.mrb[25].mxu1 }
 0x676   : > { %v8379_v21 = vadd.f32 %v9373_v11, %v8378_v15 }
 0x677   : > { %8459 = vst.msk [vmem:[%s17228_s9 + $0x8] sm:$0xff] %vm8457_vm7, %v8384_v5 }
 0x678   : > { %8458 = vst.msk [vmem:[%s17228_s9] sm:$0xff] %vm8457_vm7, %v8379_v21 }
 0x680   : > { %v9958_v35 = vpop.f32.mrb[26].mxu1 }
 0x681   : > { %v8394_v59 = vadd.f32 %v9958_v35, %v9373_v11  ;;  %v8388_v56 = vpop.f32.mrb[27].mxu1 }
 0x682   : > { %v8389_v48 = vadd.f32 %v9373_v11, %v8388_v56 }
 0x683   : > { %8461 = vst.msk [vmem:[%s17228_s9 + $0x18] sm:$0xff] %vm8457_vm7, %v8394_v59 }
 0x684   : > { %8460 = vst.msk [vmem:[%s17228_s9 + $0x10] sm:$0xff] %vm8457_vm7, %v8389_v48  ;;  %v9961_v36 = vpop.f32.mrb[28].mxu1 }
 0x685   : > { %v8404_v61 = vadd.f32 %v9961_v36, %v9373_v11  ;;  %v8398_v34 = vpop.f32.mrb[29].mxu1 }
 0x686   : > { %v8399_v16 = vadd.f32 %v9373_v11, %v8398_v34 }
 0x687   : > { %8463 = vst.msk [vmem:[%s17228_s9 + $0x28] sm:$0xff] %vm8457_vm7, %v8404_v61 }
 0x688   : > { %8462 = vst.msk [vmem:[%s17228_s9 + $0x20] sm:$0xff] %vm8457_vm7, %v8399_v16  ;;  %v9964_v50 = vpop.f32.mrb[30].mxu1 }
 0x689   : > { %v8414_v58 = vadd.f32 %v9964_v50, %v9373_v11  ;;  %v8408_v2 = vpop.f32.mrb[31].mxu1 }
 0x68a   : > { %v8409_v54 = vadd.f32 %v9373_v11, %v8408_v2 }
 0x68b   : > { %8465 = vst.msk [vmem:[%s17228_s9 + $0x38] sm:$0xff] %vm8457_vm7, %v8414_v58 }
 0x68c   : > { %8464 = vst.msk [vmem:[%s17228_s9 + $0x30] sm:$0xff] %vm8457_vm7, %v8409_v54  ;;  %v9967_v60 = vpop.f32.mrb[32].mxu1 }
 0x68d   : > { %v8424_v10 = vadd.f32 %v9967_v60, %v9373_v11  ;;  %v8418_v44 = vpop.f32.mrb[33].mxu1 }
 0x68e   : > { %v8419_v18 = vadd.f32 %v9373_v11, %v8418_v44 }
 0x68f   : > { %8467 = vst.msk [vmem:[%s17228_s9 + $0x48] sm:$0xff] %vm8457_vm7, %v8424_v10 }
 0x690   : > { %8466 = vst.msk [vmem:[%s17228_s9 + $0x40] sm:$0xff] %vm8457_vm7, %v8419_v18  ;;  %v9970_v25 = vpop.f32.mrb[34].mxu1 }
 0x691   : > { %v8434_v37 = vadd.f32 %v9970_v25, %v9373_v11  ;;  %v8428_v53 = vpop.f32.mrb[35].mxu1 }
 0x692   : > { %v8429_v26 = vadd.f32 %v9373_v11, %v8428_v53 }
 0x693   : > { %8469 = vst.msk [vmem:[%s17228_s9 + $0x58] sm:$0xff] %vm8457_vm7, %v8434_v37 }
 0x694   : > { %8468 = vst.msk [vmem:[%s17228_s9 + $0x50] sm:$0xff] %vm8457_vm7, %v8429_v26  ;;  %v9973_v19 = vpop.f32.mrb[36].mxu1 }
 0x695   : > { %v8444_v51 = vadd.f32 %v9973_v19, %v9373_v11  ;;  %v8438_v49 = vpop.f32.mrb[37].mxu1 }
 0x696   : > { %v8439_v20 = vadd.f32 %v9373_v11, %v8438_v49 }
 0x697   : > { %8471 = vst.msk [vmem:[%s17228_s9 + $0x68] sm:$0xff] %vm8457_vm7, %v8444_v51 }
 0x698   : > { %8470 = vst.msk [vmem:[%s17228_s9 + $0x60] sm:$0xff] %vm8457_vm7, %v8439_v20  ;;  %v9976_v17 = vpop.f32.mrb[38].mxu1 }
 0x699   : > { %v8454_v0 = vadd.f32 %v9976_v17, %v9373_v11  ;;  %v8448_v41 = vpop.f32.mrb[39].mxu1 }
 0x69a   : > { %v8449_v1 = vadd.f32 %v9373_v11, %v8448_v41 }
 0x69b   : > { %8473 = vst.msk [vmem:[%s17228_s9 + $0x78] sm:$0xff] %vm8457_vm7, %v8454_v0 }
 0x69c   : > { %8472 = vst.msk [vmem:[%s17228_s9 + $0x70] sm:$0xff] %vm8457_vm7, %v8449_v1 }
 0x69d PF: > { %s17_s24 = sadd.s32 1, %s10723_s24  }
 0x69e   : > { %p14_p4 = scmp.ge.s32.totalorder %s17_s24, 4  }
 0x6a0   :  { %16 = sbr.rel (!%p14_p4) target bundleno = 1 (0x1), region = 78 }

</bundles_post_ra>
